<compile_context>
chip_gen: v5e
topology: v5e:2x2
jax: 0.10.0
libtpu: 0.0.40
codegen_flags: <defaults>
</compile_context>

<pallas_src>
import math
import functools

import jax
import jax.numpy as jnp
import numpy as np
from jax.experimental import pallas as pl
from jax.experimental.pallas import tpu as pltpu


# ----------------------------------------------------------------------------
# Pallas kernel: fused posenc + 3-layer MLP
#   act = [x | sin(x*2^f) f=0..nf-1 | cos(x*2^f) f=0..nf-1]   (lane concat)
#   h1 = act @ W1p + b1 ; relu      (single K=Din*(1+2nf) matmul)
#   h2 = h1 @ W2 + b2 ; relu
#   o  = h2 @ W3 + b3
# ----------------------------------------------------------------------------
def _shader_mlp_kernel(x_ref, w1_ref, b1_ref, w2_ref, b2_ref, w3_ref, b3_ref,
                       o_ref, *, n_freq):
    x = x_ref[...]                                          # (tile, Din) f32

    if n_freq > 0:
        half_pi = np.float32(np.pi / 2.0)
        scaled = [x * np.float32(2.0 ** f) for f in range(n_freq)]      # VPU
        # cos(t) == sin(t + pi/2): one lane-packed EUP sin produces every sin AND cos
        # feature at once (1 transcendental vreg push per 8 rows instead of 4 in v2).
        pts = jnp.concatenate(scaled + [p + half_pi for p in scaled], axis=-1)
        act = jnp.concatenate([x, jnp.sin(pts)], axis=-1)   # (tile, Din*(1+2nf)) f32
    else:
        act = x

    # Layer 1: single fused matmul against the pre-packed W1.
    h1 = jnp.dot(act.astype(jnp.bfloat16), w1_ref[...],
                 preferred_element_type=jnp.float32)
    h1 = jnp.maximum(h1 + b1_ref[...], 0.0)                 # f32 bias + ReLU

    # Layer 2
    h2 = jnp.dot(h1.astype(jnp.bfloat16), w2_ref[...],
                 preferred_element_type=jnp.float32)
    h2 = jnp.maximum(h2 + b2_ref[...], 0.0)

    # Layer 3 (3-wide output; masked 3-lane store is tiny vs the input stream)
    out = jnp.dot(h2.astype(jnp.bfloat16), w3_ref[...],
                  preferred_element_type=jnp.float32)
    o_ref[...] = (out + b3_ref[...]).astype(o_ref.dtype)


def mlp_pallas(x, w1, b1, w2, b2, w3, b3, *, n_freq, tile_m=4096):
    """x: (N, Din) float32, w1 pre-packed (Din*(1+2*n_freq), H) bf16 -> (N, 3) f32."""
    n, din = x.shape
    k1, h = w1.shape
    c_out = w3.shape[1]
    expected_k1 = din * (1 + 2 * n_freq) if n_freq > 0 else din
    assert k1 == expected_k1, (k1, expected_k1)

    # Re-derive the tile from N: number of grid steps fixed by tile_m, tile rounded to a
    # multiple of 8, so padded rows are at most 7 per grid step (no nearly-empty tiles).
    num_tiles = int(pl.cdiv(n, tile_m))
    tile = int(pl.cdiv(n, num_tiles * 8)) * 8
    n_pad = num_tiles * tile
    if n_pad != n:
        x = jnp.pad(x, ((0, n_pad - n), (0, 0)))

    kernel = functools.partial(_shader_mlp_kernel, n_freq=n_freq)

    out = pl.pallas_call(
        kernel,
        out_shape=jax.ShapeDtypeStruct((n_pad, c_out), jnp.float32),
        grid_spec=pltpu.PrefetchScalarGridSpec(
            num_scalar_prefetch=0,
            grid=(num_tiles,),
            in_specs=[
                pl.BlockSpec((tile, din), lambda i: (i, 0)),    # x tile (f32)
                pl.BlockSpec((k1, h), lambda i: (0, 0)),        # packed W1 (bf16), grid-invariant
                pl.BlockSpec((1, h), lambda i: (0, 0)),         # b1 (f32)
                pl.BlockSpec((h, h), lambda i: (0, 0)),         # W2 (bf16)
                pl.BlockSpec((1, h), lambda i: (0, 0)),         # b2 (f32)
                pl.BlockSpec((h, c_out), lambda i: (0, 0)),     # W3 (bf16)
                pl.BlockSpec((1, c_out), lambda i: (0, 0)),     # b3 (f32)
            ],
            out_specs=pl.BlockSpec((tile, c_out), lambda i: (i, 0)),
        ),
        compiler_params=pltpu.CompilerParams(
            # Megacore-shard the row axis on v7x; explicit VMEM limit so tile_m=4096
            # compiles on v5e (16 MiB scoped default) and stays within v7x's 64 MiB/TC.
            dimension_semantics=("parallel",),
            vmem_limit_bytes=48 * 1024 * 1024,
        ),
    )(x, w1, b1, w2, b2, w3, b3)

    return out[:n]


# ----------------------------------------------------------------------------
# W1 packing: reorder + concatenate the rows of W1 so layer 1 is one fused matmul
# against act = [x | sin(x*2^f) f-major | cos(x*2^f) f-major], x = [feat, vd].
# Original concat layout of the torch MLP input:
#   [ feat (F) | vd (3) | sin(feat) d-major/f-minor (pf*F) | cos(feat) (pf*F)
#     | sin(vd) (pv*3) | cos(vd) (pv*3) ]
# ----------------------------------------------------------------------------
def pack_first_layer_weights(w1, rgb_feature_dim, posenc_feat, posenc_viewdirs):
    F = rgb_feature_dim
    pf, pv = posenc_feat, posenc_viewdirs
    din = F + 3
    h = w1.shape[1]
    n_freq = max(pf, pv)

    w_id = w1[:din]                                      # identity rows (Din, H)
    if n_freq == 0:
        return w_id, 0

    base_fs = din                    # sin(feat) rows
    base_fc = din + pf * F           # cos(feat) rows
    base_vs = din + 2 * pf * F       # sin(vd) rows
    base_vc = base_vs + pv * 3       # cos(vd) rows

    zeros_f = jnp.zeros((F, h), w1.dtype)
    zeros_v = jnp.zeros((3, h), w1.dtype)

    sin_blocks, cos_blocks = [], []
    for f in range(n_freq):
        if f < pf:
            idx = np.arange(F) * pf + f                  # static gather indices
            fs, fc = w1[base_fs + idx], w1[base_fc + idx]
        else:
            fs, fc = zeros_f, zeros_f
        if f < pv:
            idxv = np.arange(3) * pv + f
            vs, vc = w1[base_vs + idxv], w1[base_vc + idxv]
        else:
            vs, vc = zeros_v, zeros_v
        sin_blocks.append(jnp.concatenate([fs, vs], axis=0))   # (Din, H)
        cos_blocks.append(jnp.concatenate([fc, vc], axis=0))

    w1_packed = jnp.concatenate([w_id] + sin_blocks + cos_blocks, axis=0)
    return w1_packed, n_freq        # (Din*(1+2*n_freq), H)


def prepare_shader_params(params, rgb_feature_dim, *, posenc_feat=2, posenc_viewdirs=2):
    """One-time weight preprocessing (row packing + bf16 casts), kept OUT of the
    per-batch jitted forward."""
    w1, b1, w2, b2, w3, b3 = params
    w1_packed, n_freq = pack_first_layer_weights(
        w1, rgb_feature_dim, posenc_feat, posenc_viewdirs)
    packed = (
        w1_packed.astype(jnp.bfloat16),
        b1.astype(jnp.float32),
        w2.astype(jnp.bfloat16),
        b2.astype(jnp.float32),
        w3.astype(jnp.bfloat16),
        b3.astype(jnp.float32),
    )
    return packed, n_freq


# ----------------------------------------------------------------------------
# Module glue (parameter init, forward, pure-JAX reference)
# ----------------------------------------------------------------------------
def positional_encoding(x, freqs):
    freq_bands = (2.0 ** jnp.arange(freqs)).astype(x.dtype)
    pts = (x[..., None] * freq_bands).reshape(x.shape[:-1] + (x.shape[-1] * freqs,))
    return jnp.concatenate([jnp.sin(pts), jnp.cos(pts)], axis=-1)


def init_shader_params(key, rgb_feature_dim, posenc_viewdirs=2, posenc_feat=2, dim_latent=128):
    """Re-implementation of the torch init (default Linear init, weights scaled by
    10**(1/3), last bias zeroed)."""
    in_mlpC = (2 * posenc_viewdirs + 1) * 3 + (2 * posenc_feat + 1) * rgb_feature_dim
    dims = [(in_mlpC, dim_latent), (dim_latent, dim_latent), (dim_latent, 3)]
    scale = math.pow(10.0, 1.0 / 3.0)
    params = []
    for i, (fan_in, fan_out) in enumerate(dims):
        key, kw, kb = jax.random.split(key, 3)
        bound = 1.0 / math.sqrt(fan_in)
        w = jax.random.uniform(kw, (fan_in, fan_out), jnp.float32, -bound, bound) * scale
        if i == len(dims) - 1:
            b = jnp.zeros((1, fan_out), jnp.float32)
        else:
            b = jax.random.uniform(kb, (1, fan_out), jnp.float32, -bound, bound)
        params.extend([w, b])
    return params, in_mlpC


@functools.partial(jax.jit, static_argnames=("n_freq", "tile_m"))
def shader_tensorf_forward(packed_params, coords_xyz, viewdirs, feat_rgb,
                           n_freq=2, tile_m=4096):
    # coords_xyz accepted for API parity with the torch module; unused there too.
    del coords_xyz
    w1, b1, w2, b2, w3, b3 = packed_params
    B, R, F = feat_rgb.shape
    n = B * R

    # Kernel reads only the 30-channel raw input; posenc is fused inside the kernel.
    # Kept f32 (not bf16) so the sin/cos arguments keep full mantissa.
    vd = jnp.broadcast_to(viewdirs.reshape(B, 1, 3), (B, R, 3))
    x = jnp.concatenate([feat_rgb, vd], axis=-1).reshape(n, F + 3).astype(jnp.float32)

    rgb = mlp_pallas(x, w1, b1, w2, b2, w3, b3, n_freq=n_freq, tile_m=tile_m)
    return rgb.reshape(B, R, 3)


def shader_tensorf_reference(params, coords_xyz, viewdirs, feat_rgb,
                             posenc_viewdirs=2, posenc_feat=2):
    """Pure-JAX f32 reference (mirrors the torch forward exactly)."""
    del coords_xyz
    w1, b1, w2, b2, w3, b3 = params
    B, R, _ = feat_rgb.shape
    vd = jnp.broadcast_to(viewdirs.reshape(B, 1, 3), (B, R, 3))
    indata = [feat_rgb, vd]
    if posenc_feat > 0:
        indata.append(positional_encoding(feat_rgb, posenc_feat))
    if posenc_viewdirs > 0:
        indata.append(positional_encoding(vd, posenc_viewdirs))
    x = jnp.concatenate(indata, axis=-1)
    h = jnp.maximum(x @ w1 + b1, 0.0)
    h = jnp.maximum(h @ w2 + b2, 0.0)
    return h @ w3 + b3


if __name__ == "__main__":
    rgb_feature_dim = 27
    dim_latent = 128

    # ---- Test 1: default config (pf = pv = 2), small tile -> multi-step grid ----
    B, R = 2, 520                     # N = 1040 rows
    posenc_viewdirs, posenc_feat = 2, 2

    key = jax.random.PRNGKey(0)
    kp, kx, kv, kf = jax.random.split(key, 4)

    params, in_mlpC = init_shader_params(
        kp, rgb_feature_dim, posenc_viewdirs, posenc_feat, dim_latent)
    packed, n_freq = prepare_shader_params(
        params, rgb_feature_dim, posenc_feat=posenc_feat, posenc_viewdirs=posenc_viewdirs)

    coords_xyz = jax.random.normal(kx, (B, R, 3), jnp.float32)
    viewdirs = jax.random.normal(kv, (B, 3), jnp.float32)
    viewdirs = viewdirs / jnp.linalg.norm(viewdirs, axis=-1, keepdims=True)
    feat_rgb = jax.random.normal(kf, (B, R, rgb_feature_dim), jnp.float32)

    # Small tile in the test so the grid has several steps; production default is 4096.
    out = shader_tensorf_forward(packed, coords_xyz, viewdirs, feat_rgb,
                                 n_freq=n_freq, tile_m=256)
    out = jax.block_until_ready(out)
    ref = shader_tensorf_reference(params, coords_xyz, viewdirs, feat_rgb,
                                   posenc_viewdirs=posenc_viewdirs,
                                   posenc_feat=posenc_feat)
    assert out.shape == (B, R, 3), out.shape
    # bf16 matmul inputs with f32 accumulation -> loosened tolerance vs f32 reference.
    np.testing.assert_allclose(np.asarray(out), np.asarray(ref), rtol=5e-2, atol=5e-2)

    # ---- Test 2: asymmetric posenc (pf != pv) -> exercises zero-padded frequency
    #      blocks in the W1 packing, plus the row-padding path (N not multiple of 8) ----
    pf2, pv2 = 3, 1
    kp2, kv2, kf2 = jax.random.split(jax.random.PRNGKey(1), 3)
    params2, _ = init_shader_params(kp2, rgb_feature_dim,
                                    posenc_viewdirs=pv2, posenc_feat=pf2,
                                    dim_latent=dim_latent)
    packed2, n_freq2 = prepare_shader_params(
        params2, rgb_feature_dim, posenc_feat=pf2, posenc_viewdirs=pv2)

    B2, R2 = 3, 33                    # N = 99 rows (padding path)
    viewdirs2 = jax.random.normal(kv2, (B2, 3), jnp.float32)
    viewdirs2 = viewdirs2 / jnp.linalg.norm(viewdirs2, axis=-1, keepdims=True)
    feat_rgb2 = jax.random.normal(kf2, (B2, R2, rgb_feature_dim), jnp.float32)

    out2 = shader_tensorf_forward(packed2, None, viewdirs2, feat_rgb2, n_freq=n_freq2)
    out2 = jax.block_until_ready(out2)
    ref2 = shader_tensorf_reference(params2, None, viewdirs2, feat_rgb2,
                                    posenc_viewdirs=pv2, posenc_feat=pf2)
    np.testing.assert_allclose(np.asarray(out2), np.asarray(ref2), rtol=5e-2, atol=5e-2)

    print("KERNEL_OK")
</pallas_src>

<mosaic_0001>
module attributes {stable_mosaic.version = 11 : i64} {
  func.func @_shader_mlp_kernel(%arg0: i32, %arg1: memref<208x30xf32, #tpu.memory_space<vmem>>, %arg2: memref<150x128xbf16, #tpu.memory_space<vmem>>, %arg3: memref<1x128xf32, #tpu.memory_space<vmem>>, %arg4: memref<128x128xbf16, #tpu.memory_space<vmem>>, %arg5: memref<1x128xf32, #tpu.memory_space<vmem>>, %arg6: memref<128x3xbf16, #tpu.memory_space<vmem>>, %arg7: memref<1x3xf32, #tpu.memory_space<vmem>>, %arg8: memref<208x3xf32, #tpu.memory_space<vmem>>) attributes {dimension_semantics = [#tpu.dimension_semantics<parallel>], iteration_bounds = array<i64: 5>, scalar_prefetch = 0 : i64, scratch_operands = 0 : i64, tpu.core_type = #tpu.core_type<tc>, window_params = [{transform_indices = @transform_0, window_bounds = array<i64: 208, 30>}, {pipeline_mode = #tpu.pipeline_mode<synchronous>, transform_indices = @transform_1, window_bounds = array<i64: 150, 128>}, {pipeline_mode = #tpu.pipeline_mode<synchronous>, transform_indices = @transform_2, window_bounds = array<i64: 1, 128>}, {pipeline_mode = #tpu.pipeline_mode<synchronous>, transform_indices = @transform_3, window_bounds = array<i64: 128, 128>}, {pipeline_mode = #tpu.pipeline_mode<synchronous>, transform_indices = @transform_4, window_bounds = array<i64: 1, 128>}, {pipeline_mode = #tpu.pipeline_mode<synchronous>, transform_indices = @transform_5, window_bounds = array<i64: 128, 3>}, {pipeline_mode = #tpu.pipeline_mode<synchronous>, transform_indices = @transform_6, window_bounds = array<i64: 1, 3>}, {transform_indices = @transform_7, window_bounds = array<i64: 208, 3>}]} {
    %c0 = arith.constant 0 : index
    %c0_0 = arith.constant 0 : index
    %0 = vector.load %arg1[%c0, %c0_0] : memref<208x30xf32, #tpu.memory_space<vmem>>, vector<208x30xf32>
    %cst = arith.constant 1.000000e+00 : f32
    %1 = vector.broadcast %cst : f32 to vector<208x30xf32>
    %2 = arith.mulf %0, %1 : vector<208x30xf32>
    %cst_1 = arith.constant 2.000000e+00 : f32
    %3 = vector.broadcast %cst_1 : f32 to vector<208x30xf32>
    %4 = arith.mulf %0, %3 : vector<208x30xf32>
    %cst_2 = arith.constant 1.57079637 : f32
    %5 = vector.broadcast %cst_2 : f32 to vector<208x30xf32>
    %6 = arith.addf %2, %5 : vector<208x30xf32>
    %cst_3 = arith.constant 1.57079637 : f32
    %7 = vector.broadcast %cst_3 : f32 to vector<208x30xf32>
    %8 = arith.addf %4, %7 : vector<208x30xf32>
    %9 = tpu.concatenate %2, %4, %6, %8 in 1 : vector<208x30xf32>, vector<208x30xf32>, vector<208x30xf32>, vector<208x30xf32> -> vector<208x120xf32>
    %10 = math.sin %9 : vector<208x120xf32>
    %11 = tpu.concatenate %0, %10 in 1 : vector<208x30xf32>, vector<208x120xf32> -> vector<208x150xf32>
    %12 = arith.truncf %11 : vector<208x150xf32> to vector<208x150xbf16>
    %c0_4 = arith.constant 0 : index
    %c0_5 = arith.constant 0 : index
    %13 = vector.load %arg2[%c0_4, %c0_5] : memref<150x128xbf16, #tpu.memory_space<vmem>>, vector<150x128xbf16>
    %cst_6 = arith.constant dense<0.000000e+00> : vector<208x128xf32>
    %14 = tpu.matmul %12, %13, %cst_6 {dimension_numbers = #tpu.dot_dimension_numbers<[1], [0], [0], [1], [0, 0, 1, 1], [], []>} : vector<208x150xbf16>, vector<150x128xbf16>, vector<208x128xf32> -> vector<208x128xf32>
    %c0_7 = arith.constant 0 : index
    %c0_8 = arith.constant 0 : index
    %15 = vector.load %arg3[%c0_7, %c0_8] : memref<1x128xf32, #tpu.memory_space<vmem>>, vector<1x128xf32>
    %16 = vector.broadcast %15 : vector<1x128xf32> to vector<208x128xf32>
    %17 = arith.addf %14, %16 : vector<208x128xf32>
    %cst_9 = arith.constant 0.000000e+00 : f32
    %18 = vector.broadcast %cst_9 : f32 to vector<208x128xf32>
    %19 = arith.maximumf %17, %18 : vector<208x128xf32>
    %20 = arith.truncf %19 : vector<208x128xf32> to vector<208x128xbf16>
    %c0_10 = arith.constant 0 : index
    %c0_11 = arith.constant 0 : index
    %21 = vector.load %arg4[%c0_10, %c0_11] : memref<128x128xbf16, #tpu.memory_space<vmem>>, vector<128x128xbf16>
    %cst_12 = arith.constant dense<0.000000e+00> : vector<208x128xf32>
    %22 = tpu.matmul %20, %21, %cst_12 {dimension_numbers = #tpu.dot_dimension_numbers<[1], [0], [0], [1], [0, 0, 1, 1], [], []>} : vector<208x128xbf16>, vector<128x128xbf16>, vector<208x128xf32> -> vector<208x128xf32>
    %c0_13 = arith.constant 0 : index
    %c0_14 = arith.constant 0 : index
    %23 = vector.load %arg5[%c0_13, %c0_14] : memref<1x128xf32, #tpu.memory_space<vmem>>, vector<1x128xf32>
    %24 = vector.broadcast %23 : vector<1x128xf32> to vector<208x128xf32>
    %25 = arith.addf %22, %24 : vector<208x128xf32>
    %cst_15 = arith.constant 0.000000e+00 : f32
    %26 = vector.broadcast %cst_15 : f32 to vector<208x128xf32>
    %27 = arith.maximumf %25, %26 : vector<208x128xf32>
    %28 = arith.truncf %27 : vector<208x128xf32> to vector<208x128xbf16>
    %c0_16 = arith.constant 0 : index
    %c0_17 = arith.constant 0 : index
    %29 = vector.load %arg6[%c0_16, %c0_17] : memref<128x3xbf16, #tpu.memory_space<vmem>>, vector<128x3xbf16>
    %cst_18 = arith.constant dense<0.000000e+00> : vector<208x3xf32>
    %30 = tpu.matmul %28, %29, %cst_18 {dimension_numbers = #tpu.dot_dimension_numbers<[1], [0], [0], [1], [0, 0, 1, 1], [], []>} : vector<208x128xbf16>, vector<128x3xbf16>, vector<208x3xf32> -> vector<208x3xf32>
    %c0_19 = arith.constant 0 : index
    %c0_20 = arith.constant 0 : index
    %31 = vector.load %arg7[%c0_19, %c0_20] : memref<1x3xf32, #tpu.memory_space<vmem>>, vector<1x3xf32>
    %32 = vector.broadcast %31 : vector<1x3xf32> to vector<208x3xf32>
    %33 = arith.addf %30, %32 : vector<208x3xf32>
    %c0_21 = arith.constant 0 : index
    %c0_22 = arith.constant 0 : index
    %34 = vector.load %arg8[%c0_21, %c0_22] : memref<208x3xf32, #tpu.memory_space<vmem>>, vector<208x3xf32>
    tpu.vector_store %arg8[%c0_21, %c0_22], %33 {strides = array<i32>} : memref<208x3xf32, #tpu.memory_space<vmem>>, vector<208x3xf32>,
    return
  }
  func.func @transform_0(%arg0: i32) -> (i32, i32) {
    %c0_i32 = arith.constant 0 : i32
    %c0_i32_0 = arith.constant 0 : i32
    return %arg0, %c0_i32 : i32, i32
  }
  func.func @transform_1(%arg0: i32) -> (i32, i32) {
    %c0_i32 = arith.constant 0 : i32
    %c0_i32_0 = arith.constant 0 : i32
    %c0_i32_1 = arith.constant 0 : i32
    return %c0_i32, %c0_i32_0 : i32, i32
  }
  func.func @transform_2(%arg0: i32) -> (i32, i32) {
    %c0_i32 = arith.constant 0 : i32
    %c0_i32_0 = arith.constant 0 : i32
    %c0_i32_1 = arith.constant 0 : i32
    return %c0_i32, %c0_i32_0 : i32, i32
  }
  func.func @transform_3(%arg0: i32) -> (i32, i32) {
    %c0_i32 = arith.constant 0 : i32
    %c0_i32_0 = arith.constant 0 : i32
    %c0_i32_1 = arith.constant 0 : i32
    return %c0_i32, %c0_i32_0 : i32, i32
  }
  func.func @transform_4(%arg0: i32) -> (i32, i32) {
    %c0_i32 = arith.constant 0 : i32
    %c0_i32_0 = arith.constant 0 : i32
    %c0_i32_1 = arith.constant 0 : i32
    return %c0_i32, %c0_i32_0 : i32, i32
  }
  func.func @transform_5(%arg0: i32) -> (i32, i32) {
    %c0_i32 = arith.constant 0 : i32
    %c0_i32_0 = arith.constant 0 : i32
    %c0_i32_1 = arith.constant 0 : i32
    return %c0_i32, %c0_i32_0 : i32, i32
  }
  func.func @transform_6(%arg0: i32) -> (i32, i32) {
    %c0_i32 = arith.constant 0 : i32
    %c0_i32_0 = arith.constant 0 : i32
    %c0_i32_1 = arith.constant 0 : i32
    return %c0_i32, %c0_i32_0 : i32, i32
  }
  func.func @transform_7(%arg0: i32) -> (i32, i32) {
    %c0_i32 = arith.constant 0 : i32
    %c0_i32_0 = arith.constant 0 : i32
    return %arg0, %c0_i32 : i32, i32
  }
}

</mosaic_0001>

<bundles_post_ra>
// kernel: shader_tensorf_forward.1
= control target key start
LH: loop header
LB: loop body
LE: loop exit
PB: predicated region body
PF: predicated region fallthrough
CT: control target
= control target key end

     0   :  { %s6099_s24 = smov 0   ;;  %s10870_s0 = inlined_call_operand.vmem [shape: f32[1040,30], index: 0, kind: input, shape index: {}]   ;;  %s10871_s1 = inlined_call_operand.vmem [shape: bf16[150,128], index: 1, kind: input, shape index: {}]   ;;  %s10872_s2 = inlined_call_operand.vmem [shape: f32[1,128], index: 2, kind: input, shape index: {}]   ;;  %s10873_s3 = inlined_call_operand.vmem [shape: bf16[128,128], index: 3, kind: input, shape index: {}]   ;;  %s10874_s4 = inlined_call_operand.vmem [shape: f32[1,128], index: 4, kind: input, shape index: {}]   ;;  %s10875_s5 = inlined_call_operand.vmem [shape: bf16[128,3], index: 5, kind: input, shape index: {}]   ;;  %s10876_s6 = inlined_call_operand.vmem [shape: f32[1,3], index: 6, kind: input, shape index: {}]   ;;  %s10877_s7 = inlined_call_operand.vmem [shape: f32[1040,3], index: 7, kind: output, shape index: {}]  }
   0x1 LB: > { %s5683_s25 = sadd.s32 4294967295, %s6047_s24   ;;  %p5687_p0 = scmp.ge.s32.totalorder %s6047_s24, 1  ;;  %s6047_s24 = sphi %s6099_s24, %s17_s24  }
   0x2   : > { %p238_p1 = scmp.lt.s32.totalorder %s6047_s24, 6 }
   0x4   : > { %p239_p2 = pnand %p5687_p0, %p238_p1 }
   0x6   : > { %242 = sbr.rel (%p239_p2) target bundleno = 1736 (0x6c8), region = 48 }
   0xb   : > { %s270_s26 = smul.u32 26, %s5683_s25  ;;  %s6049_s8 = smov 60   ;;  %vm10909_vm0 = vcmask 244736   ;;  %vm10908_vm1 = vcmask 490496   ;;  %vm753_vm2 = vcmask 736256  }
   0xc   : > { %s6050_s9 = smov 30   ;;  %s6051_s10 = smov 90  }
   0xd   : > { %p271_p3 = scmp.lt.s32.totalorder %s270_s26, 129 }
   0xf   : > { %s11381_s26 = smov (!%p271_p3, %s270_s26), 129 }
  0x10   : > { %s5688_s27 = sshll.u32 %s11381_s26, 3 }
  0x11   : > { %s6115_s30 = scalar_lea.vmem %s10870_s0, %s5688_s27  ;;  %s10777_s14 = scalar_lea.vmem %s10877_s7, %s5688_s27 }
  0x12   : > { %v6118_v0 = vld [vmem:[%s6115_s30] sm:$0xff]  ;;  %v6125_v4 = vld [vmem:[%s6115_s30 + $0x8] sm:$0xff]  ;;  %v6133_v8 = vld [vmem:[%s6115_s30 + $0x18] sm:$0xff] }
  0x13   : > { %v335_v1 = vadd.f32 1.5707964, %v6118_v0  ;;  %v309_v2 = vmul.f32 2.0, %v6118_v0  ;;  %v336_v5 = vadd.f32 1.5707964, %v6125_v4  ;;  %v310_v6 = vmul.f32 2.0, %v6125_v4 }
  0x14   : > { %v6136_v9 = vld [vmem:[%s6115_s30 + $0x10] sm:$0xff]  ;;  %v312_v10 = vmul.f32 2.0, %v6133_v8  ;;  %v338_v14 = vadd.f32 1.5707964, %v6133_v8  ;;  %v288_v16 = vld [vmem:[%s6115_s30 + $0x28] sm:$0xff]  ;;  %v6150_v17 = vld [vmem:[%s6115_s30 + $0x20] sm:$0xff] }
  0x15   : > { %517 = vrot.lane.b32.xlu1 %v335_v1, %s6049_s8  ;;  %413 = vrot.lane.b32.xlu0 %v309_v2, %s6050_s9  ;;  %v361_v3 = vadd.f32 1.5707964, %v309_v2  ;;  %v362_v7 = vadd.f32 1.5707964, %v310_v6  ;;  %v311_v11 = vmul.f32 2.0, %v6136_v9  ;;  %v314_v18 = vmul.f32 2.0, %v288_v16 }
  0x16   : > { %v337_v12 = vadd.f32 1.5707964, %v6136_v9  ;;  %v364_v15 = vadd.f32 1.5707964, %v312_v10  ;;  %v313_v19 = vmul.f32 2.0, %v6150_v17  ;;  %v290_v24 = vld [vmem:[%s6115_s30 + $0x38] sm:$0xff] }
  0x17   : > { %621 = vrot.lane.b32.xlu2 %v361_v3, %s6051_s10  ;;  %v363_v13 = vadd.f32 1.5707964, %v311_v11  ;;  %v339_v20 = vadd.f32 1.5707964, %v6150_v17  ;;  %v340_v22 = vadd.f32 1.5707964, %v288_v16 }
  0x18   : > { %v365_v21 = vadd.f32 1.5707964, %v313_v19  ;;  %v366_v23 = vadd.f32 1.5707964, %v314_v18  ;;  %v289_v25 = vld [vmem:[%s6115_s30 + $0x30] sm:$0xff]  ;;  %v316_v26 = vmul.f32 2.0, %v290_v24 }
  0x19   : > { %v315_v27 = vmul.f32 2.0, %v289_v25  ;;  %v341_v28 = vadd.f32 1.5707964, %v289_v25  ;;  %v342_v30 = vadd.f32 1.5707964, %v290_v24  ;;  %v292_v32 = vld [vmem:[%s6115_s30 + $0x48] sm:$0xff] }
  0x1a   : > { %v368_v31 = vadd.f32 1.5707964, %v316_v26  ;;  %v291_v33 = vld [vmem:[%s6115_s30 + $0x40] sm:$0xff]  ;;  %v318_v34 = vmul.f32 2.0, %v292_v32  ;;  %v344_v38 = vadd.f32 1.5707964, %v292_v32 }
  0x1b   : > { %v367_v29 = vadd.f32 1.5707964, %v315_v27  ;;  %v317_v35 = vmul.f32 2.0, %v291_v33  ;;  %v343_v36 = vadd.f32 1.5707964, %v291_v33  ;;  %v294_v40 = vld [vmem:[%s6115_s30 + $0x58] sm:$0xff] }
  0x1c   : > { %v370_v39 = vadd.f32 1.5707964, %v318_v34  ;;  %v293_v41 = vld [vmem:[%s6115_s30 + $0x50] sm:$0xff]  ;;  %v320_v42 = vmul.f32 2.0, %v294_v40  ;;  %v346_v46 = vadd.f32 1.5707964, %v294_v40 }
  0x1d   : > { %519 = vrot.lane.b32.xlu1 %v336_v5, %s6049_s8  ;;  %415 = vrot.lane.b32.xlu0 %v310_v6, %s6050_s9  ;;  %v369_v37 = vadd.f32 1.5707964, %v317_v35  ;;  %v319_v43 = vmul.f32 2.0, %v293_v41  ;;  %v345_v44 = vadd.f32 1.5707964, %v293_v41  ;;  %v296_v48 = vld [vmem:[%s6115_s30 + $0x68] sm:$0xff] }
  0x1e   : > { %v372_v47 = vadd.f32 1.5707964, %v320_v42  ;;  %v295_v49 = vld [vmem:[%s6115_s30 + $0x60] sm:$0xff]  ;;  %v322_v50 = vmul.f32 2.0, %v296_v48  ;;  %v348_v54 = vadd.f32 1.5707964, %v296_v48 }
  0x1f   : > { %623 = vrot.lane.b32.xlu2 %v362_v7, %s6051_s10  ;;  %v371_v45 = vadd.f32 1.5707964, %v319_v43  ;;  %v321_v51 = vmul.f32 2.0, %v295_v49  ;;  %v347_v52 = vadd.f32 1.5707964, %v295_v49  ;;  %v298_v55 = vld [vmem:[%s6115_s30 + $0x78] sm:$0xff] }
  0x20   : > { %v297_v56 = vld [vmem:[%s6115_s30 + $0x70] sm:$0xff]  ;;  %v374_v57 = vadd.f32 1.5707964, %v322_v50  ;;  %v6194_v58 = vmul.f32 2.0, %v298_v55  ;;  %v350_v5 = vadd.f32 1.5707964, %v298_v55 }
  0x21   : > { %v373_v53 = vadd.f32 1.5707964, %v321_v51  ;;  %v323_v59 = vmul.f32 2.0, %v297_v56  ;;  %v349_v1 = vadd.f32 1.5707964, %v297_v56 }
  0x22   : > { %v10899_v33 = vmov 2131351028   ;;  %v10894_v40 = vmov 920167782  }
  0x23   : > { %v375_v3 = vadd.f32 1.5707964, %v323_v59 }
  0x25   : > { %419 = vrot.lane.b32.xlu1 %v312_v10, %s6050_s9  ;;  %417 = vrot.lane.b32.xlu0 %v311_v11, %s6050_s9  ;;  %v300_v11 = vld [vmem:[%s6115_s30 + $0x88] sm:$0xff] }
  0x27   : > { %521 = vrot.lane.b32.xlu2 %v337_v12, %s6049_s8  ;;  %v6212_v12 = vld [vmem:[%s6115_s30 + $0x80] sm:$0xff] }
  0x2d   : > { %625 = vrot.lane.b32.xlu1 %v363_v13, %s6051_s10  ;;  %523 = vrot.lane.b32.xlu0 %v338_v14, %s6049_s8 }
  0x2f   : > { %627 = vrot.lane.b32.xlu2 %v364_v15, %s6051_s10 }
  0x35   : > { %423 = vrot.lane.b32.xlu1 %v314_v18, %s6050_s9  ;;  %421 = vrot.lane.b32.xlu0 %v313_v19, %s6050_s9 }
  0x37   : > { %525 = vrot.lane.b32.xlu2 %v339_v20, %s6049_s8  ;;  %v6217_v20 = vmul.f32 2.0, %v300_v11 }
  0x3d   : > { %629 = vrot.lane.b32.xlu1 %v365_v21, %s6051_s10  ;;  %527 = vrot.lane.b32.xlu0 %v340_v22, %s6049_s8  ;;  %v325_v21 = vmul.f32 2.0, %v6212_v12 }
  0x3f   : > { %631 = vrot.lane.b32.xlu2 %v366_v23, %s6051_s10 }
  0x45   : > { %427 = vrot.lane.b32.xlu1 %v316_v26, %s6050_s9  ;;  %425 = vrot.lane.b32.xlu0 %v315_v27, %s6050_s9 }
  0x47   : > { %529 = vrot.lane.b32.xlu2 %v341_v28, %s6049_s8  ;;  %v377_v28 = vadd.f32 1.5707964, %v325_v21 }
  0x4d   : > { %633 = vrot.lane.b32.xlu1 %v367_v29, %s6051_s10  ;;  %531 = vrot.lane.b32.xlu0 %v342_v30, %s6049_s8  ;;  %v352_v29 = vadd.f32 1.5707964, %v300_v11 }
  0x4f   : > { %635 = vrot.lane.b32.xlu2 %v368_v31, %s6051_s10  ;;  %v10887_v31 = vmov 2475754826  }
  0x55   : > { %431 = vrot.lane.b32.xlu1 %v318_v34, %s6050_s9  ;;  %429 = vrot.lane.b32.xlu0 %v317_v35, %s6050_s9  ;;  %v10891_v35 = vmov 2102212464  }
  0x57   : > { %533 = vrot.lane.b32.xlu2 %v343_v36, %s6049_s8 }
  0x5d   : > { %637 = vrot.lane.b32.xlu1 %v369_v37, %s6051_s10  ;;  %535 = vrot.lane.b32.xlu0 %v344_v38, %s6049_s8  ;;  %v10882_v37 = vmov 683565275  }
  0x5f   : > { %639 = vrot.lane.b32.xlu2 %v370_v39, %s6051_s10 }
  0x65   : > { %435 = vrot.lane.b32.xlu1 %v320_v42, %s6050_s9  ;;  %433 = vrot.lane.b32.xlu0 %v319_v43, %s6050_s9  ;;  %v10903_v42 = vmov 1326507024  }
  0x67   : > { %537 = vrot.lane.b32.xlu2 %v345_v44, %s6049_s8 }
  0x6d   : > { %641 = vrot.lane.b32.xlu1 %v371_v45, %s6051_s10  ;;  %539 = vrot.lane.b32.xlu0 %v346_v46, %s6049_s8 }
  0x6f   : > { %643 = vrot.lane.b32.xlu2 %v372_v47, %s6051_s10 }
  0x71   : > { %v622_v60 = vpop.permute.xlu2 %621 }
  0x75   : > { %439 = vrot.lane.b32.xlu1 %v322_v50, %s6050_s9  ;;  %437 = vrot.lane.b32.xlu0 %v321_v51, %s6050_s9 }
  0x77   : > { %541 = vrot.lane.b32.xlu2 %v347_v52, %s6049_s8 }
  0x79   : > { %v624_v18 = vpop.permute.xlu2 %623 }
  0x7d   : > { %645 = vrot.lane.b32.xlu1 %v373_v53, %s6051_s10  ;;  %543 = vrot.lane.b32.xlu0 %v348_v54, %s6049_s8 }
  0x7f   : > { %647 = vrot.lane.b32.xlu2 %v374_v57, %s6051_s10 }
  0x85   : > { %443 = vrot.lane.b32.xlu1 %v6194_v58, %s6050_s9  ;;  %441 = vrot.lane.b32.xlu0 %v323_v59, %s6050_s9 }
  0x87   : > { %v518_v61 = vpop.permute.xlu1 %517  ;;  %v414_v62 = vpop.permute.xlu0 %413  ;;  %545 = vrot.lane.b32.xlu2 %v349_v1, %s6049_s8 }
  0x88   : > { %v700_v63 = vsel %vm10909_vm0, %v6118_v0, %v414_v62 }
  0x89   : > { %v727_v2 = vsel %vm10908_vm1, %v700_v63, %v518_v61 }
  0x8a   : > { %v6204_v6 = vsel %vm753_vm2, %v727_v2, %v622_v60 }
  0x8b   : > { %11039 = vst [vmem:[#allocation2_spill] sm:$0xff] %v6204_v6  ;;  %v783_v7 = vand.u32 2139095040, %v6204_v6  ;;  %v10879_v27 = vand.u32 2147483647, %v6204_v6 }
  0x8d   : > { %v784_v10 = vshrl.u32 %v783_v7, 23  ;;  %649 = vrot.lane.b32.xlu1 %v375_v3, %s6051_s10  ;;  %547 = vrot.lane.b32.xlu0 %v350_v5, %s6049_s8  ;;  %v787_v48 = vand.u32 8388607, %v10879_v27 }
  0x8f   : > { %v5690_v0 = vadd.s32 4294967169, %v784_v10  ;;  %v520_v13 = vpop.permute.xlu1 %519  ;;  %v416_v14 = vpop.permute.xlu0 %415  ;;  %v788_v56 = vor.u32 8388608, %v787_v48 }
  0x90   : > { %v701_v15 = vsel %vm10909_vm0, %v6125_v4, %v416_v14 }
  0x91   : > { %v790_v16 = vadd.s32 1, %v5690_v0  ;;  %v728_v19 = vsel %vm10908_vm1, %v701_v15, %v520_v13  ;;  %v6280_v2 = vshll.u32 %v788_v56, 8 }
  0x92   : > { %v6221_v22 = vsel %vm753_vm2, %v728_v19, %v624_v18 }
  0x93   : > { %11040 = vst [vmem:[#allocation3_spill] sm:$0xff] %v6221_v22  ;;  %vm791_vm3 = vcmp.gt.s32.totalorder %v790_v16, 0  ;;  %v938_v24 = vand.u32 2139095040, %v6221_v22  ;;  %v829_v10 = vand.u32 65535, %v6280_v2  ;;  %v10878_v13 = vand.u32 2147483647, %v6221_v22 }
  0x94   : > { %v792_v23 = vsel %vm791_vm3, %v790_v16, 0  ;;  %v830_v18 = vshrl.u32 %v6280_v2, 16 }
  0x95   : > { %v794_v25 = vand.u32 31, %v792_v23  ;;  %447 = vrot.lane.b32.xlu1 %v6217_v20, %s6050_s9  ;;  %445 = vrot.lane.b32.xlu0 %v325_v21, %s6050_s9  ;;  %v939_v26 = vshrl.u32 %v938_v24, 23  ;;  %v6230_v30 = vshrl.u32 %v792_v23, 5  ;;  %v942_v23 = vand.u32 8388607, %v10878_v13 }
  0x97   : > { %v6227_v4 = vsub.s32 32, %v794_v25  ;;  %v797_v38 = vshll.u32 %v10882_v37, %v794_v25  ;;  %v806_v39 = vshll.u32 %v10891_v35, %v794_v25  ;;  %v800_v44 = vshll.u32 %v10887_v31, %v794_v25 }
  0x98   : > { %v803_v45 = vshll.u32 %v10899_v33, %v794_v25  ;;  %v809_v46 = vshll.u32 %v10894_v40, %v794_v25  ;;  %v5693_v47 = vadd.s32 4294967169, %v939_v26  ;;  %vm815_vm4 = vcmp.lt.s32.totalorder %v6230_v30, 4 }
  0x99   : > { %v798_v32 = vshrl.u32 %v10887_v31, %v6227_v4  ;;  %v801_v34 = vshrl.u32 %v10899_v33, %v6227_v4  ;;  %v804_v36 = vshrl.u32 %v10891_v35, %v6227_v4  ;;  %v807_v41 = vshrl.u32 %v10894_v40, %v6227_v4 }
  0x9a   : > { %v810_v43 = vshrl.u32 %v10903_v42, %v6227_v4  ;;  %v945_v55 = vadd.s32 1, %v5693_v47  ;;  %vm812_vm5 = vcmp.lt.s32.totalorder %v6230_v30, 1  ;;  %vm814_vm6 = vcmp.lt.s32.totalorder %v6230_v30, 3 }
  0x9b   : > { %v6249_v49 = vor.u32 %v798_v32, %v797_v38  ;;  %v808_v50 = vor.u32 %v807_v41, %v806_v39  ;;  %v6251_v51 = vor.u32 %v801_v34, %v800_v44  ;;  %v6253_v52 = vor.u32 %v804_v36, %v803_v45  ;;  %v6311_v41 = vpop.permute.xlu1 %419 }
  0x9c   : > { %v811_v53 = vor.u32 %v810_v43, %v809_v46  ;;  %vm946_vm7 = vcmp.gt.s32.totalorder %v945_v55, 0  ;;  %vm813_vm8 = vcmp.lt.s32.totalorder %v6230_v30, 2 }
  0x9d   : > { %653 = vrot.lane.b32.xlu1 %v377_v28, %s6051_s10  ;;  %551 = vrot.lane.b32.xlu0 %v352_v29, %s6049_s8  ;;  %v821_v54 = vsel %vm815_vm4, %v808_v50, 920167782  ;;  %v820_v57 = vsel %vm812_vm5, %v6249_v49, %v6251_v51  ;;  %v824_v62 = vsel %vm812_vm5, %v6251_v51, %v6253_v52  ;;  %v947_v1 = vsel %vm946_vm7, %v945_v55, 0 }
  0x9e   : > { %v822_v59 = vsel %vm814_vm6, %v6253_v52, %v821_v54  ;;  %v825_v60 = vsel %vm815_vm4, %v811_v53, 1326507024  ;;  %v949_v7 = vand.u32 31, %v947_v1  ;;  %v6299_v26 = vshrl.u32 %v947_v1, 5 }
  0x9f   : > { %v823_v61 = vsel %vm813_vm8, %v820_v57, %v822_v59  ;;  %v826_v63 = vsel %vm814_vm6, %v808_v50, %v825_v60  ;;  %v943_v59 = vor.u32 8388608, %v942_v23 }
  0xa0   : > { %v827_v3 = vsel %vm813_vm8, %v824_v62, %v826_v63  ;;  %v854_v5 = vshrl.u32 %v823_v61, 16  ;;  %v6288_v14 = vsub.s32 32, %v949_v7  ;;  %v853_v16 = vand.u32 65535, %v823_v61 }
  0xa1   : > { %v832_v11 = vshrl.u32 %v827_v3, 16  ;;  %v831_v15 = vand.u32 65535, %v827_v3  ;;  %v964_v24 = vshll.u32 %v10894_v40, %v949_v7  ;;  %v955_v44 = vshll.u32 %v10887_v31, %v949_v7  ;;  %v418_v3 = vpop.permute.xlu0 %417 }
  0xa2   : > { %v6285_v0 = vmul.u32 %v854_v5, %v829_v10  ;;  %v965_v25 = vshrl.u32 %v10903_v42, %v6288_v14  ;;  %v956_v28 = vshrl.u32 %v10899_v33, %v6288_v14  ;;  %v959_v29 = vshrl.u32 %v10891_v35, %v6288_v14 }
  0xa3   : > { %v6291_v19 = vmul.u32 %v832_v11, %v829_v10  ;;  %v962_v32 = vshrl.u32 %v10894_v40, %v6288_v14  ;;  %v6307_v34 = vmul.u32 %v831_v15, %v830_v18  ;;  %v855_v36 = vmul.u32 %v853_v16, %v829_v10 }
  0xa4   : > { %v859_v21 = vshll.u32 %v6285_v0, 16  ;;  %v6309_v38 = vmul.u32 %v853_v16, %v830_v18  ;;  %v966_v39 = vor.u32 %v965_v25, %v964_v24  ;;  %v958_v45 = vshll.u32 %v10899_v33, %v949_v7 }
  0xa5   : > { %v837_v43 = vshll.u32 %v6291_v19, 16  ;;  %v961_v46 = vshll.u32 %v10891_v35, %v949_v7  ;;  %v833_v47 = vmul.u32 %v831_v15, %v829_v10  ;;  %v953_v53 = vshrl.u32 %v10887_v31, %v6288_v14 }
  0xa6   : > { %vm6317_vm9 = vc.u32 %v855_v36, %v859_v21  ;;  %v6321_v50 = vadd.s32 %v859_v21, %v855_v36  ;;  %v6325_v54 = vor.u32 %v956_v28, %v955_v44  ;;  %v6327_v55 = vor.u32 %v959_v29, %v958_v45 }
  0xa7   : > { %v963_v56 = vor.u32 %v962_v32, %v961_v46  ;;  %vm970_vm10 = vcmp.lt.s32.totalorder %v6299_v26, 4  ;;  %v858_v57 = vmul.u32 %v854_v5, %v830_v18  ;;  %v952_v60 = vshll.u32 %v10882_v37, %v949_v7 }
  0xa8   : > { %v980_v61 = vsel %vm970_vm10, %v966_v39, 1326507024  ;;  %v839_v62 = vshll.u32 %v6307_v34, 16  ;;  %vm841_vm11 = vc.u32 %v833_v47, %v837_v43  ;;  %v843_v63 = vadd.s32 %v837_v43, %v833_v47  ;;  %v522_v39 = vpop.permute.xlu2 %521 }
  0xa9   : > { %v861_v1 = vshll.u32 %v6309_v38, 16  ;;  %v10885_v10 = vmov 0   ;;  %v6338_v16 = vor.u32 %v953_v53, %v952_v60  ;;  %vm967_vm12 = vcmp.lt.s32.totalorder %v6299_v26, 1 }
  0xaa   : > { %v864_v15 = vsel %vm6317_vm9, 1, %v10885_v10  ;;  %vm969_vm13 = vcmp.lt.s32.totalorder %v6299_v26, 3  ;;  %v976_v5 = vsel %vm970_vm10, %v963_v56, 920167782  ;;  %v979_v7 = vsel %vm967_vm12, %v6325_v54, %v6327_v55 }
  0xab   : > { %vm867_vm14 = vc.u32 %v6321_v50, %v861_v1  ;;  %v981_v21 = vsel %vm969_vm13, %v963_v56, %v980_v61  ;;  %v836_v23 = vmul.u32 %v832_v11, %v830_v18  ;;  %v702_v24 = vsel %vm10909_vm0, %v6136_v9, %v418_v3  ;;  %v626_v18 = vpop.permute.xlu1 %625 }
  0xac   : > { %v842_v25 = vsel %vm841_vm11, 1, %v10885_v10  ;;  %vm845_vm15 = vc.u32 %v843_v63, %v839_v62  ;;  %v866_v28 = vadd.s32 %v864_v15, %v858_v57  ;;  %vm968_vm3 = vcmp.lt.s32.totalorder %v6299_v26, 2 }
  0xad   : > { %v868_v29 = vsel %vm867_vm14, 1, %v10885_v10  ;;  %v975_v32 = vsel %vm967_vm12, %v6338_v16, %v6325_v54  ;;  %v977_v11 = vsel %vm969_vm13, %v6327_v55, %v976_v5  ;;  %v982_v9 = vsel %vm968_vm3, %v979_v7, %v981_v21 }
  0xae   : > { %v6365_v36 = vshll.u32 %v943_v59, 8  ;;  %v844_v43 = vadd.s32 %v842_v25, %v836_v23  ;;  %v846_v44 = vsel %vm845_vm15, 1, %v10885_v10  ;;  %v729_v45 = vsel %vm10908_vm1, %v702_v24, %v522_v39 }
  0xaf   : > { %v870_v46 = vadd.s32 %v868_v29, %v866_v28  ;;  %v6371_v47 = vsel %vm968_vm3, %v975_v32, %v977_v11  ;;  %v987_v48 = vshrl.u32 %v982_v9, 16  ;;  %v6374_v53 = vsel %vm753_vm2, %v729_v45, %v626_v18 }
  0xb0   : > { %11043 = vst [vmem:[#allocation4_spill] sm:$0xff] %v6374_v53  ;;  %v860_v56 = vshrl.u32 %v6285_v0, 16  ;;  %v984_v57 = vand.u32 65535, %v6365_v36  ;;  %v817_v59 = vsel %vm815_vm4, %v6253_v52, 2102212464  ;;  %v848_v60 = vadd.s32 %v846_v44, %v844_v43  ;;  %v6428_v44 = vld [vmem:[%s6115_s30 + $0x90] sm:$0xff] }
  0xb1   : > { %v1009_v61 = vshrl.u32 %v6371_v47, 16  ;;  %v1093_v62 = vand.u32 2139095040, %v6374_v53  ;;  %v796_v63 = vshrl.u32 %v10882_v37, %v6227_v4  ;;  %v838_v5 = vshrl.u32 %v6291_v19, 16 }
  0xb2   : > { %v871_v3 = vadd.s32 %v870_v46, %v860_v56  ;;  %v6385_v15 = vmul.u32 %v987_v48, %v984_v57  ;;  %v376_v7 = vadd.f32 1.5707964, %v6194_v58  ;;  %v818_v21 = vsel %vm814_vm6, %v6251_v51, %v817_v59 }
  0xb3   : > { %v1094_v0 = vshrl.u32 %v1093_v62, 23  ;;  %v816_v52 = vsel %vm812_vm5, %v796_v63, %v6249_v49  ;;  %v862_v23 = vshrl.u32 %v6309_v38, 16  ;;  %v986_v24 = vand.u32 65535, %v982_v9 }
  0xb4   : > { %v849_v4 = vadd.s32 %v848_v60, %v838_v5  ;;  %v6398_v25 = vmul.u32 %v1009_v61, %v984_v57  ;;  %651 = vrot.lane.b32.xlu2 %v376_v7, %s6051_s10  ;;  %v985_v28 = vshrl.u32 %v6365_v36, 16  ;;  %v992_v49 = vshll.u32 %v6385_v15, 16 }
  0xb5   : > { %v5696_v19 = vadd.s32 4294967169, %v1094_v0  ;;  %v6401_v58 = vadd.s32 %v871_v3, %v862_v23  ;;  %v703_v51 = vsel %vm10909_vm0, %v6133_v8, %v6311_v41  ;;  %v6410_v38 = vsel %vm813_vm8, %v816_v52, %v818_v21  ;;  %v524_v8 = vpop.permute.xlu0 %523 }
  0xb6   : > { %v840_v29 = vshrl.u32 %v6307_v34, 16  ;;  %v1008_v32 = vand.u32 65535, %v6371_v47  ;;  %v6415_v9 = vadd.s32 %v6321_v50, %v861_v1  ;;  %v6419_v18 = vshrl.u32 %v10882_v37, %v6288_v14 }
  0xb7   : > { %v1100_v11 = vadd.s32 1, %v5696_v19  ;;  %v988_v39 = vmul.u32 %v986_v24, %v984_v57  ;;  %v6421_v43 = vmul.u32 %v986_v24, %v985_v28  ;;  %v1014_v30 = vshll.u32 %v6398_v25, 16 }
  0xb8   : > { %v6423_v41 = vadd.s32 %v849_v4, %v840_v29  ;;  %v1090_v34 = vand.u32 2147483647, %v6374_v53  ;;  %v876_v50 = vadd.s32 1, %v6401_v58  ;;  %v972_v14 = vsel %vm970_vm10, %v6327_v55, 2102212464  ;;  %v628_v55 = vpop.permute.xlu2 %627 }
  0xb9   : > { %vm1101_vm4 = vcmp.gt.s32.totalorder %v1100_v11, 0  ;;  %vm996_vm5 = vc.u32 %v988_v39, %v992_v49  ;;  %v998_v1 = vadd.s32 %v992_v49, %v988_v39  ;;  %v1010_v46 = vmul.u32 %v1008_v32, %v984_v57 }
  0xba   : > { %v1102_v45 = vsel %vm1101_vm4, %v1100_v11, 0  ;;  %v730_v59 = vsel %vm10908_vm1, %v703_v51, %v524_v8  ;;  %v991_v60 = vmul.u32 %v987_v48, %v985_v28  ;;  %v994_v62 = vshll.u32 %v6421_v43, 16 }
  0xbb   : > { %v1104_v56 = vand.u32 31, %v1102_v45  ;;  %v6436_v63 = vmul.u32 %v1008_v32, %v985_v28  ;;  %v6439_v3 = vmul.f32 2.0, %v6428_v44  ;;  %vm875_vm6 = vc.u32 %v6423_v41, %v6415_v9 }
  0xbc   : > { %v997_v5 = vsel %vm996_vm5, 1, %v10885_v10  ;;  %vm6444_vm7 = vc.u32 %v1010_v46, %v1014_v30  ;;  %v1097_v48 = vand.u32 8388607, %v1090_v34  ;;  %vm6452_vm8 = vc.u32 %v998_v1, %v994_v62 }
  0xbd   : > { %v6450_v57 = vsub.s32 32, %v1104_v56  ;;  %v6456_v52 = vadd.s32 %v1014_v30, %v1010_v46  ;;  %v6458_v21 = vshrl.u32 %v1102_v45, 5  ;;  %v6461_v23 = vsel %vm753_vm2, %v730_v59, %v628_v55  ;;  %449 = vrot.lane.b32.xlu1 %v6439_v3, %s6050_s9 }
  0xbe   : > { %11048 = vst [vmem:[#allocation5_spill] sm:$0xff] %v6461_v23  ;;  %v1107_v24 = vshll.u32 %v10882_v37, %v1104_v56  ;;  %v1110_v19 = vshll.u32 %v10887_v31, %v1104_v56  ;;  %v1113_v51 = vshll.u32 %v10899_v33, %v1104_v56  ;;  %v1116_v32 = vshll.u32 %v10891_v35, %v1104_v56 }
  0xbf   : > { %v1108_v4 = vshrl.u32 %v10887_v31, %v6450_v57  ;;  %v1111_v49 = vshrl.u32 %v10899_v33, %v6450_v57  ;;  %v1114_v29 = vshrl.u32 %v10891_v35, %v6450_v57  ;;  %v1117_v11 = vshrl.u32 %v10894_v40, %v6450_v57 }
  0xc0   : > { %v1098_v39 = vor.u32 8388608, %v1097_v48  ;;  %v1120_v1 = vshrl.u32 %v10903_v42, %v6450_v57  ;;  %v1119_v59 = vshll.u32 %v10894_v40, %v1104_v56  ;;  %v1248_v62 = vand.u32 2139095040, %v6461_v23 }
  0xc1   : > { %v6477_v8 = vor.u32 %v1108_v4, %v1107_v24  ;;  %v6479_v30 = vor.u32 %v1111_v49, %v1110_v19  ;;  %v1115_v45 = vor.u32 %v1114_v29, %v1113_v51  ;;  %v1118_v46 = vor.u32 %v1117_v11, %v1116_v32 }
  0xc2   : > { %v999_v55 = vadd.s32 %v997_v5, %v991_v60  ;;  %v1013_v13 = vmul.u32 %v1009_v61, %v985_v28  ;;  %v1016_v27 = vshll.u32 %v6436_v63, 16  ;;  %vm1122_vm9 = vcmp.lt.s32.totalorder %v6458_v21, 1 }
  0xc3   : > { %v1019_v48 = vsel %vm6444_vm7, 1, %v10885_v10  ;;  %v1121_v24 = vor.u32 %v1120_v1, %v1119_v59  ;;  %vm1125_vm10 = vcmp.lt.s32.totalorder %v6458_v21, 4  ;;  %v1130_v56 = vsel %vm1122_vm9, %v6477_v8, %v6479_v30 }
  0xc4   : > { %v1001_v47 = vsel %vm6452_vm8, 1, %v10885_v10  ;;  %vm6503_vm11 = vc.u32 %v6456_v52, %v1016_v27  ;;  %vm1124_vm14 = vcmp.lt.s32.totalorder %v6458_v21, 3  ;;  %v1131_v28 = vsel %vm1125_vm10, %v1118_v46, 920167782 }
  0xc5   : > { %vm1123_vm15 = vcmp.lt.s32.totalorder %v6458_v21, 2  ;;  %v1132_v60 = vsel %vm1124_vm14, %v1115_v45, %v1131_v28  ;;  %v6513_v5 = vshll.u32 %v1098_v39, 8  ;;  %v1249_v0 = vshrl.u32 %v1248_v62, 23 }
  0xc6   : > { %v873_v7 = vmul.u32 %v6280_v2, %v6410_v38  ;;  %v971_v4 = vsel %vm967_vm12, %v6419_v18, %v6338_v16  ;;  %v1133_v19 = vsel %vm1123_vm15, %v1130_v56, %v1132_v60  ;;  %v1134_v49 = vsel %vm1122_vm9, %v6479_v30, %v1115_v45 }
  0xc7   : > { %v877_v51 = vsel %vm875_vm6, %v876_v50, %v6401_v58  ;;  %v973_v2 = vsel %vm969_vm13, %v6325_v54, %v972_v14  ;;  %v1021_v38 = vadd.s32 %v1019_v48, %v1013_v13  ;;  %v1135_v16 = vsel %vm1125_vm10, %v1121_v24, 1326507024 }
  0xc8   : > { %v1003_v18 = vadd.s32 %v1001_v47, %v999_v55  ;;  %v1023_v29 = vsel %vm6503_vm11, 1, %v10885_v10  ;;  %v1136_v32 = vsel %vm1124_vm14, %v1118_v46, %v1135_v16  ;;  %v1164_v11 = vshrl.u32 %v1133_v19, 16 }
  0xc9   : > { %v1137_v58 = vsel %vm1123_vm15, %v1134_v49, %v1136_v32  ;;  %v1139_v50 = vand.u32 65535, %v6513_v5  ;;  %v1163_v39 = vand.u32 65535, %v1133_v19  ;;  %v5699_v54 = vadd.s32 4294967169, %v1249_v0 }
  0xca   : > { %v1140_v13 = vshrl.u32 %v6513_v5, 16  ;;  %v1141_v14 = vand.u32 65535, %v1137_v58  ;;  %v1142_v1 = vshrl.u32 %v1137_v58, 16  ;;  %v10881_v59 = vand.u32 2147483647, %v6461_v23 }
  0xcb   : > { %v6545_v62 = vadd.s32 %v877_v51, %v873_v7  ;;  %v993_v55 = vshrl.u32 %v6385_v15, 16  ;;  %v1166_v48 = vmul.u32 %v1164_v11, %v1139_v50  ;;  %v6550_v46 = vsel %vm968_vm3, %v971_v4, %v973_v2 }
  0xcc   : > { %v995_v24 = vshrl.u32 %v6421_v43, 16  ;;  %v1144_v56 = vmul.u32 %v1142_v1, %v1139_v50  ;;  %v1145_v47 = vmul.u32 %v1141_v14, %v1140_v13  ;;  %v1025_v28 = vadd.s32 %v1023_v29, %v1021_v38 }
  0xcd   : > { %v1004_v61 = vadd.s32 %v1003_v18, %v993_v55  ;;  %v1167_v60 = vmul.u32 %v1163_v39, %v1140_v13  ;;  %v1255_v0 = vadd.s32 1, %v5699_v54  ;;  %v1106_v19 = vshrl.u32 %v10882_v37, %v6450_v57 }
  0xce   : > { %v1143_v7 = vmul.u32 %v1141_v14, %v1139_v50  ;;  %v1147_v49 = vshll.u32 %v1144_v56, 16  ;;  %v6557_v15 = vand.u32 8388607, %v10881_v59  ;;  %v1127_v26 = vsel %vm1125_vm10, %v1115_v45, 2102212464 }
  0xcf   : > { %v1165_v4 = vmul.u32 %v1163_v39, %v1139_v50  ;;  %v1168_v43 = vmul.u32 %v1164_v11, %v1140_v13  ;;  %v1169_v51 = vshll.u32 %v1166_v48, 16  ;;  %v1146_v2 = vmul.u32 %v1142_v1, %v1140_v13 }
  0xd0   : > { %v1149_v16 = vshll.u32 %v1145_v47, 16  ;;  %vm1151_vm12 = vc.u32 %v1143_v7, %v1147_v49  ;;  %v1153_v38 = vadd.s32 %v1147_v49, %v1143_v7  ;;  %v1171_v29 = vshll.u32 %v1167_v60, 16 }
  0xd1   : > { %v1152_v18 = vsel %vm1151_vm12, 1, %v10885_v10  ;;  %vm1173_vm13 = vc.u32 %v1165_v4, %v1169_v51  ;;  %vm1256_vm3 = vcmp.gt.s32.totalorder %v1255_v0, 0  ;;  %v1175_v58 = vadd.s32 %v1169_v51, %v1165_v4 }
  0xd2   : > { %v1154_v57 = vadd.s32 %v1152_v18, %v1146_v2  ;;  %vm1155_vm4 = vc.u32 %v1153_v38, %v1149_v16  ;;  %v1174_v32 = vsel %vm1173_vm13, 1, %v10885_v10  ;;  %v1126_v45 = vsel %vm1122_vm9, %v1106_v19, %v6477_v8 }
  0xd3   : > { %v1128_v11 = vsel %vm1124_vm14, %v6479_v30, %v1127_v26  ;;  %v1156_v50 = vsel %vm1155_vm4, 1, %v10885_v10  ;;  %v1176_v39 = vadd.s32 %v1174_v32, %v1168_v43  ;;  %v1148_v54 = vshrl.u32 %v1144_v56, 16 }
  0xd4   : > { %v1158_v13 = vadd.s32 %v1156_v50, %v1154_v57  ;;  %vm1177_vm5 = vc.u32 %v1175_v58, %v1171_v29  ;;  %v1257_v14 = vsel %vm1256_vm3, %v1255_v0, 0  ;;  %v1015_v1 = vshrl.u32 %v6398_v25, 16 }
  0xd5   : > { %v1017_v55 = vshrl.u32 %v6436_v63, 16  ;;  %v1178_v7 = vsel %vm1177_vm5, 1, %v10885_v10  ;;  %v1259_v49 = vand.u32 31, %v1257_v14  ;;  %v1150_v4 = vshrl.u32 %v1145_v47, 16 }
  0xd6   : > { %v1159_v8 = vadd.s32 %v1158_v13, %v1148_v54  ;;  %v1170_v19 = vshrl.u32 %v1166_v48, 16  ;;  %v1180_v51 = vadd.s32 %v1178_v7, %v1176_v39  ;;  %v6573_v2 = vadd.s32 %v1004_v61, %v995_v24 }
  0xd7   : > { %v1026_v30 = vadd.s32 %v1025_v28, %v1015_v1  ;;  %v1129_v56 = vsel %vm1123_vm15, %v1126_v45, %v1128_v11  ;;  %v6577_v26 = vsub.s32 32, %v1259_v49  ;;  %v1172_v25 = vshrl.u32 %v1167_v60, 16 }
  0xd8   : > { %v6579_v0 = vadd.s32 %v1159_v8, %v1150_v4  ;;  %v1181_v43 = vadd.s32 %v1180_v51, %v1170_v19  ;;  %v1253_v16 = vor.u32 8388608, %v6557_v15  ;;  %v6582_v38 = vadd.s32 %v1175_v58, %v1171_v29 }
  0xd9   : > { %v1262_v47 = vshll.u32 %v10882_v37, %v1259_v49  ;;  %v1263_v48 = vshrl.u32 %v10887_v31, %v6577_v26  ;;  %v1266_v24 = vshrl.u32 %v10899_v33, %v6577_v26  ;;  %v1265_v61 = vshll.u32 %v10887_v31, %v1259_v49 }
  0xda   : > { %v1182_v21 = vadd.s32 %v1181_v43, %v1172_v25  ;;  %v1268_v28 = vshll.u32 %v10899_v33, %v1259_v49  ;;  %v1269_v60 = vshrl.u32 %v10891_v35, %v6577_v26  ;;  %vm1185_vm6 = vc.u32 %v6579_v0, %v6582_v38 }
  0xdb   : > { %v6595_v15 = vshrl.u32 %v1257_v14, 5  ;;  %v1271_v18 = vshll.u32 %v10891_v35, %v1259_v49  ;;  %v1272_v29 = vshrl.u32 %v10894_v40, %v6577_v26  ;;  %v6600_v32 = vor.u32 %v1263_v48, %v1262_v47 }
  0xdc   : > { %v1186_v57 = vadd.s32 1, %v1182_v21  ;;  %v6602_v58 = vor.u32 %v1266_v24, %v1265_v61  ;;  %v6604_v45 = vor.u32 %v1269_v60, %v1268_v28  ;;  %v1183_v11 = vmul.u32 %v6513_v5, %v1129_v56  ;;  %v6651_v61 = vpop.permute.xlu1 %423 }
  0xdd   : > { %v1273_v50 = vor.u32 %v1272_v29, %v1271_v18  ;;  %v1274_v39 = vshll.u32 %v10894_v40, %v1259_v49  ;;  %v1275_v54 = vshrl.u32 %v10903_v42, %v6577_v26  ;;  %v6613_v13 = vadd.s32 %v6456_v52, %v1016_v27 }
  0xde   : > { %v1027_v14 = vadd.s32 %v1026_v30, %v1017_v55  ;;  %v1187_v1 = vsel %vm1185_vm6, %v1186_v57, %v1182_v21  ;;  %v6615_v7 = vshll.u32 %v1253_v16, 8  ;;  %vm1277_vm7 = vcmp.lt.s32.totalorder %v6595_v15, 1 }
  0xdf   : > { %v6617_v4 = vadd.s32 %v1187_v1, %v1183_v11  ;;  %v1276_v8 = vor.u32 %v1275_v54, %v1274_v39  ;;  %vm1280_vm8 = vcmp.lt.s32.totalorder %v6595_v15, 4  ;;  %vm1279_vm9 = vcmp.lt.s32.totalorder %v6595_v15, 3  ;;  %v422_v1 = vpop.permute.xlu0 %421 }
  0xe0   : > { %v1285_v63 = vsel %vm1277_vm7, %v6600_v32, %v6602_v58  ;;  %v1286_v27 = vsel %vm1280_vm8, %v1273_v50, 920167782  ;;  %v1289_v52 = vsel %vm1277_vm7, %v6602_v58, %v6604_v45  ;;  %vm1030_vm10 = vc.u32 %v6573_v2, %v6613_v13 }
  0xe1   : > { %vm1278_vm11 = vcmp.lt.s32.totalorder %v6595_v15, 2  ;;  %v1287_v5 = vsel %vm1279_vm9, %v6604_v45, %v1286_v27  ;;  %v1290_v55 = vsel %vm1280_vm8, %v1276_v8, 1326507024  ;;  %v1031_v49 = vadd.s32 1, %v1027_v14 }
  0xe2   : > { %v1288_v19 = vsel %vm1278_vm11, %v1285_v63, %v1287_v5  ;;  %v1291_v51 = vsel %vm1279_vm9, %v1273_v50, %v1290_v55  ;;  %v353_v30 = vadd.f32 1.5707964, %v6428_v44  ;;  %v1189_v56 = vadd.s32 536870912, %v6617_v4 }
  0xe3   : > { %v1292_v25 = vsel %vm1278_vm11, %v1289_v52, %v1291_v51  ;;  %v1294_v43 = vand.u32 65535, %v6615_v7  ;;  %v1319_v16 = vshrl.u32 %v1288_v19, 16  ;;  %v1295_v47 = vshrl.u32 %v6615_v7, 16 }
  0xe4   : > { %v1296_v48 = vand.u32 65535, %v1292_v25  ;;  %v1297_v24 = vshrl.u32 %v1292_v25, 16  ;;  %v1318_v21 = vand.u32 65535, %v1288_v19  ;;  %553 = vrot.lane.b32.xlu0 %v353_v30, %s6049_s8  ;;  %v879_v28 = vadd.s32 536870912, %v6545_v62  ;;  %v302_v19 = vld [vmem:[%s6115_s30 + $0x98] sm:$0xff] }
  0xe5   : > { %v1032_v44 = vsel %vm1030_vm10, %v1031_v49, %v1027_v14  ;;  %v1321_v29 = vmul.u32 %v1319_v16, %v1294_v43  ;;  %v1028_v57 = vmul.u32 %v6365_v36, %v6550_v46  ;;  %v6661_v11 = vshrl.u32 %v1189_v56, 30 }
  0xe6   : > { %v1299_v60 = vmul.u32 %v1297_v24, %v1294_v43  ;;  %v6657_v18 = vmul.u32 %v1296_v48, %v1295_v47  ;;  %v1298_v50 = vmul.u32 %v1296_v48, %v1294_v43  ;;  %v6663_v54 = vmul.u32 %v1318_v21, %v1295_v47 }
  0xe7   : > { %v6665_v8 = vshrl.u32 %v879_v28, 30  ;;  %v6667_v63 = vadd.s32 %v1032_v44, %v1028_v57  ;;  %v1301_v14 = vmul.u32 %v1297_v24, %v1295_v47  ;;  %v1324_v5 = vshll.u32 %v1321_v29, 16 }
  0xe8   : > { %v1302_v39 = vshll.u32 %v1299_v60, 16  ;;  %v1304_v27 = vshll.u32 %v6657_v18, 16  ;;  %v1191_v36 = vshll.u32 %v6661_v11, 30  ;;  %v1320_v55 = vmul.u32 %v1318_v21, %v1294_v43  ;;  %v630_v21 = vpop.permute.xlu1 %629 }
  0xe9   : > { %11051 = vst [vmem:[#allocation6_spill] sm:$0xff] %v6665_v8  ;;  %v704_v49 = vsel %vm10909_vm0, %v6150_v17, %v422_v1  ;;  %v1323_v30 = vmul.u32 %v1319_v16, %v1295_v47  ;;  %v1326_v56 = vshll.u32 %v6663_v54, 16  ;;  %v351_v24 = vadd.f32 1.5707964, %v6212_v12 }
  0xea   : > { %vm1306_vm14 = vc.u32 %v1298_v50, %v1302_v39  ;;  %v1308_v52 = vadd.s32 %v1302_v39, %v1298_v50  ;;  %vm1328_vm12 = vc.u32 %v1320_v55, %v1324_v5  ;;  %v1330_v48 = vadd.s32 %v1324_v5, %v1320_v55  ;;  %v526_v50 = vpop.permute.xlu2 %525 }
  0xeb   : > { %v1307_v46 = vsel %vm1306_vm14, 1, %v10885_v10  ;;  %v881_v28 = vshll.u32 %v6665_v8, 30  ;;  %v1329_v44 = vsel %vm1328_vm12, 1, %v10885_v10  ;;  %v354_v43 = vadd.f32 1.5707964, %v302_v19  ;;  %549 = vrot.lane.b32.xlu2 %v351_v24, %s6049_s8 }
  0xec   : > { %v1309_v51 = vadd.s32 %v1307_v46, %v1301_v14  ;;  %vm1310_vm15 = vc.u32 %v1308_v52, %v1304_v27  ;;  %v1034_v17 = vadd.s32 536870912, %v6667_v63  ;;  %v1331_v57 = vadd.s32 %v1329_v44, %v1323_v30 }
  0xed   : > { %v1311_v25 = vsel %vm1310_vm15, 1, %v10885_v10  ;;  %vm1332_vm13 = vc.u32 %v1330_v48, %v1326_v56  ;;  %v328_v16 = vmul.f32 2.0, %v302_v19  ;;  %v6683_v47 = vsub.s32 %v6617_v4, %v1191_v36  ;;  %555 = vrot.lane.b32.xlu1 %v354_v43, %s6049_s8 }
  0xee   : > { %v1313_v39 = vadd.s32 %v1311_v25, %v1309_v51  ;;  %v1333_v12 = vsel %vm1332_vm13, 1, %v10885_v10  ;;  %v731_v1 = vsel %vm10908_vm1, %v704_v49, %v526_v50  ;;  %v1325_v14 = vshrl.u32 %v1321_v29, 16 }
  0xef   : > { %v1335_v27 = vadd.s32 %v1333_v12, %v1331_v57  ;;  %v380_v52 = vadd.f32 1.5707964, %v328_v16  ;;  %v6689_v5 = vsel %vm753_vm2, %v731_v1, %v630_v21  ;;  %v6692_v46 = vsub.s32 %v6545_v62, %v881_v28 }
  0xf0   : > { %11052 = vst [vmem:[#allocation7_spill] sm:$0xff] %v6689_v5  ;;  %v1303_v55 = vshrl.u32 %v1299_v60, 16  ;;  %v1403_v4 = vand.u32 2139095040, %v6689_v5  ;;  %v1194_v36 = vsub.s32 0, %v6683_v47  ;;  %v6697_v30 = vshrl.u32 %v1034_v17, 30 }
  0xf1   : > { %v1336_v19 = vadd.s32 %v1335_v27, %v1325_v14  ;;  %659 = vrot.lane.b32.xlu0 %v380_v52, %s6051_s10  ;;  %vm1193_vm3 = vcmp.lt.s32.totalorder %v6683_v47, 0  ;;  %v1327_v29 = vshrl.u32 %v6663_v54, 16  ;;  %v884_v25 = vsub.s32 0, %v6692_v46  ;;  %v528_v52 = vpop.permute.xlu0 %527 }
  0xf2   : > { %v1314_v51 = vadd.s32 %v1313_v39, %v1303_v55  ;;  %11053 = vst [vmem:[#allocation8_spill] sm:$0xff] %v6697_v30  ;;  %v1404_v49 = vshrl.u32 %v1403_v4, 23  ;;  %v1305_v62 = vshrl.u32 %v6657_v18, 16  ;;  %v378_v60 = vadd.f32 1.5707964, %v6217_v20 }
  0xf3   : > { %vm883_vm4 = vcmp.lt.s32.totalorder %v6692_v46, 0  ;;  %v1282_v24 = vsel %vm1280_vm8, %v6604_v45, 2102212464  ;;  %v1337_v28 = vadd.s32 %v1336_v19, %v1327_v29  ;;  %v1195_v43 = vsel %vm1193_vm3, %v1194_v36, %v6683_v47  ;;  %v5994_v19 = vld [vmem:[%s6115_s30 + $0x28] sm:$0xff] }
  0xf4   : > { %v5702_v44 = vadd.s32 4294967169, %v1404_v49  ;;  %v1261_v54 = vshrl.u32 %v10882_v37, %v6577_v26  ;;  %v6711_v21 = vadd.s32 %v1314_v51, %v1305_v62  ;;  %655 = vrot.lane.b32.xlu2 %v378_v60, %s6051_s10  ;;  %v1036_v18 = vshll.u32 %v6697_v30, 30  ;;  %v632_v60 = vpop.permute.xlu2 %631 }
  0xf5   : > { %v885_v17 = vsel %vm883_vm4, %v884_v25, %v6692_v46  ;;  %v1283_v57 = vsel %vm1279_vm9, %v6602_v58, %v1282_v24  ;;  %v6722_v50 = vadd.s32 %v1330_v48, %v1326_v56  ;;  %v1196_v26 = vclz %v1195_v43 }
  0xf6   : > { %v1410_v20 = vadd.s32 1, %v5702_v44  ;;  %v1281_v45 = vsel %vm1277_vm7, %v1261_v54, %v6600_v32  ;;  %v1341_v39 = vadd.s32 1, %v1337_v28  ;;  %v886_v1 = vclz %v885_v17 }
  0xf7   : > { %vm1340_vm6 = vc.u32 %v6711_v21, %v6722_v50  ;;  %v6727_v14 = vsub.s32 %v6667_v63, %v1036_v18  ;;  %v1284_v32 = vsel %vm1278_vm11, %v1281_v45, %v1283_v57  ;;  %v5697_v58 = vadd.s32 4294967294, %v1196_v26 }
  0xf8   : > { %vm1411_vm5 = vcmp.gt.s32.totalorder %v1410_v20, 0  ;;  %v1342_v55 = vsel %vm1340_vm6, %v1341_v39, %v1337_v28  ;;  %v1338_v48 = vmul.u32 %v6615_v7, %v1284_v32  ;;  %v705_v4 = vsel %vm10909_vm0, %v5994_v19, %v6651_v61 }
  0xf9   : > { %v1412_v12 = vsel %vm1411_vm5, %v1410_v20, 0  ;;  %v10880_v36 = vand.u32 2147483647, %v6689_v5  ;;  %v5691_v63 = vadd.s32 4294967294, %v886_v1  ;;  %vm1038_vm7 = vcmp.lt.s32.totalorder %v6727_v14, 0 }
  0xfa   : > { %v1414_v27 = vand.u32 31, %v1412_v12  ;;  %v1039_v15 = vsub.s32 0, %v6727_v14  ;;  %v732_v51 = vsel %vm10908_vm1, %v705_v4, %v528_v52  ;;  %v1343_v29 = vadd.s32 %v1342_v55, %v1338_v48 }
  0xfb   : > { %vm5698_vm8 = vcmp.lt.s32.totalorder %v5697_v58, 0  ;;  %v6748_v25 = vshrl.u32 %v1412_v12, 5  ;;  %v1407_v24 = vand.u32 8388607, %v10880_v36  ;;  %v6762_v17 = vsel %vm753_vm2, %v732_v51, %v632_v60 }
  0xfc   : > { %v6731_v56 = vsub.s32 32, %v1414_v27  ;;  %451 = vrot.lane.b32.xlu2 %v328_v16, %s6050_s9  ;;  %v1426_v16 = vshll.u32 %v10891_v35, %v1414_v27  ;;  %v1417_v28 = vshll.u32 %v10882_v37, %v1414_v27  ;;  %v1420_v44 = vshll.u32 %v10887_v31, %v1414_v27  ;;  %11054 = vst [vmem:[#allocation9_spill] sm:$0xff] %v6762_v17 }
  0xfd   : > { %v1423_v43 = vshll.u32 %v10899_v33, %v1414_v27  ;;  %v1429_v18 = vshll.u32 %v10894_v40, %v1414_v27  ;;  %v1344_v45 = vadd.s32 536870912, %v1343_v29  ;;  %vm1435_vm9 = vcmp.lt.s32.totalorder %v6748_v25, 4 }
  0xfe   : > { %v1418_v49 = vshrl.u32 %v10887_v31, %v6731_v56  ;;  %v1421_v7 = vshrl.u32 %v10899_v33, %v6731_v56  ;;  %v1424_v61 = vshrl.u32 %v10891_v35, %v6731_v56  ;;  %v1427_v62 = vshrl.u32 %v10894_v40, %v6731_v56 }
  0xff   : > { %v1430_v20 = vshrl.u32 %v10903_v42, %v6731_v56  ;;  %vm5692_vm10 = vcmp.lt.s32.totalorder %v5691_v63, 0  ;;  %v1040_v1 = vsel %vm1038_vm7, %v1039_v15, %v6727_v14  ;;  %v1199_v32 = vsel %vm5698_vm8, 0, %v5697_v58 }
 0x100   : > { %v1428_v54 = vor.u32 %v1427_v62, %v1426_v16  ;;  %v6764_v57 = vor.u32 %v1418_v49, %v1417_v28  ;;  %v6766_v26 = vor.u32 %v1421_v7, %v1420_v44  ;;  %v6768_v39 = vor.u32 %v1424_v61, %v1423_v43 }
 0x101   : > { %v1431_v12 = vor.u32 %v1430_v20, %v1429_v18  ;;  %v1408_v52 = vor.u32 8388608, %v1407_v24  ;;  %vm1432_vm11 = vcmp.lt.s32.totalorder %v6748_v25, 1  ;;  %vm1434_vm14 = vcmp.lt.s32.totalorder %v6748_v25, 3 }
 0x102   : > { %v1441_v27 = vsel %vm1435_vm9, %v1428_v54, 920167782  ;;  %v1558_v55 = vand.u32 2139095040, %v6762_v17  ;;  %v6780_v48 = vshrl.u32 %v1344_v45, 30  ;;  %v1440_v19 = vsel %vm1432_vm11, %v6764_v57, %v6766_v26 }
 0x103   : > { %v1442_v58 = vsel %vm1434_vm14, %v6768_v39, %v1441_v27  ;;  %v1445_v4 = vsel %vm1435_vm9, %v1431_v12, 1326507024  ;;  %v1041_v15 = vclz %v1040_v1  ;;  %v1204_v51 = vsub.s32 4294967266, %v1199_v32 }
 0x104   : > { %v1444_v49 = vsel %vm1432_vm11, %v6766_v26, %v6768_v39  ;;  %v1446_v7 = vsel %vm1434_vm14, %v1428_v54, %v1445_v4  ;;  %vm1433_vm15 = vcmp.lt.s32.totalorder %v6748_v25, 2  ;;  %v889_v61 = vsel %vm5692_vm10, 0, %v5691_v63 }
 0x105   : > { %v6801_v16 = vsel %vm1433_vm15, %v1440_v19, %v1442_v58  ;;  %v1346_v62 = vshll.u32 %v6780_v48, 30  ;;  %v6806_v60 = vsel %vm1433_vm15, %v1444_v49, %v1446_v7  ;;  %v6808_v24 = vshll.u32 %v1408_v52, 8 }
 0x106   : > { %v1559_v28 = vshrl.u32 %v1558_v55, 23  ;;  %v5694_v44 = vadd.s32 4294967294, %v1041_v15  ;;  %v1205_v43 = vadd.s32 127, %v1204_v51  ;;  %v894_v54 = vsub.s32 4294967266, %v889_v61 }
 0x107   : > { %v1474_v18 = vshrl.u32 %v6801_v16, 16  ;;  %v890_v20 = vsub.s32 32, %v889_v61  ;;  %v1200_v63 = vsub.s32 32, %v1199_v32  ;;  %v1452_v45 = vshrl.u32 %v6806_v60, 16 }
 0x108   : > { %v6812_v12 = vsub.s32 %v1343_v29, %v1346_v62  ;;  %v1449_v1 = vand.u32 65535, %v6808_v24  ;;  %v5705_v27 = vadd.s32 4294967169, %v1559_v28  ;;  %v874_v19 = vadd.s32 %v6415_v9, %v6423_v41 }
 0x109   : > { %vm5695_vm12 = vcmp.lt.s32.totalorder %v5694_v44, 0  ;;  %v1184_v52 = vadd.s32 %v6582_v38, %v6579_v0  ;;  %v1206_v55 = vshll.u32 %v1205_v43, 23  ;;  %v895_v58 = vadd.s32 127, %v894_v54 }
 0x10a   : > { %v6819_v4 = vmul.u32 %v1474_v18, %v1449_v1  ;;  %v892_v15 = vshrl.u32 %v874_v19, %v890_v20  ;;  %v6821_v49 = vmul.u32 %v1452_v45, %v1449_v1  ;;  %v6823_v29 = vsel %vm5695_vm12, 0, %v5694_v44 }
 0x10b   : > { %v1202_v51 = vshrl.u32 %v1184_v52, %v1200_v63  ;;  %v1349_v7 = vsub.s32 0, %v6812_v12  ;;  %v1473_v62 = vand.u32 65535, %v6801_v16  ;;  %v1565_v28 = vadd.s32 1, %v5705_v27 }
 0x10c   : > { %v1201_v9 = vshll.u32 %v6683_v47, %v1199_v32  ;;  %v1207_v41 = vor.u32 4788187, %v1206_v55  ;;  %vm1348_vm13 = vcmp.lt.s32.totalorder %v6812_v12, 0  ;;  %v1451_v0 = vand.u32 65535, %v6806_v60 }
 0x10d   : > { %v896_v38 = vshll.u32 %v895_v58, 23  ;;  %v1450_v43 = vshrl.u32 %v6808_v24, 16  ;;  %v1479_v54 = vshll.u32 %v6819_v4, 16  ;;  %vm1566_vm3 = vcmp.gt.s32.totalorder %v1565_v28, 0 }
 0x10e   : > { %v891_v44 = vshll.u32 %v6692_v46, %v889_v61  ;;  %v1203_v20 = vor.u32 %v1202_v51, %v1201_v9  ;;  %v1457_v63 = vshll.u32 %v6821_v49, 16  ;;  %v1049_v16 = vsub.s32 4294967266, %v6823_v29 }
 0x10f   : > { %v1350_v47 = vsel %vm1348_vm13, %v1349_v7, %v6812_v12  ;;  %v1475_v32 = vmul.u32 %v1473_v62, %v1449_v1  ;;  %v6836_v27 = vmul.u32 %v1473_v62, %v1450_v43  ;;  %v1208_v19 = vand.u32 2147483647, %v1207_v41 }
 0x110   : > { %v1453_v60 = vmul.u32 %v1451_v0, %v1449_v1  ;;  %v6838_v52 = vmul.u32 %v1451_v0, %v1450_v43  ;;  %v1567_v55 = vsel %vm1566_vm3, %v1565_v28, 0  ;;  %v893_v58 = vor.u32 %v892_v15, %v891_v44 }
 0x111   : > { %v897_v36 = vor.u32 4788187, %v896_v38  ;;  %vm1483_vm4 = vc.u32 %v1475_v32, %v1479_v54  ;;  %v6840_v59 = vadd.s32 %v1479_v54, %v1475_v32  ;;  %v1210_v46 = vcvt.s32.f32 %v1203_v20 }
 0x112   : > { %v1351_v61 = vclz %v1350_v47  ;;  %vm1461_vm5 = vc.u32 %v1453_v60, %v1457_v63  ;;  %v1463_v51 = vadd.s32 %v1457_v63, %v1453_v60  ;;  %v1050_v9 = vadd.s32 127, %v1049_v16 }
 0x113   : > { %v1481_v7 = vshll.u32 %v6836_v27, 16  ;;  %v1569_v37 = vand.u32 31, %v1567_v55  ;;  %v1211_v62 = vmul.f32 %v1210_v46, %v1208_v19  ;;  %v1459_v41 = vshll.u32 %v6838_v52, 16 }
 0x114   : > { %v1484_v1 = vsel %vm1483_vm4, 1, %v10885_v10  ;;  %v10884_v28 = vand.u32 2147483647, %v6762_v17  ;;  %v900_v15 = vcvt.s32.f32 %v893_v58  ;;  %v1462_v0 = vsel %vm1461_vm5, 1, %v10885_v10 }
 0x115   : > { %v1478_v38 = vmul.u32 %v1474_v18, %v1450_v43  ;;  %vm1487_vm6 = vc.u32 %v6840_v59, %v1481_v7  ;;  %v898_v54 = vand.u32 2147483647, %v897_v36  ;;  %v5700_v44 = vadd.s32 4294967294, %v1351_v61 }
 0x116   : > { %v1456_v20 = vmul.u32 %v1452_v45, %v1450_v43  ;;  %vm1465_vm7 = vc.u32 %v1463_v51, %v1459_v41  ;;  %v1045_v63 = vsub.s32 32, %v6823_v29  ;;  %v1051_v16 = vshll.u32 %v1050_v9, 23 }
 0x117   : > { %v1486_v47 = vadd.s32 %v1484_v1, %v1478_v38  ;;  %v6851_v32 = vsub.s32 32, %v1569_v37  ;;  %v1212_v19 = vxor.u32 2147483648, %v1211_v62  ;;  %v1488_v58 = vsel %vm1487_vm6, 1, %v10885_v10 }
 0x118   : > { %v1464_v60 = vadd.s32 %v1462_v0, %v1456_v20  ;;  %v6856_v18 = vand.u32 8388607, %v10884_v28  ;;  %v1029_v36 = vadd.s32 %v6613_v13, %v6573_v2  ;;  %vm6862_vm8 = vcmp.le.f32.partialorder %v1090_v34, 0.7853982  ;;  %v6876_v13 = vpop.permute.xlu1 %427 }
 0x119   : > { %v1466_v43 = vsel %vm1465_vm7, 1, %v10885_v10  ;;  %v6867_v46 = vmul.f32 %v900_v15, %v898_v54  ;;  %v1046_v61 = vshll.u32 %v6727_v14, %v6823_v29  ;;  %vm1092_vm10 = vcmp.lt.s32.totalorder %v6374_v53, 0  ;;  %v426_v10 = vpop.permute.xlu0 %425 }
 0x11a   : > { %vm5701_vm12 = vcmp.lt.s32.totalorder %v5700_v44, 0  ;;  %v1047_v51 = vshrl.u32 %v1029_v36, %v1045_v63  ;;  %v6872_v9 = vor.u32 4788187, %v1051_v16  ;;  %v1490_v2 = vadd.s32 %v1488_v58, %v1486_v47 }
 0x11b   : > { %v1585_v34 = vshrl.u32 %v10903_v42, %v6851_v32  ;;  %v1213_v41 = vsel %vm1092_vm10, %v1212_v19, %v1211_v62  ;;  %v1468_v1 = vadd.s32 %v1466_v43, %v1464_v60  ;;  %v1563_v15 = vor.u32 8388608, %v6856_v18 }
 0x11c   : > { %v1582_v0 = vshrl.u32 %v10894_v40, %v6851_v32  ;;  %v6883_v38 = vsel %vm5701_vm12, 0, %v5700_v44  ;;  %v1458_v54 = vshrl.u32 %v6821_v49, 16  ;;  %v1480_v20 = vshrl.u32 %v6819_v4, 16 }
 0x11d   : > { %v1584_v63 = vshll.u32 %v10894_v40, %v1569_v37  ;;  %v6888_v16 = vshrl.u32 %v1567_v55, 5  ;;  %v1576_v47 = vshrl.u32 %v10899_v33, %v6851_v32  ;;  %v1579_v62 = vshrl.u32 %v10891_v35, %v6851_v32 }
 0x11e   : > { %v1581_v19 = vshll.u32 %v10891_v35, %v1569_v37  ;;  %v6898_v44 = vsel %vm6862_vm8, %v6374_v53, %v1213_v41  ;;  %v1491_v49 = vadd.s32 %v1490_v2, %v1480_v20  ;;  %v1573_v4 = vshrl.u32 %v10887_v31, %v6851_v32 }
 0x11f   : > { %v1586_v60 = vor.u32 %v1585_v34, %v1584_v63  ;;  %v1469_v55 = vadd.s32 %v1468_v1, %v1458_v54  ;;  %v1575_v58 = vshll.u32 %v10887_v31, %v1569_v37  ;;  %v1578_v18 = vshll.u32 %v10899_v33, %v1569_v37 }
 0x120   : > { %v1583_v36 = vor.u32 %v1582_v0, %v1581_v19  ;;  %v1359_v43 = vsub.s32 4294967266, %v6883_v38  ;;  %v1437_v28 = vsel %vm1435_vm9, %v6768_v39, 2102212464  ;;  %v1482_v41 = vshrl.u32 %v6836_v27, 16 }
 0x121   : > { %v11057_v2 = vmov 683565275   ;;  %v1460_v34 = vshrl.u32 %v6838_v52, 16  ;;  %v6911_v1 = vor.u32 %v1576_v47, %v1575_v58  ;;  %v6913_v54 = vor.u32 %v1579_v62, %v1578_v18  ;;  %v5995_v62 = vld [vmem:[%s6115_s30 + $0x30] sm:$0xff] }
 0x122   : > { %v1572_v20 = vshll.u32 %v11057_v2, %v1569_v37  ;;  %vm1590_vm13 = vcmp.lt.s32.totalorder %v6888_v16, 4  ;;  %v1416_v0 = vshrl.u32 %v11057_v2, %v6731_v56  ;;  %v1492_v63 = vadd.s32 %v1491_v49, %v1482_v41 }
 0x123   : > { %v1600_v39 = vsel %vm1590_vm13, %v1586_v60, 1326507024  ;;  %v6924_v37 = vmul.f32 %v6898_v44, %v6898_v44  ;;  %v6926_v52 = vadd.s32 %v1469_v55, %v1460_v34  ;;  %v1596_v47 = vsel %vm1590_vm13, %v1583_v36, 920167782 }
 0x124   : > { %v6918_v19 = vor.u32 %v1573_v4, %v1572_v20  ;;  %v706_v58 = vsel %vm10909_vm0, %v5995_v62, %v426_v10  ;;  %v1436_v56 = vsel %vm1432_vm11, %v1416_v0, %v6764_v57  ;;  %v1438_v49 = vsel %vm1434_vm14, %v6766_v26, %v1437_v28  ;;  %v634_v4 = vpop.permute.xlu1 %633  ;;  %v530_v26 = vpop.permute.xlu2 %529 }
 0x125   : > { %11058 = vst [vmem:[#allocation10_spill] sm:$0xff] %v6924_v37  ;;  %vm1587_vm9 = vcmp.lt.s32.totalorder %v6888_v16, 1  ;;  %vm1589_vm3 = vcmp.lt.s32.totalorder %v6888_v16, 3  ;;  %v1360_v60 = vadd.s32 127, %v1359_v43  ;;  %v6943_v55 = vadd.s32 %v6840_v59, %v1481_v7 }
 0x126   : > { %v1599_v10 = vsel %vm1587_vm9, %v6911_v1, %v6913_v54  ;;  %v1601_v57 = vsel %vm1589_vm3, %v1583_v36, %v1600_v39  ;;  %v1496_v28 = vadd.s32 1, %v1492_v63  ;;  %v1595_v18 = vsel %vm1587_vm9, %v6918_v19, %v6911_v1 }
 0x127   : > { %v1597_v59 = vsel %vm1589_vm3, %v6913_v54, %v1596_v47  ;;  %v733_v27 = vsel %vm10908_vm1, %v706_v58, %v530_v26  ;;  %v1355_v7 = vsub.s32 32, %v6883_v38  ;;  %vm1495_vm11 = vc.u32 %v6926_v52, %v6943_v55 }
 0x128   : > { %vm1588_vm14 = vcmp.lt.s32.totalorder %v6888_v16, 2  ;;  %v6964_v36 = vsel %vm753_vm2, %v733_v27, %v634_v4  ;;  %v1048_v43 = vor.u32 %v1047_v51, %v1046_v61  ;;  %v1226_v41 = vmul.f32 -0.00019511016, %v6924_v37 }
 0x129   : > { %11059 = vst [vmem:[#allocation11_spill] sm:$0xff] %v6964_v36  ;;  %v1439_v20 = vsel %vm1433_vm15, %v1436_v56, %v1438_v49  ;;  %v1602_v34 = vsel %vm1588_vm14, %v1599_v10, %v1601_v57  ;;  %v1339_v0 = vadd.s32 %v6722_v50, %v6711_v21  ;;  %v1361_v39 = vshll.u32 %v1360_v60, 23 }
 0x12a   : > { %v1598_v47 = vsel %vm1588_vm14, %v1595_v18, %v1597_v59  ;;  %v6978_v62 = vshll.u32 %v1563_v15, 8  ;;  %v1053_v14 = vand.u32 2147483647, %v6872_v9  ;;  %v1497_v29 = vsel %vm1495_vm11, %v1496_v28, %v1492_v63 }
 0x12b   : > { %v1713_v61 = vand.u32 2139095040, %v6964_v36  ;;  %v902_v25 = vxor.u32 2147483648, %v6867_v46  ;;  %v1357_v51 = vshrl.u32 %v1339_v0, %v1355_v7  ;;  %v1493_v58 = vmul.u32 %v6808_v24, %v1439_v20 }
 0x12c   : > { %v1607_v56 = vshrl.u32 %v1602_v34, 16  ;;  %v1055_v49 = vcvt.s32.f32 %v1048_v43  ;;  %v1227_v4 = vadd.f32 0.008332121, %v1226_v41  ;;  %v1629_v21 = vshrl.u32 %v1598_v47, 16 }
 0x12d   : > { %v1714_v50 = vshrl.u32 %v1713_v61, 23  ;;  %v1356_v60 = vshll.u32 %v6812_v12, %v6883_v38  ;;  %v1362_v15 = vor.u32 4788187, %v1361_v39  ;;  %v6986_v10 = vadd.s32 %v1497_v29, %v1493_v58 }
 0x12e   : > { %v1604_v9 = vand.u32 65535, %v6978_v62  ;;  %vm10907_vm15 = vcmp.lt.s32.totalorder %v6204_v6, 0  ;;  %v6990_v63 = vmul.f32 %v1055_v49, %v1053_v14  ;;  %v379_v24 = vadd.f32 1.5707964, %v6439_v3 }
 0x12f   : > { %v5708_v57 = vadd.s32 4294967169, %v1714_v50  ;;  %v903_v26 = vsel %vm10907_vm15, %v902_v25, %v6867_v46  ;;  %v1214_v28 = vsub.s32 4, %v6661_v11  ;;  %v1358_v18 = vor.u32 %v1357_v51, %v1356_v60  ;;  %v5996_v60 = vld [vmem:[%s6115_s30 + $0x38] sm:$0xff] }
 0x130   : > { %v6997_v12 = vmul.u32 %v1607_v56, %v1604_v9  ;;  %v1228_v38 = vmul.f32 %v1227_v4, %v6924_v37  ;;  %v7000_v59 = vmul.u32 %v1629_v21, %v1604_v9  ;;  %657 = vrot.lane.b32.xlu2 %v379_v24, %s6051_s10  ;;  %v11060_v7 = vand.u32 2147483647, %v6204_v6 }
 0x131   : > { %v1720_v27 = vadd.s32 1, %v5708_v57  ;;  %v11061_v3 = vmov 0  ;;  %v1363_v43 = vand.u32 2147483647, %v1362_v15  ;;  %v1499_v46 = vadd.s32 536870912, %v6986_v10 }
 0x132   : > { %vm7005_vm4 = vcmp.le.f32.partialorder %v11060_v7, 0.7853982  ;;  %v1606_v41 = vand.u32 65535, %v1602_v34  ;;  %v1628_v39 = vand.u32 65535, %v1598_v47  ;;  %v7019_v14 = vsel %vm1092_vm10, %v1214_v28, %v6661_v11  ;;  %v636_v7 = vpop.permute.xlu2 %635 }
 0x133   : > { %v11062_v3 = vsel %vm7005_vm4, 4294967295, %v11061_v3  ;;  %v7013_v20 = vsel %vm7005_vm4, %v6204_v6, %v903_v26  ;;  %vm1721_vm5 = vcmp.gt.s32.totalorder %v1720_v27, 0  ;;  %v1365_v29 = vcvt.s32.f32 %v1358_v18 }
 0x134   : > { %11063 = vst [vmem:[#allocation12_spill] sm:$0xff] %v11062_v3  ;;  %v1612_v61 = vshll.u32 %v6997_v12, 16  ;;  %v1722_v25 = vsel %vm1721_vm5, %v1720_v27, 0  ;;  %v1229_v34 = vadd.f32 -0.16666654, %v1228_v38  ;;  %v1605_v51 = vshrl.u32 %v6978_v62, 16 }
 0x135   : > { %11064 = vst [vmem:[#allocation13_spill] sm:$0xff] %v7013_v20  ;;  %v1634_v58 = vshll.u32 %v7000_v59, 16  ;;  %v1724_v49 = vand.u32 31, %v1722_v25  ;;  %v7024_v4 = vmul.f32 %v1365_v29, %v1363_v43  ;;  %v7026_v50 = vshrl.u32 %v1499_v46, 30 }
 0x136   : > { %v1608_v47 = vmul.u32 %v1606_v41, %v1604_v9  ;;  %v707_v11 = vsel %vm10909_vm0, %v5996_v60, %v6876_v13  ;;  %v7031_v15 = vmul.u32 %v1606_v41, %v1605_v51  ;;  %v1630_v57 = vmul.u32 %v1628_v39, %v1604_v9 }
 0x137   : > { %v10898_v24 = vand.u32 2147483647, %v6964_v36  ;;  %v7034_v26 = vsub.s32 32, %v1724_v49  ;;  %v1611_v28 = vmul.u32 %v1607_v56, %v1605_v51  ;;  %v7040_v38 = vmul.u32 %v1628_v39, %v1605_v51 }
 0x138   : > { %vm7036_vm6 = vc.u32 %v1608_v47, %v1612_v61  ;;  %v1633_v27 = vmul.u32 %v1629_v21, %v1605_v51  ;;  %vm7042_vm7 = vc.u32 %v1630_v57, %v1634_v58  ;;  %v1727_v13 = vshll.u32 %v11057_v2, %v1724_v49 }
 0x139   : > { %v1728_v9 = vshrl.u32 %v10887_v31, %v7034_v26  ;;  %v1730_v43 = vshll.u32 %v10887_v31, %v1724_v49  ;;  %v1731_v56 = vshrl.u32 %v10899_v33, %v7034_v26  ;;  %v1734_v46 = vshrl.u32 %v10891_v35, %v7034_v26  ;;  %v532_v31 = vpop.permute.xlu0 %531 }
 0x13a   : > { %v1736_v41 = vshll.u32 %v10891_v35, %v1724_v49  ;;  %v1737_v21 = vshrl.u32 %v10894_v40, %v7034_v26  ;;  %v1717_v39 = vand.u32 8388607, %v10898_v24  ;;  %v7059_v29 = vshrl.u32 %v1722_v25, 5 }
 0x13b   : > { %v1733_v51 = vshll.u32 %v10899_v33, %v1724_v49  ;;  %v1740_v60 = vshrl.u32 %v10903_v42, %v7034_v26  ;;  %vm10956_vm10 = vcmp.lt.s32.totalorder %v6221_v22, 0  ;;  %v1618_v0 = vadd.s32 %v1612_v61, %v1608_v47 }
 0x13c   : > { %v7065_v53 = vor.u32 %v1728_v9, %v1727_v13  ;;  %v7067_v35 = vor.u32 %v1731_v56, %v1730_v43  ;;  %v1738_v3 = vor.u32 %v1737_v21, %v1736_v41  ;;  %v1614_v40 = vshll.u32 %v7031_v15, 16 }
 0x13d   : > { %v7070_v30 = vadd.s32 %v1634_v58, %v1630_v57  ;;  %v7072_v25 = vor.u32 %v1734_v46, %v1733_v51  ;;  %v11069_v24 = vmov 920167782   ;;  %v11070_v6 = vmov 0  }
 0x13e   : > { %v1739_v33 = vshll.u32 %v11069_v24, %v1724_v49  ;;  %v1617_v42 = vsel %vm7036_vm6, 1, %v11070_v6  ;;  %v1636_v8 = vshll.u32 %v7040_v38, 16  ;;  %v1639_v61 = vsel %vm7042_vm7, 1, %v11070_v6 }
 0x13f   : > { %v734_v47 = vsel %vm10908_vm1, %v707_v11, %v532_v31  ;;  %v11071_v13 = vand.u32 2147483647, %v6221_v22  ;;  %v11072_v58 = vmov 0  ;;  %vm1247_vm11 = vcmp.lt.s32.totalorder %v6461_v23, 0 }
 0x140   : > { %v1718_v49 = vor.u32 8388608, %v1717_v39  ;;  %v1741_v57 = vor.u32 %v1740_v60, %v1739_v33  ;;  %vm1742_vm5 = vcmp.lt.s32.totalorder %v7059_v29, 1  ;;  %vm1745_vm6 = vcmp.lt.s32.totalorder %v7059_v29, 4 }
 0x141   : > { %vm7085_vm12 = vcmp.le.f32.partialorder %v11071_v13, 0.7853982  ;;  %vm7092_vm15 = vc.u32 %v1618_v0, %v1614_v40  ;;  %vm1744_vm7 = vcmp.lt.s32.totalorder %v7059_v29, 3  ;;  %v1750_v31 = vsel %vm1742_vm5, %v7065_v53, %v7067_v35 }
 0x142   : > { %v11073_v58 = vsel %vm7085_vm12, 4294967295, %v11072_v58  ;;  %v1751_v11 = vsel %vm1745_vm6, %v1738_v3, 920167782  ;;  %vm1642_vm1 = vc.u32 %v7070_v30, %v1636_v8  ;;  %vm1743_vm0 = vcmp.lt.s32.totalorder %v7059_v29, 2 }
 0x143   : > { %11074 = vst [vmem:[#allocation14_spill] sm:$0xff] %v11073_v58  ;;  %v1752_v33 = vsel %vm1744_vm7, %v7072_v25, %v1751_v11  ;;  %v7111_v40 = vsel %vm753_vm2, %v734_v47, %v636_v7  ;;  %v1230_v0 = vmul.f32 %v1229_v34, %v6924_v37  ;;  %v1367_v9 = vxor.u32 2147483648, %v7024_v4 }
 0x144   : > { %11077 = vst [vmem:[#allocation15_spill] sm:$0xff] %v7111_v40  ;;  %v7117_v43 = vsel %vm1743_vm0, %v1750_v31, %v1752_v33  ;;  %v1754_v56 = vsel %vm1742_vm5, %v7067_v35, %v7072_v25  ;;  %v1619_v46 = vadd.s32 %v1617_v42, %v1611_v28  ;;  %v1641_v41 = vadd.s32 %v1639_v61, %v1633_v27 }
 0x145   : > { %v1755_v21 = vsel %vm1745_vm6, %v1741_v57, 1326507024  ;;  %v7125_v39 = vshll.u32 %v1718_v49, 8  ;;  %v1621_v34 = vsel %vm7092_vm15, 1, %v11070_v6  ;;  %v1643_v51 = vsel %vm1642_vm1, 1, %v11070_v6 }
 0x146   : > { %v1756_v60 = vsel %vm1744_vm7, %v1738_v3, %v1755_v21  ;;  %v1868_v47 = vand.u32 2139095040, %v7111_v40  ;;  %v11078_v42 = vxor.u32 2147483648, %v6990_v63  ;;  %v1501_v27 = vshll.u32 %v7026_v50, 30 }
 0x147   : > { %v7142_v61 = vsel %vm1743_vm0, %v1754_v56, %v1756_v60  ;;  %v1784_v13 = vshrl.u32 %v7117_v43, 16  ;;  %v1217_v3 = vsel %vm6862_vm8, 0, %v7019_v14  ;;  %v11079_v49 = vand.u32 2147483647, %v6461_v23 }
 0x148   : > { %v1058_v28 = vsel %vm10956_vm10, %v11078_v42, %v6990_v63  ;;  %v11080_v57 = vmov 0  ;;  %v1369_v63 = vsub.s32 4, %v6780_v48  ;;  %v1762_v18 = vshrl.u32 %v7142_v61, 16 }
 0x149   : > { %vm7150_vm1 = vcmp.le.f32.partialorder %v11079_v49, 0.7853982  ;;  %v1231_v7 = vadd.f32 1.0, %v1230_v0  ;;  %v1623_v31 = vadd.s32 %v1621_v34, %v1619_v46  ;;  %v1645_v11 = vadd.s32 %v1643_v51, %v1641_v41 }
 0x14a   : > { %v11081_v57 = vsel %vm7150_vm1, 4294967295, %v11080_v57  ;;  %v1759_v33 = vand.u32 65535, %v7125_v39  ;;  %v7159_v56 = vmul.f32 %v7013_v20, %v7013_v20  ;;  %v7164_v45 = vsel %vm7085_vm12, %v6221_v22, %v1058_v28 }
 0x14b   : > { %11082 = vst [vmem:[#allocation16_spill] sm:$0xff] %v11081_v57  ;;  %v1368_v14 = vsel %vm1247_vm11, %v1367_v9, %v7024_v4  ;;  %v1869_v21 = vshrl.u32 %v1868_v47, 23  ;;  %v7170_v0 = vsub.s32 %v6986_v10, %v1501_v27  ;;  %v1613_v46 = vshrl.u32 %v6997_v12, 16 }
 0x14c   : > { %11083 = vst [vmem:[#allocation17_spill] sm:$0xff] %v7159_v56  ;;  %v1635_v41 = vshrl.u32 %v7000_v59, 16  ;;  %v7176_v34 = vmul.u32 %v1784_v13, %v1759_v33  ;;  %v7178_v51 = vadd.s32 3, %v1217_v3  ;;  %v7183_v60 = vsel %vm1247_vm11, %v1369_v63, %v6780_v48 }
 0x14d   : > { %11084 = vst [vmem:[#allocation18_spill] sm:$0xff] %v7164_v45  ;;  %v1571_v4 = vshrl.u32 %v11057_v2, %v6851_v32  ;;  %v7187_v10 = vmul.u32 %v1762_v18, %v1759_v33  ;;  %v7190_v12 = vmul.f32 %v1231_v7, %v6898_v44  ;;  %v1624_v59 = vadd.s32 %v1623_v31, %v1613_v46 }
 0x14e   : > { %11085 = vst [vmem:[#allocation19_spill] sm:$0xff] %v7183_v60  ;;  %v1646_v9 = vadd.s32 %v1645_v11, %v1635_v41  ;;  %v1783_v47 = vand.u32 65535, %v7117_v43  ;;  %v7196_v42 = vsel %vm7150_vm1, %v6461_v23, %v1368_v14  ;;  %v1761_v32 = vand.u32 65535, %v7142_v61 }
 0x14f   : > { %11086 = vst [vmem:[#allocation20_spill] sm:$0xff] %v7190_v12  ;;  %v1591_v48 = vsel %vm1587_vm9, %v1571_v4, %v6918_v19  ;;  %v5711_v28 = vadd.s32 4294967169, %v1869_v21  ;;  %v1504_v27 = vsub.s32 0, %v7170_v0  ;;  %v1615_v44 = vshrl.u32 %v7031_v15, 16 }
 0x150   : > { %v1637_v3 = vshrl.u32 %v7040_v38, 16  ;;  %v1789_v49 = vshll.u32 %v7176_v34, 16  ;;  %vm1503_vm8 = vcmp.lt.s32.totalorder %v7170_v0, 0  ;;  %v1592_v63 = vsel %vm1590_vm13, %v6913_v54, 2102212464 }
 0x151   : > { %v1760_v7 = vshrl.u32 %v7125_v39, 16  ;;  %v1767_v19 = vshll.u32 %v7187_v10, 16  ;;  %v7212_v61 = vadd.s32 %v1624_v59, %v1615_v44  ;;  %v1785_v11 = vmul.u32 %v1783_v47, %v1759_v33 }
 0x152   : > { %v1647_v31 = vadd.s32 %v1646_v9, %v1637_v3  ;;  %v10910_v15 = vand.u32 2147483647, %v7111_v40  ;;  %v1763_v14 = vmul.u32 %v1761_v32, %v1759_v33  ;;  %v1875_v41 = vadd.s32 1, %v5711_v28 }
 0x153   : > { %v7215_v21 = vmul.u32 %v1761_v32, %v1760_v7  ;;  %v7217_v46 = vmul.u32 %v1783_v47, %v1760_v7  ;;  %v1505_v4 = vsel %vm1503_vm8, %v1504_v27, %v7170_v0  ;;  %v1593_v54 = vsel %vm1589_vm3, %v6911_v1, %v1592_v63 }
 0x154   : > { %v7226_v59 = vadd.s32 %v7070_v30, %v1636_v8  ;;  %vm1793_vm13 = vc.u32 %v1785_v11, %v1789_v49  ;;  %vm1771_vm9 = vc.u32 %v1763_v14, %v1767_v19  ;;  %v1773_v9 = vadd.s32 %v1767_v19, %v1763_v14 }
 0x155   : > { %v7228_v33 = vadd.s32 %v1789_v49, %v1785_v11  ;;  %vm1876_vm15 = vcmp.gt.s32.totalorder %v1875_v41, 0  ;;  %v1651_v47 = vadd.s32 1, %v1647_v31  ;;  %v1872_v32 = vand.u32 8388607, %v10910_v15 }
 0x156   : > { %vm1650_vm11 = vc.u32 %v7212_v61, %v7226_v59  ;;  %v1877_v28 = vsel %vm1876_vm15, %v1875_v41, 0  ;;  %v1769_v1 = vshll.u32 %v7215_v21, 16  ;;  %v10911_v38 = vshll.u32 %v7217_v46, 16 }
 0x157   : > { %v1794_v8 = vsel %vm1793_vm13, 1, %v11070_v6  ;;  %v1879_v30 = vand.u32 31, %v1877_v28  ;;  %v7239_v27 = vmul.f32 %v7196_v42, %v7196_v42  ;;  %v1594_v44 = vsel %vm1588_vm14, %v1591_v48, %v1593_v54 }
 0x158   : > { %v1772_v3 = vsel %vm1771_vm9, 1, %v11070_v6  ;;  %v1788_v49 = vmul.u32 %v1784_v13, %v1760_v7  ;;  %v1766_v63 = vmul.u32 %v1762_v18, %v1760_v7  ;;  %vm1775_vm3 = vc.u32 %v1773_v9, %v1769_v1 }
 0x159   : > { %11087 = vst [vmem:[#allocation21_spill] sm:$0xff] %v7239_v27  ;;  %vm1797_vm8 = vc.u32 %v7228_v33, %v10911_v38  ;;  %v7249_v19 = vsub.s32 32, %v1879_v30  ;;  %v1506_v11 = vclz %v1505_v4  ;;  %v1652_v14 = vsel %vm1650_vm11, %v1651_v47, %v1647_v31 }
 0x15a   : > { %v1796_v16 = vadd.s32 %v1794_v8, %v1788_v49  ;;  %v1873_v48 = vor.u32 8388608, %v1872_v32  ;;  %v1774_v41 = vadd.s32 %v1772_v3, %v1766_v63  ;;  %v1882_v54 = vshll.u32 %v11057_v2, %v1879_v30 }
 0x15b   : > { %v11088_v43 = vmov 2475754826   ;;  %v11089_v18 = vmov 2131351028   ;;  %v1776_v9 = vsel %vm1775_vm3, 1, %v11070_v6  ;;  %v1798_v1 = vsel %vm1797_vm8, 1, %v11070_v6 }
 0x15c   : > { %v1883_v13 = vshrl.u32 %v11088_v43, %v7249_v19  ;;  %v1886_v7 = vshrl.u32 %v11089_v18, %v7249_v19  ;;  %v1885_v4 = vshll.u32 %v11088_v43, %v1879_v30  ;;  %v11090_v15 = vmov 2102212464  }
 0x15d   : > { %v1889_v31 = vshrl.u32 %v11090_v15, %v7249_v19  ;;  %v7264_v47 = vshrl.u32 %v1877_v28, 5  ;;  %v1888_v8 = vshll.u32 %v11089_v18, %v1879_v30  ;;  %v1891_v3 = vshll.u32 %v11090_v15, %v1879_v30 }
 0x15e   : > { %v7266_v32 = vor.u32 %v1883_v13, %v1882_v54  ;;  %v7270_v49 = vor.u32 %v1886_v7, %v1885_v4  ;;  %v1892_v63 = vshrl.u32 %v11069_v24, %v7249_v19  ;;  %v1894_v38 = vshll.u32 %v11069_v24, %v1879_v30 }
 0x15f   : > { %v11091_v23 = vmov 1326507024   ;;  %v7279_v28 = vadd.s32 %v6943_v55, %v6926_v52  ;;  %v5703_v54 = vadd.s32 4294967294, %v1506_v11  ;;  %v1648_v13 = vmul.u32 %v6978_v62, %v1594_v44 }
 0x160   : > { %v1895_v37 = vshrl.u32 %v11091_v23, %v7249_v19  ;;  %v1800_v58 = vadd.s32 %v1798_v1, %v1796_v16  ;;  %v1778_v20 = vadd.s32 %v1776_v9, %v1774_v41  ;;  %v7282_v22 = vor.u32 %v1889_v31, %v1888_v8 }
 0x161   : > { %v1893_v7 = vor.u32 %v1892_v63, %v1891_v3  ;;  %v7284_v56 = vadd.s32 %v1652_v14, %v1648_v13  ;;  %v1790_v30 = vshrl.u32 %v7176_v34, 16  ;;  %vm1897_vm14 = vcmp.lt.s32.totalorder %v7264_v47, 1 }
 0x162   : > { %v1896_v4 = vor.u32 %v1895_v37, %v1894_v38  ;;  %vm1900_vm13 = vcmp.lt.s32.totalorder %v7264_v47, 4  ;;  %v1768_v52 = vshrl.u32 %v7187_v10, 16  ;;  %v1905_v55 = vsel %vm1897_vm14, %v7266_v32, %v7270_v49  ;;  %v7298_v37 = vpop.permute.xlu1 %431 }
 0x163   : > { %v1906_v62 = vsel %vm1900_vm13, %v1893_v7, 920167782  ;;  %v7296_v44 = vshll.u32 %v1873_v48, 8  ;;  %v1381_v34 = vmul.f32 -0.00019511016, %v7239_v27  ;;  %vm5704_vm9 = vcmp.lt.s32.totalorder %v5703_v54, 0 }
 0x164   : > { %v1801_v38 = vadd.s32 %v1800_v58, %v1790_v30  ;;  %vm1899_vm15 = vcmp.lt.s32.totalorder %v7264_v47, 3  ;;  %v1779_v11 = vadd.s32 %v1778_v20, %v1768_v52  ;;  %vm1898_vm11 = vcmp.lt.s32.totalorder %v7264_v47, 2 }
 0x165   : > { %v1907_v10 = vsel %vm1899_vm15, %v7282_v22, %v1906_v62  ;;  %v1910_v14 = vsel %vm1900_vm13, %v1896_v4, 1326507024  ;;  %v1654_v16 = vadd.s32 536870912, %v7284_v56  ;;  %v1792_v48 = vshrl.u32 %v7217_v46, 16 }
 0x166   : > { %v1908_v41 = vsel %vm1898_vm11, %v1905_v55, %v1907_v10  ;;  %v1909_v20 = vsel %vm1897_vm14, %v7270_v49, %v7282_v22  ;;  %v1770_v58 = vshrl.u32 %v7215_v21, 16  ;;  %v1911_v9 = vsel %vm1899_vm15, %v1893_v7, %v1910_v14  ;;  %v430_v7 = vpop.permute.xlu0 %429 }
 0x167   : > { %v1914_v1 = vand.u32 65535, %v7296_v44  ;;  %v1939_v31 = vshrl.u32 %v1908_v41, 16  ;;  %v1382_v8 = vadd.f32 0.008332121, %v1381_v34  ;;  %v7321_v3 = vsel %vm5704_vm9, 0, %v5703_v54  ;;  %v5997_v34 = vld [vmem:[%s6115_s30 + $0x40] sm:$0xff] }
 0x168   : > { %v1802_v63 = vadd.s32 %v1801_v38, %v1792_v48  ;;  %v1938_v13 = vand.u32 65535, %v1908_v41  ;;  %v1726_v4 = vshrl.u32 %v11057_v2, %v7034_v26  ;;  %v7325_v30 = vadd.s32 %v1779_v11, %v1770_v58 }
 0x169   : > { %v1912_v21 = vsel %vm1898_vm11, %v1909_v20, %v1911_v9  ;;  %v7329_v52 = vmul.u32 %v1939_v31, %v1914_v1  ;;  %v1747_v55 = vsel %vm1745_vm6, %v7072_v25, 2102212464  ;;  %v1915_v54 = vshrl.u32 %v7296_v44, 16  ;;  %v534_v9 = vpop.permute.xlu2 %533 }
 0x16a   : > { %v1916_v62 = vand.u32 65535, %v1912_v21  ;;  %vm11092_vm3 = vcmask 244736   ;;  %v7337_v10 = vshrl.u32 %v1654_v16, 30  ;;  %v11093_v26 = vshll.u32 %v7217_v46, 16 }
 0x16b   : > { %v708_v38 = vsel %vm11092_vm3, %v5997_v34, %v430_v7  ;;  %v1917_v14 = vshrl.u32 %v1912_v21, 16  ;;  %v1944_v48 = vshll.u32 %v7329_v52, 16  ;;  %v1746_v25 = vsel %vm1742_vm5, %v1726_v4, %v7065_v53 }
 0x16c   : > { %v7342_v11 = vadd.s32 %v7228_v33, %v11093_v26  ;;  %v1806_v41 = vadd.s32 1, %v1802_v63  ;;  %v1940_v20 = vmul.u32 %v1938_v13, %v1914_v1  ;;  %v7348_v58 = vmul.u32 %v1938_v13, %v1915_v54  ;;  %v638_v33 = vpop.permute.xlu1 %637 }
 0x16d   : > { %v1748_v16 = vsel %vm1744_vm7, %v7067_v35, %v1747_v55  ;;  %v7355_v46 = vmul.u32 %v1917_v14, %v1914_v1  ;;  %vm11094_vm8 = vcmask 490496   ;;  %v1383_v7 = vmul.f32 %v1382_v8, %v7239_v27 }
 0x16e   : > { %vm1805_vm6 = vc.u32 %v7325_v30, %v7342_v11  ;;  %v735_v21 = vsel %vm11094_vm8, %v708_v38, %v534_v9  ;;  %v7359_v53 = vmul.u32 %v1916_v62, %v1915_v54  ;;  %vm1948_vm5 = vc.u32 %v1940_v20, %v1944_v48 }
 0x16f   : > { %v7361_v13 = vadd.s32 %v1944_v48, %v1940_v20  ;;  %v1514_v4 = vsub.s32 4294967266, %v7321_v3  ;;  %v1656_v34 = vshll.u32 %v7337_v10, 30  ;;  %v1918_v35 = vmul.u32 %v1916_v62, %v1914_v1 }
 0x170   : > { %v1922_v55 = vshll.u32 %v7355_v46, 16  ;;  %v1749_v26 = vsel %vm1743_vm0, %v1746_v25, %v1748_v16  ;;  %v1807_v40 = vsel %vm1805_vm6, %v1806_v41, %v1802_v63  ;;  %v1946_v38 = vshll.u32 %v7348_v58, 16  ;;  %vm11098_vm6 = vmmov %vm11094_vm8 }
 0x171   : > { %v7370_v8 = vsel %vm753_vm2, %v735_v21, %v638_v33  ;;  %v1921_v9 = vmul.u32 %v1917_v14, %v1915_v54  ;;  %v1943_v48 = vmul.u32 %v1939_v31, %v1915_v54  ;;  %v1949_v20 = vsel %vm1948_vm5, 1, %v11070_v6 }
 0x172   : > { %11095 = vst [vmem:[#allocation22_spill] sm:$0xff] %v7370_v8  ;;  %vm1926_vm7 = vc.u32 %v1918_v35, %v1922_v55  ;;  %v1924_v36 = vshll.u32 %v7359_v53, 16  ;;  %v1928_v62 = vadd.s32 %v1922_v55, %v1918_v35  ;;  %vm1952_vm0 = vc.u32 %v7361_v13, %v1946_v38  ;;  %v5998_v55 = vld [vmem:[%s6115_s30 + $0x48] sm:$0xff] }
 0x173   : > { %v1927_v1 = vsel %vm1926_vm7, 1, %v11070_v6  ;;  %v1384_v29 = vadd.f32 -0.16666654, %v1383_v7  ;;  %v1510_v63 = vsub.s32 32, %v7321_v3  ;;  %v1515_v25 = vadd.s32 127, %v1514_v4 }
 0x174   : > { %v1803_v41 = vmul.u32 %v7125_v39, %v1749_v26  ;;  %v1929_v14 = vadd.s32 %v1927_v1, %v1921_v9  ;;  %vm1930_vm9 = vc.u32 %v1928_v62, %v1924_v36  ;;  %v1951_v31 = vadd.s32 %v1949_v20, %v1943_v48  ;;  %v536_v9 = vpop.permute.xlu0 %535 }
 0x175   : > { %v2023_v54 = vand.u32 2139095040, %v7370_v8  ;;  %v7382_v16 = vsub.s32 %v7284_v56, %v1656_v34  ;;  %v1931_v21 = vsel %vm1930_vm9, 1, %v11070_v6  ;;  %v1953_v7 = vsel %vm1952_vm0, 1, %v11070_v6 }
 0x176   : > { %v7384_v33 = vadd.s32 %v1807_v40, %v1803_v41  ;;  %v7390_v4 = vmul.f32 %v7164_v45, %v7164_v45  ;;  %v7393_v39 = vand.u32 3, %v7178_v51  ;;  %v1512_v40 = vshrl.u32 %v7279_v28, %v1510_v63 }
 0x177   : > { %v2024_v35 = vshrl.u32 %v2023_v54, 23  ;;  %v1516_v34 = vshll.u32 %v1515_v25, 23  ;;  %v709_v26 = vsel %vm11092_vm3, %v5998_v55, %v7298_v37  ;;  %v7404_v48 = vmul.f32 %v1384_v29, %v7239_v27 }
 0x178   : > { %11096 = vst [vmem:[#allocation23_spill] sm:$0xff] %v7390_v4  ;;  %v1933_v51 = vadd.s32 %v1931_v21, %v1929_v14  ;;  %v1955_v20 = vadd.s32 %v1953_v7, %v1951_v31  ;;  %v1511_v62 = vshll.u32 %v7170_v0, %v7321_v3  ;;  %v1524_v41 = vsub.s32 4, %v7026_v50 }
 0x179   : > { %11097 = vst [vmem:[#allocation24_spill] sm:$0xff] %v7393_v39  ;;  %v5714_v1 = vadd.s32 4294967169, %v2024_v35  ;;  %v1659_v54 = vsub.s32 0, %v7382_v16  ;;  %v1809_v28 = vadd.s32 536870912, %v7384_v33  ;;  %v1923_v63 = vshrl.u32 %v7355_v46, 16  ;;  %v640_v46 = vpop.permute.xlu2 %639 }
 0x17a   : > { %v1945_v37 = vshrl.u32 %v7329_v52, 16  ;;  %v736_v29 = vsel %vm11098_vm6, %v709_v26, %v536_v9  ;;  %v7414_v55 = vor.u32 %v1512_v40, %v1511_v62  ;;  %v7416_v14 = vor.u32 4788187, %v1516_v34 }
 0x17b   : > { %v2030_v25 = vadd.s32 1, %v5714_v1  ;;  %vm1658_vm8 = vcmp.lt.s32.totalorder %v7382_v16, 0  ;;  %v10925_v0 = vand.u32 2147483647, %v7370_v8  ;;  %v1902_v3 = vsel %vm1900_vm13, %v7282_v22, 2102212464 }
 0x17c   : > { %v1934_v31 = vadd.s32 %v1933_v51, %v1923_v63  ;;  %v1956_v21 = vadd.s32 %v1955_v20, %v1945_v37  ;;  %v7423_v52 = vshrl.u32 %v1809_v28, 30  ;;  %v1881_v7 = vshrl.u32 %v11057_v2, %v7249_v19 }
 0x17d   : > { %vm2031_vm5 = vcmp.gt.s32.totalorder %v2030_v25, 0  ;;  %v7428_v40 = vsel %vm753_vm2, %v736_v29, %v640_v46  ;;  %v1660_v34 = vsel %vm1658_vm8, %v1659_v54, %v7382_v16  ;;  %v1925_v26 = vshrl.u32 %v7359_v53, 16 }
 0x17e   : > { %v2032_v35 = vsel %vm2031_vm5, %v2030_v25, 0  ;;  %11099 = vst [vmem:[#allocation25_spill] sm:$0xff] %v7428_v40  ;;  %v1947_v9 = vshrl.u32 %v7348_v58, 16  ;;  %v1518_v51 = vand.u32 2147483647, %v7416_v14  ;;  %v1901_v20 = vsel %vm1897_vm14, %v1881_v7, %v7266_v32 }
 0x17f   : > { %v2034_v22 = vand.u32 31, %v2032_v35  ;;  %v1903_v19 = vsel %vm1899_vm15, %v7270_v49, %v1902_v3  ;;  %v2027_v1 = vand.u32 8388607, %v10925_v0  ;;  %v7442_v62 = vadd.s32 %v1934_v31, %v1925_v26 }
 0x180   : > { %v1957_v54 = vadd.s32 %v1956_v21, %v1947_v9  ;;  %v2178_v28 = vand.u32 2139095040, %v7428_v40  ;;  %v1661_v63 = vclz %v1660_v34  ;;  %v1811_v37 = vshll.u32 %v7423_v52, 30 }
 0x181   : > { %v7444_v53 = vsub.s32 32, %v2034_v22  ;;  %v2037_v25 = vshll.u32 %v11057_v2, %v2034_v22  ;;  %v2040_v32 = vshll.u32 %v11088_v43, %v2034_v22  ;;  %v7453_v49 = vadd.s32 %v7361_v13, %v1946_v38 }
 0x182   : > { %v7455_v29 = vshrl.u32 %v2032_v35, 5  ;;  %vm1402_vm14 = vcmp.lt.s32.totalorder %v6689_v5, 0  ;;  %v1904_v31 = vsel %vm1898_vm11, %v1901_v20, %v1903_v19  ;;  %v2043_v21 = vshll.u32 %v11089_v18, %v2034_v22 }
 0x183   : > { %v2038_v14 = vshrl.u32 %v11088_v43, %v7444_v53  ;;  %v2041_v3 = vshrl.u32 %v11089_v18, %v7444_v53  ;;  %v2044_v58 = vshrl.u32 %v11090_v15, %v7444_v53  ;;  %v2046_v13 = vshll.u32 %v11090_v15, %v2034_v22 }
 0x184   : > { %vm1960_vm13 = vc.u32 %v7442_v62, %v7453_v49  ;;  %v1961_v38 = vadd.s32 1, %v1957_v54  ;;  %v2028_v46 = vor.u32 8388608, %v2027_v1  ;;  %v2179_v7 = vshrl.u32 %v2178_v28, 23 }
 0x185   : > { %v7470_v35 = vor.u32 %v2038_v14, %v2037_v25  ;;  %v7472_v34 = vor.u32 %v2041_v3, %v2040_v32  ;;  %v2047_v47 = vshrl.u32 %v11069_v24, %v7444_v53  ;;  %v2049_v26 = vshll.u32 %v11069_v24, %v2034_v22 }
 0x186   : > { %v5706_v9 = vadd.s32 4294967294, %v1661_v63  ;;  %v7478_v20 = vsub.s32 %v7384_v33, %v1811_v37  ;;  %v2050_v19 = vshrl.u32 %v11091_v23, %v7444_v53  ;;  %vm2052_vm15 = vcmp.lt.s32.totalorder %v7455_v29, 1 }
 0x187   : > { %v11100_v1 = vand.u32 2147483647, %v6689_v5  ;;  %v1520_v25 = vcvt.s32.f32 %v7414_v55  ;;  %v1958_v32 = vmul.u32 %v7296_v44, %v1904_v31  ;;  %v7491_v22 = vor.u32 %v2044_v58, %v2043_v21 }
 0x188   : > { %v2048_v63 = vor.u32 %v2047_v47, %v2046_v13  ;;  %v1962_v33 = vsel %vm1960_vm13, %v1961_v38, %v1957_v54  ;;  %v2051_v37 = vor.u32 %v2050_v19, %v2049_v26  ;;  %vm2054_vm7 = vcmp.lt.s32.totalorder %v7455_v29, 3 }
 0x189   : > { %vm7485_vm11 = vcmp.le.f32.partialorder %v11100_v1, 0.7853982  ;;  %v7497_v14 = vshll.u32 %v2028_v46, 8  ;;  %vm2053_vm0 = vcmp.lt.s32.totalorder %v7455_v29, 2  ;;  %vm2055_vm9 = vcmp.lt.s32.totalorder %v7455_v29, 4 }
 0x18a   : > { %v2060_v44 = vsel %vm2052_vm15, %v7470_v35, %v7472_v34  ;;  %v5717_v55 = vadd.s32 4294967169, %v2179_v7  ;;  %v1521_v3 = vmul.f32 %v1520_v25, %v1518_v51  ;;  %vm5707_vm3 = vcmp.lt.s32.totalorder %v5706_v9, 0 }
 0x18b   : > { %v1814_v31 = vsub.s32 0, %v7478_v20  ;;  %v2061_v54 = vsel %vm2055_vm9, %v2048_v63, 920167782  ;;  %vm1813_vm6 = vcmp.lt.s32.totalorder %v7478_v20, 0  ;;  %v7509_v21 = vadd.s32 %v1962_v33, %v1958_v32 }
 0x18c   : > { %v2062_v58 = vsel %vm2054_vm7, %v7491_v22, %v2061_v54  ;;  %v2064_v13 = vsel %vm2052_vm15, %v7472_v34, %v7491_v22  ;;  %v7523_v51 = vsel %vm1402_vm14, %v1524_v41, %v7026_v50  ;;  %v2065_v46 = vsel %vm2055_vm9, %v2051_v37, 1326507024 }
 0x18d   : > { %v2063_v38 = vsel %vm2053_vm0, %v2060_v44, %v2062_v58  ;;  %v2069_v7 = vand.u32 65535, %v7497_v14  ;;  %v7530_v47 = vsel %vm5707_vm3, 0, %v5706_v9  ;;  %v2066_v26 = vsel %vm2054_vm7, %v2048_v63, %v2065_v46 }
 0x18e   : > { %v2093_v19 = vand.u32 65535, %v2063_v38  ;;  %v2185_v1 = vadd.s32 1, %v5717_v55  ;;  %v1815_v25 = vsel %vm1813_vm6, %v1814_v31, %v7478_v20  ;;  %v2067_v50 = vsel %vm2053_vm0, %v2064_v13, %v2066_v26 }
 0x18f   : > { %v2070_v41 = vshrl.u32 %v7497_v14, 16  ;;  %v2094_v32 = vshrl.u32 %v2063_v38, 16  ;;  %v1522_v33 = vxor.u32 2147483648, %v1521_v3  ;;  %v1964_v37 = vadd.s32 536870912, %v7509_v21 }
 0x190   : > { %v2071_v44 = vand.u32 65535, %v2067_v50  ;;  %v2072_v54 = vshrl.u32 %v2067_v50, 16  ;;  %v7540_v9 = vadd.f32 1.0, %v7404_v48  ;;  %v1649_v55 = vadd.s32 %v7226_v59, %v7212_v61 }
 0x191   : > { %v2096_v31 = vmul.u32 %v2094_v32, %v2069_v7  ;;  %v1669_v58 = vsub.s32 4294967266, %v7530_v47  ;;  %v1816_v13 = vclz %v1815_v25  ;;  %v2095_v38 = vmul.u32 %v2093_v19, %v2069_v7 }
 0x192   : > { %vm2186_vm8 = vcmp.gt.s32.totalorder %v2185_v1, 0  ;;  %v2073_v46 = vmul.u32 %v2071_v44, %v2069_v7  ;;  %v2074_v26 = vmul.u32 %v2072_v54, %v2069_v7  ;;  %v7548_v56 = vmul.u32 %v2071_v44, %v2070_v41 }
 0x193   : > { %v7550_v50 = vmul.u32 %v2093_v19, %v2070_v41  ;;  %v7554_v48 = vsel %vm1402_vm14, %v1522_v33, %v1521_v3  ;;  %v1665_v36 = vsub.s32 32, %v7530_v47  ;;  %v7557_v0 = vshrl.u32 %v1964_v37, 30 }
 0x194   : > { %v2099_v61 = vshll.u32 %v2096_v31, 16  ;;  %v2076_v59 = vmul.u32 %v2072_v54, %v2070_v41  ;;  %v2077_v63 = vshll.u32 %v2074_v26, 16  ;;  %v2079_v25 = vshll.u32 %v7548_v56, 16 }
 0x195   : > { %v2098_v12 = vmul.u32 %v2094_v32, %v2070_v41  ;;  %v7560_v39 = vadd.s32 127, %v1669_v58  ;;  %v7562_v7 = vadd.s32 4294967294, %v1816_v13  ;;  %v2187_v44 = vsel %vm2186_vm8, %v2185_v1, 0 }
 0x196   : > { %vm2081_vm5 = vc.u32 %v2073_v46, %v2077_v63  ;;  %v2083_v3 = vadd.s32 %v2077_v63, %v2073_v46  ;;  %v2101_v33 = vshll.u32 %v7550_v50, 16  ;;  %vm2103_vm14 = vc.u32 %v2095_v38, %v2099_v61 }
 0x197   : > { %v1966_v54 = vshll.u32 %v7557_v0, 30  ;;  %v2082_v41 = vsel %vm2081_vm5, 1, %v11070_v6  ;;  %v2104_v32 = vsel %vm2103_vm14, 1, %v11070_v6  ;;  %v2105_v13 = vadd.s32 %v2099_v61, %v2095_v38 }
 0x198   : > { %v2084_v58 = vadd.s32 %v2082_v41, %v2076_v59  ;;  %vm2085_vm13 = vc.u32 %v2083_v3, %v2079_v25  ;;  %v2106_v19 = vadd.s32 %v2104_v32, %v2098_v12  ;;  %v7572_v60 = vshrl.u32 %v1649_v55, %v1665_v36 }
 0x199   : > { %v1671_v1 = vshll.u32 %v7560_v39, 23  ;;  %v2086_v63 = vsel %vm2085_vm13, 1, %v11070_v6  ;;  %v2189_v46 = vand.u32 31, %v2187_v44  ;;  %vm5710_vm3 = vcmp.lt.s32.totalorder %v7562_v7, 0 }
 0x19a   : > { %v2078_v37 = vshrl.u32 %v2074_v26, 16  ;;  %vm2107_vm6 = vc.u32 %v2105_v13, %v2101_v33  ;;  %v11103_v57 = vand.u32 2147483647, %v7428_v40  ;;  %v2088_v45 = vadd.s32 %v2086_v63, %v2084_v58 }
 0x19b   : > { %v2100_v4 = vshrl.u32 %v2096_v31, 16  ;;  %v2108_v59 = vsel %vm2107_vm6, 1, %v11070_v6  ;;  %v7580_v38 = vsub.s32 32, %v2189_v46  ;;  %v7583_v12 = vsub.s32 %v7509_v21, %v1966_v54 }
 0x19c   : > { %v2182_v27 = vand.u32 8388607, %v11103_v57  ;;  %v2036_v39 = vshrl.u32 %v11057_v2, %v7444_v53  ;;  %v2057_v36 = vsel %vm2055_vm9, %v7491_v22, 2102212464  ;;  %v2110_v55 = vadd.s32 %v2108_v59, %v2106_v19 }
 0x19d   : > { %v2192_v26 = vshll.u32 %v11057_v2, %v2189_v46  ;;  %v2193_v57 = vshrl.u32 %v11088_v43, %v7580_v38  ;;  %v2195_v31 = vshll.u32 %v11088_v43, %v2189_v46  ;;  %v2196_v61 = vshrl.u32 %v11089_v18, %v7580_v38 }
 0x19e   : > { %v2183_v21 = vor.u32 8388608, %v2182_v27  ;;  %v7596_v25 = vshrl.u32 %v2187_v44, 5  ;;  %v2198_v53 = vshll.u32 %v11089_v18, %v2189_v46  ;;  %v2199_v3 = vshrl.u32 %v11090_v15, %v7580_v38 }
 0x19f   : > { %v2080_v22 = vshrl.u32 %v7548_v56, 16  ;;  %v2089_v19 = vadd.s32 %v2088_v45, %v2078_v37  ;;  %v2102_v54 = vshrl.u32 %v7550_v50, 16  ;;  %v2111_v41 = vadd.s32 %v2110_v55, %v2100_v4 }
 0x1a0   : > { %vm1968_vm9 = vcmp.lt.s32.totalorder %v7583_v12, 0  ;;  %v1969_v32 = vsub.s32 0, %v7583_v12  ;;  %v2056_v27 = vsel %vm2052_vm15, %v2036_v39, %v7470_v35  ;;  %v2058_v44 = vsel %vm2054_vm7, %v7472_v34, %v2057_v36 }
 0x1a1   : > { %v7611_v58 = vor.u32 %v2193_v57, %v2192_v26  ;;  %v7613_v63 = vor.u32 %v2196_v61, %v2195_v31  ;;  %v2201_v45 = vshll.u32 %v11090_v15, %v2189_v46  ;;  %v2202_v4 = vshrl.u32 %v11069_v24, %v7580_v38 }
 0x1a2   : > { %v7618_v56 = vor.u32 %v2199_v3, %v2198_v53  ;;  %v2204_v50 = vshll.u32 %v11069_v24, %v2189_v46  ;;  %v2205_v35 = vshrl.u32 %v11091_v23, %v7580_v38  ;;  %vm2207_vm15 = vcmp.lt.s32.totalorder %v7596_v25, 1 }
 0x1a3   : > { %v7624_v37 = vadd.s32 %v2089_v19, %v2080_v22  ;;  %v7626_v34 = vadd.s32 %v2105_v13, %v2101_v33  ;;  %v2112_v59 = vadd.s32 %v2111_v41, %v2102_v54  ;;  %v2203_v39 = vor.u32 %v2202_v4, %v2201_v45 }
 0x1a4   : > { %v2206_v36 = vor.u32 %v2205_v35, %v2204_v50  ;;  %vm2209_vm7 = vcmp.lt.s32.totalorder %v7596_v25, 3  ;;  %vm2210_vm8 = vcmp.lt.s32.totalorder %v7596_v25, 4  ;;  %v7630_v55 = vshll.u32 %v2183_v21, 8 }
 0x1a5   : > { %v1672_v26 = vor.u32 4788187, %v1671_v1  ;;  %v7635_v46 = vsel %vm5710_vm3, 0, %v7562_v7  ;;  %vm2208_vm5 = vcmp.lt.s32.totalorder %v7596_v25, 2  ;;  %v2215_v33 = vsel %vm2207_vm15, %v7611_v58, %v7613_v63 }
 0x1a6   : > { %v1970_v13 = vsel %vm1968_vm9, %v1969_v32, %v7583_v12  ;;  %v2216_v57 = vsel %vm2210_vm8, %v2203_v39, 920167782  ;;  %v2219_v7 = vsel %vm2207_vm15, %v7613_v63, %v7618_v56  ;;  %v2220_v1 = vsel %vm2210_vm8, %v2206_v36, 1326507024 }
 0x1a7   : > { %v2059_v31 = vsel %vm2053_vm0, %v2056_v27, %v2058_v44  ;;  %vm2115_vm14 = vc.u32 %v7624_v37, %v7626_v34  ;;  %v2116_v61 = vadd.s32 1, %v2112_v59  ;;  %v2217_v21 = vsel %vm2209_vm7, %v7618_v56, %v2216_v57 }
 0x1a8   : > { %v2218_v53 = vsel %vm2208_vm5, %v2215_v33, %v2217_v21  ;;  %v2221_v3 = vsel %vm2209_vm7, %v2203_v39, %v2220_v1  ;;  %v2224_v22 = vand.u32 65535, %v7630_v55  ;;  %v2225_v19 = vshrl.u32 %v7630_v55, 16 }
 0x1a9   : > { %v11104_v29 = vsel %vm7485_vm11, 0, %v7523_v51  ;;  %v11105_v41 = vshll.u32 %v7382_v16, %v7530_v47  ;;  %v1824_v27 = vsub.s32 4294967266, %v7635_v46  ;;  %v2222_v44 = vsel %vm2208_vm5, %v2219_v7, %v2221_v3  ;;  %v7691_v7 = vpop.permute.xlu1 %435 }
 0x1aa   : > { %v7670_v54 = vadd.s32 3, %v11104_v29  ;;  %v7683_v45 = vsel %vm7485_vm11, %v6689_v5, %v7554_v48  ;;  %v2226_v4 = vand.u32 65535, %v2222_v44  ;;  %v2227_v51 = vshrl.u32 %v2222_v44, 16 }
 0x1ab   : > { %v1668_v32 = vor.u32 %v7572_v60, %v11105_v41  ;;  %v2249_v50 = vshrl.u32 %v2218_v53, 16  ;;  %v1673_v35 = vand.u32 2147483647, %v1672_v26  ;;  %v1971_v39 = vclz %v1970_v13 }
 0x1ac   : > { %v2113_v16 = vmul.u32 %v7497_v14, %v2059_v31  ;;  %v2117_v60 = vsel %vm2115_vm14, %v2116_v61, %v2112_v59  ;;  %v2228_v47 = vmul.u32 %v2226_v4, %v2224_v22  ;;  %v2229_v36 = vmul.u32 %v2227_v51, %v2224_v22 }
 0x1ad   : > { %v7689_v33 = vmul.u32 %v2226_v4, %v2225_v19  ;;  %v2248_v57 = vand.u32 65535, %v2218_v53  ;;  %v7695_v28 = vmul.f32 %v7683_v45, %v7683_v45  ;;  %v1675_v48 = vcvt.s32.f32 %v1668_v32 }
 0x1ae   : > { %v1820_v26 = vsub.s32 32, %v7635_v46  ;;  %v1825_v13 = vadd.s32 127, %v1824_v27  ;;  %v2231_v14 = vmul.u32 %v2227_v51, %v2225_v19  ;;  %v2232_v1 = vshll.u32 %v2229_v36, 16 }
 0x1af   : > { %11106 = vst [vmem:[#allocation26_spill] sm:$0xff] %v7695_v28  ;;  %v2234_v31 = vshll.u32 %v7689_v33, 16  ;;  %v2251_v59 = vmul.u32 %v2249_v50, %v2224_v22  ;;  %v1676_v61 = vmul.f32 %v1675_v48, %v1673_v35  ;;  %v1804_v21 = vadd.s32 %v7342_v11, %v7325_v30  ;;  %v434_v35 = vpop.permute.xlu0 %433 }
 0x1b0   : > { %v5712_v53 = vadd.s32 4294967294, %v1971_v39  ;;  %v7701_v3 = vadd.s32 %v2117_v60, %v2113_v16  ;;  %vm2236_vm11 = vc.u32 %v2228_v47, %v2232_v1  ;;  %v2238_v29 = vadd.s32 %v2232_v1, %v2228_v47 }
 0x1b1   : > { %v2250_v41 = vmul.u32 %v2248_v57, %v2224_v22  ;;  %v2252_v44 = vmul.u32 %v2248_v57, %v2225_v19  ;;  %vm1557_vm0 = vcmp.lt.s32.totalorder %v6762_v17, 0  ;;  %v1821_v32 = vshll.u32 %v7478_v20, %v7635_v46 }
 0x1b2   : > { %v1822_v27 = vshrl.u32 %v1804_v21, %v1820_v26  ;;  %v1826_v4 = vshll.u32 %v1825_v13, 23  ;;  %v2237_v51 = vsel %vm2236_vm11, 1, %v11070_v6  ;;  %vm2240_vm13 = vc.u32 %v2238_v29, %v2234_v31  ;;  %v538_v21 = vpop.permute.xlu2 %537  ;;  %v642_v29 = vpop.permute.xlu1 %641 }
 0x1b3   : > { %v2239_v48 = vadd.s32 %v2237_v51, %v2231_v14  ;;  %v2253_v30 = vmul.u32 %v2249_v50, %v2225_v19  ;;  %v2254_v11 = vshll.u32 %v2251_v59, 16  ;;  %vm5713_vm3 = vcmp.lt.s32.totalorder %v5712_v53, 0  ;;  %v5999_v50 = vld [vmem:[%s6115_s30 + $0x50] sm:$0xff] }
 0x1b4   : > { %v2119_v39 = vadd.s32 536870912, %v7701_v3  ;;  %v2241_v22 = vsel %vm2240_vm13, 1, %v11070_v6  ;;  %v2256_v16 = vshll.u32 %v2252_v44, 16  ;;  %v2233_v60 = vshrl.u32 %v2229_v36, 16 }
 0x1b5   : > { %v2243_v47 = vadd.s32 %v2241_v22, %v2239_v48  ;;  %vm2258_vm6 = vc.u32 %v2250_v41, %v2254_v11  ;;  %v2260_v20 = vadd.s32 %v2254_v11, %v2250_v41  ;;  %v11107_v46 = vand.u32 2147483647, %v6762_v17 }
 0x1b6   : > { %v11108_v57 = vmov 0  ;;  %v1677_v26 = vxor.u32 2147483648, %v1676_v61  ;;  %v1823_v13 = vor.u32 %v1822_v27, %v1821_v32  ;;  %v2259_v19 = vsel %vm2258_vm6, 1, %v11070_v6 }
 0x1b7   : > { %vm7711_vm9 = vcmp.le.f32.partialorder %v11107_v46, 0.7853982  ;;  %vm11111_vm14 = vcmask 244736   ;;  %v1827_v1 = vor.u32 4788187, %v1826_v4  ;;  %v7718_v31 = vsel %vm5713_vm3, 0, %v5712_v53 }
 0x1b8   : > { %v11109_v57 = vsel %vm7711_vm9, 4294967295, %v11108_v57  ;;  %v710_v14 = vsel %vm11111_vm14, %v5999_v50, %v434_v35  ;;  %v2261_v36 = vadd.s32 %v2259_v19, %v2253_v30  ;;  %vm2262_vm11 = vc.u32 %v2260_v20, %v2256_v16  ;;  %vm11114_vm3 = vmmov %vm11111_vm14 }
 0x1b9   : > { %11110 = vst [vmem:[#allocation27_spill] sm:$0xff] %v11109_v57  ;;  %v7720_v41 = vshrl.u32 %v2119_v39, 30  ;;  %v2255_v51 = vshrl.u32 %v2251_v59, 16  ;;  %v2263_v48 = vsel %vm2262_vm11, 1, %v11070_v6  ;;  %vm11112_vm13 = vcmask 490496  }
 0x1ba   : > { %v737_v32 = vsel %vm11112_vm13, %v710_v14, %v538_v21  ;;  %v1536_v27 = vmul.f32 -0.00019511016, %v7695_v28  ;;  %v2191_v35 = vshrl.u32 %v11057_v2, %v7580_v38  ;;  %v2235_v53 = vshrl.u32 %v7689_v33, 16 }
 0x1bb   : > { %v2244_v4 = vadd.s32 %v2243_v47, %v2233_v60  ;;  %v2212_v30 = vsel %vm2210_vm8, %v7618_v56, 2102212464  ;;  %v2257_v11 = vshrl.u32 %v2252_v44, 16  ;;  %v2265_v39 = vadd.s32 %v2263_v48, %v2261_v36  ;;  %v6000_v60 = vld [vmem:[%s6115_s30 + $0x58] sm:$0xff]  ;;  %v540_v44 = vpop.permute.xlu0 %539 }
 0x1bc   : > { %v7732_v59 = vsel %vm753_vm2, %v737_v32, %v642_v29  ;;  %v1678_v22 = vsel %vm1557_vm0, %v1677_v26, %v1676_v61  ;;  %v1828_v46 = vand.u32 2147483647, %v1827_v1  ;;  %v1830_v19 = vcvt.s32.f32 %v1823_v13 }
 0x1bd   : > { %11113 = vst [vmem:[#allocation28_spill] sm:$0xff] %v7732_v59  ;;  %v1979_v50 = vsub.s32 4294967266, %v7718_v31  ;;  %v2121_v38 = vshll.u32 %v7720_v41, 30  ;;  %v2266_v33 = vadd.s32 %v2265_v39, %v2255_v51  ;;  %v711_v47 = vsel %vm11114_vm3, %v6000_v60, %v7691_v7 }
 0x1be   : > { %v2333_v56 = vand.u32 2139095040, %v7732_v59  ;;  %v2211_v14 = vsel %vm2207_vm15, %v2191_v35, %v7611_v58  ;;  %v2213_v61 = vsel %vm2209_vm7, %v7613_v63, %v2212_v30  ;;  %v7748_v26 = vadd.s32 %v2244_v4, %v2235_v53  ;;  %vm11116_vm15 = vmmov %vm11112_vm13  ;;  %v644_v35 = vpop.permute.xlu2 %643 }
 0x1bf   : > { %v7750_v13 = vadd.s32 %v2260_v20, %v2256_v16  ;;  %v7754_v1 = vmul.f32 %v7540_v9, %v7196_v42  ;;  %v1537_v7 = vadd.f32 0.008332121, %v1536_v27  ;;  %v2267_v36 = vadd.s32 %v2266_v33, %v2257_v11  ;;  %v11118_v27 = vld [vmem:[#allocation11_spill] sm:$0xff] }
 0x1c0   : > { %v2334_v21 = vshrl.u32 %v2333_v56, 23  ;;  %v7759_v29 = vsel %vm7711_vm9, %v6762_v17, %v1678_v22  ;;  %v1831_v58 = vmul.f32 %v1830_v19, %v1828_v46  ;;  %v1980_v51 = vadd.s32 127, %v1979_v50 }
 0x1c1   : > { %11115 = vst [vmem:[#allocation29_spill] sm:$0xff] %v7754_v1  ;;  %v738_v63 = vsel %vm11116_vm15, %v711_v47, %v540_v44  ;;  %v7763_v48 = vsub.s32 %v7701_v3, %v2121_v38  ;;  %v2214_v16 = vsel %vm2208_vm5, %v2211_v14, %v2213_v61  ;;  %v2271_v42 = vadd.s32 1, %v2267_v36 }
 0x1c2   : > { %v5720_v9 = vadd.s32 4294967169, %v2334_v21  ;;  %v7768_v20 = vand.u32 3, %v7670_v54  ;;  %v1679_v32 = vsub.s32 4, %v7337_v10  ;;  %vm1712_vm7 = vcmp.lt.s32.totalorder %v11118_v27, 0 }
 0x1c3   : > { %vm2270_vm8 = vc.u32 %v7748_v26, %v7750_v13  ;;  %v1538_v53 = vmul.f32 %v1537_v7, %v7695_v28  ;;  %v7777_v3 = vmul.f32 %v7759_v29, %v7759_v29  ;;  %v7780_v4 = vsel %vm753_vm2, %v738_v63, %v644_v35 }
 0x1c4   : > { %11117 = vst [vmem:[#allocation30_spill] sm:$0xff] %v7768_v20  ;;  %v2340_v25 = vadd.s32 1, %v5720_v9  ;;  %v11121_v54 = vand.u32 2147483647, %v11118_v27  ;;  %v1832_v11 = vxor.u32 2147483648, %v1831_v58  ;;  %v1975_v39 = vsub.s32 32, %v7718_v31 }
 0x1c5   : > { %11119 = vst [vmem:[#allocation31_spill] sm:$0xff] %v7777_v3  ;;  %v1981_v22 = vshll.u32 %v1980_v51, 23  ;;  %v2268_v46 = vmul.u32 %v7630_v55, %v2214_v16  ;;  %v2124_v19 = vsub.s32 0, %v7763_v48  ;;  %v2272_v50 = vsel %vm2270_vm8, %v2271_v42, %v2267_v36 }
 0x1c6   : > { %11120 = vst [vmem:[#allocation32_spill] sm:$0xff] %v7780_v4  ;;  %vm7784_vm5 = vcmp.le.f32.partialorder %v11121_v54, 0.7853982  ;;  %v10935_v38 = vand.u32 2147483647, %v7732_v59  ;;  %vm2341_vm6 = vcmp.gt.s32.totalorder %v2340_v25, 0  ;;  %v1959_v33 = vadd.s32 %v7453_v49, %v7442_v62 }
 0x1c7   : > { %vm2123_vm14 = vcmp.lt.s32.totalorder %v7763_v48, 0  ;;  %v2342_v60 = vsel %vm2341_vm6, %v2340_v25, 0  ;;  %v2488_v47 = vand.u32 2139095040, %v7780_v4  ;;  %v1539_v56 = vadd.f32 -0.16666654, %v1538_v53 }
 0x1c8   : > { %v7799_v44 = vsel %vm1557_vm0, %v1679_v32, %v7337_v10  ;;  %v1691_v55 = vmul.f32 -0.00019511016, %v7777_v3  ;;  %v2344_v14 = vand.u32 31, %v2342_v60  ;;  %v1833_v61 = vsel %vm1712_vm7, %v1832_v11, %v1831_v58 }
 0x1c9   : > { %11124 = vst [vmem:[#allocation33_spill] sm:$0xff] %v7799_v44  ;;  %v1976_v62 = vshll.u32 %v7583_v12, %v7718_v31  ;;  %v1977_v49 = vshrl.u32 %v1959_v33, %v1975_v39  ;;  %v7806_v7 = vadd.s32 %v2272_v50, %v2268_v46  ;;  %v1982_v36 = vor.u32 4788187, %v1981_v22 }
 0x1ca   : > { %v2125_v21 = vsel %vm2123_vm14, %v2124_v19, %v7763_v48  ;;  %v2337_v51 = vand.u32 8388607, %v10935_v38  ;;  %v7811_v10 = vsub.s32 32, %v2344_v14  ;;  %v7813_v63 = vshrl.u32 %v2342_v60, 5 }
 0x1cb   : > { %v2347_v16 = vshll.u32 %v11057_v2, %v2344_v14  ;;  %v2350_v58 = vshll.u32 %v11088_v43, %v2344_v14  ;;  %v2489_v42 = vshrl.u32 %v2488_v47, 23  ;;  %v2353_v9 = vshll.u32 %v11089_v18, %v2344_v14 }
 0x1cc   : > { %v2348_v12 = vshrl.u32 %v11088_v43, %v7811_v10  ;;  %v2351_v31 = vshrl.u32 %v11089_v18, %v7811_v10  ;;  %v2354_v32 = vshrl.u32 %v11090_v15, %v7811_v10  ;;  %v1692_v35 = vadd.f32 0.008332121, %v1691_v55 }
 0x1cd   : > { %v2126_v53 = vclz %v2125_v21  ;;  %v2274_v25 = vadd.s32 536870912, %v7806_v7  ;;  %v2356_v54 = vshll.u32 %v11090_v15, %v2344_v14  ;;  %v7829_v11 = vsel %vm7784_vm5, %v11118_v27, %v1833_v61 }
 0x1ce   : > { %v1978_v39 = vor.u32 %v1977_v49, %v1976_v62  ;;  %v1983_v22 = vand.u32 2147483647, %v1982_v36  ;;  %v2338_v46 = vor.u32 8388608, %v2337_v51  ;;  %v7831_v19 = vor.u32 %v2348_v12, %v2347_v16 }
 0x1cf   : > { %v7833_v50 = vor.u32 %v2351_v31, %v2350_v58  ;;  %v2357_v33 = vshrl.u32 %v11069_v24, %v7811_v10  ;;  %v5723_v60 = vadd.s32 4294967169, %v2489_v42  ;;  %v7837_v47 = vor.u32 %v2354_v32, %v2353_v9 }
 0x1d0   : > { %v2359_v55 = vshll.u32 %v11069_v24, %v2344_v14  ;;  %v2360_v21 = vshrl.u32 %v11091_v23, %v7811_v10  ;;  %vm2362_vm0 = vcmp.lt.s32.totalorder %v7813_v63, 1  ;;  %v5715_v61 = vadd.s32 4294967294, %v2126_v53  ;;  %v11127_v14 = vld [vmem:[#allocation15_spill] sm:$0xff] }
 0x1d1   : > { %v7843_v62 = vshrl.u32 %v2274_v25, 30  ;;  %v2358_v49 = vor.u32 %v2357_v33, %v2356_v54  ;;  %vm2364_vm11 = vcmp.lt.s32.totalorder %v7813_v63, 3  ;;  %v7848_v36 = vmul.f32 %v7829_v11, %v7829_v11 }
 0x1d2   : > { %v1985_v51 = vcvt.s32.f32 %v1978_v39  ;;  %v2361_v16 = vor.u32 %v2360_v21, %v2359_v55  ;;  %vm2365_vm13 = vcmp.lt.s32.totalorder %v7813_v63, 4  ;;  %vm10957_vm3 = vcmp.lt.s32.totalorder %v11127_v14, 0 }
 0x1d3   : > { %11125 = vst [vmem:[#allocation34_spill] sm:$0xff] %v7843_v62  ;;  %vm2363_vm15 = vcmp.lt.s32.totalorder %v7813_v63, 2  ;;  %v2370_v58 = vsel %vm2362_vm0, %v7831_v19, %v7833_v50  ;;  %v2371_v42 = vsel %vm2365_vm13, %v2358_v49, 920167782  ;;  %v7859_v12 = vshll.u32 %v2338_v46, 8 }
 0x1d4   : > { %11126 = vst [vmem:[#allocation35_spill] sm:$0xff] %v7848_v36  ;;  %v1986_v31 = vmul.f32 %v1985_v51, %v1983_v22  ;;  %v2372_v9 = vsel %vm2364_vm11, %v7837_v47, %v2371_v42  ;;  %v2374_v32 = vsel %vm2362_vm0, %v7833_v50, %v7837_v47  ;;  %v2495_v53 = vadd.s32 1, %v5723_v60 }
 0x1d5   : > { %v1540_v25 = vmul.f32 %v1539_v56, %v7695_v28  ;;  %vm5716_vm8 = vcmp.lt.s32.totalorder %v5715_v61, 0  ;;  %v2276_v54 = vshll.u32 %v7843_v62, 30  ;;  %v2375_v39 = vsel %vm2365_vm13, %v2361_v16, 1326507024 }
 0x1d6   : > { %v1693_v22 = vmul.f32 %v1692_v35, %v7777_v3  ;;  %v1846_v46 = vmul.f32 -0.00019511016, %v7848_v36  ;;  %v11128_v33 = vand.u32 2147483647, %v11127_v14  ;;  %v11129_v55 = vmov 0 }
 0x1d7   : > { %v2373_v60 = vsel %vm2363_vm15, %v2370_v58, %v2372_v9  ;;  %v2376_v56 = vsel %vm2364_vm11, %v2358_v49, %v2375_v39  ;;  %v1834_v35 = vsub.s32 4, %v7423_v52  ;;  %v2379_v16 = vand.u32 65535, %v7859_v12 }
 0x1d8   : > { %vm7876_vm6 = vcmp.le.f32.partialorder %v11128_v33, 0.7853982  ;;  %v2377_v51 = vsel %vm2363_vm15, %v2374_v32, %v2376_v56  ;;  %v1987_v42 = vxor.u32 2147483648, %v1986_v31  ;;  %v2129_v33 = vsel %vm5716_vm8, 0, %v5715_v61 }
 0x1d9   : > { %v11130_v55 = vsel %vm7876_vm6, 4294967295, %v11129_v55  ;;  %v2380_v38 = vshrl.u32 %v7859_v12, 16  ;;  %vm2496_vm14 = vcmp.gt.s32.totalorder %v2495_v53, 0  ;;  %v7893_v58 = vsub.s32 %v7806_v7, %v2276_v54 }
 0x1da   : > { %11131 = vst [vmem:[#allocation36_spill] sm:$0xff] %v11130_v55  ;;  %v2381_v49 = vand.u32 65535, %v2377_v51  ;;  %v2382_v9 = vshrl.u32 %v2377_v51, 16  ;;  %v2404_v39 = vshrl.u32 %v2373_v60, 16  ;;  %v7895_v17 = vadd.f32 1.0, %v1540_v25 }
 0x1db   : > { %v1694_v21 = vadd.f32 -0.16666654, %v1693_v22  ;;  %v1847_v5 = vadd.f32 0.008332121, %v1846_v46  ;;  %v2403_v20 = vand.u32 65535, %v2373_v60  ;;  %v7900_v32 = vsel %vm1712_vm7, %v1834_v35, %v7423_v52 }
 0x1dc   : > { %v2134_v61 = vsub.s32 4294967266, %v2129_v33  ;;  %v7902_v56 = vmul.u32 %v2382_v9, %v2379_v16  ;;  %v7904_v44 = vmul.u32 %v2404_v39, %v2379_v16  ;;  %v1988_v7 = vsel %vm10957_vm3, %v1987_v42, %v1986_v31 }
 0x1dd   : > { %v2114_v25 = vadd.s32 %v7626_v34, %v7624_v37  ;;  %v2130_v54 = vsub.s32 32, %v2129_v33  ;;  %v2497_v22 = vsel %vm2496_vm14, %v2495_v53, 0  ;;  %v2279_v46 = vsub.s32 0, %v7893_v58 }
 0x1de   : > { %v2383_v60 = vmul.u32 %v2381_v49, %v2379_v16  ;;  %v7912_v51 = vmul.u32 %v2381_v49, %v2380_v38  ;;  %v2387_v52 = vshll.u32 %v7902_v56, 16  ;;  %v1848_v35 = vmul.f32 %v1847_v5, %v7848_v36 }
 0x1df   : > { %vm2278_vm7 = vcmp.lt.s32.totalorder %v7893_v58, 0  ;;  %v2405_v27 = vmul.u32 %v2403_v20, %v2379_v16  ;;  %v2409_v31 = vshll.u32 %v7904_v44, 16  ;;  %v7921_v37 = vsel %vm7876_vm6, %v11127_v14, %v1988_v7 }
 0x1e0   : > { %11132 = vst [vmem:[#allocation37_spill] sm:$0xff] %v7921_v37  ;;  %v2135_v34 = vadd.s32 127, %v2134_v61  ;;  %v7923_v53 = vmul.u32 %v2403_v20, %v2380_v38  ;;  %v2499_v42 = vand.u32 31, %v2497_v22  ;;  %v7926_v49 = vmul.f32 %v1694_v21, %v7777_v3 }
 0x1e1   : > { %v2131_v57 = vshll.u32 %v7763_v48, %v2129_v33  ;;  %v2132_v5 = vshrl.u32 %v2114_v25, %v2130_v54  ;;  %v2280_v1 = vsel %vm2278_vm7, %v2279_v46, %v7893_v58  ;;  %v2389_v7 = vshll.u32 %v7912_v51, 16 }
 0x1e2   : > { %v2393_v61 = vadd.s32 %v2387_v52, %v2383_v60  ;;  %v7935_v20 = vadd.f32 -0.16666654, %v1848_v35  ;;  %v7939_v21 = vmul.f32 %v7921_v37, %v7921_v37  ;;  %vm2391_vm8 = vc.u32 %v2383_v60, %v2387_v52 }
 0x1e3   : > { %vm2413_vm14 = vc.u32 %v2405_v27, %v2409_v31  ;;  %v2136_v48 = vshll.u32 %v2135_v34, 23  ;;  %v10953_v33 = vshll.u32 %v7923_v53, 16  ;;  %v7942_v25 = vadd.s32 %v2409_v31, %v2405_v27 }
 0x1e4   : > { %11133 = vst [vmem:[#allocation38_spill] sm:$0xff] %v7939_v21  ;;  %v7944_v54 = vsub.s32 32, %v2499_v42  ;;  %v7946_v16 = vor.u32 %v2132_v5, %v2131_v57  ;;  %v2281_v46 = vclz %v2280_v1  ;;  %v2386_v28 = vmul.u32 %v2382_v9, %v2380_v38 }
 0x1e5   : > { %v11134_v35 = vand.u32 2147483647, %v7780_v4  ;;  %v2392_v59 = vsel %vm2391_vm8, 1, %v11070_v6  ;;  %vm2395_vm7 = vc.u32 %v2393_v61, %v2389_v7  ;;  %v2408_v37 = vmul.u32 %v2404_v39, %v2380_v38 }
 0x1e6   : > { %v2414_v60 = vsel %vm2413_vm14, 1, %v11070_v6  ;;  %v2502_v52 = vshll.u32 %v11057_v2, %v2499_v42  ;;  %v2503_v27 = vshrl.u32 %v11088_v43, %v7944_v54  ;;  %v2505_v31 = vshll.u32 %v11088_v43, %v2499_v42 }
 0x1e7   : > { %v2492_v3 = vand.u32 8388607, %v11134_v35  ;;  %v2506_v57 = vshrl.u32 %v11089_v18, %v7944_v54  ;;  %v7958_v1 = vor.u32 4788187, %v2136_v48  ;;  %vm2417_vm8 = vc.u32 %v7942_v25, %v10953_v33 }
 0x1e8   : > { %v7963_v9 = vshrl.u32 %v2497_v22, 5  ;;  %v2508_v38 = vshll.u32 %v11089_v18, %v2499_v42  ;;  %v5718_v39 = vadd.s32 4294967294, %v2281_v46  ;;  %v2394_v34 = vadd.s32 %v2392_v59, %v2386_v28 }
 0x1e9   : > { %v2493_v5 = vor.u32 8388608, %v2492_v3  ;;  %v2509_v7 = vshrl.u32 %v11090_v15, %v7944_v54  ;;  %v2396_v61 = vsel %vm2395_vm7, 1, %v11070_v6  ;;  %v2416_v35 = vadd.s32 %v2414_v60, %v2408_v37 }
 0x1ea   : > { %v2511_v48 = vshll.u32 %v11090_v15, %v2499_v42  ;;  %v2512_v4 = vshrl.u32 %v11069_v24, %v7944_v54  ;;  %v2418_v33 = vsel %vm2417_vm8, 1, %v11070_v6  ;;  %v7973_v22 = vor.u32 %v2503_v27, %v2502_v52 }
 0x1eb   : > { %v7975_v62 = vor.u32 %v2506_v57, %v2505_v31  ;;  %v2514_v28 = vshll.u32 %v11069_v24, %v2499_v42  ;;  %v7978_v59 = vor.u32 %v2509_v7, %v2508_v38  ;;  %v2515_v46 = vshrl.u32 %v11091_v23, %v7944_v54 }
 0x1ec   : > { %v2513_v3 = vor.u32 %v2512_v4, %v2511_v48  ;;  %vm2517_vm14 = vcmp.lt.s32.totalorder %v7963_v9, 1  ;;  %v2388_v37 = vshrl.u32 %v7902_v56, 16  ;;  %v2410_v60 = vshrl.u32 %v7904_v44, 16 }
 0x1ed   : > { %vm2519_vm7 = vcmp.lt.s32.totalorder %v7963_v9, 3  ;;  %vm2520_vm8 = vcmp.lt.s32.totalorder %v7963_v9, 4  ;;  %v2398_v52 = vadd.s32 %v2396_v61, %v2394_v34  ;;  %v2420_v27 = vadd.s32 %v2418_v33, %v2416_v35 }
 0x1ee   : > { %v2516_v31 = vor.u32 %v2515_v46, %v2514_v28  ;;  %vm2518_vm10 = vcmp.lt.s32.totalorder %v7963_v9, 2  ;;  %v2140_v4 = vcvt.s32.f32 %v7946_v16  ;;  %v2346_v42 = vshrl.u32 %v11057_v2, %v7811_v10 }
 0x1ef   : > { %v2525_v56 = vsel %vm2517_vm14, %v7973_v22, %v7975_v62  ;;  %v2526_v44 = vsel %vm2520_vm8, %v2513_v3, 920167782  ;;  %vm5719_vm3 = vcmp.lt.s32.totalorder %v5718_v39, 0  ;;  %v2367_v33 = vsel %vm2365_vm13, %v7837_v47, 2102212464 }
 0x1f0   : > { %v2527_v16 = vsel %vm2519_vm7, %v7978_v59, %v2526_v44  ;;  %v2529_v10 = vsel %vm2517_vm14, %v7975_v62, %v7978_v59  ;;  %v2390_v57 = vshrl.u32 %v7912_v51, 16  ;;  %v2530_v34 = vsel %vm2520_vm8, %v2516_v31, 1326507024 }
 0x1f1   : > { %v2528_v38 = vsel %vm2518_vm10, %v2525_v56, %v2527_v16  ;;  %v8012_v7 = vshll.u32 %v2493_v5, 8  ;;  %v2399_v47 = vadd.s32 %v2398_v52, %v2388_v37  ;;  %v2412_v61 = vshrl.u32 %v7923_v53, 16 }
 0x1f2   : > { %v2421_v35 = vadd.s32 %v2420_v27, %v2410_v60  ;;  %v2531_v48 = vsel %vm2519_vm7, %v2513_v3, %v2530_v34  ;;  %v2559_v56 = vshrl.u32 %v2528_v38, 16  ;;  %v2138_v44 = vand.u32 2147483647, %v7958_v1  ;;  %v8036_v34 = vpop.permute.xlu1 %439 }
 0x1f3   : > { %v2532_v28 = vsel %vm2518_vm10, %v2529_v10, %v2531_v48  ;;  %v2534_v51 = vand.u32 65535, %v8012_v7  ;;  %v2535_v46 = vshrl.u32 %v8012_v7, 16  ;;  %v2558_v16 = vand.u32 65535, %v2528_v38 }
 0x1f4   : > { %v2536_v31 = vand.u32 65535, %v2532_v28  ;;  %v2537_v5 = vshrl.u32 %v2532_v28, 16  ;;  %v8023_v37 = vmul.f32 -0.00019511016, %v7939_v21  ;;  %v2269_v60 = vadd.s32 %v7750_v13, %v7748_v26 }
 0x1f5   : > { %v2366_v3 = vsel %vm2362_vm0, %v2346_v42, %v7831_v19  ;;  %v2368_v52 = vsel %vm2364_vm11, %v7833_v50, %v2367_v33  ;;  %v8034_v27 = vsel %vm5719_vm3, 0, %v5718_v39  ;;  %v2422_v1 = vadd.s32 %v2421_v35, %v2412_v61 }
 0x1f6   : > { %v2538_v10 = vmul.u32 %v2536_v31, %v2534_v51  ;;  %v2539_v38 = vmul.u32 %v2537_v5, %v2534_v51  ;;  %v8038_v48 = vadd.s32 %v2399_v47, %v2390_v57  ;;  %v11135_v26 = vshll.u32 %v7923_v53, 16 }
 0x1f7   : > { %v2540_v19 = vmul.u32 %v2536_v31, %v2535_v46  ;;  %v2561_v42 = vmul.u32 %v2559_v56, %v2534_v51  ;;  %v8045_v28 = vmul.f32 %v2140_v4, %v2138_v44  ;;  %v2541_v50 = vmul.u32 %v2537_v5, %v2535_v46 }
 0x1f8   : > { %v8043_v13 = vadd.s32 %v7942_v25, %v11135_v26  ;;  %v2542_v33 = vshll.u32 %v2539_v38, 16  ;;  %v2562_v39 = vmul.u32 %v2558_v16, %v2535_v46  ;;  %v2285_v61 = vsub.s32 32, %v8034_v27 }
 0x1f9   : > { %v2369_v35 = vsel %vm2363_vm15, %v2366_v3, %v2368_v52  ;;  %v2544_v23 = vshll.u32 %v2540_v19, 16  ;;  %v2560_v57 = vmul.u32 %v2558_v16, %v2534_v51  ;;  %v2289_v47 = vsub.s32 4294967266, %v8034_v27 }
 0x1fa   : > { %11136 = vst [vmem:[#allocation39_spill] sm:$0xff] %v8043_v13  ;;  %v2426_v53 = vadd.s32 1, %v2422_v1  ;;  %vm2546_vm0 = vc.u32 %v2538_v10, %v2542_v33  ;;  %v2548_v25 = vadd.s32 %v2542_v33, %v2538_v10  ;;  %vm2425_vm11 = vc.u32 %v8038_v48, %v8043_v13  ;;  %v438_v13 = vpop.permute.xlu0 %437 }
 0x1fb   : > { %v2547_v4 = vsel %vm2546_vm0, 1, %v11070_v6  ;;  %v2563_v44 = vmul.u32 %v2559_v56, %v2535_v46  ;;  %v2564_v31 = vshll.u32 %v2561_v42, 16  ;;  %v2543_v5 = vshrl.u32 %v2539_v38, 16 }
 0x1fc   : > { %v2549_v26 = vadd.s32 %v2547_v4, %v2541_v50  ;;  %vm2550_vm13 = vc.u32 %v2548_v25, %v2544_v23  ;;  %v2566_v24 = vshll.u32 %v2562_v39, 16  ;;  %v2423_v63 = vmul.u32 %v7859_v12, %v2369_v35  ;;  %v6001_v35 = vld [vmem:[%s6115_s30 + $0x60] sm:$0xff] }
 0x1fd   : > { %v2551_v51 = vsel %vm2550_vm13, 1, %v11070_v6  ;;  %vm2568_vm3 = vc.u32 %v2560_v57, %v2564_v31  ;;  %v2570_v16 = vadd.s32 %v2564_v31, %v2560_v57  ;;  %v2290_v3 = vadd.s32 127, %v2289_v47  ;;  %v646_v57 = vpop.permute.xlu1 %645 }
 0x1fe   : > { %v2427_v52 = vsel %vm2425_vm11, %v2426_v53, %v2422_v1  ;;  %v2553_v10 = vadd.s32 %v2551_v51, %v2549_v26  ;;  %v2569_v33 = vsel %vm2568_vm3, 1, %v11070_v6  ;;  %v2501_v46 = vshrl.u32 %v11057_v2, %v7944_v54  ;;  %v542_v54 = vpop.permute.xlu2 %541 }
 0x1ff   : > { %v2565_v56 = vshrl.u32 %v2561_v42, 16  ;;  %v2571_v38 = vadd.s32 %v2569_v33, %v2563_v44  ;;  %vm2572_vm15 = vc.u32 %v2570_v16, %v2566_v24  ;;  %v2545_v23 = vshrl.u32 %v2540_v19, 16 }
 0x200   : > { %v2554_v50 = vadd.s32 %v2553_v10, %v2543_v5  ;;  %v2573_v12 = vsel %vm2572_vm15, 1, %v11070_v6  ;;  %vm11137_vm0 = vcmask 244736   ;;  %v8062_v47 = vadd.s32 %v2427_v52, %v2423_v63 }
 0x201   : > { %v712_v25 = vsel %vm11137_vm0, %v6001_v35, %v438_v13  ;;  %v2522_v1 = vsel %vm2520_vm8, %v7978_v59, 2102212464  ;;  %v2567_v53 = vshrl.u32 %v2562_v39, 16  ;;  %v2575_v4 = vadd.s32 %v2573_v12, %v2571_v38  ;;  %vm11143_vm13 = vmmov %vm11137_vm0 }
 0x202   : > { %v2142_v42 = vxor.u32 2147483648, %v8045_v28  ;;  %v2286_v19 = vshll.u32 %v7893_v58, %v8034_v27  ;;  %v2287_v44 = vshrl.u32 %v2269_v60, %v2285_v61  ;;  %vm11138_vm11 = vcmask 490496  }
 0x203   : > { %v739_v31 = vsel %vm11138_vm11, %v712_v25, %v542_v54  ;;  %v2291_v5 = vshll.u32 %v2290_v3, 23  ;;  %v2521_v13 = vsel %vm2517_vm14, %v2501_v46, %v7973_v22  ;;  %v2576_v26 = vadd.s32 %v2575_v4, %v2565_v56  ;;  %v6002_v56 = vld [vmem:[%s6115_s30 + $0x68] sm:$0xff]  ;;  %vm11148_vm3 = vmmov %vm11138_vm11 }
 0x204   : > { %v8075_v63 = vsel %vm753_vm2, %v739_v31, %v646_v57  ;;  %v2523_v59 = vsel %vm2519_vm7, %v7975_v62, %v2522_v1  ;;  %v8080_v39 = vadd.s32 %v2554_v50, %v2545_v23  ;;  %v8082_v51 = vadd.s32 %v2570_v16, %v2566_v24  ;;  %v544_v50 = vpop.permute.xlu0 %543 }
 0x205   : > { %11139 = vst [vmem:[#allocation40_spill] sm:$0xff] %v8075_v63  ;;  %v2643_v58 = vand.u32 2139095040, %v8075_v63  ;;  %v2002_v60 = vadd.f32 0.008332121, %v8023_v37  ;;  %vm2022_vm8 = vcmp.lt.s32.totalorder %v7370_v8, 0  ;;  %v2429_v22 = vadd.s32 536870912, %v8062_v47 }
 0x206   : > { %v2577_v27 = vadd.s32 %v2576_v26, %v2567_v53  ;;  %v1989_v61 = vsub.s32 4, %v7557_v0  ;;  %v11140_v3 = vand.u32 2147483647, %v7370_v8  ;;  %v2143_v24 = vsel %vm2022_vm8, %v2142_v42, %v8045_v28  ;;  %v648_v42 = vpop.permute.xlu2 %647 }
 0x207   : > { %v2644_v16 = vshrl.u32 %v2643_v58, 23  ;;  %v1850_v37 = vmul.f32 %v7935_v20, %v7848_v36  ;;  %v2288_v52 = vor.u32 %v2287_v44, %v2286_v19  ;;  %v2524_v10 = vsel %vm2518_vm10, %v2521_v13, %v2523_v59 }
 0x208   : > { %vm8091_vm14 = vcmp.le.f32.partialorder %v11140_v3, 0.7853982  ;;  %v2581_v33 = vadd.s32 1, %v2577_v27  ;;  %v2292_v46 = vor.u32 4788187, %v2291_v5  ;;  %vm2580_vm7 = vc.u32 %v8080_v39, %v8082_v51 }
 0x209   : > { %v713_v38 = vsel %vm11143_vm13, %v6002_v56, %v8036_v34  ;;  %v5726_v23 = vadd.s32 4294967169, %v2644_v16  ;;  %v8109_v28 = vmul.f32 %v7895_v17, %v7683_v45  ;;  %v2003_v20 = vmul.f32 %v2002_v60, %v7939_v21 }
 0x20a   : > { %v8115_v9 = vsel %vm8091_vm14, %v7370_v8, %v2143_v24  ;;  %v8117_v12 = vshrl.u32 %v2429_v22, 30  ;;  %v1696_v35 = vadd.f32 1.0, %v7926_v49  ;;  %v11145_v34 = vsel %vm7784_vm5, 0, %v7900_v32 }
 0x20b   : > { %11144 = vst [vmem:[#allocation41_spill] sm:$0xff] %v8109_v28  ;;  %v1854_v25 = vadd.s32 3, %v11145_v34  ;;  %v2578_v57 = vmul.u32 %v8012_v7, %v2524_v10  ;;  %v2650_v17 = vadd.s32 1, %v5726_v23  ;;  %v1851_v45 = vadd.f32 1.0, %v1850_v37 }
 0x20c   : > { %vm11146_vm10 = vcmp.lt.s32.totalorder %v11127_v14, 0  ;;  %v2582_v53 = vsel %vm2580_vm7, %v2581_v33, %v2577_v27  ;;  %v740_v4 = vsel %vm11148_vm3, %v713_v38, %v544_v50  ;;  %v8133_v49 = vmul.f32 %v8115_v9, %v8115_v9 }
 0x20d   : > { %v8128_v1 = vsel %vm11146_vm10, %v1989_v61, %v7557_v0  ;;  %v2293_v30 = vand.u32 2147483647, %v2292_v46  ;;  %v2295_v54 = vcvt.s32.f32 %v2288_v52  ;;  %vm2651_vm5 = vcmp.gt.s32.totalorder %v2650_v17, 0 }
 0x20e   : > { %11147 = vst [vmem:[#allocation42_spill] sm:$0xff] %v8128_v1  ;;  %v2004_v32 = vadd.f32 -0.16666654, %v2003_v20  ;;  %v2431_v7 = vshll.u32 %v8117_v12, 30  ;;  %v10961_v19 = vand.u32 2147483647, %v8075_v63  ;;  %v8138_v31 = vadd.s32 %v2582_v53, %v2578_v57 }
 0x20f   : > { %11149 = vst [vmem:[#allocation43_spill] sm:$0xff] %v8133_v49  ;;  %v2652_v44 = vsel %vm2651_vm5, %v2650_v17, 0  ;;  %v8141_v13 = vsel %vm753_vm2, %v740_v4, %v648_v42  ;;  %v8144_v26 = vmul.f32 %v1696_v35, %v7759_v29  ;;  %v8147_v59 = vmul.f32 %v1851_v45, %v7829_v11 }
 0x210   : > { %v2654_v5 = vand.u32 31, %v2652_v44  ;;  %11150 = vst [vmem:[#allocation44_spill] sm:$0xff] %v8141_v13  ;;  %v8149_v58 = vand.u32 3, %v1854_v25  ;;  %v2156_v22 = vmul.f32 -0.00019511016, %v8133_v49  ;;  %vm2177_vm15 = vcmp.lt.s32.totalorder %v7428_v40, 0 }
 0x211   : > { %11151 = vst [vmem:[#allocation45_spill] sm:$0xff] %v8144_v26  ;;  %v2296_v27 = vmul.f32 %v2295_v54, %v2293_v30  ;;  %v2005_v3 = vmul.f32 %v2004_v32, %v7939_v21  ;;  %v8160_v29 = vsub.s32 %v8062_v47, %v2431_v7  ;;  %v2647_v11 = vand.u32 8388607, %v10961_v19 }
 0x212   : > { %11152 = vst [vmem:[#allocation46_spill] sm:$0xff] %v8147_v59  ;;  %v8156_v61 = vsub.s32 32, %v2654_v5  ;;  %v2798_v24 = vand.u32 2139095040, %v8141_v13  ;;  %v2144_v16 = vsub.s32 4, %v7720_v41  ;;  %v2584_v37 = vadd.s32 536870912, %v8138_v31 }
 0x213   : > { %11153 = vst [vmem:[#allocation47_spill] sm:$0xff] %v8149_v58  ;;  %v2657_v52 = vshll.u32 %v11057_v2, %v2654_v5  ;;  %v2660_v10 = vshll.u32 %v11088_v43, %v2654_v5  ;;  %v2663_v46 = vshll.u32 %v11089_v18, %v2654_v5  ;;  %v2157_v38 = vadd.f32 0.008332121, %v2156_v22 }
 0x214   : > { %v2658_v33 = vshrl.u32 %v11088_v43, %v8156_v61  ;;  %v2661_v47 = vshrl.u32 %v11089_v18, %v8156_v61  ;;  %v2664_v56 = vshrl.u32 %v11090_v15, %v8156_v61  ;;  %v2297_v23 = vxor.u32 2147483648, %v2296_v27 }
 0x215   : > { %v8176_v50 = vshrl.u32 %v2652_v44, 5  ;;  %v2666_v20 = vshll.u32 %v11090_v15, %v2654_v5  ;;  %vm2433_vm0 = vcmp.lt.s32.totalorder %v8160_v29, 0  ;;  %v2648_v35 = vor.u32 8388608, %v2647_v11 }
 0x216   : > { %v11154_v34 = vmov 920167782   ;;  %v2799_v57 = vshrl.u32 %v2798_v24, 23  ;;  %v2434_v17 = vsub.s32 0, %v8160_v29  ;;  %v8183_v45 = vshrl.u32 %v2584_v37, 30 }
 0x217   : > { %v2667_v25 = vshrl.u32 %v11154_v34, %v8156_v61  ;;  %v2669_v53 = vshll.u32 %v11154_v34, %v2654_v5  ;;  %v11156_v4 = vmov 1326507024   ;;  %v2659_v54 = vor.u32 %v2658_v33, %v2657_v52 }
 0x218   : > { %11155 = vst [vmem:[#allocation48_spill] sm:$0xff] %v8183_v45  ;;  %v2670_v30 = vshrl.u32 %v11156_v4, %v8156_v61  ;;  %v2662_v32 = vor.u32 %v2661_v47, %v2660_v10  ;;  %v2665_v7 = vor.u32 %v2664_v56, %v2663_v46  ;;  %v2145_v44 = vsel %vm2022_vm8, %v2144_v16, %v7720_v41 }
 0x219   : > { %v2668_v42 = vor.u32 %v2667_v25, %v2666_v20  ;;  %vm2672_vm11 = vcmp.lt.s32.totalorder %v8176_v50, 1  ;;  %vm2675_vm7 = vcmp.lt.s32.totalorder %v8176_v50, 4  ;;  %v2298_v11 = vsel %vm2177_vm15, %v2297_v23, %v2296_v27 }
 0x21a   : > { %v2671_v22 = vor.u32 %v2670_v30, %v2669_v53  ;;  %vm2674_vm13 = vcmp.lt.s32.totalorder %v8176_v50, 3  ;;  %v8196_v5 = vshll.u32 %v2648_v35, 8  ;;  %v5729_v24 = vadd.s32 4294967169, %v2799_v57 }
 0x21b   : > { %v2435_v37 = vsel %vm2433_vm0, %v2434_v17, %v8160_v29  ;;  %v2586_v52 = vshll.u32 %v8183_v45, 30  ;;  %v2681_v41 = vsel %vm2675_vm7, %v2668_v42, 920167782  ;;  %v2158_v10 = vmul.f32 %v2157_v38, %v8133_v49 }
 0x21c   : > { %v2685_v16 = vsel %vm2675_vm7, %v2671_v22, 1326507024  ;;  %vm2673_vm8 = vcmp.lt.s32.totalorder %v8176_v50, 2  ;;  %v2680_v27 = vsel %vm2672_vm11, %v2659_v54, %v2662_v32  ;;  %v2684_v33 = vsel %vm2672_vm11, %v2662_v32, %v2665_v7 }
 0x21d   : > { %v2147_v47 = vsel %vm8091_vm14, 0, %v2145_v44  ;;  %v11157_v46 = vand.u32 2147483647, %v7428_v40  ;;  %v11158_v56 = vmov 0  ;;  %v2682_v38 = vsel %vm2674_vm13, %v2665_v7, %v2681_v41  ;;  %v11163_v41 = vld [vmem:[#allocation39_spill] sm:$0xff] }
 0x21e   : > { %v2686_v23 = vsel %vm2674_vm13, %v2668_v42, %v2685_v16  ;;  %v2436_v35 = vclz %v2435_v37  ;;  %v2689_v62 = vand.u32 65535, %v8196_v5  ;;  %v2805_v25 = vadd.s32 1, %v5729_v24 }
 0x21f   : > { %vm8216_vm10 = vcmp.le.f32.partialorder %v11157_v46, 0.7853982  ;;  %v8231_v57 = vsub.s32 %v8138_v31, %v2586_v52  ;;  %v2683_v17 = vsel %vm2673_vm8, %v2680_v27, %v2682_v38  ;;  %v2687_v53 = vsel %vm2673_vm8, %v2684_v33, %v2686_v23 }
 0x220   : > { %v11159_v56 = vsel %vm8216_vm10, 4294967295, %v11158_v56  ;;  %v8227_v20 = vsel %vm8216_vm10, %v7428_v40, %v2298_v11  ;;  %v2690_v30 = vshrl.u32 %v8196_v5, 16  ;;  %v8238_v42 = vadd.f32 1.0, %v2005_v3 }
 0x221   : > { %11160 = vst [vmem:[#allocation49_spill] sm:$0xff] %v11159_v56  ;;  %v8240_v44 = vadd.f32 -0.16666654, %v2158_v10  ;;  %v8242_v22 = vadd.s32 3, %v2147_v47  ;;  %v2691_v11 = vand.u32 65535, %v2687_v53  ;;  %v8246_v24 = vmul.f32 %v8227_v20, %v8227_v20 }
 0x222   : > { %11161 = vst [vmem:[#allocation50_spill] sm:$0xff] %v8227_v20  ;;  %v2692_v31 = vshrl.u32 %v2687_v53, 16  ;;  %v2713_v37 = vand.u32 65535, %v2683_v17  ;;  %v2714_v52 = vshrl.u32 %v2683_v17, 16  ;;  %v8250_v16 = vadd.s32 %v11163_v41, %v8038_v48 }
 0x223   : > { %11162 = vst [vmem:[#allocation51_spill] sm:$0xff] %v8246_v24  ;;  %v8252_v27 = vadd.s32 4294967294, %v2436_v35  ;;  %v2656_v3 = vshrl.u32 %v11057_v2, %v8156_v61  ;;  %vm2806_vm14 = vcmp.gt.s32.totalorder %v2805_v25, 0  ;;  %vm2588_vm3 = vcmp.lt.s32.totalorder %v8231_v57, 0 }
 0x224   : > { %v2693_v10 = vmul.u32 %v2691_v11, %v2689_v62  ;;  %v2694_v33 = vmul.u32 %v2692_v31, %v2689_v62  ;;  %v2695_v47 = vmul.u32 %v2691_v11, %v2690_v30  ;;  %v2677_v46 = vsel %vm2675_vm7, %v2665_v7, 2102212464 }
 0x225   : > { %v2715_v38 = vmul.u32 %v2713_v37, %v2689_v62  ;;  %v2716_v23 = vmul.u32 %v2714_v52, %v2689_v62  ;;  %v2717_v17 = vmul.u32 %v2713_v37, %v2690_v30  ;;  %v2589_v48 = vsub.s32 0, %v8231_v57 }
 0x226   : > { %v2696_v53 = vmul.u32 %v2692_v31, %v2690_v30  ;;  %v2697_v35 = vshll.u32 %v2694_v33, 16  ;;  %v2699_v41 = vshll.u32 %v2695_v47, 16  ;;  %v2676_v61 = vsel %vm2672_vm11, %v2656_v3, %v2659_v54 }
 0x227   : > { %v2718_v60 = vmul.u32 %v2714_v52, %v2690_v30  ;;  %v2719_v0 = vshll.u32 %v2716_v23, 16  ;;  %v2807_v19 = vsel %vm2806_vm14, %v2805_v25, 0  ;;  %v2678_v11 = vsel %vm2674_vm13, %v2662_v32, %v2677_v46 }
 0x228   : > { %vm2701_vm5 = vc.u32 %v2693_v10, %v2697_v35  ;;  %v2703_v7 = vadd.s32 %v2697_v35, %v2693_v10  ;;  %v2721_v8 = vshll.u32 %v2717_v17, 16  ;;  %v2698_v62 = vshrl.u32 %v2694_v33, 16 }
 0x229   : > { %v2702_v37 = vsel %vm2701_vm5, 1, %v11070_v6  ;;  %vm2723_vm0 = vc.u32 %v2715_v38, %v2719_v0  ;;  %v2725_v31 = vadd.s32 %v2719_v0, %v2715_v38  ;;  %v2809_v54 = vand.u32 31, %v2807_v19 }
 0x22a   : > { %v2704_v14 = vadd.s32 %v2702_v37, %v2696_v53  ;;  %vm2705_vm7 = vc.u32 %v2703_v7, %v2699_v41  ;;  %v2724_v58 = vsel %vm2723_vm0, 1, %v11070_v6  ;;  %v2720_v52 = vshrl.u32 %v2716_v23, 16 }
 0x22b   : > { %v2706_v30 = vsel %vm2705_vm7, 1, %v11070_v6  ;;  %v2726_v25 = vadd.s32 %v2724_v58, %v2718_v60  ;;  %vm2727_vm11 = vc.u32 %v2725_v31, %v2721_v8  ;;  %v2700_v3 = vshrl.u32 %v2695_v47, 16 }
 0x22c   : > { %v2708_v32 = vadd.s32 %v2706_v30, %v2704_v14  ;;  %v2728_v10 = vsel %vm2727_vm11, 1, %v11070_v6  ;;  %v8269_v46 = vsub.s32 32, %v2809_v54  ;;  %v2590_v0 = vsel %vm2588_vm3, %v2589_v48, %v8231_v57 }
 0x22d   : > { %v2722_v33 = vshrl.u32 %v2717_v17, 16  ;;  %v2730_v38 = vadd.s32 %v2728_v10, %v2726_v25  ;;  %v10966_v53 = vand.u32 2147483647, %v8141_v13  ;;  %v2679_v35 = vsel %vm2673_vm8, %v2676_v61, %v2678_v11 }
 0x22e   : > { %v2709_v23 = vadd.s32 %v2708_v32, %v2698_v62  ;;  %v8277_v58 = vadd.s32 %v2725_v31, %v2721_v8  ;;  %v2812_v14 = vshll.u32 %v11057_v2, %v2809_v54  ;;  %v2813_v47 = vshrl.u32 %v11088_v43, %v8269_v46 }
 0x22f   : > { %v2731_v60 = vadd.s32 %v2730_v38, %v2720_v52  ;;  %v2815_v41 = vshll.u32 %v11088_v43, %v2809_v54  ;;  %v2816_v17 = vshrl.u32 %v11089_v18, %v8269_v46  ;;  %vm5722_vm13 = vcmp.lt.s32.totalorder %v8252_v27, 0 }
 0x230   : > { %v8286_v48 = vadd.s32 %v2709_v23, %v2700_v3  ;;  %v8288_v50 = vshrl.u32 %v2807_v19, 5  ;;  %v2818_v8 = vshll.u32 %v11089_v18, %v2809_v54  ;;  %v2591_v61 = vclz %v2590_v0 }
 0x231   : > { %v2732_v11 = vadd.s32 %v2731_v60, %v2722_v33  ;;  %v2802_v7 = vand.u32 8388607, %v10966_v53  ;;  %v2819_v62 = vshrl.u32 %v11090_v15, %v8269_v46  ;;  %v2733_v37 = vmul.u32 %v8196_v5, %v2679_v35 }
 0x232   : > { %vm2735_vm8 = vc.u32 %v8286_v48, %v8277_v58  ;;  %v2821_v31 = vshll.u32 %v11090_v15, %v2809_v54  ;;  %v2822_v19 = vshrl.u32 %v11154_v34, %v8269_v46  ;;  %v8301_v52 = vor.u32 %v2813_v47, %v2812_v14 }
 0x233   : > { %v2736_v30 = vadd.s32 1, %v2732_v11  ;;  %v8303_v25 = vor.u32 %v2816_v17, %v2815_v41  ;;  %v2824_v3 = vshll.u32 %v11154_v34, %v2809_v54  ;;  %v8306_v32 = vor.u32 %v2819_v62, %v2818_v8 }
 0x234   : > { %v2823_v10 = vor.u32 %v2822_v19, %v2821_v31  ;;  %v2825_v5 = vshrl.u32 %v11156_v4, %v8269_v46  ;;  %vm2827_vm14 = vcmp.lt.s32.totalorder %v8288_v50, 1  ;;  %v2803_v33 = vor.u32 8388608, %v2802_v7 }
 0x235   : > { %v2737_v0 = vsel %vm2735_vm8, %v2736_v30, %v2732_v11  ;;  %vm2829_vm3 = vcmp.lt.s32.totalorder %v8288_v50, 3  ;;  %vm2830_vm5 = vcmp.lt.s32.totalorder %v8288_v50, 4  ;;  %v8316_v38 = vsel %vm5722_vm13, 0, %v8252_v27  ;;  %v11164_v30 = vld [vmem:[#allocation6_spill] sm:$0xff] }
 0x236   : > { %v2738_v54 = vadd.s32 %v2737_v0, %v2733_v37  ;;  %v2826_v35 = vor.u32 %v2825_v5, %v2824_v3  ;;  %vm2828_vm0 = vcmp.lt.s32.totalorder %v8288_v50, 2  ;;  %v2440_v23 = vsub.s32 32, %v8316_v38  ;;  %v11170_v50 = vld [vmem:[#allocation8_spill] sm:$0xff] }
 0x237   : > { %v2835_v60 = vsel %vm2827_vm14, %v8301_v52, %v8303_v25  ;;  %v2836_v47 = vsel %vm2830_vm5, %v2823_v10, 920167782  ;;  %v5724_v41 = vadd.s32 4294967294, %v2591_v61  ;;  %v2839_v8 = vsel %vm2827_vm14, %v8303_v25, %v8306_v32 }
 0x238   : > { %v2739_v27 = vadd.s32 536870912, %v2738_v54  ;;  %v2837_v17 = vsel %vm2829_vm3, %v8306_v32, %v2836_v47  ;;  %v2444_v11 = vsub.s32 4294967266, %v8316_v38  ;;  %v2840_v62 = vsel %vm2830_vm5, %v2826_v35, 1326507024 }
 0x239   : > { %v2838_v7 = vsel %vm2828_vm0, %v2835_v60, %v2837_v17  ;;  %v8340_v37 = vshll.u32 %v2803_v33, 8  ;;  %v2841_v31 = vsel %vm2829_vm3, %v2823_v10, %v2840_v62  ;;  %vm5725_vm7 = vcmp.lt.s32.totalorder %v5724_v41, 0  ;;  %v11165_v62 = vld [vmem:[#allocation17_spill] sm:$0xff] }
 0x23a   : > { %v8342_v61 = vshrl.u32 %v2739_v27, 30  ;;  %v2869_v19 = vshrl.u32 %v2838_v7, 16  ;;  %v2842_v5 = vsel %vm2828_vm0, %v2839_v8, %v2841_v31  ;;  %v2868_v47 = vand.u32 65535, %v2838_v7 }
 0x23b   : > { %v2844_v0 = vand.u32 65535, %v8340_v37  ;;  %v2845_v60 = vshrl.u32 %v8340_v37, 16  ;;  %v2846_v35 = vand.u32 65535, %v2842_v5  ;;  %v2847_v27 = vshrl.u32 %v2842_v5, 16 }
 0x23c   : > { %v2741_v33 = vshll.u32 %v8342_v61, 30  ;;  %v2442_v17 = vshrl.u32 %v8250_v16, %v2440_v23  ;;  %v2445_v53 = vadd.s32 127, %v2444_v11  ;;  %v909_v14 = vmul.f32 -0.001358992, %v11165_v62 }
 0x23d   : > { %v2871_v10 = vmul.u32 %v2869_v19, %v2844_v0  ;;  %v2579_v3 = vadd.s32 %v8082_v51, %v8080_v39  ;;  %v2848_v31 = vmul.u32 %v2846_v35, %v2844_v0  ;;  %v2849_v1 = vmul.u32 %v2847_v27, %v2844_v0 }
 0x23e   : > { %v8356_v8 = vsub.s32 %v2738_v54, %v2741_v33  ;;  %v8358_v55 = vsel %vm5725_vm7, 0, %v5724_v41  ;;  %v2850_v7 = vmul.u32 %v2846_v35, %v2845_v60  ;;  %v2870_v21 = vmul.u32 %v2868_v47, %v2844_v0 }
 0x23f   : > { %v2872_v36 = vmul.u32 %v2868_v47, %v2845_v60  ;;  %v2851_v23 = vmul.u32 %v2847_v27, %v2845_v60  ;;  %v2852_v11 = vshll.u32 %v2849_v1, 16  ;;  %v2446_v5 = vshll.u32 %v2445_v53, 23 }
 0x240   : > { %vm2743_vm11 = vcmp.lt.s32.totalorder %v8356_v8, 0  ;;  %v2744_v16 = vsub.s32 0, %v8356_v8  ;;  %v2854_v26 = vshll.u32 %v2850_v7, 16  ;;  %v2874_v28 = vshll.u32 %v2871_v10, 16 }
 0x241   : > { %v910_v13 = vadd.f32 0.041655596, %v909_v14  ;;  %v2599_v39 = vsub.s32 4294967266, %v8358_v55  ;;  %vm2856_vm13 = vc.u32 %v2848_v31, %v2852_v11  ;;  %v2858_v51 = vadd.s32 %v2852_v11, %v2848_v31 }
 0x242   : > { %v2873_v54 = vmul.u32 %v2869_v19, %v2845_v60  ;;  %v2745_v41 = vsel %vm2743_vm11, %v2744_v16, %v8356_v8  ;;  %v2811_v0 = vshrl.u32 %v11057_v2, %v8269_v46  ;;  %v2857_v47 = vsel %vm2856_vm13, 1, %v11070_v6 }
 0x243   : > { %v2876_v33 = vshll.u32 %v2872_v36, 16  ;;  %v2853_v35 = vshrl.u32 %v2849_v1, 16  ;;  %v2859_v27 = vadd.s32 %v2857_v47, %v2851_v23  ;;  %vm2860_vm8 = vc.u32 %v2858_v51, %v2854_v26 }
 0x244   : > { %vm2878_vm7 = vc.u32 %v2870_v21, %v2874_v28  ;;  %v2832_v53 = vsel %vm2830_vm5, %v8306_v32, 2102212464  ;;  %v2861_v14 = vsel %vm2860_vm8, 1, %v11070_v6  ;;  %v2880_v60 = vadd.s32 %v2874_v28, %v2870_v21 }
 0x245   : > { %v2879_v19 = vsel %vm2878_vm7, 1, %v11070_v6  ;;  %v2746_v31 = vclz %v2745_v41  ;;  %v2855_v16 = vshrl.u32 %v2850_v7, 16  ;;  %v2863_v11 = vadd.s32 %v2861_v14, %v2859_v27 }
 0x246   : > { %v2881_v46 = vadd.s32 %v2879_v19, %v2873_v54  ;;  %v2595_v20 = vsub.s32 32, %v8358_v55  ;;  %v2875_v45 = vshrl.u32 %v2871_v10, 16  ;;  %vm2882_vm11 = vc.u32 %v2880_v60, %v2876_v33 }
 0x247   : > { %v916_v1 = vmul.f32 -0.00019511016, %v11165_v62  ;;  %v2831_v26 = vsel %vm2827_vm14, %v2811_v0, %v8301_v52  ;;  %v2833_v32 = vsel %vm2829_vm3, %v8303_v25, %v2832_v53  ;;  %v2864_v23 = vadd.s32 %v2863_v11, %v2853_v35  ;;  %v11172_v11 = vld [vmem:[#allocation23_spill] sm:$0xff] }
 0x248   : > { %v2883_v21 = vsel %vm2882_vm11, 1, %v11070_v6  ;;  %v11166_v28 = vshll.u32 %v8160_v29, %v8316_v38  ;;  %v2600_v51 = vadd.s32 127, %v2599_v39  ;;  %v2877_v10 = vshrl.u32 %v2872_v36, 16 }
 0x249   : > { %v2885_v54 = vadd.s32 %v2883_v21, %v2881_v46  ;;  %v5727_v41 = vadd.s32 4294967294, %v2746_v31  ;;  %v8384_v47 = vadd.s32 %v2864_v23, %v2855_v16  ;;  %v8386_v27 = vadd.s32 %v2880_v60, %v2876_v33  ;;  %v11173_v23 = vld [vmem:[#allocation3_spill] sm:$0xff] }
 0x24a   : > { %v2443_v7 = vor.u32 %v2442_v17, %v11166_v28  ;;  %v917_v52 = vadd.f32 0.008332121, %v916_v1  ;;  %v2447_v0 = vor.u32 4788187, %v2446_v5  ;;  %v2834_v25 = vsel %vm2828_vm0, %v2831_v26, %v2833_v32  ;;  %v11168_v17 = vld [vmem:[#allocation2_spill] sm:$0xff] }
 0x24b   : > { %v2886_v35 = vadd.s32 %v2885_v54, %v2875_v45  ;;  %v911_v53 = vmul.f32 %v910_v13, %v11165_v62  ;;  %v2596_v29 = vshll.u32 %v8231_v57, %v8358_v55  ;;  %v2597_v38 = vshrl.u32 %v2579_v3, %v2595_v20 }
 0x24c   : > { %v11167_v36 = vsub.s32 4, %v11164_v30  ;;  %vm11169_vm14 = vcmp.lt.s32.totalorder %v11168_v17, 0  ;;  %v918_v33 = vmul.f32 %v917_v52, %v11165_v62  ;;  %v2450_v14 = vcvt.s32.f32 %v2443_v7  ;;  %v11175_v52 = vld [vmem:[#allocation34_spill] sm:$0xff] }
 0x24d   : > { %v2601_v5 = vshll.u32 %v2600_v51, 23  ;;  %v2887_v19 = vadd.s32 %v2886_v35, %v2877_v10  ;;  %v1059_v60 = vsub.s32 4, %v11170_v50  ;;  %vm5728_vm3 = vcmp.lt.s32.totalorder %v5727_v41, 0 }
 0x24e   : > { %v905_v39 = vsel %vm11169_vm14, %v11167_v36, %v11164_v30  ;;  %v2888_v13 = vmul.u32 %v8340_v37, %v2834_v25  ;;  %vm2890_vm5 = vc.u32 %v8384_v47, %v8386_v27  ;;  %v919_v55 = vadd.f32 -0.16666654, %v918_v33  ;;  %v11176_v36 = vld [vmem:[#allocation28_spill] sm:$0xff] }
 0x24f   : > { %v2448_v45 = vand.u32 2147483647, %v2447_v0  ;;  %v2891_v20 = vadd.s32 1, %v2887_v19  ;;  %v907_v3 = vsel %vm7005_vm4, 0, %v905_v39  ;;  %v912_v30 = vadd.f32 -0.4999988, %v911_v53 }
 0x250   : > { %v2598_v31 = vor.u32 %v2597_v38, %v2596_v29  ;;  %v920_v16 = vmul.f32 %v919_v55, %v11165_v62  ;;  %v1064_v46 = vmul.f32 -0.001358992, %v11172_v11  ;;  %v1071_v1 = vmul.f32 -0.00019511016, %v11172_v11 }
 0x251   : > { %v2602_v26 = vor.u32 4788187, %v2601_v5  ;;  %v2749_v32 = vsel %vm5728_vm3, 0, %v5727_v41  ;;  %v2892_v37 = vsel %vm2890_vm5, %v2891_v20, %v2887_v19  ;;  %vm11174_vm0 = vcmp.lt.s32.totalorder %v11173_v23, 0  ;;  %v11177_v5 = vld [vmem:[#allocation13_spill] sm:$0xff] }
 0x252   : > { %v1060_v21 = vsel %vm11174_vm0, %v1059_v60, %v11170_v50  ;;  %v2893_v28 = vadd.s32 %v2892_v37, %v2888_v13  ;;  %v921_v7 = vadd.f32 1.0, %v920_v16  ;;  %v1065_v51 = vadd.f32 0.041655596, %v1064_v46 }
 0x253   : > { %v1072_v10 = vadd.f32 0.008332121, %v1071_v1  ;;  %v8413_v54 = vmul.f32 %v8240_v44, %v8133_v49  ;;  %v2299_v0 = vsub.s32 4, %v11175_v52  ;;  %v2311_v25 = vmul.f32 -0.00019511016, %v8246_v24  ;;  %v11182_v44 = vld [vmem:[#allocation18_spill] sm:$0xff] }
 0x254   : > { %v913_v35 = vmul.f32 %v912_v30, %v11165_v62  ;;  %v2894_v41 = vadd.s32 536870912, %v2893_v28  ;;  %v924_v53 = vadd.s32 3, %v907_v3  ;;  %v1066_v29 = vmul.f32 %v1065_v51, %v11172_v11 }
 0x255   : > { %v1073_v38 = vmul.f32 %v1072_v10, %v11172_v11  ;;  %vm2332_vm4 = vcmp.lt.s32.totalorder %v11176_v36, 0  ;;  %v2451_v39 = vmul.f32 %v2450_v14, %v2448_v45  ;;  %v2754_v33 = vsub.s32 4294967266, %v2749_v32 }
 0x256   : > { %v922_v19 = vmul.f32 %v921_v7, %v11177_v5  ;;  %v1062_v50 = vsel %vm7085_vm12, 0, %v1060_v21  ;;  %v2603_v60 = vand.u32 2147483647, %v2602_v26  ;;  %v2605_v13 = vcvt.s32.f32 %v2598_v31 }
 0x257   : > { %v8424_v55 = vshrl.u32 %v2894_v41, 30  ;;  %v1067_v62 = vadd.f32 -0.4999988, %v1066_v29  ;;  %v2734_v20 = vadd.s32 %v8277_v58, %v8286_v48  ;;  %v2750_v57 = vsub.s32 32, %v2749_v32 }
 0x258   : > { %v914_v3 = vadd.f32 1.0, %v913_v35  ;;  %v1074_v30 = vadd.f32 -0.16666654, %v1073_v38  ;;  %v2312_v16 = vadd.f32 0.008332121, %v2311_v25  ;;  %v925_v45 = vand.u32 3, %v924_v53 }
 0x259   : > { %v2896_v14 = vshll.u32 %v8424_v55, 30  ;;  %v1079_v46 = vadd.s32 3, %v1062_v50  ;;  %v11179_v1 = vand.u32 2147483647, %v11176_v36  ;;  %v2755_v31 = vadd.s32 127, %v2754_v33 }
 0x25a   : > { %v928_v26 = vxor.u32 2147483648, %v922_v19  ;;  %v1068_v21 = vmul.f32 %v1067_v62, %v11172_v11  ;;  %v1075_v58 = vmul.f32 %v1074_v30, %v11172_v11  ;;  %v2452_v48 = vxor.u32 2147483648, %v2451_v39 }
 0x25b   : > { %vm8431_vm13 = vcmp.le.f32.partialorder %v11179_v1, 0.7853982  ;;  %v2606_v7 = vmul.f32 %v2605_v13, %v2603_v60  ;;  %v2751_v51 = vshll.u32 %v8356_v8, %v2749_v32  ;;  %v8438_v10 = vsub.s32 %v2893_v28, %v2896_v14 }
 0x25c   : > { %v2752_v25 = vshrl.u32 %v2734_v20, %v2750_v57  ;;  %v931_v35 = vxor.u32 2147483648, %v914_v3  ;;  %v1069_v41 = vadd.f32 1.0, %v1068_v21  ;;  %v1076_v53 = vadd.f32 1.0, %v1075_v58  ;;  %v303_v21 = vld [vmem:[%s6115_s30 + $0xa0] sm:$0xff] }
 0x25d   : > { %vm2898_vm12 = vcmp.lt.s32.totalorder %v8438_v10, 0  ;;  %v2899_v29 = vsub.s32 0, %v8438_v10  ;;  %vm927_vm8 = vcmp.eq.s32.totalorder %v925_v45, 0  ;;  %v1080_v38 = vand.u32 3, %v1079_v46  ;;  %v11184_v58 = vld [vmem:[#allocation10_spill] sm:$0xff] }
 0x25e   : > { %v2756_v33 = vshll.u32 %v2755_v31, 23  ;;  %v929_v5 = vsel %vm927_vm8, %v914_v3, %v928_v26  ;;  %v1077_v11 = vmul.f32 %v1076_v53, %v11182_v44  ;;  %v1086_v50 = vxor.u32 2147483648, %v1069_v41  ;;  %v444_v31 = vpop.permute.xlu1 %443  ;;  %v442_v26 = vpop.permute.xlu0 %441 }
 0x25f   : > { %v2453_v8 = vsel %vm2332_vm4, %v2452_v48, %v2451_v39  ;;  %v2607_v32 = vxor.u32 2147483648, %v2606_v7  ;;  %vm923_vm7 = vweird.f32 %v11168_v17  ;;  %vm930_vm11 = vcmp.eq.s32.totalorder %v925_v45, 2 }
 0x260   : > { %v2900_v28 = vsel %vm2898_vm12, %v2899_v29, %v8438_v10  ;;  %vm926_vm14 = vcmp.lt.s32.totalorder %v925_v45, 2  ;;  %v932_v60 = vsel %vm930_vm11, %v931_v35, %v922_v19  ;;  %v1083_v13 = vxor.u32 2147483648, %v1077_v11  ;;  %v11183_v19 = vld [vmem:[#allocation32_spill] sm:$0xff] }
 0x261   : > { %v2753_v62 = vor.u32 %v2752_v25, %v2751_v51  ;;  %v933_v20 = vsel %vm926_vm14, %v929_v5, %v932_v60  ;;  %vm1082_vm3 = vcmp.eq.s32.totalorder %v1080_v38, 0  ;;  %vm1085_vm5 = vcmp.eq.s32.totalorder %v1080_v38, 2  ;;  %v304_v60 = vld [vmem:[%s6115_s30 + $0xa8] sm:$0xff] }
 0x262   : > { %v2757_v57 = vor.u32 4788187, %v2756_v33  ;;  %vm1081_vm0 = vcmp.lt.s32.totalorder %v1080_v38, 2  ;;  %v1084_v3 = vsel %vm1082_vm3, %v1069_v41, %v1083_v13  ;;  %v1087_v30 = vsel %vm1085_vm5, %v1086_v50, %v1077_v11 }
 0x263   : > { %v8450_v39 = vsel %vm8431_vm13, %v11176_v36, %v2453_v8  ;;  %v2901_v14 = vclz %v2900_v28  ;;  %vm1078_vm12 = vweird.f32 %v11173_v23  ;;  %v1088_v45 = vsel %vm1081_vm0, %v1084_v3, %v1087_v30  ;;  %v11185_v23 = vld [vmem:[#allocation21_spill] sm:$0xff] }
 0x264   : > { %vm11001_vm8 = vcmp.lt.s32.totalorder %v11183_v19, 0  ;;  %v934_v46 = vsel %vm923_vm7, nan, %v933_v20  ;;  %v1089_v1 = vsel %vm1078_vm12, nan, %v1088_v45  ;;  %v1219_v48 = vmul.f32 -0.001358992, %v11184_v58  ;;  %v11191_v3 = vld [vmem:[#allocation37_spill] sm:$0xff] }
 0x265   : > { %v2313_v51 = vmul.f32 %v2312_v16, %v8246_v24  ;;  %v2608_v25 = vsel %vm11001_vm8, %v2607_v32, %v2606_v7  ;;  %v5926_v35 = vpack.i.bf16 %v1089_v1, %v934_v46  ;;  %v1374_v41 = vmul.f32 -0.001358992, %v11185_v23  ;;  %v546_v16 = vpop.permute.xlu2 %545  ;;  %v6003_v7 = vld [vmem:[%s6115_s30 + $0x70] sm:$0xff] }
 0x266   : > { %v8464_v17 = vmul.f32 %v8450_v39, %v8450_v39  ;;  %v11186_v53 = vand.u32 2147483647, %v11183_v19  ;;  %v2758_v38 = vand.u32 2147483647, %v2757_v57  ;;  %v2760_v33 = vcvt.s32.f32 %v2753_v62 }
 0x267   : > { %v5730_v5 = vadd.s32 4294967294, %v2901_v14  ;;  %5927 = vrot.lane.b32.xlu0 %v5926_v35, %s6050_s9  ;;  %vm11189_vm11 = vcmask 244736   ;;  %v355_v11 = vadd.f32 1.5707964, %v303_v21  ;;  %v8475_v50 = vmul.f32 2.0, %v303_v21 }
 0x268   : > { %vm8468_vm7 = vcmp.le.f32.partialorder %v11186_v53, 0.7853982  ;;  %v714_v44 = vsel %vm11189_vm11, %v6003_v7, %v442_v26  ;;  %v2161_v32 = vadd.f32 1.0, %v8413_v54  ;;  %v1220_v13 = vadd.f32 0.041655596, %v1219_v48  ;;  %vm11196_vm3 = vmmov %vm11189_vm11  ;;  %v650_v48 = vpop.permute.xlu1 %649 }
 0x269   : > { %v8482_v28 = vsel %vm8468_vm7, %v11183_v19, %v2608_v25  ;;  %v8490_v62 = vsel %vm2177_vm15, %v2299_v0, %v11175_v52  ;;  %v2314_v20 = vadd.f32 -0.16666654, %v2313_v51  ;;  %v2454_v57 = vsub.s32 4, %v8117_v12  ;;  %557 = vrot.lane.b32.xlu1 %v355_v11, %s6049_s8  ;;  %453 = vrot.lane.b32.xlu2 %v8475_v50, %s6050_s9 }
 0x26a   : > { %11190 = vst [vmem:[#allocation39_spill] sm:$0xff] %v8490_v62  ;;  %v1375_v54 = vadd.f32 0.041655596, %v1374_v41  ;;  %v8498_v30 = vmul.f32 %v8238_v42, %v11191_v3  ;;  %v8501_v14 = vand.u32 3, %v8242_v22  ;;  %v2466_v52 = vmul.f32 -0.00019511016, %v8464_v17 }
 0x26b   : > { %vm11194_vm15 = vcmask 490496   ;;  %v8507_v45 = vmul.f32 %v8482_v28, %v8482_v28  ;;  %v2761_v46 = vmul.f32 %v2760_v33, %v2758_v38  ;;  %vm5731_vm14 = vcmp.lt.s32.totalorder %v5730_v5, 0  ;;  %v6004_v22 = vld [vmem:[%s6115_s30 + $0x78] sm:$0xff] }
 0x26c   : > { %11192 = vst [vmem:[#allocation6_spill] sm:$0xff] %v8498_v30  ;;  %v741_v0 = vsel %vm11194_vm15, %v714_v44, %v546_v16  ;;  %v8509_v1 = vmul.f32 2.0, %v304_v60  ;;  %v8512_v26 = vmul.f32 %v2161_v32, %v8115_v9  ;;  %v715_v21 = vsel %vm11196_vm3, %v6004_v22, %v444_v31  ;;  %v548_v9 = vpop.permute.xlu0 %547 }
 0x26d   : > { %11193 = vst [vmem:[#allocation17_spill] sm:$0xff] %v8501_v14  ;;  %v1221_v51 = vmul.f32 %v1220_v13, %v11184_v58  ;;  %v2315_v25 = vmul.f32 %v2314_v20, %v8246_v24  ;;  %v2455_v35 = vsel %vm2332_vm4, %v2454_v57, %v8117_v12  ;;  %v8525_v41 = vsel %vm753_vm2, %v741_v0, %v650_v48  ;;  %vm11198_vm4 = vmmov %vm11194_vm15  ;;  %v652_v13 = vpop.permute.xlu2 %651 }
 0x26e   : > { %11195 = vst [vmem:[#allocation2_spill] sm:$0xff] %v8512_v26  ;;  %v1376_v53 = vmul.f32 %v1375_v54, %v11185_v23  ;;  %v2467_v38 = vadd.f32 0.008332121, %v2466_v52  ;;  %v2904_v33 = vsel %vm5731_vm14, 0, %v5730_v5  ;;  %v10981_v16 = vand.u32 2147483647, %v8525_v41 }
 0x26f   : > { %11197 = vst [vmem:[#allocation8_spill] sm:$0xff] %v8525_v41  ;;  %v2953_v31 = vand.u32 2139095040, %v8525_v41  ;;  %v2621_v7 = vmul.f32 -0.00019511016, %v8507_v45  ;;  %v2762_v44 = vxor.u32 2147483648, %v2761_v46  ;;  %v2889_v11 = vadd.s32 %v8386_v27, %v8384_v47  ;;  %455 = vrot.lane.b32.xlu0 %v8509_v1, %s6050_s9 }
 0x270   : > { %v742_v12 = vsel %vm11198_vm4, %v715_v21, %v548_v9  ;;  %v2905_v32 = vsub.s32 32, %v2904_v33  ;;  %v2957_v5 = vand.u32 8388607, %v10981_v16  ;;  %v1222_v57 = vadd.f32 -0.4999988, %v1221_v51 }
 0x271   : > { %v2954_v20 = vshrl.u32 %v2953_v31, 23  ;;  %v2909_v54 = vsub.s32 4294967266, %v2904_v33  ;;  %v8539_v3 = vsel %vm753_vm2, %v742_v12, %v652_v13  ;;  %v356_v52 = vadd.f32 1.5707964, %v304_v60 }
 0x272   : > { %11199 = vst [vmem:[#allocation12_spill] sm:$0xff] %v8539_v3  ;;  %v1377_v0 = vadd.f32 -0.4999988, %v1376_v53  ;;  %v8542_v27 = vadd.f32 1.0, %v2315_v25  ;;  %v2468_v22 = vmul.f32 %v2467_v38, %v8464_v17  ;;  %v2457_v48 = vsel %vm8431_vm13, 0, %v2455_v35 }
 0x273   : > { %v5732_v21 = vadd.s32 4294967169, %v2954_v20  ;;  %v2622_v9 = vadd.f32 0.008332121, %v2621_v7  ;;  %vm2642_vm5 = vcmp.lt.s32.totalorder %v8075_v63, 0  ;;  %v2958_v51 = vor.u32 8388608, %v2957_v5  ;;  %559 = vrot.lane.b32.xlu2 %v356_v52, %s6049_s8 }
 0x274   : > { %v2906_v31 = vshll.u32 %v8438_v10, %v2904_v33  ;;  %v2907_v60 = vshrl.u32 %v2889_v11, %v2905_v32  ;;  %v3108_v12 = vand.u32 2139095040, %v8539_v3  ;;  %v2763_v25 = vsel %vm2642_vm5, %v2762_v44, %v2761_v46  ;;  %v11201_v10 = vld [vmem:[#allocation19_spill] sm:$0xff] }
 0x275   : > { %v2960_v53 = vadd.s32 1, %v5732_v21  ;;  %v2910_v38 = vadd.s32 127, %v2909_v54  ;;  %v1223_v13 = vmul.f32 %v1222_v57, %v11184_v58  ;;  %v1378_v37 = vmul.f32 %v1377_v0, %v11185_v23 }
 0x276   : > { %v8555_v35 = vadd.f32 -0.16666654, %v2468_v22  ;;  %v8557_v7 = vadd.s32 3, %v2457_v48  ;;  %v11202_v33 = vsel %vm7150_vm1, 0, %v11201_v10  ;;  %v8564_v32 = vmul.f32 %v2622_v9, %v8507_v45 }
 0x277   : > { %vm2961_vm13 = vcmp.gt.s32.totalorder %v2960_v53, 0  ;;  %v1389_v11 = vadd.s32 3, %v11202_v33  ;;  %v11203_v46 = vand.u32 2147483647, %v8075_v63  ;;  %v8572_v23 = vshll.u32 %v2958_v51, 8  ;;  %v11206_v33 = vld [vmem:[#allocation24_spill] sm:$0xff] }
 0x278   : > { %v2962_v58 = vsel %vm2961_vm13, %v2960_v53, 0  ;;  %v8579_v57 = vor.u32 %v2907_v60, %v2906_v31  ;;  %v3109_v52 = vshrl.u32 %v3108_v12, 23  ;;  %v2911_v0 = vshll.u32 %v2910_v38, 23 }
 0x279   : > { %vm8568_vm0 = vcmp.le.f32.partialorder %v11203_v46, 0.7853982  ;;  %v2964_v54 = vand.u32 31, %v2962_v58  ;;  %v2963_v22 = vshrl.u32 %v2962_v58, 5  ;;  %v8581_v21 = vadd.f32 1.0, %v1223_v13 }
 0x27a   : > { %v8577_v5 = vsel %vm8568_vm0, %v8075_v63, %v2763_v25  ;;  %v8583_v48 = vadd.f32 1.0, %v1378_v37  ;;  %v8587_v20 = vand.u32 3, %v1389_v11  ;;  %v2999_v12 = vand.u32 65535, %v8572_v23 }
 0x27b   : > { %v2965_v9 = vsub.s32 32, %v2964_v54  ;;  %v2967_v53 = vshll.u32 %v11057_v2, %v2964_v54  ;;  %v2970_v51 = vshll.u32 %v11088_v43, %v2964_v54  ;;  %v2973_v25 = vshll.u32 %v11089_v18, %v2964_v54 }
 0x27c   : > { %v2976_v31 = vshll.u32 %v11090_v15, %v2964_v54  ;;  %v2979_v60 = vshll.u32 %v11154_v34, %v2964_v54  ;;  %v3000_v37 = vshrl.u32 %v8572_v23, 16  ;;  %v5735_v10 = vadd.s32 4294967169, %v3109_v52 }
 0x27d   : > { %v2968_v38 = vshrl.u32 %v11088_v43, %v2965_v9  ;;  %v2971_v13 = vshrl.u32 %v11089_v18, %v2965_v9  ;;  %vm1237_vm1 = vcmp.eq.s32.totalorder %v11206_v33, 0  ;;  %v2974_v11 = vshrl.u32 %v11090_v15, %v2965_v9 }
 0x27e   : > { %v2977_v46 = vshrl.u32 %v11154_v34, %v2965_v9  ;;  %v2980_v58 = vshrl.u32 %v11156_v4, %v2965_v9  ;;  %vm2982_vm12 = vcmp.lt.s32.totalorder %v2963_v22, 1  ;;  %v2966_v54 = vshrl.u32 %v11057_v2, %v2965_v9 }
 0x27f   : > { %v2969_v47 = vor.u32 %v2968_v38, %v2967_v53  ;;  %v2972_v42 = vor.u32 %v2971_v13, %v2970_v51  ;;  %vm2984_vm11 = vcmp.lt.s32.totalorder %v2963_v22, 3  ;;  %v2975_v8 = vor.u32 %v2974_v11, %v2973_v25 }
 0x280   : > { %v2978_v16 = vor.u32 %v2977_v46, %v2976_v31  ;;  %v2981_v36 = vor.u32 %v2980_v58, %v2979_v60  ;;  %vm2985_vm15 = vcmp.lt.s32.totalorder %v2963_v22, 4  ;;  %vm2983_vm14 = vcmp.lt.s32.totalorder %v2963_v22, 2 }
 0x281   : > { %v2990_v52 = vsel %vm2982_vm12, %v2969_v47, %v2972_v42  ;;  %v10991_v40 = vand.u32 2147483647, %v8539_v3  ;;  %v3115_v26 = vadd.s32 1, %v5735_v10  ;;  %v2987_v14 = vsel %vm2985_vm15, %v2975_v8, 2102212464 }
 0x282   : > { %v2991_v62 = vsel %vm2985_vm15, %v2978_v16, 920167782  ;;  %v2994_v56 = vsel %vm2982_vm12, %v2972_v42, %v2975_v8  ;;  %v2995_v24 = vsel %vm2985_vm15, %v2981_v36, 1326507024  ;;  %v2986_v9 = vsel %vm2982_vm12, %v2966_v54, %v2969_v47 }
 0x283   : > { %v2988_v53 = vsel %vm2984_vm11, %v2972_v42, %v2987_v14  ;;  %v2992_v51 = vsel %vm2984_vm11, %v2975_v8, %v2991_v62  ;;  %v2996_v25 = vsel %vm2984_vm11, %v2978_v16, %v2995_v24  ;;  %v8608_v31 = vor.u32 4788187, %v2911_v0  ;;  %v11207_v62 = vld [vmem:[#allocation20_spill] sm:$0xff] }
 0x284   : > { %v2993_v60 = vsel %vm2983_vm14, %v2990_v52, %v2992_v51  ;;  %v2997_v38 = vsel %vm2983_vm14, %v2994_v56, %v2996_v25  ;;  %v8614_v13 = vand.u32 8388607, %v10991_v40  ;;  %v8618_v14 = vsel %vm2983_vm14, %v2986_v9, %v2988_v53 }
 0x285   : > { %v3001_v10 = vand.u32 65535, %v2997_v38  ;;  %v3002_v47 = vshrl.u32 %v2997_v38, 16  ;;  %v3023_v11 = vand.u32 65535, %v2993_v60  ;;  %v3024_v8 = vshrl.u32 %v2993_v60, 16 }
 0x286   : > { %v3113_v24 = vor.u32 8388608, %v8614_v13  ;;  %v11208_v42 = vxor.u32 2147483648, %v11207_v62  ;;  %vm3116_vm3 = vcmp.gt.s32.totalorder %v3115_v26, 0  ;;  %vm1240_vm11 = vcmp.eq.s32.totalorder %v11206_v33, 2 }
 0x287   : > { %v3003_v16 = vmul.u32 %v3001_v10, %v2999_v12  ;;  %v3004_v0 = vmul.u32 %v3002_v47, %v2999_v12  ;;  %v3005_v46 = vmul.u32 %v3001_v10, %v3000_v37  ;;  %v3006_v58 = vmul.u32 %v3002_v47, %v3000_v37 }
 0x288   : > { %v8626_v56 = vsel %vm1237_vm1, %v8581_v21, %v11208_v42  ;;  %v3025_v54 = vmul.u32 %v3023_v11, %v2999_v12  ;;  %v3026_v52 = vmul.u32 %v3024_v8, %v2999_v12  ;;  %v3027_v22 = vmul.u32 %v3023_v11, %v3000_v37 }
 0x289   : > { %v3007_v9 = vshll.u32 %v3004_v0, 16  ;;  %v3008_v53 = vshrl.u32 %v3004_v0, 16  ;;  %v3009_v51 = vshll.u32 %v3005_v46, 16  ;;  %v3028_v25 = vmul.u32 %v3024_v8, %v3000_v37 }
 0x28a   : > { %v3010_v60 = vshrl.u32 %v3005_v46, 16  ;;  %v3029_v38 = vshll.u32 %v3026_v52, 16  ;;  %v3030_v13 = vshrl.u32 %v3026_v52, 16  ;;  %v3031_v40 = vshll.u32 %v3027_v22, 16 }
 0x28b   : > { %vm3011_vm4 = vc.u32 %v3003_v16, %v3007_v9  ;;  %v3013_v36 = vadd.s32 %v3007_v9, %v3003_v16  ;;  %v3032_v42 = vshrl.u32 %v3027_v22, 16  ;;  %v3117_v49 = vsel %vm3116_vm3, %v3115_v26, 0 }
 0x28c   : > { %v3012_v10 = vsel %vm3011_vm4, 1, %v11070_v6  ;;  %vm3033_vm13 = vc.u32 %v3025_v54, %v3029_v38  ;;  %v3035_v47 = vadd.s32 %v3029_v38, %v3025_v54  ;;  %v8630_v30 = vshrl.u32 %v3117_v49, 5 }
 0x28d   : > { %v3014_v12 = vadd.s32 %v3012_v10, %v3006_v58  ;;  %vm3015_vm1 = vc.u32 %v3013_v36, %v3009_v51  ;;  %v3034_v11 = vsel %vm3033_vm13, 1, %v11070_v6  ;;  %v3119_v37 = vand.u32 31, %v3117_v49 }
 0x28e   : > { %v3016_v8 = vsel %vm3015_vm1, 1, %v11070_v6  ;;  %v3036_v0 = vadd.s32 %v3034_v11, %v3028_v25  ;;  %vm3037_vm12 = vc.u32 %v3035_v47, %v3031_v40  ;;  %v8634_v46 = vadd.s32 %v3035_v47, %v3031_v40 }
 0x28f   : > { %v3018_v26 = vadd.s32 %v3016_v8, %v3014_v12  ;;  %v3038_v16 = vsel %vm3037_vm12, 1, %v11070_v6  ;;  %v3120_v52 = vsub.s32 32, %v3119_v37  ;;  %v3122_v54 = vshll.u32 %v11057_v2, %v3119_v37 }
 0x290   : > { %vm1236_vm15 = vcmp.lt.s32.totalorder %v11206_v33, 2  ;;  %v3040_v36 = vadd.s32 %v3038_v16, %v3036_v0  ;;  %v3125_v58 = vshll.u32 %v11088_v43, %v3119_v37  ;;  %v3128_v49 = vshll.u32 %v11089_v18, %v3119_v37 }
 0x291   : > { %v3131_v22 = vshll.u32 %v11090_v15, %v3119_v37  ;;  %v3019_v9 = vadd.s32 %v3018_v26, %v3008_v53  ;;  %v3123_v40 = vshrl.u32 %v11088_v43, %v3120_v52  ;;  %v3126_v51 = vshrl.u32 %v11089_v18, %v3120_v52 }
 0x292   : > { %v3129_v25 = vshrl.u32 %v11090_v15, %v3120_v52  ;;  %v3041_v38 = vadd.s32 %v3040_v36, %v3030_v13  ;;  %v3132_v10 = vshrl.u32 %v11154_v34, %v3120_v52  ;;  %v3134_v47 = vshll.u32 %v11154_v34, %v3119_v37 }
 0x293   : > { %v3135_v12 = vshrl.u32 %v11156_v4, %v3120_v52  ;;  %v8649_v11 = vadd.s32 %v3019_v9, %v3010_v60  ;;  %v3124_v8 = vor.u32 %v3123_v40, %v3122_v54  ;;  %v3127_v0 = vor.u32 %v3126_v51, %v3125_v58  ;;  %v11209_v60 = vld [vmem:[#allocation4_spill] sm:$0xff] }
 0x294   : > { %v1241_v16 = vxor.u32 2147483648, %v8581_v21  ;;  %v3042_v53 = vadd.s32 %v3041_v38, %v3032_v42  ;;  %v3130_v26 = vor.u32 %v3129_v25, %v3128_v49  ;;  %v3133_v59 = vor.u32 %v3132_v10, %v3131_v22 }
 0x295   : > { %v3136_v3 = vor.u32 %v3135_v12, %v3134_v47  ;;  %v3043_v41 = vmul.u32 %v8572_v23, %v8618_v14  ;;  %vm3045_vm14 = vc.u32 %v8649_v11, %v8634_v46  ;;  %vm3137_vm3 = vcmp.lt.s32.totalorder %v8630_v30, 1 }
 0x296   : > { %v8657_v13 = vshll.u32 %v3113_v24, 8  ;;  %vm1233_vm4 = vweird.f32 %v11209_v60  ;;  %v3046_v37 = vadd.s32 1, %v3042_v53  ;;  %vm3138_vm13 = vcmp.lt.s32.totalorder %v8630_v30, 2 }
 0x297   : > { %vm3139_vm1 = vcmp.lt.s32.totalorder %v8630_v30, 3  ;;  %vm3140_vm12 = vcmp.lt.s32.totalorder %v8630_v30, 4  ;;  %v3145_v21 = vsel %vm3137_vm3, %v3124_v8, %v3127_v0  ;;  %v3149_v14 = vsel %vm3137_vm3, %v3127_v0, %v3130_v26 }
 0x298   : > { %v3146_v23 = vsel %vm3140_vm12, %v3133_v59, 920167782  ;;  %v1242_v24 = vsel %vm1240_vm11, %v1241_v16, %v11207_v62  ;;  %v3047_v42 = vsel %vm3045_vm14, %v3046_v37, %v3042_v53  ;;  %v3150_v36 = vsel %vm3140_vm12, %v3136_v3, 1326507024 }
 0x299   : > { %v3147_v54 = vsel %vm3139_vm1, %v3130_v26, %v3146_v23  ;;  %v1243_v58 = vsel %vm1236_vm15, %v8626_v56, %v1242_v24  ;;  %v3048_v49 = vadd.s32 %v3047_v42, %v3043_v41  ;;  %v3121_v22 = vshrl.u32 %v11057_v2, %v3120_v52 }
 0x29a   : > { %v3148_v9 = vsel %vm3138_vm13, %v3145_v21, %v3147_v54  ;;  %v3151_v62 = vsel %vm3139_vm1, %v3133_v59, %v3150_v36  ;;  %v3154_v51 = vand.u32 65535, %v8657_v13  ;;  %v3155_v3 = vshrl.u32 %v8657_v13, 16 }
 0x29b   : > { %v3152_v40 = vsel %vm3138_vm13, %v3149_v14, %v3151_v62  ;;  %v3178_v25 = vand.u32 65535, %v3148_v9  ;;  %v3049_v38 = vadd.s32 536870912, %v3048_v49  ;;  %v3179_v41 = vshrl.u32 %v3148_v9, 16  ;;  %v11212_v62 = vld [vmem:[#allocation29_spill] sm:$0xff] }
 0x29c   : > { %v3156_v33 = vand.u32 65535, %v3152_v40  ;;  %v3157_v56 = vshrl.u32 %v3152_v40, 16  ;;  %v3142_v10 = vsel %vm3140_vm12, %v3130_v26, 2102212464  ;;  %vm1392_vm11 = vcmp.eq.s32.totalorder %v8587_v20, 0 }
 0x29d   : > { %v8691_v47 = vmul.u32 %v3178_v25, %v3155_v3  ;;  %v8694_v59 = vshrl.u32 %v3049_v38, 30  ;;  %v3141_v37 = vsel %vm3137_vm3, %v3121_v22, %v3124_v8  ;;  %v3180_v21 = vmul.u32 %v3178_v25, %v3154_v51  ;;  %v11211_v22 = vld [vmem:[#allocation5_spill] sm:$0xff]  ;;  %v448_v25 = vpop.permute.xlu1 %447 }
 0x29e   : > { %v3158_v12 = vmul.u32 %v3156_v33, %v3154_v51  ;;  %v3159_v16 = vmul.u32 %v3157_v56, %v3154_v51  ;;  %v3160_v53 = vmul.u32 %v3156_v33, %v3155_v3  ;;  %v3181_v23 = vmul.u32 %v3179_v41, %v3154_v51 }
 0x29f   : > { %11210 = vst [vmem:[#allocation23_spill] sm:$0xff] %v8694_v59  ;;  %v8700_v14 = vsel %vm1233_vm4, nan, %v1243_v58  ;;  %vm1395_vm15 = vcmp.eq.s32.totalorder %v8587_v20, 2  ;;  %v3051_v26 = vshll.u32 %v8694_v59, 30  ;;  %v3143_v24 = vsel %vm3139_vm1, %v3127_v0, %v3142_v10 }
 0x2a0   : > { %v3161_v42 = vmul.u32 %v3157_v56, %v3155_v3  ;;  %v3162_v54 = vshll.u32 %v3159_v16, 16  ;;  %vm1391_vm14 = vcmp.lt.s32.totalorder %v8587_v20, 2  ;;  %v3164_v36 = vshll.u32 %v3160_v53, 16 }
 0x2a1   : > { %v3183_v9 = vmul.u32 %v3179_v41, %v3155_v3  ;;  %v3184_v8 = vshll.u32 %v3181_v23, 16  ;;  %vm1388_vm3 = vweird.f32 %v11211_v22  ;;  %v1393_v60 = vxor.u32 2147483648, %v11212_v62 }
 0x2a2   : > { %v8709_v58 = vsub.s32 %v3048_v49, %v3051_v26  ;;  %vm3166_vm4 = vc.u32 %v3158_v12, %v3162_v54  ;;  %v3168_v40 = vadd.s32 %v3162_v54, %v3158_v12  ;;  %v3186_v51 = vshll.u32 %v8691_v47, 16 }
 0x2a3   : > { %v3163_v38 = vshrl.u32 %v3159_v16, 16  ;;  %v3165_v0 = vshrl.u32 %v3160_v53, 16  ;;  %v3167_v33 = vsel %vm3166_vm4, 1, %v11070_v6  ;;  %vm3188_vm1 = vc.u32 %v3180_v21, %v3184_v8  ;;  %v446_v16 = vpop.permute.xlu0 %445 }
 0x2a4   : > { %vm3053_vm12 = vcmp.lt.s32.totalorder %v8709_v58, 0  ;;  %v3054_v3 = vsub.s32 0, %v8709_v58  ;;  %v3169_v56 = vadd.s32 %v3167_v33, %v3161_v42  ;;  %vm3170_vm8 = vc.u32 %v3168_v40, %v3164_v36  ;;  %v305_v40 = vld [vmem:[%s6115_s30 + $0xb0] sm:$0xff] }
 0x2a5   : > { %v3171_v49 = vsel %vm3170_vm8, 1, %v11070_v6  ;;  %v3189_v41 = vsel %vm3188_vm1, 1, %v11070_v6  ;;  %v3190_v10 = vadd.s32 %v3184_v8, %v3180_v21  ;;  %v1394_v12 = vsel %vm1392_vm11, %v8583_v48, %v1393_v60 }
 0x2a6   : > { %v3055_v53 = vsel %vm3053_vm12, %v3054_v3, %v8709_v58  ;;  %v3173_v26 = vadd.s32 %v3171_v49, %v3169_v56  ;;  %v3191_v54 = vadd.s32 %v3189_v41, %v3183_v9  ;;  %v1396_v52 = vxor.u32 2147483648, %v8583_v48 }
 0x2a7   : > { %v3056_v59 = vclz %v3055_v53  ;;  %v3185_v42 = vshrl.u32 %v3181_v23, 16  ;;  %vm3192_vm4 = vc.u32 %v3190_v10, %v3186_v51  ;;  %v381_v36 = vadd.f32 1.5707964, %v8475_v50  ;;  %v6005_v23 = vld [vmem:[%s6115_s30 + $0x80] sm:$0xff] }
 0x2a8   : > { %v3144_v21 = vsel %vm3138_vm13, %v3141_v37, %v3143_v24  ;;  %v3174_v8 = vadd.s32 %v3173_v26, %v3163_v38  ;;  %v3193_v60 = vsel %vm3192_vm4, 1, %v11070_v6  ;;  %v1397_v33 = vsel %vm1395_vm15, %v1396_v52, %v11212_v62  ;;  %v550_v24 = vpop.permute.xlu2 %549 }
 0x2a9   : > { %v5733_v3 = vadd.s32 4294967294, %v3056_v59  ;;  %v3195_v9 = vadd.s32 %v3193_v60, %v3191_v54  ;;  %v1398_v48 = vsel %vm1391_vm14, %v1394_v12, %v1397_v33  ;;  %661 = vrot.lane.b32.xlu0 %v381_v36, %s6051_s10  ;;  %vm11213_vm8 = vcmask 244736  }
 0x2aa   : > { %v716_v50 = vsel %vm11213_vm8, %v6005_v23, %v446_v16  ;;  %v3187_v30 = vshrl.u32 %v8691_v47, 16  ;;  %v8736_v37 = vadd.s32 %v3190_v10, %v3186_v51  ;;  %v1399_v38 = vsel %vm1388_vm3, nan, %v1398_v48  ;;  %v654_v51 = vpop.permute.xlu1 %653  ;;  %vm11218_vm14 = vmmov %vm11213_vm8 }
 0x2ab   : > { %v357_v56 = vadd.f32 1.5707964, %v305_v40  ;;  %vm5734_vm13 = vcmp.lt.s32.totalorder %v5733_v3, 0  ;;  %v8740_v52 = vadd.s32 %v3174_v8, %v3165_v0  ;;  %v3196_v59 = vadd.s32 %v3195_v9, %v3185_v42  ;;  %v6006_v42 = vld [vmem:[%s6115_s30 + $0x88] sm:$0xff]  ;;  %v11220_v8 = vld [vmem:[#allocation48_spill] sm:$0xff] }
 0x2ac   : > { %v5931_v20 = vpack.i.bf16 %v1399_v38, %v8700_v14  ;;  %v2470_v62 = vmul.f32 %v8555_v35, %v8464_v17  ;;  %v2624_v49 = vadd.f32 -0.16666654, %v8564_v32  ;;  %v3059_v47 = vsel %vm5734_vm13, 0, %v5733_v3 }
 0x2ad   : > { %561 = vrot.lane.b32.xlu2 %v357_v56, %s6049_s8  ;;  %vm11214_vm11 = vcmask 490496   ;;  %v2764_v41 = vsub.s32 4, %v8342_v61  ;;  %v8751_v0 = vmul.f32 %v8577_v5, %v8577_v5  ;;  %v3064_v10 = vsub.s32 4294967266, %v3059_v47  ;;  %v11222_v56 = vld [vmem:[#allocation50_spill] sm:$0xff] }
 0x2ae   : > { %v743_v22 = vsel %vm11214_vm11, %v716_v50, %v550_v24  ;;  %5932 = vrot.lane.b32.xlu1 %v5931_v20, %s6050_s9  ;;  %v8754_v14 = vmul.f32 2.0, %v305_v40  ;;  %v11216_v35 = vand.u32 2147483647, %v8608_v31  ;;  %v11217_v32 = vcvt.s32.f32 %v8579_v57  ;;  %v552_v31 = vpop.permute.xlu0 %551  ;;  %vm11221_vm3 = vmmov %vm11214_vm11 }
 0x2af   : > { %11215 = vst [vmem:[#allocation3_spill] sm:$0xff] %v8751_v0  ;;  %v3044_v16 = vadd.s32 %v8634_v46, %v8649_v11  ;;  %v3197_v53 = vadd.s32 %v3196_v59, %v3187_v30  ;;  %v3198_v26 = vmul.u32 %v8657_v13, %v3144_v21  ;;  %v3060_v54 = vsub.s32 32, %v3059_v47 }
 0x2b0   : > { %v2916_v12 = vmul.f32 %v11217_v32, %v11216_v35  ;;  %vm3200_vm15 = vc.u32 %v8740_v52, %v8736_v37  ;;  %v717_v36 = vsel %vm11218_vm14, %v6006_v42, %v448_v25  ;;  %v8768_v40 = vsel %vm753_vm2, %v743_v22, %v654_v51  ;;  %v656_v20 = vpop.permute.xlu2 %655  ;;  %v11226_v22 = vld [vmem:[#allocation44_spill] sm:$0xff] }
 0x2b1   : > { %11219 = vst [vmem:[#allocation34_spill] sm:$0xff] %v8768_v40  ;;  %v2609_v57 = vsub.s32 4, %v11220_v8  ;;  %v3065_v60 = vadd.s32 127, %v3064_v10  ;;  %v3201_v33 = vadd.s32 1, %v3197_v53  ;;  %v3263_v46 = vand.u32 2139095040, %v8768_v40  ;;  %457 = vrot.lane.b32.xlu0 %v8754_v14, %s6050_s9 }
 0x2b2   : > { %v2471_v11 = vadd.f32 1.0, %v2470_v62  ;;  %v2625_v13 = vmul.f32 %v2624_v49, %v8507_v45  ;;  %v2765_v21 = vsel %vm2642_vm5, %v2764_v41, %v8342_v61  ;;  %v382_v3 = vadd.f32 1.5707964, %v8509_v1 }
 0x2b3   : > { %v2776_v25 = vmul.f32 -0.00019511016, %v8751_v0  ;;  %v3202_v9 = vsel %vm3200_vm15, %v3201_v33, %v3197_v53  ;;  %v3264_v48 = vshrl.u32 %v3263_v46, 23  ;;  %v744_v23 = vsel %vm11221_vm3, %v717_v36, %v552_v31 }
 0x2b4   : > { %v2917_v50 = vxor.u32 2147483648, %v2916_v12  ;;  %v3061_v30 = vshll.u32 %v8709_v58, %v3059_v47  ;;  %v3062_v24 = vshrl.u32 %v3044_v16, %v3060_v54  ;;  %v3203_v38 = vadd.s32 %v3202_v9, %v3198_v26 }
 0x2b5   : > { %v8784_v59 = vmul.f32 %v8542_v27, %v11222_v56  ;;  %v8787_v61 = vand.u32 3, %v8557_v7  ;;  %v3066_v1 = vshll.u32 %v3065_v60, 23  ;;  %v5738_v62 = vadd.s32 4294967169, %v3264_v48 }
 0x2b6   : > { %v8790_v49 = vmul.f32 %v2471_v11, %v8450_v39  ;;  %vm11225_vm5 = vcmp.lt.s32.totalorder %v11183_v19, 0  ;;  %v3204_v58 = vadd.s32 536870912, %v3203_v38  ;;  %663 = vrot.lane.b32.xlu1 %v382_v3, %s6051_s10  ;;  %v8799_v27 = vsel %vm753_vm2, %v744_v23, %v656_v20 }
 0x2b7   : > { %11223 = vst [vmem:[#allocation13_spill] sm:$0xff] %v8787_v61  ;;  %v8795_v51 = vsel %vm11225_vm5, %v2609_v57, %v11220_v8  ;;  %v2626_v47 = vadd.f32 1.0, %v2625_v13  ;;  %v2767_v7 = vsel %vm8568_vm0, 0, %v2765_v21  ;;  %vm2797_vm1 = vcmp.lt.s32.totalorder %v11226_v22, 0 }
 0x2b8   : > { %11224 = vst [vmem:[#allocation14_spill] sm:$0xff] %v8790_v49  ;;  %v3270_v41 = vadd.s32 1, %v5738_v62  ;;  %v2777_v39 = vadd.f32 0.008332121, %v2776_v25  ;;  %v2918_v10 = vsel %vm2797_vm1, %v2917_v50, %v2916_v12  ;;  %v3063_v35 = vor.u32 %v3062_v24, %v3061_v30 }
 0x2b9   : > { %v8806_v32 = vshrl.u32 %v3204_v58, 30  ;;  %v3067_v16 = vor.u32 4788187, %v3066_v1  ;;  %v11005_v53 = vand.u32 2147483647, %v8768_v40  ;;  %v3418_v26 = vand.u32 2139095040, %v8799_v27 }
 0x2ba   : > { %vm3271_vm12 = vcmp.gt.s32.totalorder %v3270_v41, 0  ;;  %v8816_v12 = vmul.f32 %v2626_v47, %v8482_v28  ;;  %v2784_v31 = vadd.s32 3, %v2767_v7  ;;  %v11228_v8 = vand.u32 2147483647, %v11226_v22 }
 0x2bb   : > { %v3206_v42 = vshll.u32 %v8806_v32, 30  ;;  %v3272_v36 = vsel %vm3271_vm12, %v3270_v41, 0  ;;  %v2778_v33 = vmul.f32 %v2777_v39, %v8751_v0  ;;  %v3070_v11 = vcvt.s32.f32 %v3063_v35 }
 0x2bc   : > { %11227 = vst [vmem:[#allocation18_spill] sm:$0xff] %v8816_v12  ;;  %vm8820_vm0 = vcmp.le.f32.partialorder %v11228_v8, 0.7853982  ;;  %v3274_v60 = vand.u32 31, %v3272_v36  ;;  %v3068_v28 = vand.u32 2147483647, %v3067_v16 }
 0x2bd   : > { %v8828_v46 = vsel %vm8820_vm0, %v11226_v22, %v2918_v10  ;;  %v8830_v13 = vsub.s32 %v3203_v38, %v3206_v42  ;;  %v3267_v21 = vand.u32 8388607, %v11005_v53  ;;  %v3419_v25 = vshrl.u32 %v3418_v26, 23 }
 0x2be   : > { %v8834_v3 = vsub.s32 32, %v3274_v60  ;;  %v8838_v48 = vshrl.u32 %v3272_v36, 5  ;;  %v3277_v23 = vshll.u32 %v11057_v2, %v3274_v60  ;;  %v3280_v30 = vshll.u32 %v11088_v43, %v3274_v60 }
 0x2bf   : > { %vm3208_vm4 = vcmp.lt.s32.totalorder %v8830_v13, 0  ;;  %v3209_v9 = vsub.s32 0, %v8830_v13  ;;  %v3283_v38 = vshll.u32 %v11089_v18, %v3274_v60  ;;  %v3286_v20 = vshll.u32 %v11090_v15, %v3274_v60 }
 0x2c0   : > { %v3278_v50 = vshrl.u32 %v11088_v43, %v8834_v3  ;;  %v3281_v24 = vshrl.u32 %v11089_v18, %v8834_v3  ;;  %v3284_v1 = vshrl.u32 %v11090_v15, %v8834_v3  ;;  %v3287_v62 = vshrl.u32 %v11154_v34, %v8834_v3 }
 0x2c1   : > { %v3210_v56 = vsel %vm3208_vm4, %v3209_v9, %v8830_v13  ;;  %v2779_v58 = vadd.f32 -0.16666654, %v2778_v33  ;;  %v8853_v47 = vand.u32 3, %v2784_v31  ;;  %v2919_v7 = vsub.s32 4, %v8424_v55 }
 0x2c2   : > { %v3268_v41 = vor.u32 8388608, %v3267_v21  ;;  %v8858_v39 = vmul.f32 %v8828_v46, %v8828_v46  ;;  %v3289_v10 = vshll.u32 %v11154_v34, %v3274_v60  ;;  %v3290_v35 = vshrl.u32 %v11156_v4, %v8834_v3 }
 0x2c3   : > { %11231 = vst [vmem:[#allocation10_spill] sm:$0xff] %v8853_v47  ;;  %v5741_v16 = vadd.s32 4294967169, %v3419_v25  ;;  %v3071_v26 = vmul.f32 %v3070_v11, %v3068_v28  ;;  %v3211_v42 = vclz %v3210_v56  ;;  %v3279_v36 = vor.u32 %v3278_v50, %v3277_v23  ;;  %v11232_v28 = vld [vmem:[#allocation8_spill] sm:$0xff] }
 0x2c4   : > { %v3282_v8 = vor.u32 %v3281_v24, %v3280_v30  ;;  %v3285_v33 = vor.u32 %v3284_v1, %v3283_v38  ;;  %v3288_v31 = vor.u32 %v3287_v62, %v3286_v20  ;;  %v3291_v9 = vor.u32 %v3290_v35, %v3289_v10 }
 0x2c5   : > { %vm3292_vm8 = vcmp.lt.s32.totalorder %v8838_v48, 1  ;;  %v8867_v21 = vsel %vm2797_vm1, %v2919_v7, %v8424_v55  ;;  %vm3295_vm13 = vcmp.lt.s32.totalorder %v8838_v48, 4  ;;  %v8870_v60 = vshll.u32 %v3268_v41, 8 }
 0x2c6   : > { %v11004_v25 = vand.u32 2147483647, %v8799_v27  ;;  %v8874_v11 = vmul.f32 %v2779_v58, %v8751_v0  ;;  %vm2952_vm11 = vcmp.lt.s32.totalorder %v11232_v28, 0  ;;  %vm3294_vm15 = vcmp.lt.s32.totalorder %v8838_v48, 3 }
 0x2c7   : > { %v3425_v23 = vadd.s32 1, %v5741_v16  ;;  %v2931_v50 = vmul.f32 -0.00019511016, %v8858_v39  ;;  %v3072_v30 = vxor.u32 2147483648, %v3071_v26  ;;  %vm3293_vm14 = vcmp.lt.s32.totalorder %v8838_v48, 2 }
 0x2c8   : > { %v3300_v55 = vsel %vm3292_vm8, %v3279_v36, %v3282_v8  ;;  %v5736_v24 = vadd.s32 4294967294, %v3211_v42  ;;  %v3301_v38 = vsel %vm3295_vm13, %v3288_v31, 920167782  ;;  %v3304_v56 = vsel %vm3292_vm8, %v3282_v8, %v3285_v33 }
 0x2c9   : > { %v3305_v1 = vsel %vm3295_vm13, %v3291_v9, 1326507024  ;;  %v11233_v20 = vand.u32 2147483647, %v11232_v28  ;;  %v3302_v58 = vsel %vm3294_vm15, %v3285_v33, %v3301_v38  ;;  %v3309_v7 = vand.u32 65535, %v8870_v60 }
 0x2ca   : > { %v8899_v41 = vand.u32 8388607, %v11004_v25  ;;  %v3303_v10 = vsel %vm3293_vm14, %v3300_v55, %v3302_v58  ;;  %v3306_v35 = vsel %vm3294_vm15, %v3288_v31, %v3305_v1  ;;  %v3310_v16 = vshrl.u32 %v8870_v60, 16 }
 0x2cb   : > { %vm8890_vm3 = vcmp.le.f32.partialorder %v11233_v20, 0.7853982  ;;  %vm3426_vm5 = vcmp.gt.s32.totalorder %v3425_v23, 0  ;;  %v8906_v42 = vadd.f32 0.008332121, %v2931_v50  ;;  %v3073_v9 = vsel %vm2952_vm11, %v3072_v30, %v3071_v26 }
 0x2cc   : > { %v3307_v38 = vsel %vm3293_vm14, %v3304_v56, %v3306_v35  ;;  %v3333_v20 = vand.u32 65535, %v3303_v10  ;;  %vm5737_vm1 = vcmp.lt.s32.totalorder %v5736_v24, 0  ;;  %v3334_v25 = vshrl.u32 %v3303_v10, 16 }
 0x2cd   : > { %v3311_v54 = vand.u32 65535, %v3307_v38  ;;  %v3312_v44 = vshrl.u32 %v3307_v38, 16  ;;  %v3199_v55 = vadd.s32 %v8736_v37, %v8740_v52  ;;  %v3427_v58 = vsel %vm3426_vm5, %v3425_v23, 0 }
 0x2ce   : > { %v3337_v31 = vmul.u32 %v3333_v20, %v3310_v16  ;;  %v3276_v50 = vshrl.u32 %v11057_v2, %v8834_v3  ;;  %v8920_v56 = vsel %vm8890_vm3, %v11232_v28, %v3073_v9  ;;  %v8922_v35 = vsel %vm5737_vm1, 0, %v5736_v24  ;;  %v9020_v28 = vld [vmem:[%s6115_s30 + $0xb8] sm:$0xff] }
 0x2cf   : > { %v3313_v53 = vmul.u32 %v3311_v54, %v3309_v7  ;;  %v3314_v26 = vmul.u32 %v3312_v44, %v3309_v7  ;;  %v3315_v30 = vmul.u32 %v3311_v54, %v3310_v16  ;;  %v3335_v10 = vmul.u32 %v3333_v20, %v3309_v7 }
 0x2d0   : > { %v3336_v38 = vmul.u32 %v3334_v25, %v3309_v7  ;;  %v3297_v37 = vsel %vm3295_vm13, %v3285_v33, 2102212464  ;;  %v3316_v52 = vmul.u32 %v3312_v44, %v3310_v16  ;;  %v3215_v3 = vsub.s32 32, %v8922_v35 }
 0x2d1   : > { %v3317_v23 = vshll.u32 %v3314_v26, 16  ;;  %v3319_v1 = vshll.u32 %v3315_v30, 16  ;;  %v3338_v22 = vmul.u32 %v3334_v25, %v3310_v16  ;;  %v3341_v54 = vshll.u32 %v3337_v31, 16 }
 0x2d2   : > { %v3339_v47 = vshll.u32 %v3336_v38, 16  ;;  %v3219_v63 = vsub.s32 4294967266, %v8922_v35  ;;  %v3296_v9 = vsel %vm3292_vm8, %v3276_v50, %v3279_v36  ;;  %v3298_v7 = vsel %vm3294_vm15, %v3282_v8, %v3297_v37 }
 0x2d3   : > { %vm3321_vm12 = vc.u32 %v3313_v53, %v3317_v23  ;;  %v3323_v24 = vadd.s32 %v3317_v23, %v3313_v53  ;;  %v3318_v20 = vshrl.u32 %v3314_v26, 16  ;;  %v3340_v0 = vshrl.u32 %v3336_v38, 16 }
 0x2d4   : > { %v3322_v33 = vsel %vm3321_vm12, 1, %v11070_v6  ;;  %vm3343_vm4 = vc.u32 %v3335_v10, %v3339_v47  ;;  %v3345_v44 = vadd.s32 %v3339_v47, %v3335_v10  ;;  %v3220_v36 = vadd.s32 127, %v3219_v63 }
 0x2d5   : > { %v3324_v19 = vadd.s32 %v3322_v33, %v3316_v52  ;;  %vm3325_vm13 = vc.u32 %v3323_v24, %v3319_v1  ;;  %v3344_v25 = vsel %vm3343_vm4, 1, %v11070_v6  ;;  %v3320_v50 = vshrl.u32 %v3315_v30, 16 }
 0x2d6   : > { %v3326_v16 = vsel %vm3325_vm13, 1, %v11070_v6  ;;  %v3346_v12 = vadd.s32 %v3344_v25, %v3338_v22  ;;  %vm3347_vm5 = vc.u32 %v3345_v44, %v3341_v54  ;;  %v3216_v8 = vshll.u32 %v8830_v13, %v8922_v35 }
 0x2d7   : > { %v3328_v53 = vadd.s32 %v3326_v16, %v3324_v19  ;;  %v3348_v23 = vsel %vm3347_vm5, 1, %v11070_v6  ;;  %v3342_v37 = vshrl.u32 %v3337_v31, 16  ;;  %v3429_v26 = vand.u32 31, %v3427_v58 }
 0x2d8   : > { %v3350_v47 = vadd.s32 %v3348_v23, %v3346_v12  ;;  %v3299_v1 = vsel %vm3293_vm14, %v3296_v9, %v3298_v7  ;;  %v8940_v52 = vadd.s32 %v3345_v44, %v3341_v54  ;;  %v8942_v38 = vshrl.u32 %v3427_v58, 5 }
 0x2d9   : > { %v3329_v10 = vadd.s32 %v3328_v53, %v3318_v20  ;;  %v3217_v22 = vshrl.u32 %v3199_v55, %v3215_v3  ;;  %v3430_v30 = vsub.s32 32, %v3429_v26  ;;  %v3432_v19 = vshll.u32 %v11057_v2, %v3429_v26 }
 0x2da   : > { %v3351_v63 = vadd.s32 %v3350_v47, %v3340_v0  ;;  %v3221_v24 = vshll.u32 %v3220_v36, 23  ;;  %v3435_v13 = vshll.u32 %v11088_v43, %v3429_v26  ;;  %v3438_v12 = vshll.u32 %v11089_v18, %v3429_v26 }
 0x2db   : > { %v8945_v33 = vadd.s32 %v3329_v10, %v3320_v50  ;;  %v3353_v48 = vmul.u32 %v8870_v60, %v3299_v1  ;;  %v3433_v35 = vshrl.u32 %v11088_v43, %v3430_v30  ;;  %v3441_v58 = vshll.u32 %v11090_v15, %v3429_v26 }
 0x2dc   : > { %v3352_v31 = vadd.s32 %v3351_v63, %v3342_v37  ;;  %v3436_v0 = vshrl.u32 %v11089_v18, %v3430_v30  ;;  %v3439_v55 = vshrl.u32 %v11090_v15, %v3430_v30  ;;  %vm3447_vm15 = vcmp.lt.s32.totalorder %v8942_v38, 1 }
 0x2dd   : > { %vm3355_vm8 = vc.u32 %v8945_v33, %v8940_v52  ;;  %v3434_v54 = vor.u32 %v3433_v35, %v3432_v19  ;;  %v3442_v9 = vshrl.u32 %v11154_v34, %v3430_v30  ;;  %vm3450_vm14 = vcmp.lt.s32.totalorder %v8942_v38, 4  ;;  %v11236_v19 = vld [vmem:[#allocation23_spill] sm:$0xff] }
 0x2de   : > { %v3356_v3 = vadd.s32 1, %v3352_v31  ;;  %v3437_v60 = vor.u32 %v3436_v0, %v3435_v13  ;;  %v3440_v7 = vor.u32 %v3439_v55, %v3438_v12  ;;  %v3444_v44 = vshll.u32 %v11154_v34, %v3429_v26 }
 0x2df   : > { %v3445_v20 = vshrl.u32 %v11156_v4, %v3430_v30  ;;  %v8963_v25 = vmul.f32 %v8920_v56, %v8920_v56  ;;  %v3443_v36 = vor.u32 %v3442_v9, %v3441_v58  ;;  %vm3449_vm1 = vcmp.lt.s32.totalorder %v8942_v38, 3 }
 0x2e0   : > { %v3357_v16 = vsel %vm3355_vm8, %v3356_v3, %v3352_v31  ;;  %v3218_v50 = vor.u32 %v3217_v22, %v3216_v8  ;;  %v3222_v53 = vor.u32 4788187, %v3221_v24  ;;  %vm3448_vm12 = vcmp.lt.s32.totalorder %v8942_v38, 2 }
 0x2e1   : > { %v3358_v23 = vadd.s32 %v3357_v16, %v3353_v48  ;;  %v3446_v37 = vor.u32 %v3445_v20, %v3444_v44  ;;  %v3455_v47 = vsel %vm3447_vm15, %v3434_v54, %v3437_v60  ;;  %v3456_v26 = vsel %vm3450_vm14, %v3443_v36, 920167782 }
 0x2e2   : > { %v3459_v1 = vsel %vm3447_vm15, %v3437_v60, %v3440_v7  ;;  %v2933_v10 = vmul.f32 %v8906_v42, %v8858_v39  ;;  %v3457_v8 = vsel %vm3449_vm1, %v3440_v7, %v3456_v26  ;;  %v3074_v24 = vsub.s32 4, %v11236_v19 }
 0x2e3   : > { %v3359_v63 = vadd.s32 536870912, %v3358_v23  ;;  %v3460_v22 = vsel %vm3450_vm14, %v3446_v37, 1326507024  ;;  %v3086_v13 = vmul.f32 -0.00019511016, %v8963_v25  ;;  %v11237_v31 = vor.u32 8388608, %v8899_v41 }
 0x2e4   : > { %v3461_v12 = vsel %vm3449_vm1, %v3443_v36, %v3460_v22  ;;  %v3225_v35 = vcvt.s32.f32 %v3218_v50  ;;  %v3458_v58 = vsel %vm3448_vm12, %v3455_v47, %v3457_v8  ;;  %v3223_v55 = vand.u32 2147483647, %v3222_v53 }
 0x2e5   : > { %v8985_v48 = vshll.u32 %v11237_v31, 8  ;;  %v8987_v42 = vshrl.u32 %v3359_v63, 30  ;;  %v3462_v0 = vsel %vm3448_vm12, %v3459_v1, %v3461_v12  ;;  %v8996_v20 = vadd.f32 1.0, %v8874_v11 }
 0x2e6   : > { %v3466_v44 = vand.u32 65535, %v3462_v0  ;;  %v8998_v41 = vadd.f32 -0.16666654, %v2933_v10  ;;  %v3467_v36 = vshrl.u32 %v3462_v0, 16  ;;  %v3431_v50 = vshrl.u32 %v11057_v2, %v3430_v30 }
 0x2e7   : > { %v3464_v3 = vand.u32 65535, %v8985_v48  ;;  %v3465_v9 = vshrl.u32 %v8985_v48, 16  ;;  %v3361_v16 = vshll.u32 %v8987_v42, 30  ;;  %v3488_v47 = vand.u32 65535, %v3458_v58 }
 0x2e8   : > { %v3489_v26 = vshrl.u32 %v3458_v58, 16  ;;  %v9005_v53 = vsel %vm2952_vm11, %v3074_v24, %v11236_v19  ;;  %v3087_v8 = vadd.f32 0.008332121, %v3086_v13  ;;  %v3226_v10 = vmul.f32 %v3225_v35, %v3223_v55 }
 0x2e9   : > { %v3470_v37 = vmul.u32 %v3466_v44, %v3465_v9  ;;  %v9007_v1 = vsub.s32 %v3358_v23, %v3361_v16  ;;  %v3468_v63 = vmul.u32 %v3466_v44, %v3464_v3  ;;  %v3469_v11 = vmul.u32 %v3467_v36, %v3464_v3 }
 0x2ea   : > { %v3452_v22 = vsel %vm3450_vm14, %v3440_v7, 2102212464  ;;  %v3471_v12 = vmul.u32 %v3467_v36, %v3465_v9  ;;  %v3451_v19 = vsel %vm3447_vm15, %v3431_v50, %v3434_v54  ;;  %v3490_v23 = vmul.u32 %v3488_v47, %v3464_v3 }
 0x2eb   : > { %vm3363_vm4 = vcmp.lt.s32.totalorder %v9007_v1, 0  ;;  %v3364_v30 = vsub.s32 0, %v9007_v1  ;;  %v3472_v31 = vshll.u32 %v3469_v11, 16  ;;  %v3474_v58 = vshll.u32 %v3470_v37, 16 }
 0x2ec   : > { %v3491_v24 = vmul.u32 %v3489_v26, %v3464_v3  ;;  %v3492_v0 = vmul.u32 %v3488_v47, %v3465_v9  ;;  %v3453_v35 = vsel %vm3449_vm1, %v3437_v60, %v3452_v22  ;;  %v3493_v16 = vmul.u32 %v3489_v26, %v3465_v9 }
 0x2ed   : > { %v3365_v13 = vsel %vm3363_vm4, %v3364_v30, %v9007_v1  ;;  %vm3476_vm11 = vc.u32 %v3468_v63, %v3472_v31  ;;  %v3478_v7 = vadd.s32 %v3472_v31, %v3468_v63  ;;  %v3473_v49 = vshrl.u32 %v3469_v11, 16 }
 0x2ee   : > { %v3366_v55 = vclz %v3365_v13  ;;  %v3477_v44 = vsel %vm3476_vm11, 1, %v11070_v6  ;;  %v3494_v36 = vshll.u32 %v3491_v24, 16  ;;  %v3496_v54 = vshll.u32 %v3492_v0, 16 }
 0x2ef   : > { %v3479_v61 = vadd.s32 %v3477_v44, %v3471_v12  ;;  %vm3480_vm13 = vc.u32 %v3478_v7, %v3474_v58  ;;  %v3475_v30 = vshrl.u32 %v3470_v37, 16  ;;  %v9025_v22 = vmul.f32 2.0, %v9020_v28  ;;  %v11238_v58 = vld [vmem:[#allocation26_spill] sm:$0xff] }
 0x2f0   : > { %v5739_v3 = vadd.s32 4294967294, %v3366_v55  ;;  %v3481_v50 = vsel %vm3480_vm13, 1, %v11070_v6  ;;  %vm3498_vm5 = vc.u32 %v3490_v23, %v3494_v36  ;;  %v3500_v47 = vadd.s32 %v3494_v36, %v3490_v23 }
 0x2f1   : > { %v3483_v60 = vadd.s32 %v3481_v50, %v3479_v61  ;;  %v3499_v63 = vsel %vm3498_vm5, 1, %v11070_v6  ;;  %v3495_v9 = vshrl.u32 %v3491_v24, 16  ;;  %459 = vrot.lane.b32.xlu1 %v9025_v22, %s6050_s9  ;;  %v1529_v23 = vmul.f32 -0.001358992, %v11238_v58 }
 0x2f2   : > { %vm5740_vm8 = vcmp.lt.s32.totalorder %v5739_v3, 0  ;;  %v3501_v26 = vadd.s32 %v3499_v63, %v3493_v16  ;;  %vm3502_vm15 = vc.u32 %v3500_v47, %v3496_v54  ;;  %v3227_v37 = vxor.u32 2147483648, %v3226_v10  ;;  %v11239_v63 = vld [vmem:[#allocation12_spill] sm:$0xff] }
 0x2f3   : > { %v3369_v11 = vsel %vm5740_vm8, 0, %v5739_v3  ;;  %v3484_v12 = vadd.s32 %v3483_v60, %v3473_v49  ;;  %v3503_v31 = vsel %vm3502_vm15, 1, %v11070_v6  ;;  %v3497_v13 = vshrl.u32 %v3492_v0, 16 }
 0x2f4   : > { %v3374_v61 = vsub.s32 4294967266, %v3369_v11  ;;  %v3505_v7 = vadd.s32 %v3503_v31, %v3501_v26  ;;  %v3354_v55 = vadd.s32 %v8940_v52, %v8945_v33  ;;  %v9035_v24 = vadd.s32 %v3500_v47, %v3496_v54  ;;  %v11240_v26 = vld [vmem:[#allocation31_spill] sm:$0xff] }
 0x2f5   : > { %v9033_v44 = vadd.s32 %v3484_v12, %v3475_v30  ;;  %v1530_v16 = vadd.f32 0.041655596, %v1529_v23  ;;  %v3370_v49 = vsub.s32 32, %v3369_v11  ;;  %v3454_v3 = vsel %vm3448_vm12, %v3451_v19, %v3453_v35 }
 0x2f6   : > { %v3375_v36 = vadd.s32 127, %v3374_v61  ;;  %v3506_v50 = vadd.s32 %v3505_v7, %v3495_v9  ;;  %v2935_v60 = vmul.f32 %v8998_v41, %v8858_v39  ;;  %vm3107_vm14 = vcmp.lt.s32.totalorder %v11239_v63, 0 }
 0x2f7   : > { %v1531_v0 = vmul.f32 %v1530_v16, %v11238_v58  ;;  %v1684_v52 = vmul.f32 -0.001358992, %v11240_v26  ;;  %v3077_v33 = vsel %vm8890_vm3, 0, %v9005_v53  ;;  %v3088_v54 = vmul.f32 %v3087_v8, %v8963_v25 }
 0x2f8   : > { %v3228_v38 = vsel %vm3107_vm14, %v3227_v37, %v3226_v10  ;;  %v3507_v19 = vadd.s32 %v3506_v50, %v3497_v13  ;;  %v3508_v35 = vmul.u32 %v8985_v48, %v3454_v3  ;;  %vm3510_vm1 = vc.u32 %v9033_v44, %v9035_v24  ;;  %v11242_v48 = vld [vmem:[#allocation33_spill] sm:$0xff]  ;;  %v11248_v3 = vld [vmem:[#allocation30_spill] sm:$0xff] }
 0x2f9   : > { %v1532_v41 = vadd.f32 -0.4999988, %v1531_v0  ;;  %v1685_v47 = vadd.f32 0.041655596, %v1684_v52  ;;  %v3371_v30 = vshll.u32 %v9007_v1, %v3369_v11  ;;  %v3372_v9 = vshrl.u32 %v3354_v55, %v3370_v49 }
 0x2fa   : > { %v3376_v12 = vshll.u32 %v3375_v36, 23  ;;  %v3511_v31 = vadd.s32 1, %v3507_v19  ;;  %v9056_v62 = vmul.f32 %v8996_v20, %v8577_v5  ;;  %v11243_v23 = vsel %vm7711_vm9, 0, %v11242_v48 }
 0x2fb   : > { %v1533_v53 = vmul.f32 %v1532_v41, %v11238_v58  ;;  %v1686_v8 = vmul.f32 %v1685_v47, %v11240_v26  ;;  %v1699_v37 = vadd.s32 3, %v11243_v23  ;;  %v9064_v61 = vadd.f32 1.0, %v2935_v60 }
 0x2fc   : > { %v9066_v13 = vadd.s32 3, %v3077_v33  ;;  %v11244_v1 = vand.u32 2147483647, %v11239_v63  ;;  %v11245_v11 = vmov 0  ;;  %v3512_v5 = vsel %vm3510_vm1, %v3511_v31, %v3507_v19 }
 0x2fd   : > { %v3513_v58 = vadd.s32 %v3512_v5, %v3508_v35  ;;  %v1534_v7 = vadd.f32 1.0, %v1533_v53  ;;  %v1687_v55 = vadd.f32 -0.4999988, %v1686_v8  ;;  %v3089_v16 = vadd.f32 -0.16666654, %v3088_v54  ;;  %v11251_v35 = vld [vmem:[#allocation41_spill] sm:$0xff] }
 0x2fe   : > { %vm9070_vm3 = vcmp.le.f32.partialorder %v11244_v1, 0.7853982  ;;  %v3373_v49 = vor.u32 %v3372_v9, %v3371_v30  ;;  %v3377_v36 = vor.u32 4788187, %v3376_v12  ;;  %vm1547_vm9 = vcmp.eq.s32.totalorder %v11248_v3, 0  ;;  %v11253_v9 = vld [vmem:[#allocation45_spill] sm:$0xff] }
 0x2ff   : > { %v11246_v11 = vsel %vm9070_vm3, 4294967295, %v11245_v11  ;;  %v9077_v20 = vsel %vm9070_vm3, %v11239_v63, %v3228_v38  ;;  %v3514_v50 = vadd.s32 536870912, %v3513_v58  ;;  %v1551_v60 = vxor.u32 2147483648, %v1534_v7  ;;  %v11250_v38 = vld [vmem:[#allocation7_spill] sm:$0xff] }
 0x300   : > { %11247 = vst [vmem:[#allocation21_spill] sm:$0xff] %v11246_v11  ;;  %v1688_v0 = vmul.f32 %v1687_v55, %v11240_v26  ;;  %v1700_v52 = vand.u32 3, %v1699_v37  ;;  %v3229_v33 = vsub.s32 4, %v8806_v32  ;;  %v9084_v19 = vmul.f32 %v9077_v20, %v9077_v20  ;;  %v9098_v37 = vpop.permute.xlu2 %451 }
 0x301   : > { %vm1543_vm12 = vweird.f32 %v11250_v38  ;;  %v11252_v41 = vxor.u32 2147483648, %v11251_v35  ;;  %v9089_v47 = vshrl.u32 %v3514_v50, 30  ;;  %vm1550_vm4 = vcmp.eq.s32.totalorder %v11248_v3, 2 }
 0x302   : > { %11249 = vst [vmem:[#allocation37_spill] sm:$0xff] %v9084_v19  ;;  %v1689_v30 = vadd.f32 1.0, %v1688_v0  ;;  %v1703_v12 = vxor.u32 2147483648, %v11253_v9  ;;  %v3378_v26 = vand.u32 2147483647, %v3377_v36  ;;  %v3380_v31 = vcvt.s32.f32 %v3373_v49  ;;  %v11255_v49 = vld [vmem:[#allocation38_spill] sm:$0xff] }
 0x303   : > { %v1549_v54 = vsel %vm1547_vm9, %v1534_v7, %v11252_v41  ;;  %vm1546_vm11 = vcmp.lt.s32.totalorder %v11248_v3, 2  ;;  %v1552_v53 = vsel %vm1550_vm4, %v1551_v60, %v11251_v35  ;;  %v3090_v8 = vmul.f32 %v3089_v16, %v8963_v25  ;;  %v11254_v7 = vld [vmem:[#allocation35_spill] sm:$0xff]  ;;  %v11256_v41 = vld [vmem:[#allocation9_spill] sm:$0xff] }
 0x304   : > { %v3516_v10 = vshll.u32 %v9089_v47, 30  ;;  %v1553_v48 = vsel %vm1546_vm11, %v1549_v54, %v1552_v53  ;;  %vm1702_vm13 = vcmp.eq.s32.totalorder %v1700_v52, 0  ;;  %v3241_v23 = vmul.f32 -0.00019511016, %v9084_v19 }
 0x305   : > { %v1704_v1 = vsel %vm1702_vm13, %v1689_v30, %v1703_v12  ;;  %v1706_v5 = vxor.u32 2147483648, %v1689_v30  ;;  %v1839_v55 = vmul.f32 -0.001358992, %v11254_v7  ;;  %vm1701_vm5 = vcmp.lt.s32.totalorder %v1700_v52, 2 }
 0x306   : > { %v9101_v36 = vsub.s32 %v3513_v58, %v3516_v10  ;;  %vm1705_vm8 = vcmp.eq.s32.totalorder %v1700_v52, 2  ;;  %v1994_v3 = vmul.f32 -0.001358992, %v11255_v49  ;;  %v3381_v50 = vmul.f32 %v3380_v31, %v3378_v26 }
 0x307   : > { %v1554_v16 = vsel %vm1543_vm12, nan, %v1553_v48  ;;  %v1707_v60 = vsel %vm1705_vm8, %v1706_v5, %v11253_v9  ;;  %v1840_v0 = vadd.f32 0.041655596, %v1839_v55  ;;  %vm1698_vm1 = vweird.f32 %v11256_v41 }
 0x308   : > { %vm3518_vm15 = vcmp.lt.s32.totalorder %v9101_v36, 0  ;;  %v3519_v35 = vsub.s32 0, %v9101_v36  ;;  %v1708_v54 = vsel %vm1701_vm5, %v1704_v1, %v1707_v60  ;;  %v3242_v58 = vadd.f32 0.008332121, %v3241_v23 }
 0x309   : > { %v1709_v30 = vsel %vm1698_vm1, nan, %v1708_v54  ;;  %v358_v52 = vadd.f32 1.5707964, %v9020_v28  ;;  %v1841_v12 = vmul.f32 %v1840_v0, %v11254_v7  ;;  %v9115_v38 = vsel %vm3107_vm14, %v3229_v33, %v8806_v32  ;;  %v554_v0 = vpop.permute.xlu0 %553 }
 0x30a   : > { %11257 = vst [vmem:[#allocation16_spill] sm:$0xff] %v9115_v38  ;;  %v3520_v9 = vsel %vm3518_vm15, %v3519_v35, %v9101_v36  ;;  %v5936_v26 = vpack.i.bf16 %v1709_v30, %v1554_v16  ;;  %v1995_v31 = vadd.f32 0.041655596, %v1994_v3  ;;  %v3091_v53 = vadd.f32 1.0, %v3090_v8  ;;  %v450_v3 = vpop.permute.xlu1 %449 }
 0x30b   : > { %v3382_v10 = vxor.u32 2147483648, %v3381_v50  ;;  %v3521_v48 = vclz %v3520_v9  ;;  %563 = vrot.lane.b32.xlu0 %v358_v52, %s6049_s8  ;;  %v1842_v23 = vadd.f32 -0.4999988, %v1841_v12  ;;  %v9125_v32 = vmul.f32 %v9064_v61, %v8828_v46  ;;  %v6007_v61 = vld [vmem:[%s6115_s30 + $0x90] sm:$0xff] }
 0x30c   : > { %v9128_v33 = vand.u32 3, %v9066_v13  ;;  %5937 = vrot.lane.b32.xlu2 %v5936_v26, %s6050_s9  ;;  %v3243_v5 = vmul.f32 %v3242_v58, %v9084_v19  ;;  %v11259_v60 = vand.u32 2147483647, %v8768_v40  ;;  %vm3262_vm9 = vcmp.lt.s32.totalorder %v8768_v40, 0  ;;  %v658_v58 = vpop.permute.xlu2 %657  ;;  %v307_v26 = vld [vmem:[%s6115_s30 + $0xc0] sm:$0xff] }
 0x30d   : > { %v5742_v55 = vadd.s32 4294967294, %v3521_v48  ;;  %v1843_v16 = vmul.f32 %v1842_v23, %v11254_v7  ;;  %vm11262_vm12 = vcmask 244736   ;;  %v1996_v35 = vmul.f32 %v1995_v31, %v11255_v49 }
 0x30e   : > { %11258 = vst [vmem:[#allocation19_spill] sm:$0xff] %v9128_v33  ;;  %vm9138_vm14 = vcmp.le.f32.partialorder %v11259_v60, 0.7853982  ;;  %v718_v13 = vsel %vm11262_vm12, %v6007_v61, %v450_v3  ;;  %v9147_v41 = vmul.f32 %v3091_v53, %v8920_v56  ;;  %v3383_v7 = vsel %vm3262_vm9, %v3382_v10, %v3381_v50  ;;  %v11267_v3 = vld [vmem:[#allocation42_spill] sm:$0xff]  ;;  %vm11269_vm13 = vmmov %vm11262_vm12 }
 0x30f   : > { %vm5743_vm4 = vcmp.lt.s32.totalorder %v5742_v55, 0  ;;  %vm11264_vm11 = vcmask 490496   ;;  %v3509_v30 = vadd.s32 %v9035_v24, %v9033_v44  ;;  %v383_v9 = vadd.f32 1.5707964, %v8754_v14 }
 0x310   : > { %11263 = vst [vmem:[#allocation24_spill] sm:$0xff] %v9147_v41  ;;  %v745_v54 = vsel %vm11264_vm11, %v718_v13, %v554_v0  ;;  %v3524_v52 = vsel %vm5743_vm4, 0, %v5742_v55  ;;  %v3244_v56 = vadd.f32 -0.16666654, %v3243_v5  ;;  %v1844_v48 = vadd.f32 1.0, %v1843_v16  ;;  %v6008_v0 = vld [vmem:[%s6115_s30 + $0x98] sm:$0xff]  ;;  %vm11272_vm15 = vmmov %vm11264_vm11 }
 0x311   : > { %v9155_v12 = vsel %vm753_vm2, %v745_v54, %v658_v58  ;;  %v3525_v31 = vsub.s32 32, %v3524_v52  ;;  %v3529_v53 = vsub.s32 4294967266, %v3524_v52  ;;  %v9162_v50 = vsel %vm9138_vm14, %v8768_v40, %v3383_v7  ;;  %665 = vrot.lane.b32.xlu1 %v383_v9, %s6051_s10 }
 0x312   : > { %11265 = vst [vmem:[#allocation20_spill] sm:$0xff] %v9162_v50  ;;  %v3573_v10 = vand.u32 2139095040, %v9155_v12  ;;  %v359_v44 = vadd.f32 1.5707964, %v307_v26  ;;  %v1997_v24 = vadd.f32 -0.4999988, %v1996_v35  ;;  %v3526_v61 = vshll.u32 %v9101_v36, %v3524_v52  ;;  %v556_v5 = vpop.permute.xlu1 %555 }
 0x313   : > { %v3530_v14 = vadd.s32 127, %v3529_v53  ;;  %v11018_v55 = vand.u32 2147483647, %v9155_v12  ;;  %v11268_v16 = vsel %vm7876_vm6, 0, %v11267_v3  ;;  %v3527_v13 = vshrl.u32 %v3509_v30, %v3525_v31  ;;  %v11270_v35 = vld [vmem:[#allocation11_spill] sm:$0xff] }
 0x314   : > { %v2009_v60 = vadd.s32 3, %v11268_v16  ;;  %v719_v7 = vsel %vm11269_vm13, %v6008_v0, %v9098_v37  ;;  %v3574_v54 = vshrl.u32 %v3573_v10, 23  ;;  %565 = vrot.lane.b32.xlu0 %v359_v44, %s6049_s8  ;;  %vm1853_vm5 = vweird.f32 %v11270_v35  ;;  %v11271_v52 = vld [vmem:[#allocation47_spill] sm:$0xff]  ;;  %v660_v10 = vpop.permute.xlu0 %659  ;;  %v11273_v44 = vld [vmem:[#allocation46_spill] sm:$0xff] }
 0x315   : > { %v9179_v58 = vmul.f32 %v3244_v56, %v9084_v19  ;;  %v9183_v9 = vmul.f32 %v9162_v50, %v9162_v50  ;;  %v3531_v53 = vshll.u32 %v3530_v14, 23  ;;  %v1861_v36 = vxor.u32 2147483648, %v1844_v48  ;;  %v308_v19 = vld [vmem:[%s6115_s30 + $0xc8] sm:$0xff] }
 0x316   : > { %v5744_v30 = vadd.s32 4294967169, %v3574_v54  ;;  %vm1857_vm6 = vcmp.eq.s32.totalorder %v11271_v52, 0  ;;  %vm1860_vm8 = vcmp.eq.s32.totalorder %v11271_v52, 2  ;;  %v1998_v37 = vmul.f32 %v1997_v24, %v11255_v49 }
 0x317   : > { %v3577_v31 = vand.u32 8388607, %v11018_v55  ;;  %v746_v56 = vsel %vm11272_vm15, %v719_v7, %v556_v5  ;;  %v11274_v3 = vxor.u32 2147483648, %v11273_v44  ;;  %v2010_v0 = vand.u32 3, %v2009_v60  ;;  %v11275_v5 = vld [vmem:[#allocation6_spill] sm:$0xff] }
 0x318   : > { %v3528_v14 = vor.u32 %v3527_v13, %v3526_v61  ;;  %v3532_v23 = vor.u32 4788187, %v3531_v53  ;;  %v3580_v8 = vadd.s32 1, %v5744_v30  ;;  %v9193_v54 = vmul.f32 2.0, %v307_v26 }
 0x319   : > { %v1859_v16 = vsel %vm1857_vm6, %v1844_v48, %v11274_v3  ;;  %v3396_v1 = vmul.f32 -0.00019511016, %v9183_v9  ;;  %vm1856_vm1 = vcmp.lt.s32.totalorder %v11271_v52, 2  ;;  %v1862_v49 = vsel %vm1860_vm8, %v1861_v36, %v11273_v44 }
 0x31a   : > { %vm3581_vm12 = vcmp.gt.s32.totalorder %v3580_v8, 0  ;;  %v9200_v24 = vsel %vm753_vm2, %v746_v56, %v660_v10  ;;  %461 = vrot.lane.b32.xlu1 %v9193_v54, %s6050_s9  ;;  %v1863_v48 = vsel %vm1856_vm1, %v1859_v16, %v1862_v49  ;;  %v1999_v60 = vadd.f32 1.0, %v1998_v37 }
 0x31b   : > { %v3578_v61 = vor.u32 8388608, %v3577_v31  ;;  %v3582_v26 = vsel %vm3581_vm12, %v3580_v8, 0  ;;  %vm2011_vm4 = vcmp.lt.s32.totalorder %v2010_v0, 2  ;;  %vm2012_vm11 = vcmp.eq.s32.totalorder %v2010_v0, 0 }
 0x31c   : > { %vm2015_vm13 = vcmp.eq.s32.totalorder %v2010_v0, 2  ;;  %v3533_v13 = vand.u32 2147483647, %v3532_v23  ;;  %v3535_v7 = vcvt.s32.f32 %v3528_v14  ;;  %v3584_v53 = vand.u32 31, %v3582_v26  ;;  %v11276_v23 = vld [vmem:[#allocation15_spill] sm:$0xff] }
 0x31d   : > { %v2013_v30 = vxor.u32 2147483648, %v11275_v5  ;;  %v9205_v36 = vadd.f32 0.008332121, %v3396_v1  ;;  %v9207_v52 = vshrl.u32 %v3582_v26, 5  ;;  %v3728_v56 = vand.u32 2139095040, %v9200_v24 }
 0x31e   : > { %v9212_v10 = vsel %vm1853_vm5, nan, %v1863_v48  ;;  %v3585_v37 = vsub.s32 32, %v3584_v53  ;;  %v3587_v8 = vshll.u32 %v11057_v2, %v3584_v53  ;;  %v3590_v31 = vshll.u32 %v11088_v43, %v3584_v53 }
 0x31f   : > { %vm2008_vm6 = vweird.f32 %v11276_v23  ;;  %v2016_v44 = vxor.u32 2147483648, %v1999_v60  ;;  %v3593_v3 = vshll.u32 %v11089_v18, %v3584_v53  ;;  %v3596_v1 = vshll.u32 %v11090_v15, %v3584_v53 }
 0x320   : > { %v3599_v16 = vshll.u32 %v11154_v34, %v3584_v53  ;;  %v9220_v14 = vshll.u32 %v3578_v61, 8  ;;  %vm3417_vm8 = vcmp.lt.s32.totalorder %v8799_v27, 0  ;;  %v3536_v35 = vmul.f32 %v3535_v7, %v3533_v13 }
 0x321   : > { %v3588_v49 = vshrl.u32 %v11088_v43, %v3585_v37  ;;  %v3591_v48 = vshrl.u32 %v11089_v18, %v3585_v37  ;;  %v2014_v26 = vsel %vm2012_vm11, %v1999_v60, %v2013_v30  ;;  %v3594_v55 = vshrl.u32 %v11090_v15, %v3585_v37 }
 0x322   : > { %v3597_v28 = vshrl.u32 %v11154_v34, %v3585_v37  ;;  %v3600_v50 = vshrl.u32 %v11156_v4, %v3585_v37  ;;  %vm3602_vm5 = vcmp.lt.s32.totalorder %v9207_v52, 1  ;;  %v3729_v63 = vshrl.u32 %v3728_v56, 23 }
 0x323   : > { %v3589_v53 = vor.u32 %v3588_v49, %v3587_v8  ;;  %v3592_v61 = vor.u32 %v3591_v48, %v3590_v31  ;;  %v2017_v13 = vsel %vm2015_vm13, %v2016_v44, %v11275_v5  ;;  %v11277_v7 = vand.u32 2147483647, %v8799_v27 }
 0x324   : > { %v3595_v60 = vor.u32 %v3594_v55, %v3593_v3  ;;  %v3598_v30 = vor.u32 %v3597_v28, %v3596_v1  ;;  %v3601_v33 = vor.u32 %v3600_v50, %v3599_v16  ;;  %vm3604_vm1 = vcmp.lt.s32.totalorder %v9207_v52, 3 }
 0x325   : > { %vm9234_vm15 = vcmp.le.f32.partialorder %v11277_v7, 0.7853982  ;;  %vm3603_vm12 = vcmp.lt.s32.totalorder %v9207_v52, 2  ;;  %vm3605_vm11 = vcmp.lt.s32.totalorder %v9207_v52, 4  ;;  %v3610_v56 = vsel %vm3602_vm5, %v3589_v53, %v3592_v61 }
 0x326   : > { %v2018_v5 = vsel %vm2011_vm4, %v2014_v26, %v2017_v13  ;;  %v3537_v8 = vxor.u32 2147483648, %v3536_v35  ;;  %v3586_v31 = vshrl.u32 %v11057_v2, %v3585_v37  ;;  %v3611_v44 = vsel %vm3605_vm11, %v3598_v30, 920167782 }
 0x327   : > { %v3614_v55 = vsel %vm3602_vm5, %v3592_v61, %v3595_v60  ;;  %v3612_v28 = vsel %vm3604_vm1, %v3595_v60, %v3611_v44  ;;  %v3615_v50 = vsel %vm3605_vm11, %v3601_v33, 1326507024  ;;  %v3619_v3 = vand.u32 65535, %v9220_v14 }
 0x328   : > { %v3620_v1 = vshrl.u32 %v9220_v14, 16  ;;  %v3613_v16 = vsel %vm3603_vm12, %v3610_v56, %v3612_v28  ;;  %v3616_v0 = vsel %vm3604_vm1, %v3598_v30, %v3615_v50  ;;  %v5747_v49 = vadd.s32 4294967169, %v3729_v63 }
 0x329   : > { %v2019_v37 = vsel %vm2008_vm6, nan, %v2018_v5  ;;  %v3607_v48 = vsel %vm3605_vm11, %v3595_v60, 2102212464  ;;  %v3617_v26 = vsel %vm3603_vm12, %v3614_v55, %v3616_v0  ;;  %v3643_v13 = vand.u32 65535, %v3613_v16 }
 0x32a   : > { %v3644_v33 = vshrl.u32 %v3613_v16, 16  ;;  %v3538_v7 = vsel %vm3417_vm8, %v3537_v8, %v3536_v35  ;;  %v3606_v44 = vsel %vm3602_vm5, %v3586_v31, %v3589_v53  ;;  %v3621_v56 = vand.u32 65535, %v3617_v26 }
 0x32b   : > { %v3622_v28 = vshrl.u32 %v3617_v26, 16  ;;  %v3645_v38 = vmul.u32 %v3643_v13, %v3619_v3  ;;  %v3647_v63 = vmul.u32 %v3643_v13, %v3620_v1  ;;  %v3608_v60 = vsel %vm3604_vm1, %v3592_v61, %v3607_v48 }
 0x32c   : > { %v3646_v30 = vmul.u32 %v3644_v33, %v3619_v3  ;;  %v3623_v5 = vmul.u32 %v3621_v56, %v3619_v3  ;;  %v3625_v50 = vmul.u32 %v3621_v56, %v3620_v1  ;;  %v9269_v35 = vsel %vm9234_vm15, %v8799_v27, %v3538_v7 }
 0x32d   : > { %v3624_v55 = vmul.u32 %v3622_v28, %v3619_v3  ;;  %v3648_v8 = vmul.u32 %v3644_v33, %v3620_v1  ;;  %v3651_v31 = vshll.u32 %v3647_v63, 16  ;;  %v3626_v16 = vmul.u32 %v3622_v28, %v3620_v1 }
 0x32e   : > { %v3649_v53 = vshll.u32 %v3646_v30, 16  ;;  %v3629_v26 = vshll.u32 %v3625_v50, 16  ;;  %v3735_v13 = vadd.s32 1, %v5747_v49  ;;  %v3609_v23 = vsel %vm3603_vm12, %v3606_v44, %v3608_v60 }
 0x32f   : > { %v3627_v0 = vshll.u32 %v3624_v55, 16  ;;  %v11280_v3 = vand.u32 2147483647, %v9200_v24  ;;  %v3650_v7 = vshrl.u32 %v3646_v30, 16  ;;  %v3628_v11 = vshrl.u32 %v3624_v55, 16 }
 0x330   : > { %vm3653_vm4 = vc.u32 %v3645_v38, %v3649_v53  ;;  %v3655_v61 = vadd.s32 %v3649_v53, %v3645_v38  ;;  %v3652_v52 = vshrl.u32 %v3647_v63, 16  ;;  %vm3736_vm1 = vcmp.gt.s32.totalorder %v3735_v13, 0 }
 0x331   : > { %v3732_v48 = vand.u32 8388607, %v11280_v3  ;;  %vm3631_vm13 = vc.u32 %v3623_v5, %v3627_v0  ;;  %v3633_v56 = vadd.s32 %v3627_v0, %v3623_v5  ;;  %v3654_v33 = vsel %vm3653_vm4, 1, %v11070_v6 }
 0x332   : > { %v3632_v1 = vsel %vm3631_vm13, 1, %v11070_v6  ;;  %v3656_v28 = vadd.s32 %v3654_v33, %v3648_v8  ;;  %vm3657_vm6 = vc.u32 %v3655_v61, %v3651_v31  ;;  %v5941_v5 = vpack.i.bf16 %v2019_v37, %v9212_v10 }
 0x333   : > { %v3634_v49 = vadd.s32 %v3632_v1, %v3626_v16  ;;  %vm3635_vm5 = vc.u32 %v3633_v56, %v3629_v26  ;;  %v3658_v44 = vsel %vm3657_vm6, 1, %v11070_v6  ;;  %v3630_v30 = vshrl.u32 %v3625_v50, 16 }
 0x334   : > { %v3636_v38 = vsel %vm3635_vm5, 1, %v11070_v6  ;;  %v3660_v60 = vadd.s32 %v3658_v44, %v3656_v28  ;;  %v3737_v0 = vsel %vm3736_vm1, %v3735_v13, 0  ;;  %v360_v55 = vadd.f32 1.5707964, %v308_v19  ;;  %5942 = vrot.lane.b32.xlu0 %v5941_v5, %s6050_s9 }
 0x335   : > { %v3638_v53 = vadd.s32 %v3636_v38, %v3634_v49  ;;  %v3663_v8 = vmul.u32 %v9220_v14, %v3609_v23  ;;  %v3739_v33 = vand.u32 31, %v3737_v0  ;;  %v384_v63 = vadd.f32 1.5707964, %v9025_v22 }
 0x336   : > { %v3661_v3 = vadd.s32 %v3660_v60, %v3650_v7  ;;  %v9284_v26 = vadd.s32 %v3655_v61, %v3651_v31  ;;  %v3733_v56 = vor.u32 8388608, %v3732_v48  ;;  %v9286_v1 = vshrl.u32 %v3737_v0, 5  ;;  %567 = vrot.lane.b32.xlu1 %v360_v55, %s6049_s8 }
 0x337   : > { %v3639_v16 = vadd.s32 %v3638_v53, %v3628_v11  ;;  %v3740_v37 = vsub.s32 32, %v3739_v33  ;;  %v3742_v50 = vshll.u32 %v11057_v2, %v3739_v33  ;;  %v3745_v13 = vshll.u32 %v11088_v43, %v3739_v33  ;;  %667 = vrot.lane.b32.xlu2 %v384_v63, %s6051_s10 }
 0x338   : > { %v3662_v10 = vadd.s32 %v3661_v3, %v3652_v52  ;;  %v3748_v23 = vshll.u32 %v11089_v18, %v3739_v33  ;;  %v3751_v22 = vshll.u32 %v11090_v15, %v3739_v33  ;;  %v3754_v11 = vshll.u32 %v11154_v34, %v3739_v33 }
 0x339   : > { %v3640_v14 = vadd.s32 %v3639_v16, %v3630_v30  ;;  %v3743_v61 = vshrl.u32 %v11088_v43, %v3740_v37  ;;  %v3746_v48 = vshrl.u32 %v11089_v18, %v3740_v37  ;;  %v3749_v7 = vshrl.u32 %v11090_v15, %v3740_v37 }
 0x33a   : > { %v3666_v31 = vadd.s32 1, %v3662_v10  ;;  %v9300_v28 = vmul.f32 %v9269_v35, %v9269_v35  ;;  %v3752_v49 = vshrl.u32 %v11154_v34, %v3740_v37  ;;  %v3755_v52 = vshrl.u32 %v11156_v4, %v3740_v37 }
 0x33b   : > { %vm3665_vm12 = vc.u32 %v3640_v14, %v9284_v26  ;;  %v9305_v38 = vor.u32 %v3743_v61, %v3742_v50  ;;  %v9307_v60 = vor.u32 %v3746_v48, %v3745_v13  ;;  %v9309_v5 = vshll.u32 %v3733_v56, 8 }
 0x33c   : > { %v3667_v44 = vsel %vm3665_vm12, %v3666_v31, %v3662_v10  ;;  %v9311_v53 = vor.u32 %v3749_v7, %v3748_v23  ;;  %v3753_v0 = vor.u32 %v3752_v49, %v3751_v22  ;;  %v3756_v55 = vor.u32 %v3755_v52, %v3754_v11 }
 0x33d   : > { %v3668_v30 = vadd.s32 %v3667_v44, %v3663_v8  ;;  %vm3757_vm11 = vcmp.lt.s32.totalorder %v9286_v1, 1  ;;  %vm3759_vm4 = vcmp.lt.s32.totalorder %v9286_v1, 3  ;;  %vm3760_vm13 = vcmp.lt.s32.totalorder %v9286_v1, 4  ;;  %v11281_v8 = vld [vmem:[#allocation43_spill] sm:$0xff] }
 0x33e   : > { %v334_v3 = vmul.f32 2.0, %v308_v19  ;;  %vm3758_vm6 = vcmp.lt.s32.totalorder %v9286_v1, 2  ;;  %v3765_v63 = vsel %vm3757_vm11, %v9305_v38, %v9307_v60  ;;  %v2149_v16 = vmul.f32 -0.001358992, %v11281_v8 }
 0x33f   : > { %v3669_v33 = vadd.s32 536870912, %v3668_v30  ;;  %v3551_v56 = vmul.f32 -0.00019511016, %v9300_v28  ;;  %v3766_v10 = vsel %vm3760_vm13, %v3753_v0, 920167782  ;;  %v3769_v19 = vsel %vm3757_vm11, %v9307_v60, %v9311_v53 }
 0x340   : > { %v3770_v50 = vsel %vm3760_vm13, %v3756_v55, 1326507024  ;;  %463 = vrot.lane.b32.xlu2 %v334_v3, %s6050_s9  ;;  %v3767_v23 = vsel %vm3759_vm4, %v9311_v53, %v3766_v10  ;;  %v3774_v11 = vand.u32 65535, %v9309_v5  ;;  %v3775_v48 = vshrl.u32 %v9309_v5, 16 }
 0x341   : > { %v9332_v13 = vshrl.u32 %v3669_v33, 30  ;;  %v3771_v22 = vsel %vm3759_vm4, %v3753_v0, %v3770_v50  ;;  %v3768_v31 = vsel %vm3758_vm6, %v3765_v63, %v3767_v23  ;;  %v386_v7 = vadd.f32 1.5707964, %v334_v3 }
 0x342   : > { %v3772_v61 = vsel %vm3758_vm6, %v3769_v19, %v3771_v22  ;;  %v11282_v49 = vsub.s32 4, %v8987_v42  ;;  %v9355_v33 = vmul.f32 %v9205_v36, %v9183_v9  ;;  %v3798_v10 = vand.u32 65535, %v3768_v31 }
 0x343   : > { %v3671_v44 = vshll.u32 %v9332_v13, 30  ;;  %v3776_v0 = vand.u32 65535, %v3772_v61  ;;  %v3777_v55 = vshrl.u32 %v3772_v61, 16  ;;  %v3799_v19 = vshrl.u32 %v3768_v31, 16  ;;  %671 = vrot.lane.b32.xlu0 %v386_v7, %s6051_s10 }
 0x344   : > { %v9350_v52 = vsel %vm3262_vm9, %v11282_v49, %v8987_v42  ;;  %v2150_v42 = vadd.f32 0.041655596, %v2149_v16  ;;  %v3552_v22 = vadd.f32 0.008332121, %v3551_v56  ;;  %v3664_v49 = vadd.s32 %v9284_v26, %v3640_v14 }
 0x345   : > { %v9359_v3 = vsub.s32 %v3668_v30, %v3671_v44  ;;  %v3778_v50 = vmul.u32 %v3776_v0, %v3774_v11  ;;  %v3779_v23 = vmul.u32 %v3777_v55, %v3774_v11  ;;  %v3741_v61 = vshrl.u32 %v11057_v2, %v3740_v37 }
 0x346   : > { %v3780_v4 = vmul.u32 %v3776_v0, %v3775_v48  ;;  %v3781_v63 = vmul.u32 %v3777_v55, %v3775_v48  ;;  %v3800_v15 = vmul.u32 %v3798_v10, %v3774_v11  ;;  %v3801_v7 = vmul.u32 %v3799_v19, %v3774_v11 }
 0x347   : > { %vm3673_vm9 = vcmp.lt.s32.totalorder %v9359_v3, 0  ;;  %v3674_v36 = vsub.s32 0, %v9359_v3  ;;  %v3782_v34 = vshll.u32 %v3779_v23, 16  ;;  %v3802_v30 = vmul.u32 %v3798_v10, %v3775_v48 }
 0x348   : > { %v3784_v31 = vshll.u32 %v3780_v4, 16  ;;  %v2151_v56 = vmul.f32 %v2150_v42, %v11281_v8  ;;  %v3803_v14 = vmul.u32 %v3799_v19, %v3775_v48  ;;  %v3804_v0 = vshll.u32 %v3801_v7, 16 }
 0x349   : > { %v3675_v44 = vsel %vm3673_vm9, %v3674_v36, %v9359_v3  ;;  %vm3786_vm5 = vc.u32 %v3778_v50, %v3782_v34  ;;  %v3788_v16 = vadd.s32 %v3782_v34, %v3778_v50  ;;  %v3783_v18 = vshrl.u32 %v3779_v23, 16 }
 0x34a   : > { %v3676_v26 = vclz %v3675_v44  ;;  %v3787_v37 = vsel %vm3786_vm5, 1, %v11070_v6  ;;  %v3806_v55 = vshll.u32 %v3802_v30, 16  ;;  %vm3808_vm12 = vc.u32 %v3800_v15, %v3804_v0 }
 0x34b   : > { %v3789_v43 = vadd.s32 %v3787_v37, %v3781_v63  ;;  %vm3790_vm1 = vc.u32 %v3788_v16, %v3784_v31  ;;  %v3810_v11 = vadd.s32 %v3804_v0, %v3800_v15  ;;  %v3762_v34 = vsel %vm3760_vm13, %v9311_v53, 2102212464 }
 0x34c   : > { %v5745_v2 = vadd.s32 4294967294, %v3676_v26  ;;  %v3791_v40 = vsel %vm3790_vm1, 1, %v11070_v6  ;;  %v3785_v10 = vshrl.u32 %v3780_v4, 16  ;;  %v3809_v42 = vsel %vm3808_vm12, 1, %v11070_v6 }
 0x34d   : > { %v3793_v50 = vadd.s32 %v3791_v40, %v3789_v43  ;;  %v3811_v48 = vadd.s32 %v3809_v42, %v3803_v14  ;;  %vm3812_vm5 = vc.u32 %v3810_v11, %v3806_v55  ;;  %v2152_v19 = vadd.f32 -0.4999988, %v2151_v56 }
 0x34e   : > { %vm5746_vm9 = vcmp.lt.s32.totalorder %v5745_v2, 0  ;;  %v3805_v36 = vshrl.u32 %v3801_v7, 16  ;;  %v3813_v31 = vsel %vm3812_vm5, 1, %v11070_v6  ;;  %v3761_v15 = vsel %vm3757_vm11, %v3741_v61, %v9305_v38 }
 0x34f   : > { %v3679_v63 = vsel %vm5746_vm9, 0, %v5745_v2  ;;  %v3794_v23 = vadd.s32 %v3793_v50, %v3783_v18  ;;  %v3763_v43 = vsel %vm3759_vm4, %v9307_v60, %v3762_v34  ;;  %v3246_v4 = vadd.f32 1.0, %v9179_v58  ;;  %v11283_v58 = vld [vmem:[#allocation51_spill] sm:$0xff]  ;;  %v11292_v34 = vld [vmem:[#allocation25_spill] sm:$0xff] }
 0x350   : > { %v3680_v44 = vsub.s32 32, %v3679_v63  ;;  %v3684_v16 = vsub.s32 4294967266, %v3679_v63  ;;  %v3553_v40 = vmul.f32 %v3552_v22, %v9300_v28  ;;  %v3807_v53 = vshrl.u32 %v3802_v30, 16 }
 0x351   : > { %v3815_v2 = vadd.s32 %v3813_v31, %v3811_v48  ;;  %v9382_v7 = vadd.s32 %v3794_v23, %v3785_v10  ;;  %v9384_v56 = vadd.s32 %v3810_v11, %v3806_v55  ;;  %v2153_v26 = vmul.f32 %v2152_v19, %v11281_v8  ;;  %v11286_v10 = vld [vmem:[#allocation39_spill] sm:$0xff] }
 0x352   : > { %v3685_v18 = vadd.s32 127, %v3684_v16  ;;  %v3387_v38 = vsel %vm9138_vm14, 0, %v9350_v52  ;;  %v3764_v60 = vsel %vm3758_vm6, %v3761_v15, %v3763_v43  ;;  %v2304_v37 = vmul.f32 -0.001358992, %v11283_v58  ;;  %v11289_v43 = vld [vmem:[#allocation17_spill] sm:$0xff] }
 0x353   : > { %v3816_v61 = vadd.s32 %v3815_v2, %v3805_v36  ;;  %v3399_v22 = vadd.f32 -0.16666654, %v9355_v33  ;;  %v11284_v30 = vsub.s32 4, %v9089_v47  ;;  %v3681_v8 = vshll.u32 %v9359_v3, %v3679_v63 }
 0x354   : > { %v3682_v0 = vshrl.u32 %v3664_v49, %v3680_v44  ;;  %v3554_v46 = vadd.f32 -0.16666654, %v3553_v40  ;;  %v3686_v52 = vshll.u32 %v3685_v18, 23  ;;  %v2305_v1 = vadd.f32 0.041655596, %v2304_v37 }
 0x355   : > { %v9399_v14 = vsel %vm3417_vm8, %v11284_v30, %v9089_v47  ;;  %v3817_v55 = vadd.s32 %v3816_v61, %v3807_v53  ;;  %v3818_v11 = vmul.u32 %v9309_v5, %v3764_v60  ;;  %vm3820_vm14 = vc.u32 %v9382_v7, %v9384_v56  ;;  %v11290_v60 = vld [vmem:[#allocation2_spill] sm:$0xff] }
 0x356   : > { %v2154_v33 = vadd.f32 1.0, %v2153_v26  ;;  %v11287_v50 = vsel %vm8216_vm10, 0, %v11286_v10  ;;  %v9410_v47 = vmul.f32 %v3246_v4, %v9077_v20  ;;  %v2306_v49 = vmul.f32 %v2305_v1, %v11283_v58  ;;  %v11288_v20 = vld [vmem:[#allocation22_spill] sm:$0xff] }
 0x357   : > { %v2319_v42 = vadd.s32 3, %v11287_v50  ;;  %v3821_v3 = vadd.s32 1, %v3817_v55  ;;  %v2459_v48 = vmul.f32 -0.001358992, %v8464_v17  ;;  %v3400_v19 = vmul.f32 %v3399_v22, %v9183_v9 }
 0x358   : > { %v9415_v5 = vadd.s32 3, %v3387_v38  ;;  %v3542_v63 = vsel %vm9234_vm15, 0, %v9399_v14  ;;  %v3683_v23 = vor.u32 %v3682_v0, %v3681_v8  ;;  %v3555_v36 = vmul.f32 %v3554_v46, %v9300_v28 }
 0x359   : > { %v3687_v31 = vor.u32 4788187, %v3686_v52  ;;  %v3822_v44 = vsel %vm3820_vm14, %v3821_v3, %v3817_v55  ;;  %vm2163_vm10 = vweird.f32 %v11288_v20  ;;  %v2307_v16 = vadd.f32 -0.4999988, %v2306_v49 }
 0x35a   : > { %v3823_v15 = vadd.s32 %v3822_v44, %v3818_v11  ;;  %vm2167_vm8 = vcmp.eq.s32.totalorder %v11289_v43, 0  ;;  %v2171_v4 = vxor.u32 2147483648, %v2154_v33  ;;  %v2320_v40 = vand.u32 3, %v2319_v42 }
 0x35b   : > { %vm2170_vm11 = vcmp.eq.s32.totalorder %v11289_v43, 2  ;;  %v2308_v53 = vmul.f32 %v2307_v16, %v11283_v58  ;;  %v2323_v2 = vxor.u32 2147483648, %v8784_v59  ;;  %v2460_v18 = vadd.f32 0.041655596, %v2459_v48 }
 0x35c   : > { %v3690_v26 = vcvt.s32.f32 %v3683_v23  ;;  %v3824_v38 = vadd.s32 536870912, %v3823_v15  ;;  %v11291_v61 = vxor.u32 2147483648, %v11290_v60  ;;  %v385_v22 = vadd.f32 1.5707964, %v9193_v54 }
 0x35d   : > { %v3688_v30 = vand.u32 2147483647, %v3687_v31  ;;  %v2309_v8 = vadd.f32 1.0, %v2308_v53  ;;  %v2461_v0 = vmul.f32 %v2460_v18, %v8464_v17  ;;  %v2614_v46 = vmul.f32 -0.001358992, %v8507_v45 }
 0x35e   : > { %v2169_v37 = vsel %vm2167_vm8, %v2154_v33, %v11291_v61  ;;  %v9431_v52 = vshrl.u32 %v3824_v38, 30  ;;  %vm2166_vm4 = vcmp.lt.s32.totalorder %v11289_v43, 2  ;;  %v2172_v58 = vsel %vm2170_vm11, %v2171_v4, %v11290_v60  ;;  %669 = vrot.lane.b32.xlu2 %v385_v22, %s6051_s10  ;;  %v11300_v22 = vld [vmem:[#allocation18_spill] sm:$0xff] }
 0x35f   : > { %vm2322_vm13 = vcmp.eq.s32.totalorder %v2320_v40, 0  ;;  %v2173_v55 = vsel %vm2166_vm4, %v2169_v37, %v2172_v58  ;;  %v2326_v11 = vxor.u32 2147483648, %v2309_v8  ;;  %v2462_v33 = vadd.f32 -0.4999988, %v2461_v0 }
 0x360   : > { %v2324_v1 = vsel %vm2322_vm13, %v2309_v8, %v2323_v2  ;;  %v3826_v54 = vshll.u32 %v9431_v52, 30  ;;  %vm2318_vm6 = vweird.f32 %v11292_v34  ;;  %vm2325_vm1 = vcmp.eq.s32.totalorder %v2320_v40, 2  ;;  %v11295_v2 = vld [vmem:[#allocation14_spill] sm:$0xff] }
 0x361   : > { %v2615_v10 = vadd.f32 0.041655596, %v2614_v46  ;;  %v3691_v50 = vmul.f32 %v3690_v26, %v3688_v30  ;;  %vm2321_vm12 = vcmp.lt.s32.totalorder %v2320_v40, 2  ;;  %v2327_v42 = vsel %vm2325_vm1, %v2326_v11, %v8784_v59  ;;  %v11301_v46 = vld [vmem:[#allocation3_spill] sm:$0xff] }
 0x362   : > { %v2463_v3 = vmul.f32 %v2462_v33, %v8464_v17  ;;  %v9440_v49 = vsub.s32 %v3823_v15, %v3826_v54  ;;  %v2174_v48 = vsel %vm2163_vm10, nan, %v2173_v55  ;;  %v2328_v23 = vsel %vm2321_vm12, %v2324_v1, %v2327_v42  ;;  %v11294_v15 = vld [vmem:[#allocation13_spill] sm:$0xff]  ;;  %v11302_v1 = vld [vmem:[#allocation28_spill] sm:$0xff] }
 0x363   : > { %v11293_v31 = vsel %vm8468_vm7, 0, %v8795_v51  ;;  %v9448_v16 = vadd.f32 1.0, %v3400_v19  ;;  %v2329_v43 = vsel %vm2318_vm6, nan, %v2328_v23  ;;  %v2616_v40 = vmul.f32 %v2615_v10, %v8507_v45 }
 0x364   : > { %v2629_v44 = vadd.s32 3, %v11293_v31  ;;  %v2464_v4 = vadd.f32 1.0, %v2463_v3  ;;  %v9451_v59 = vadd.f32 1.0, %v3555_v36  ;;  %vm3572_vm9 = vcmp.lt.s32.totalorder %v9155_v12, 0 }
 0x365   : > { %vm3828_vm5 = vcmp.lt.s32.totalorder %v9440_v49, 0  ;;  %v3829_v17 = vsub.s32 0, %v9440_v49  ;;  %v5946_v20 = vpack.i.bf16 %v2329_v43, %v2174_v48  ;;  %vm2477_vm14 = vcmp.eq.s32.totalorder %v11294_v15, 0  ;;  %v11303_v43 = vld [vmem:[#allocation32_spill] sm:$0xff] }
 0x366   : > { %v2481_v29 = vxor.u32 2147483648, %v2464_v4  ;;  %v2617_v51 = vadd.f32 -0.4999988, %v2616_v40  ;;  %v3692_v53 = vxor.u32 2147483648, %v3691_v50  ;;  %v11296_v18 = vxor.u32 2147483648, %v11295_v2 }
 0x367   : > { %v3830_v19 = vsel %vm3828_vm5, %v3829_v17, %v9440_v49  ;;  %v2630_v38 = vand.u32 3, %v2629_v44  ;;  %v11297_v36 = vand.u32 2147483647, %v9155_v12  ;;  %5947 = vrot.lane.b32.xlu1 %v5946_v20, %s6050_s9  ;;  %vm2480_vm10 = vcmp.eq.s32.totalorder %v11294_v15, 2 }
 0x368   : > { %v2479_v26 = vsel %vm2477_vm14, %v2464_v4, %v11296_v18  ;;  %v3831_v61 = vclz %v3830_v19  ;;  %v2618_v37 = vmul.f32 %v2617_v51, %v8507_v45  ;;  %v2633_v30 = vxor.u32 2147483648, %v11300_v22 }
 0x369   : > { %vm9462_vm7 = vcmp.le.f32.partialorder %v11297_v36, 0.7853982  ;;  %v3819_v8 = vadd.s32 %v9384_v56, %v9382_v7  ;;  %vm2476_vm8 = vcmp.lt.s32.totalorder %v11294_v15, 2  ;;  %v2482_v0 = vsel %vm2480_vm10, %v2481_v29, %v11295_v2 }
 0x36a   : > { %v2769_v58 = vmul.f32 -0.001358992, %v11301_v46  ;;  %v5748_v55 = vadd.s32 4294967294, %v3831_v61  ;;  %vm2473_vm11 = vweird.f32 %v11302_v1  ;;  %v2483_v11 = vsel %vm2476_vm8, %v2479_v26, %v2482_v0 }
 0x36b   : > { %v2619_v33 = vadd.f32 1.0, %v2618_v37  ;;  %v3693_v54 = vsel %vm3572_vm9, %v3692_v53, %v3691_v50  ;;  %vm2631_vm4 = vcmp.lt.s32.totalorder %v2630_v38, 2  ;;  %vm2632_vm13 = vcmp.eq.s32.totalorder %v2630_v38, 0  ;;  %v5890_v50 = vld [vmem:[%s10871_s1 + $0x38] sm:$0xff]  ;;  %v11305_v37 = vld [vmem:[#allocation40_spill] sm:$0xff] }
 0x36c   : > { %v2770_v45 = vadd.f32 0.041655596, %v2769_v58  ;;  %vm5749_vm6 = vcmp.lt.s32.totalorder %v5748_v55, 0  ;;  %v2924_v56 = vmul.f32 -0.001358992, %v8858_v39  ;;  %v2484_v42 = vsel %vm2473_vm11, nan, %v2483_v11  ;;  %5090 = vmatpush.bf16.msra.mxu0 %v5890_v50 }
 0x36d   : > { %v2634_v34 = vsel %vm2632_vm13, %v2619_v33, %v2633_v30  ;;  %v2636_v7 = vxor.u32 2147483648, %v2619_v33  ;;  %v3834_v10 = vsel %vm5749_vm6, 0, %v5748_v55  ;;  %vm2635_vm1 = vcmp.eq.s32.totalorder %v2630_v38, 2  ;;  %v11306_v58 = vld [vmem:[#allocation10_spill] sm:$0xff]  ;;  %v5888_v55 = vld [vmem:[%s10871_s1 + $0x28] sm:$0xff] }
 0x36e   : > { %v2771_v3 = vmul.f32 %v2770_v45, %v11301_v46  ;;  %v3835_v48 = vsub.s32 32, %v3834_v10  ;;  %v3836_v23 = vshll.u32 %v9440_v49, %v3834_v10  ;;  %v3839_v31 = vsub.s32 4294967266, %v3834_v10  ;;  %v5889_v49 = vld [vmem:[%s10871_s1 + $0x30] sm:$0xff] }
 0x36f   : > { %v2637_v44 = vsel %vm2635_vm1, %v2636_v7, %v11300_v22  ;;  %vm2628_vm12 = vweird.f32 %v11303_v43  ;;  %v2925_v17 = vadd.f32 0.041655596, %v2924_v56  ;;  %v11304_v51 = vsel %vm8820_vm0, 0, %v8867_v21  ;;  %v9524_v56 = vpop.permute.xlu0 %5927  ;;  %v11312_v43 = vld [vmem:[#allocation37_spill] sm:$0xff] }
 0x370   : > { %v2638_v4 = vsel %vm2631_vm4, %v2634_v34, %v2637_v44  ;;  %v2772_v40 = vadd.f32 -0.4999988, %v2771_v3  ;;  %v3837_v20 = vshrl.u32 %v3819_v8, %v3835_v48  ;;  %v3840_v15 = vadd.s32 127, %v3839_v31  ;;  %5091 = vmatpush.bf16.msra.mxu0 %v5889_v49 }
 0x371   : > { %v2639_v29 = vsel %vm2628_vm12, nan, %v2638_v4  ;;  %v2939_v53 = vadd.s32 3, %v11304_v51  ;;  %v9497_v19 = vsel %vm9462_vm7, %v9155_v12, %v3693_v54  ;;  %v2926_v26 = vmul.f32 %v2925_v17, %v8858_v39 }
 0x372   : > { %v5951_v2 = vpack.i.bf16 %v2639_v29, %v2484_v42  ;;  %v2773_v18 = vmul.f32 %v2772_v40, %v11301_v46  ;;  %v3694_v38 = vsub.s32 4, %v9332_v13  ;;  %v3838_v36 = vor.u32 %v3837_v20, %v3836_v23  ;;  %v11311_v23 = vld [vmem:[#allocation44_spill] sm:$0xff]  ;;  %v4984_v40 = vld [vmem:[%s10871_s1 + $0x48] sm:$0x7]  ;;  %v454_v20 = vpop.permute.xlu2 %453 }
 0x373   : > { %v3841_v61 = vshll.u32 %v3840_v15, 23  ;;  %vm2783_vm5 = vweird.f32 %v11305_v37  ;;  %vm3727_vm14 = vcmp.lt.s32.totalorder %v9200_v24, 0  ;;  %v2927_v21 = vadd.f32 -0.4999988, %v2926_v26  ;;  %v5886_v37 = vld [vmem:[%s10871_s1 + $0x18] sm:$0xff] }
 0x374   : > { %5952 = vrot.lane.b32.xlu2 %v5951_v2, %s6050_s9  ;;  %v2774_v57 = vadd.f32 1.0, %v2773_v18  ;;  %v2940_v22 = vand.u32 3, %v2939_v53  ;;  %v3079_v30 = vmul.f32 -0.001358992, %v8963_v25  ;;  %v9508_v8 = vmul.f32 %v9497_v19, %v9497_v19  ;;  %5092 = vmatpush.bf16.msra.mxu0 %v5888_v55  ;;  %v11314_v18 = vld [vmem:[#allocation16_spill] sm:$0xff] }
 0x375   : > { %v3842_v0 = vor.u32 4788187, %v3841_v61  ;;  %v3845_v46 = vcvt.s32.f32 %v3838_v36  ;;  %vm2787_vm0 = vcmp.eq.s32.totalorder %v11306_v58, 0  ;;  %v11307_v1 = vand.u32 2147483647, %v9200_v24  ;;  %v11321_v2 = vld [vmem:[#allocation8_spill] sm:$0xff] }
 0x376   : > { %v11310_v33 = vxor.u32 2147483648, %v9056_v62  ;;  %v2791_v45 = vxor.u32 2147483648, %v2774_v57  ;;  %v2928_v34 = vmul.f32 %v2927_v21, %v8858_v39  ;;  %v2943_v7 = vxor.u32 2147483648, %v9125_v32  ;;  %v5887_v39 = vld [vmem:[%s10871_s1 + $0x20] sm:$0xff] }
 0x377   : > { %vm9516_vm10 = vcmp.le.f32.partialorder %v11307_v1, 0.7853982  ;;  %v3843_v10 = vand.u32 2147483647, %v3842_v0  ;;  %vm2786_vm8 = vcmp.lt.s32.totalorder %v11306_v58, 2  ;;  %vm2790_vm11 = vcmp.eq.s32.totalorder %v11306_v58, 2 }
 0x378   : > { %v2789_v54 = vsel %vm2787_vm0, %v2774_v57, %v11310_v33  ;;  %v3080_v42 = vadd.f32 0.041655596, %v3079_v30  ;;  %v2792_v3 = vsel %vm2790_vm11, %v2791_v45, %v9056_v62  ;;  %v2929_v48 = vadd.f32 1.0, %v2928_v34  ;;  %5093 = vmatpush.bf16.msra.mxu0 %v5887_v39  ;;  %v11317_v34 = vld [vmem:[#allocation19_spill] sm:$0xff] }
 0x379   : > { %vm2938_vm4 = vweird.f32 %v11311_v23  ;;  %vm2942_vm13 = vcmp.eq.s32.totalorder %v2940_v22, 0  ;;  %v3846_v31 = vmul.f32 %v3845_v46, %v3843_v10  ;;  %v2793_v44 = vsel %vm2786_vm8, %v2789_v54, %v2792_v3  ;;  %v6009_v46 = vld [vmem:[%s6115_s30 + $0xa0] sm:$0xff]  ;;  %v5885_v3 = vld [vmem:[%s10871_s1 + $0x10] sm:$0xff] }
 0x37a   : > { %v3081_v50 = vmul.f32 %v3080_v42, %v8963_v25  ;;  %v3234_v4 = vmul.f32 -0.001358992, %v11312_v43  ;;  %vm2941_vm6 = vcmp.lt.s32.totalorder %v2940_v22, 2  ;;  %v2944_v62 = vsel %vm2942_vm13, %v2929_v48, %v2943_v7  ;;  %v9565_v42 = vpop.permute.xlu0 %455 }
 0x37b   : > { %vm2945_vm1 = vcmp.eq.s32.totalorder %v2940_v22, 2  ;;  %v2946_v17 = vxor.u32 2147483648, %v2929_v48  ;;  %v3847_v15 = vxor.u32 2147483648, %v3846_v31  ;;  %v2794_v29 = vsel %vm2783_vm5, nan, %v2793_v44  ;;  %v11318_v48 = vld [vmem:[#allocation24_spill] sm:$0xff] }
 0x37c   : > { %v3082_v49 = vadd.f32 -0.4999988, %v3081_v50  ;;  %v3235_v51 = vadd.f32 0.041655596, %v3234_v4  ;;  %v11315_v26 = vsel %vm9070_vm3, 0, %v11314_v18  ;;  %v5026_v61 = vunpack.c.l.b16 %v4984_v40  ;;  %5094 = vmatpush.bf16.msra.mxu0 %v5886_v37 }
 0x37d   : > { %v2947_v53 = vsel %vm2945_vm1, %v2946_v17, %v9125_v32  ;;  %v3249_v36 = vadd.s32 3, %v11315_v26  ;;  %vm5086_vm12 = vcmask 1042432   ;;  %v3848_v57 = vsel %vm3727_vm14, %v3847_v15, %v3846_v31  ;;  %v5891_v17 = vld [vmem:[%s10871_s1 + $0x40] sm:$0xff] }
 0x37e   : > { %v2948_v21 = vsel %vm2941_vm6, %v2944_v62, %v2947_v53  ;;  %v3083_v22 = vmul.f32 %v3082_v49, %v8963_v25  ;;  %v3236_v32 = vmul.f32 %v3235_v51, %v11312_v43  ;;  %v3706_v30 = vmul.f32 -0.00019511016, %v9508_v8  ;;  %v558_v25 = vpop.permute.xlu1 %557  ;;  %v9595_v51 = vpop.permute.xlu2 %559 }
 0x37f   : > { %v2949_v0 = vsel %vm2938_vm4, nan, %v2948_v21  ;;  %vm11316_vm3 = vcmask 244736   ;;  %v5036_v55 = vpack.c.b16 %v5026_v61, %v5026_v61  ;;  %v9560_v1 = vsel %vm9516_vm10, %v9200_v24, %v3848_v57 }
 0x380   : > { %v720_v58 = vsel %vm11316_vm3, %v6009_v46, %v454_v20  ;;  %v5956_v33 = vpack.i.bf16 %v2949_v0, %v2794_v29  ;;  %v3084_v54 = vadd.f32 1.0, %v3083_v22  ;;  %v3237_v45 = vadd.f32 -0.4999988, %v3236_v32  ;;  %5095 = vmatpush.bf16.msra.mxu0 %v5885_v3  ;;  %v11322_v32 = vld [vmem:[#allocation12_spill] sm:$0xff] }
 0x381   : > { %vm3097_vm5 = vcmp.eq.s32.totalorder %v11317_v34, 0  ;;  %vm3100_vm0 = vcmp.eq.s32.totalorder %v11317_v34, 2  ;;  %v3250_v7 = vand.u32 3, %v3249_v36  ;;  %v5088_v10 = vsel %vm5086_vm12, %v5036_v55, 0  ;;  %v5884_v36 = vld [vmem:[%s10871_s1 + $0x8] sm:$0xff]  ;;  %v6010_v55 = vld [vmem:[%s6115_s30] sm:$0xff] }
 0x382   : > { %5957 = vrot.lane.b32.xlu0 %v5956_v33, %s6050_s9  ;;  %v11319_v23 = vxor.u32 2147483648, %v11318_v48  ;;  %v3101_v44 = vxor.u32 2147483648, %v3084_v54  ;;  %v3238_v39 = vmul.f32 %v3237_v45, %v11312_v43  ;;  %v3253_v50 = vxor.u32 2147483648, %v9410_v47  ;;  %5170 = vmatpush.bf16.msra.mxu1 %v5088_v10  ;;  %v11324_v45 = vld [vmem:[#allocation20_spill] sm:$0xff]  ;;  %v662_v3 = vpop.permute.xlu0 %661 }
 0x383   : > { %v9577_v4 = vmul.f32 %v9560_v1, %v9560_v1  ;;  %v5930_v40 = vunpack.i.h.bf16 %v9524_v56  ;;  %v5929_v62 = vunpack.i.l.bf16 %v9524_v56  ;;  %vm11320_vm8 = vcmask 490496  }
 0x384   : > { %v3099_v31 = vsel %vm3097_vm5, %v3084_v54, %v11319_v23  ;;  %v747_v20 = vsel %vm11320_vm8, %v720_v58, %v558_v25  ;;  %v3707_v15 = vadd.f32 0.008332121, %v3706_v30  ;;  %vm3096_vm11 = vcmp.lt.s32.totalorder %v11317_v34, 2  ;;  %5096 = vmatpush.bf16.msra.mxu0 %v5884_v36  ;;  %v5883_v58 = vld [vmem:[%s10871_s1] sm:$0xff]  ;;  %vm11323_vm5 = vmmov %vm11316_vm3 }
 0x385   : > { %v3102_v43 = vsel %vm3100_vm0, %v3101_v44, %v11318_v48  ;;  %v3239_v29 = vadd.f32 1.0, %v3238_v39  ;;  %v3695_v56 = vsel %vm3572_vm9, %v3694_v38, %v9332_v13  ;;  %v3849_v49 = vsub.s32 4, %v9431_v52 }
 0x386   : > { %v3103_v53 = vsel %vm3096_vm11, %v3099_v31, %v3102_v43  ;;  %vm3252_vm4 = vcmp.eq.s32.totalorder %v3250_v7, 0  ;;  %vm3093_vm13 = vweird.f32 %v11321_v2  ;;  %v4941_v61 = vpack.c.bf16 %v5930_v40, %v5929_v62  ;;  %5171 = vmatpush.bf16.msra.mxu1 %v5891_v17  ;;  %v9638_v43 = vpop.permute.xlu2 %561 }
 0x387   : > { %v3254_v18 = vsel %vm3252_vm4, %v3239_v29, %v3253_v50  ;;  %v3256_v26 = vxor.u32 2147483648, %v3239_v29  ;;  %v3861_v57 = vmul.f32 -0.00019511016, %v9577_v4  ;;  %vm3255_vm6 = vcmp.eq.s32.totalorder %v3250_v7, 2  ;;  %v9641_v29 = vpop.permute.xlu1 %5932 }
 0x388   : > { %vm5046_vm9 = vcmask 179200   ;;  %v3389_v13 = vmul.f32 -0.001358992, %v9183_v9  ;;  %v3708_v38 = vmul.f32 %v3707_v15, %v9508_v8  ;;  %v3104_v21 = vsel %vm3093_vm13, nan, %v3103_v53  ;;  %5097 = vmatpush.bf16.msra.mxu0 %v5883_v58  ;;  %v11325_v58 = vld [vmem:[#allocation34_spill] sm:$0xff] }
 0x389   : > { %vm3251_vm1 = vcmp.lt.s32.totalorder %v3250_v7, 2  ;;  %v3257_v37 = vsel %vm3255_vm6, %v3256_v26, %v9410_v47  ;;  %v3850_v22 = vsel %vm3727_vm14, %v3849_v49, %v9431_v52  ;;  %vm3248_vm12 = vweird.f32 %v11322_v32  ;;  %5804 = vmatmul.msk.bf16.vlgmr.msra.gmra.mxu1 %vm5046_vm9, %v4941_v61  ;;  %v6011_v47 = vld [vmem:[%s6115_s30 + $0x8] sm:$0xff]  ;;  %vm11326_vm6 = vmmov %vm11316_vm3 }
 0x38a   : > { %v3258_v30 = vsel %vm3251_vm1, %v3254_v18, %v3257_v37  ;;  %v3390_v0 = vadd.f32 0.041655596, %v3389_v13  ;;  %v4914_v33 = vsel %vm11316_vm3, %v6010_v55, %v5929_v62  ;;  %v4915_v54 = vsel %vm11323_vm5, %v6011_v47, %v5930_v40 }
 0x38b   : > { %v3259_v46 = vsel %vm3248_vm12, nan, %v3258_v30  ;;  %v3544_v52 = vmul.f32 -0.001358992, %v9300_v28  ;;  %v3402_v25 = vmul.f32 %v9448_v16, %v11324_v45  ;;  %v3862_v34 = vadd.f32 0.008332121, %v3861_v57  ;;  %vm11334_vm12 = vmmov %vm11316_vm3 }
 0x38c   : > { %v5961_v7 = vpack.i.bf16 %v3259_v46, %v3104_v21  ;;  %v3391_v10 = vmul.f32 %v3390_v0, %v9183_v9  ;;  %v3405_v48 = vand.u32 3, %v9415_v5  ;;  %v3697_v23 = vsel %vm9462_vm7, 0, %v3695_v56 }
 0x38d   : > { %v3709_v31 = vadd.f32 -0.16666654, %v3708_v38  ;;  %v3545_v44 = vadd.f32 0.041655596, %v3544_v52  ;;  %v3852_v39 = vsel %vm9516_vm10, 0, %v3850_v22  ;;  %v4940_v50 = vpack.c.bf16 %v4915_v54, %v4914_v33 }
 0x38e   : > { %5962 = vrot.lane.b32.xlu1 %v5961_v7, %s6050_s9  ;;  %v3392_v40 = vadd.f32 -0.4999988, %v3391_v10  ;;  %v3559_v16 = vadd.s32 3, %v3542_v63  ;;  %v3557_v5 = vmul.f32 %v9451_v59, %v9269_v35  ;;  %v9635_v62 = vsel %vm753_vm2, %v747_v20, %v662_v3  ;;  %v9658_v54 = vpop.permute.xlu2 %5937 }
 0x38f   : > { %v3546_v60 = vmul.f32 %v3545_v44, %v9300_v28  ;;  %v3408_v11 = vxor.u32 2147483648, %v3402_v25  ;;  %v3714_v17 = vadd.s32 3, %v3697_v23  ;;  %v3863_v15 = vmul.f32 %v3862_v34, %v9577_v4  ;;  %5098 = vmatmul.bf16.vlgmr.msra.gmra.mxu0 %v4940_v50 }
 0x390   : > { %v3393_v41 = vmul.f32 %v3392_v40, %v9183_v9  ;;  %v3710_v14 = vmul.f32 %v3709_v31, %v9508_v8  ;;  %v3869_v63 = vadd.s32 3, %v3852_v39  ;;  %vm3407_vm15 = vcmp.eq.s32.totalorder %v3405_v48, 0 }
 0x391   : > { %v3547_v35 = vadd.f32 -0.4999988, %v3546_v60  ;;  %v3560_v56 = vand.u32 3, %v3559_v16  ;;  %v3880_v20 = vand.u32 2147483647, %v9635_v62  ;;  %v3883_v49 = vand.u32 2139095040, %v9635_v62 }
 0x392   : > { %v3394_v59 = vadd.f32 1.0, %v3393_v41  ;;  %v3563_v2 = vxor.u32 2147483648, %v3557_v5  ;;  %v5935_v18 = vunpack.i.h.bf16 %v9641_v29  ;;  %v5934_v9 = vunpack.i.l.bf16 %v9641_v29 }
 0x393   : > { %v3548_v53 = vmul.f32 %v3547_v35, %v9300_v28  ;;  %v3864_v26 = vadd.f32 -0.16666654, %v3863_v15  ;;  %v3884_v57 = vshrl.u32 %v3883_v49, 23  ;;  %v3711_v13 = vadd.f32 1.0, %v3710_v14 }
 0x394   : > { %v3409_v36 = vsel %vm3407_vm15, %v3394_v59, %v3408_v11  ;;  %v3411_v61 = vxor.u32 2147483648, %v3394_v59  ;;  %vm3406_vm7 = vcmp.lt.s32.totalorder %v3405_v48, 2  ;;  %vm3410_vm14 = vcmp.eq.s32.totalorder %v3405_v48, 2  ;;  %v6012_v48 = vld [vmem:[%s6115_s30 + $0xa8] sm:$0xff] }
 0x395   : > { %v3549_v38 = vadd.f32 1.0, %v3548_v53  ;;  %vm3562_vm10 = vcmp.eq.s32.totalorder %v3560_v56, 0  ;;  %v5750_v37 = vadd.s32 4294967169, %v3884_v57  ;;  %v3887_v22 = vand.u32 8388607, %v3880_v20 }
 0x396   : > { %v3412_v21 = vsel %vm3410_vm14, %v3411_v61, %v3402_v25  ;;  %v4943_v0 = vpack.c.bf16 %v5935_v18, %v5934_v9  ;;  %v3865_v46 = vmul.f32 %v3864_v26, %v9577_v4  ;;  %vm3403_vm0 = vweird.f32 %v11325_v58 }
 0x397   : > { %v3413_v28 = vsel %vm3406_vm7, %v3409_v36, %v3412_v21  ;;  %v3564_v32 = vsel %vm3562_vm10, %v3549_v38, %v3563_v2  ;;  %v3566_v30 = vxor.u32 2147483648, %v3549_v38  ;;  %vm3565_vm8 = vcmp.eq.s32.totalorder %v3560_v56, 2 }
 0x398   : > { %v3890_v55 = vadd.s32 1, %v5750_v37  ;;  %v3414_v33 = vsel %vm3403_vm0, nan, %v3413_v28  ;;  %vm3558_vm11 = vweird.f32 %v8799_v27  ;;  %vm3561_vm4 = vcmp.lt.s32.totalorder %v3560_v56, 2  ;;  %v6013_v37 = vld [vmem:[%s6115_s30 + $0x10] sm:$0xff] }
 0x399   : > { %v3567_v47 = vsel %vm3565_vm8, %v3566_v30, %v3557_v5  ;;  %v3888_v45 = vor.u32 8388608, %v3887_v22  ;;  %v3699_v25 = vmul.f32 -0.001358992, %v9508_v8  ;;  %v9661_v34 = vand.u32 3, %v3714_v17  ;;  %5805 = vmatmul.msk.bf16.gmra.mxu1 %vm5046_vm9, %v4943_v0  ;;  %v6014_v30 = vld [vmem:[%s6115_s30 + $0x18] sm:$0xff] }
 0x39a   : > { %v3568_v52 = vsel %vm3561_vm4, %v3564_v32, %v3567_v47  ;;  %vm3891_vm13 = vcmp.gt.s32.totalorder %v3890_v55, 0  ;;  %v9664_v3 = vand.u32 3, %v3869_v63  ;;  %v721_v27 = vsel %vm11326_vm6, %v6012_v48, %v9565_v42 }
 0x39b   : > { %v3569_v7 = vsel %vm3558_vm11, nan, %v3568_v52  ;;  %v3892_v10 = vsel %vm3891_vm13, %v3890_v55, 0  ;;  %v9670_v44 = vmul.f32 %v3711_v13, %v9497_v19  ;;  %v3866_v39 = vadd.f32 1.0, %v3865_v46 }
 0x39c   : > { %v5966_v23 = vpack.i.bf16 %v3569_v7, %v3414_v33  ;;  %v3894_v31 = vand.u32 31, %v3892_v10  ;;  %v5940_v50 = vunpack.i.h.bf16 %v9658_v54  ;;  %v5939_v40 = vunpack.i.l.bf16 %v9658_v54 }
 0x39d   : > { %v9675_v5 = vshll.u32 %v3888_v45, 8  ;;  %v3700_v60 = vadd.f32 0.041655596, %v3699_v25  ;;  %v3854_v11 = vmul.f32 -0.001358992, %v9577_v4  ;;  %v9678_v42 = vshrl.u32 %v3892_v10, 5 }
 0x39e   : > { %5967 = vrot.lane.b32.xlu2 %v5966_v23, %s6050_s9  ;;  %v3895_v16 = vsub.s32 32, %v3894_v31  ;;  %v11327_v17 = vmov 683565275   ;;  %v11328_v19 = vmov 2475754826   ;;  %vm11329_vm1 = vcmask 490496  }
 0x39f   : > { %v3897_v15 = vshll.u32 %v11327_v17, %v3894_v31  ;;  %v3900_v41 = vshll.u32 %v11328_v19, %v3894_v31  ;;  %v748_v14 = vsel %vm11329_vm1, %v721_v27, %v9595_v51  ;;  %v11330_v35 = vmov 2131351028  }
 0x3a0   : > { %v3898_v63 = vshrl.u32 %v11328_v19, %v3895_v16  ;;  %v3901_v59 = vshrl.u32 %v11330_v35, %v3895_v16  ;;  %v3903_v56 = vshll.u32 %v11330_v35, %v3894_v31  ;;  %v11331_v49 = vmov 2102212464  }
 0x3a1   : > { %v3904_v53 = vshrl.u32 %v11331_v49, %v3895_v16  ;;  %v3906_v2 = vshll.u32 %v11331_v49, %v3894_v31  ;;  %v11332_v26 = vmov 920167782   ;;  %v11333_v57 = vmov 1326507024  }
 0x3a2   : > { %v3907_v36 = vshrl.u32 %v11332_v26, %v3895_v16  ;;  %v3909_v61 = vshll.u32 %v11332_v26, %v3894_v31  ;;  %v3910_v13 = vshrl.u32 %v11333_v57, %v3895_v16  ;;  %v3899_v38 = vor.u32 %v3898_v63, %v3897_v15 }
 0x3a3   : > { %v3902_v21 = vor.u32 %v3901_v59, %v3900_v41  ;;  %v3905_v51 = vor.u32 %v3904_v53, %v3903_v56  ;;  %v4916_v22 = vsel %vm11334_vm12, %v6013_v37, %v5934_v9  ;;  %vm3912_vm3 = vcmp.lt.s32.totalorder %v9678_v42, 1  ;;  %v664_v9 = vpop.permute.xlu1 %663 }
 0x3a4   : > { %v3908_v28 = vor.u32 %v3907_v36, %v3906_v2  ;;  %v3911_v32 = vor.u32 %v3910_v13, %v3909_v61  ;;  %v4917_v0 = vsel %vm11323_vm5, %v6014_v30, %v5935_v18  ;;  %vm3915_vm15 = vcmp.lt.s32.totalorder %v9678_v42, 4 }
 0x3a5   : > { %v3920_v46 = vsel %vm3912_vm3, %v3899_v38, %v3902_v21  ;;  %v3924_v58 = vsel %vm3912_vm3, %v3902_v21, %v3905_v51  ;;  %v3929_v55 = vand.u32 65535, %v9675_v5  ;;  %vm3914_vm7 = vcmp.lt.s32.totalorder %v9678_v42, 3 }
 0x3a6   : > { %v3921_v33 = vsel %vm3915_vm15, %v3908_v28, 920167782  ;;  %v3925_v29 = vsel %vm3915_vm15, %v3911_v32, 1326507024  ;;  %v4942_v18 = vpack.c.bf16 %v4917_v0, %v4916_v22  ;;  %vm3913_vm14 = vcmp.lt.s32.totalorder %v9678_v42, 2 }
 0x3a7   : > { %v3922_v47 = vsel %vm3914_vm7, %v3905_v51, %v3921_v33  ;;  %v3926_v52 = vsel %vm3914_vm7, %v3908_v28, %v3925_v29  ;;  %v3930_v45 = vshrl.u32 %v9675_v5, 16  ;;  %v9723_v10 = vsel %vm753_vm2, %v748_v14, %v664_v9 }
 0x3a8   : > { %v3923_v25 = vsel %vm3913_vm14, %v3920_v46, %v3922_v47  ;;  %v3927_v7 = vsel %vm3913_vm14, %v3924_v58, %v3926_v52  ;;  %5103 = vmatmul.bf16.gmra.mxu0 %v4942_v18  ;;  %v3701_v48 = vmul.f32 %v3700_v60, %v9508_v8  ;;  %v9727_v41 = vmul.f32 %v3866_v39, %v9560_v1 }
 0x3a9   : > { %v3931_v27 = vand.u32 65535, %v3927_v7  ;;  %v3932_v23 = vshrl.u32 %v3927_v7, 16  ;;  %v3953_v31 = vand.u32 65535, %v3923_v25  ;;  %v3954_v15 = vshrl.u32 %v3923_v25, 16 }
 0x3aa   : > { %v4945_v63 = vpack.c.bf16 %v5940_v50, %v5939_v40  ;;  %v3896_v59 = vshrl.u32 %v11327_v17, %v3895_v16  ;;  %v3917_v14 = vsel %vm3915_vm15, %v3905_v51, 2102212464  ;;  %v4038_v60 = vand.u32 2139095040, %v9723_v10 }
 0x3ab   : > { %v3934_v56 = vmul.u32 %v3932_v23, %v3929_v55  ;;  %v3935_v53 = vmul.u32 %v3931_v27, %v3930_v45  ;;  %v3855_v2 = vadd.f32 0.041655596, %v3854_v11  ;;  %v3956_v1 = vmul.u32 %v3954_v15, %v3929_v55 }
 0x3ac   : > { %v3916_v36 = vsel %vm3912_vm3, %v3896_v59, %v3899_v38  ;;  %v3957_v39 = vmul.u32 %v3953_v31, %v3930_v45  ;;  %v3702_v61 = vadd.f32 -0.4999988, %v3701_v48  ;;  %5806 = vmatmul.msk.bf16.gmra.mxu1 %vm5046_vm9, %v4945_v63  ;;  %v3918_v13 = vsel %vm3914_vm7, %v3902_v21, %v3917_v14 }
 0x3ad   : > { %v3933_v16 = vmul.u32 %v3931_v27, %v3929_v55  ;;  %v3937_v37 = vshll.u32 %v3934_v56, 16  ;;  %v4035_v51 = vand.u32 2147483647, %v9723_v10  ;;  %v3936_v22 = vmul.u32 %v3932_v23, %v3930_v45 }
 0x3ae   : > { %v3955_v28 = vmul.u32 %v3953_v31, %v3929_v55  ;;  %v3958_v32 = vmul.u32 %v3954_v15, %v3930_v45  ;;  %v3959_v30 = vshll.u32 %v3956_v1, 16  ;;  %v3939_v11 = vshll.u32 %v3935_v53, 16 }
 0x3af   : > { %vm3941_vm10 = vc.u32 %v3933_v16, %v3937_v37  ;;  %v3943_v0 = vadd.s32 %v3937_v37, %v3933_v16  ;;  %v4039_v38 = vshrl.u32 %v4038_v60, 23  ;;  %v3961_v58 = vshll.u32 %v3957_v39, 16 }
 0x3b0   : > { %v3942_v46 = vsel %vm3941_vm10, 1, %v11070_v6  ;;  %vm3963_vm0 = vc.u32 %v3955_v28, %v3959_v30  ;;  %v3965_v9 = vadd.s32 %v3959_v30, %v3955_v28  ;;  %v3856_v55 = vmul.f32 %v3855_v2, %v9577_v4 }
 0x3b1   : > { %v3944_v33 = vadd.s32 %v3942_v46, %v3936_v22  ;;  %vm3945_vm8 = vc.u32 %v3943_v0, %v3939_v11  ;;  %v3964_v21 = vsel %vm3963_vm0, 1, %v11070_v6  ;;  %v5753_v29 = vadd.s32 4294967169, %v4039_v38 }
 0x3b2   : > { %v3946_v18 = vsel %vm3945_vm8, 1, %v11070_v6  ;;  %v3966_v47 = vadd.s32 %v3964_v21, %v3958_v32  ;;  %vm3967_vm11 = vc.u32 %v3965_v9, %v3961_v58  ;;  %v3938_v52 = vshrl.u32 %v3934_v56, 16 }
 0x3b3   : > { %v3948_v45 = vadd.s32 %v3946_v18, %v3944_v33  ;;  %v3968_v25 = vsel %vm3967_vm11, 1, %v11070_v6  ;;  %v4045_v7 = vadd.s32 1, %v5753_v29  ;;  %v3919_v48 = vsel %vm3913_vm14, %v3916_v36, %v3918_v13 }
 0x3b4   : > { %v3960_v27 = vshrl.u32 %v3956_v1, 16  ;;  %v3970_v23 = vadd.s32 %v3968_v25, %v3966_v47  ;;  %v3703_v31 = vmul.f32 %v3702_v61, %v9508_v8  ;;  %v3940_v15 = vshrl.u32 %v3935_v53, 16 }
 0x3b5   : > { %v3949_v63 = vadd.s32 %v3948_v45, %v3938_v52  ;;  %v4042_v59 = vand.u32 8388607, %v4035_v51  ;;  %vm4046_vm4 = vcmp.gt.s32.totalorder %v4045_v7, 0  ;;  %v3718_v14 = vxor.u32 2147483648, %v9670_v44 }
 0x3b6   : > { %v3962_v56 = vshrl.u32 %v3957_v39, 16  ;;  %v3971_v60 = vadd.s32 %v3970_v23, %v3960_v27  ;;  %v4047_v2 = vsel %vm4046_vm4, %v4045_v7, 0  ;;  %v3873_v16 = vxor.u32 2147483648, %v9727_v41 }
 0x3b7   : > { %v9755_v37 = vadd.s32 %v3949_v63, %v3940_v15  ;;  %v9757_v42 = vadd.s32 %v3965_v9, %v3961_v58  ;;  %v4049_v36 = vand.u32 31, %v4047_v2  ;;  %v3973_v8 = vmul.u32 %v9675_v5, %v3919_v48 }
 0x3b8   : > { %v3972_v1 = vadd.s32 %v3971_v60, %v3962_v56  ;;  %v3704_v53 = vadd.f32 1.0, %v3703_v31  ;;  %v3857_v61 = vadd.f32 -0.4999988, %v3856_v55  ;;  %v4043_v13 = vor.u32 8388608, %v4042_v59 }
 0x3b9   : > { %vm3975_vm13 = vc.u32 %v9755_v37, %v9757_v42  ;;  %v9762_v22 = vshrl.u32 %v4047_v2, 5  ;;  %v4050_v39 = vsub.s32 32, %v4049_v36  ;;  %vm3717_vm6 = vcmp.eq.s32.totalorder %v9661_v34, 0 }
 0x3ba   : > { %v3976_v28 = vadd.s32 1, %v3972_v1  ;;  %v4052_v32 = vshll.u32 %v11327_v17, %v4049_v36  ;;  %v4055_v30 = vshll.u32 %v11328_v19, %v4049_v36  ;;  %v4058_v11 = vshll.u32 %v11330_v35, %v4049_v36 }
 0x3bb   : > { %v4053_v5 = vshrl.u32 %v11328_v19, %v4050_v39  ;;  %v4056_v0 = vshrl.u32 %v11330_v35, %v4050_v39  ;;  %v4059_v38 = vshrl.u32 %v11331_v49, %v4050_v39  ;;  %v4061_v46 = vshll.u32 %v11331_v49, %v4049_v36 }
 0x3bc   : > { %v3977_v58 = vsel %vm3975_vm13, %v3976_v28, %v3972_v1  ;;  %v4062_v9 = vshrl.u32 %v11332_v26, %v4050_v39  ;;  %v4064_v33 = vshll.u32 %v11332_v26, %v4049_v36  ;;  %v4065_v21 = vshrl.u32 %v11333_v57, %v4050_v39 }
 0x3bd   : > { %v3978_v29 = vadd.s32 %v3977_v58, %v3973_v8  ;;  %v4054_v18 = vor.u32 %v4053_v5, %v4052_v32  ;;  %v9775_v47 = vor.u32 %v4056_v0, %v4055_v30  ;;  %v4060_v55 = vor.u32 %v4059_v38, %v4058_v11  ;;  %v9810_v11 = vpop.permute.xlu0 %457 }
 0x3be   : > { %vm3716_vm1 = vcmp.lt.s32.totalorder %v9661_v34, 2  ;;  %v4063_v52 = vor.u32 %v4062_v9, %v4061_v46  ;;  %v4066_v45 = vor.u32 %v4065_v21, %v4064_v33  ;;  %v9778_v25 = vshll.u32 %v4043_v13, 8 }
 0x3bf   : > { %v3721_v7 = vxor.u32 2147483648, %v3704_v53  ;;  %v3979_v48 = vadd.s32 536870912, %v3978_v29  ;;  %vm4067_vm12 = vcmp.lt.s32.totalorder %v9762_v22, 1  ;;  %vm4070_vm3 = vcmp.lt.s32.totalorder %v9762_v22, 4 }
 0x3c0   : > { %v3858_v27 = vmul.f32 %v3857_v61, %v9577_v4  ;;  %vm4069_vm5 = vcmp.lt.s32.totalorder %v9762_v22, 3  ;;  %v4075_v23 = vsel %vm4067_vm12, %v4054_v18, %v9775_v47  ;;  %v4076_v31 = vsel %vm4070_vm3, %v4063_v52, 920167782 }
 0x3c1   : > { %v4079_v15 = vsel %vm4067_vm12, %v9775_v47, %v4060_v55  ;;  %v9792_v63 = vshrl.u32 %v3979_v48, 30  ;;  %vm4068_vm15 = vcmp.lt.s32.totalorder %v9762_v22, 2  ;;  %v4077_v4 = vsel %vm4069_vm5, %v4060_v55, %v4076_v31 }
 0x3c2   : > { %v4080_v59 = vsel %vm4070_vm3, %v4066_v45, 1326507024  ;;  %v4078_v56 = vsel %vm4068_vm15, %v4075_v23, %v4077_v4  ;;  %v3719_v2 = vsel %vm3717_vm6, %v3704_v53, %v3718_v14  ;;  %vm3720_vm7 = vcmp.eq.s32.totalorder %v9661_v34, 2 }
 0x3c3   : > { %v4081_v60 = vsel %vm4069_vm5, %v4063_v52, %v4080_v59  ;;  %v4084_v1 = vand.u32 65535, %v9778_v25  ;;  %v4108_v8 = vand.u32 65535, %v4078_v56  ;;  %v3859_v61 = vadd.f32 1.0, %v3858_v27 }
 0x3c4   : > { %v4082_v36 = vsel %vm4068_vm15, %v4079_v15, %v4081_v60  ;;  %v4085_v13 = vshrl.u32 %v9778_v25, 16  ;;  %v4109_v30 = vshrl.u32 %v4078_v56, 16  ;;  %v3981_v5 = vshll.u32 %v9792_v63, 30  ;;  %v460_v56 = vpop.permute.xlu1 %459 }
 0x3c5   : > { %v4086_v28 = vand.u32 65535, %v4082_v36  ;;  %v4087_v32 = vshrl.u32 %v4082_v36, 16  ;;  %v3722_v14 = vsel %vm3720_vm7, %v3721_v7, %v9670_v44  ;;  %vm3872_vm14 = vcmp.eq.s32.totalorder %v9664_v3, 0 }
 0x3c6   : > { %vm3875_vm10 = vcmp.eq.s32.totalorder %v9664_v3, 2  ;;  %v4051_v53 = vshrl.u32 %v11327_v17, %v4050_v39  ;;  %v3723_v46 = vsel %vm3716_vm1, %v3719_v2, %v3722_v14  ;;  %vm3871_vm0 = vcmp.lt.s32.totalorder %v9664_v3, 2 }
 0x3c7   : > { %v4089_v0 = vmul.u32 %v4087_v32, %v4084_v1  ;;  %v4090_v38 = vmul.u32 %v4086_v28, %v4085_v13  ;;  %v4111_v58 = vmul.u32 %v4109_v30, %v4084_v1  ;;  %v4112_v9 = vmul.u32 %v4108_v8, %v4085_v13 }
 0x3c8   : > { %vm3713_vm8 = vweird.f32 %v9155_v12  ;;  %v3874_v44 = vsel %vm3872_vm14, %v3859_v61, %v3873_v16  ;;  %v3876_v33 = vxor.u32 2147483648, %v3859_v61  ;;  %v4071_v21 = vsel %vm4067_vm12, %v4051_v53, %v4054_v18 }
 0x3c9   : > { %v4072_v39 = vsel %vm4070_vm3, %v4060_v55, 2102212464  ;;  %v4088_v52 = vmul.u32 %v4086_v28, %v4084_v1  ;;  %v4092_v45 = vshll.u32 %v4089_v0, 16  ;;  %vm3868_vm11 = vweird.f32 %v9200_v24 }
 0x3ca   : > { %v9828_v34 = vsub.s32 %v3978_v29, %v3981_v5  ;;  %v4091_v7 = vmul.u32 %v4087_v32, %v4085_v13  ;;  %v4110_v48 = vmul.u32 %v4108_v8, %v4084_v1  ;;  %v4114_v27 = vshll.u32 %v4111_v58, 16  ;;  %v6015_v5 = vld [vmem:[%s6115_s30 + $0xb8] sm:$0xff] }
 0x3cb   : > { %v4094_v23 = vshll.u32 %v4090_v38, 16  ;;  %vm4096_vm4 = vc.u32 %v4088_v52, %v4092_v45  ;;  %v4098_v31 = vadd.s32 %v4092_v45, %v4088_v52  ;;  %v4113_v16 = vmul.u32 %v4109_v30, %v4085_v13  ;;  %v564_v13 = vpop.permute.xlu0 %563 }
 0x3cc   : > { %v4097_v15 = vsel %vm4096_vm4, 1, %v11070_v6  ;;  %v4116_v4 = vshll.u32 %v4112_v9, 16  ;;  %vm4118_vm13 = vc.u32 %v4110_v48, %v4114_v27  ;;  %v4120_v18 = vadd.s32 %v4114_v27, %v4110_v48 }
 0x3cd   : > { %v4073_v55 = vsel %vm4069_vm5, %v9775_v47, %v4072_v39  ;;  %v4099_v59 = vadd.s32 %v4097_v15, %v4091_v7  ;;  %vm4100_vm6 = vc.u32 %v4098_v31, %v4094_v23  ;;  %v4119_v29 = vsel %vm4118_vm13, 1, %v11070_v6  ;;  %v6016_v23 = vld [vmem:[%s6115_s30 + $0x20] sm:$0xff]  ;;  %v6017_v15 = vld [vmem:[%s6115_s30 + $0x28] sm:$0xff] }
 0x3ce   : > { %v4101_v60 = vsel %vm4100_vm6, 1, %v11070_v6  ;;  %v4121_v2 = vadd.s32 %v4119_v29, %v4113_v16  ;;  %vm4122_vm1 = vc.u32 %v4120_v18, %v4116_v4  ;;  %v3877_v36 = vsel %vm3875_vm10, %v3876_v33, %v9727_v41 }
 0x3cf   : > { %v3984_v1 = vsub.s32 0, %v9828_v34  ;;  %v4093_v8 = vshrl.u32 %v4089_v0, 16  ;;  %v4103_v61 = vadd.s32 %v4101_v60, %v4099_v59  ;;  %v4123_v47 = vsel %vm4122_vm1, 1, %v11070_v6 }
 0x3d0   : > { %v4115_v28 = vshrl.u32 %v4111_v58, 16  ;;  %v4125_v32 = vadd.s32 %v4123_v47, %v4121_v2  ;;  %v3878_v30 = vsel %vm3871_vm0, %v3874_v44, %v3877_v36  ;;  %vm11335_vm12 = vcmask 244736   ;;  %v668_v58 = vpop.permute.xlu2 %667 }
 0x3d1   : > { %v723_v14 = vsel %vm11335_vm12, %v6015_v5, %v460_v56  ;;  %vm3983_vm3 = vcmp.lt.s32.totalorder %v9828_v34, 0  ;;  %v4095_v53 = vshrl.u32 %v4090_v38, 16  ;;  %v4117_v39 = vshrl.u32 %v4112_v9, 16  ;;  %vm11338_vm14 = vmmov %vm11335_vm12 }
 0x3d2   : > { %v3724_v41 = vsel %vm3713_vm8, nan, %v3723_v46  ;;  %v4104_v0 = vadd.s32 %v4103_v61, %v4093_v8  ;;  %v4126_v33 = vadd.s32 %v4125_v32, %v4115_v28  ;;  %v3879_v52 = vsel %vm3868_vm11, nan, %v3878_v30  ;;  %v6018_v61 = vld [vmem:[%s6115_s30 + $0xb0] sm:$0xff]  ;;  %vm11339_vm8 = vmmov %vm11335_vm12 }
 0x3d3   : > { %vm11336_vm5 = vcmask 490496   ;;  %v4074_v44 = vsel %vm4068_vm15, %v4071_v21, %v4073_v55  ;;  %v5971_v45 = vpack.i.bf16 %v3879_v52, %v3724_v41  ;;  %v3985_v12 = vsel %vm3983_vm3, %v3984_v1, %v9828_v34  ;;  %vm11337_vm15 = vmmov %vm11335_vm12 }
 0x3d4   : > { %v750_v3 = vsel %vm11336_vm5, %v723_v14, %v564_v13  ;;  %v9857_v46 = vadd.s32 %v4104_v0, %v4095_v53  ;;  %v9859_v9 = vadd.s32 %v4120_v18, %v4116_v4  ;;  %v4127_v24 = vadd.s32 %v4126_v33, %v4117_v39  ;;  %v666_v0 = vpop.permute.xlu1 %665  ;;  %vm11340_vm11 = vmmov %vm11336_vm5 }
 0x3d5   : > { %v9854_v38 = vsel %vm753_vm2, %v750_v3, %v668_v58  ;;  %5972 = vrot.lane.b32.xlu0 %v5971_v45, %s6050_s9  ;;  %v3986_v21 = vclz %v3985_v12  ;;  %v4128_v48 = vmul.u32 %v9778_v25, %v4074_v44  ;;  %v4918_v31 = vsel %vm11337_vm15, %v6016_v23, %v5939_v40 }
 0x3d6   : > { %v4348_v7 = vand.u32 2139095040, %v9854_v38  ;;  %vm4130_vm7 = vc.u32 %v9857_v46, %v9859_v9  ;;  %v4131_v22 = vadd.s32 1, %v4127_v24  ;;  %v4919_v4 = vsel %vm11338_vm14, %v6017_v15, %v5940_v50 }
 0x3d7   : > { %v4944_v59 = vpack.c.bf16 %v4919_v4, %v4918_v31  ;;  %v5751_v29 = vadd.s32 4294967294, %v3986_v21  ;;  %v4345_v2 = vand.u32 2147483647, %v9854_v38  ;;  %v722_v47 = vsel %vm11339_vm8, %v6018_v61, %v9810_v11 }
 0x3d8   : > { %v4349_v27 = vshrl.u32 %v4348_v7, 23  ;;  %v4132_v16 = vsel %vm4130_vm7, %v4131_v22, %v4127_v24  ;;  %v749_v12 = vsel %vm11340_vm11, %v722_v47, %v9638_v43  ;;  %v3974_v61 = vadd.s32 %v9757_v42, %v9755_v37 }
 0x3d9   : > { %v4133_v18 = vadd.s32 %v4132_v16, %v4128_v48  ;;  %5108 = vmatmul.bf16.gmra.mxu0 %v4944_v59  ;;  %vm5752_vm0 = vcmp.lt.s32.totalorder %v5751_v29, 0  ;;  %v4352_v50 = vand.u32 8388607, %v4345_v2  ;;  %v9914_v21 = vsel %vm753_vm2, %v749_v12, %v666_v0 }
 0x3da   : > { %v5759_v55 = vadd.s32 4294967169, %v4349_v27  ;;  %v9877_v1 = vsel %vm5752_vm0, 0, %v5751_v29  ;;  %v4193_v15 = vand.u32 2139095040, %v9914_v21  ;;  %v11037_v42 = vand.u32 2147483647, %v9914_v21 }
 0x3db   : > { %v4134_v56 = vadd.s32 536870912, %v4133_v18  ;;  %v3994_v32 = vsub.s32 4294967266, %v9877_v1  ;;  %v4353_v39 = vor.u32 8388608, %v4352_v50  ;;  %v3990_v16 = vsub.s32 32, %v9877_v1 }
 0x3dc   : > { %v4355_v60 = vadd.s32 1, %v5759_v55 }
 0x3dd   : > { %v9874_v25 = vshrl.u32 %v4134_v56, 30  ;;  %v3995_v24 = vadd.s32 127, %v3994_v32  ;;  %v9926_v31 = vshll.u32 %v4353_v39, 8  ;;  %v3992_v39 = vshrl.u32 %v3974_v61, %v3990_v16 }
 0x3de   : > { %vm4356_vm10 = vcmp.gt.s32.totalorder %v4355_v60, 0 }
 0x3df   : > { %v4357_v40 = vsel %vm4356_vm10, %v4355_v60, 0  ;;  %v4136_v54 = vshll.u32 %v9874_v25, 30  ;;  %v3996_v59 = vshll.u32 %v3995_v24, 23  ;;  %v4395_v32 = vshrl.u32 %v9926_v31, 16 }
 0x3e0   : > { %v4359_v36 = vand.u32 31, %v4357_v40  ;;  %v9898_v41 = vshrl.u32 %v4357_v40, 5 }
 0x3e1   : > { %v9896_v53 = vsub.s32 %v4133_v18, %v4136_v54  ;;  %v9952_v0 = vor.u32 4788187, %v3996_v59 }
 0x3e2   : > { %v9882_v8 = vsub.s32 32, %v4359_v36  ;;  %v4362_v30 = vshll.u32 %v11327_v17, %v4359_v36  ;;  %v4365_v5 = vshll.u32 %v11328_v19, %v4359_v36  ;;  %v4368_v11 = vshll.u32 %v11330_v35, %v4359_v36 }
 0x3e3   : > { %v4371_v58 = vshll.u32 %v11331_v49, %v4359_v36  ;;  %v4374_v44 = vshll.u32 %v11332_v26, %v4359_v36  ;;  %v4139_v48 = vsub.s32 0, %v9896_v53  ;;  %vm4377_vm4 = vcmp.lt.s32.totalorder %v9898_v41, 1 }
 0x3e4   : > { %v4363_v13 = vshrl.u32 %v11328_v19, %v9882_v8  ;;  %v4366_v28 = vshrl.u32 %v11330_v35, %v9882_v8  ;;  %v4369_v14 = vshrl.u32 %v11331_v49, %v9882_v8  ;;  %v4372_v3 = vshrl.u32 %v11332_v26, %v9882_v8 }
 0x3e5   : > { %v4375_v45 = vshrl.u32 %v11333_v57, %v9882_v8  ;;  %vm4380_vm13 = vcmp.lt.s32.totalorder %v9898_v41, 4  ;;  %vm4138_vm6 = vcmp.lt.s32.totalorder %v9896_v53, 0  ;;  %vm4379_vm1 = vcmp.lt.s32.totalorder %v9898_v41, 3 }
 0x3e6   : > { %v9901_v33 = vor.u32 %v4363_v13, %v4362_v30  ;;  %v9903_v52 = vor.u32 %v4366_v28, %v4365_v5  ;;  %v4370_v7 = vor.u32 %v4369_v14, %v4368_v11  ;;  %v4373_v22 = vor.u32 %v4372_v3, %v4371_v58 }
 0x3e7   : > { %v4376_v27 = vor.u32 %v4375_v45, %v4374_v44  ;;  %vm4378_vm12 = vcmp.lt.s32.totalorder %v9898_v41, 2  ;;  %v4140_v29 = vsel %vm4138_vm6, %v4139_v48, %v9896_v53  ;;  %v4394_v36 = vand.u32 65535, %v9926_v31 }
 0x3e8   : > { %v4385_v43 = vsel %vm4377_vm4, %v9901_v33, %v9903_v52  ;;  %v4386_v23 = vsel %vm4380_vm13, %v4373_v22, 920167782  ;;  %v4389_v18 = vsel %vm4377_vm4, %v9903_v52, %v4370_v7  ;;  %v4141_v28 = vclz %v4140_v29 }
 0x3e9   : > { %v4387_v4 = vsel %vm4379_vm1, %v4370_v7, %v4386_v23  ;;  %v4390_v55 = vsel %vm4380_vm13, %v4376_v27, 1326507024  ;;  %v4194_v5 = vshrl.u32 %v4193_v15, 23  ;;  %v3991_v14 = vshll.u32 %v9828_v34, %v9877_v1 }
 0x3ea   : > { %v4388_v56 = vsel %vm4378_vm12, %v4385_v43, %v4387_v4  ;;  %v4391_v60 = vsel %vm4379_vm1, %v4373_v22, %v4390_v55  ;;  %v5754_v24 = vadd.s32 4294967294, %v4141_v28  ;;  %v4382_v4 = vsel %vm4380_vm13, %v4370_v7, 2102212464 }
 0x3eb   : > { %v4392_v40 = vsel %vm4378_vm12, %v4389_v18, %v4391_v60  ;;  %v4418_v54 = vand.u32 65535, %v4388_v56  ;;  %v4419_v50 = vshrl.u32 %v4388_v56, 16  ;;  %v5756_v27 = vadd.s32 4294967169, %v4194_v5 }
 0x3ec   : > { %v4396_v47 = vand.u32 65535, %v4392_v40  ;;  %v4397_v13 = vshrl.u32 %v4392_v40, 16  ;;  %vm5755_vm15 = vcmp.lt.s32.totalorder %v5754_v24, 0  ;;  %v4361_v59 = vshrl.u32 %v11327_v17, %v9882_v8 }
 0x3ed   : > { %v4421_v30 = vmul.u32 %v4419_v50, %v4394_v36  ;;  %v4422_v3 = vmul.u32 %v4418_v54, %v4395_v32  ;;  %v4420_v37 = vmul.u32 %v4418_v54, %v4394_v36  ;;  %v4423_v48 = vmul.u32 %v4419_v50, %v4395_v32 }
 0x3ee   : > { %v4399_v11 = vmul.u32 %v4397_v13, %v4394_v36  ;;  %v4400_v58 = vmul.u32 %v4396_v47, %v4395_v32  ;;  %v4398_v45 = vmul.u32 %v4396_v47, %v4394_v36  ;;  %v4401_v22 = vmul.u32 %v4397_v13, %v4395_v32 }
 0x3ef   : > { %v4424_v44 = vshll.u32 %v4421_v30, 16  ;;  %v4426_v1 = vshll.u32 %v4422_v3, 16  ;;  %v4200_v36 = vadd.s32 1, %v5756_v27  ;;  %v4381_v54 = vsel %vm4377_vm4, %v4361_v59, %v9901_v33 }
 0x3f0   : > { %v4402_v12 = vshll.u32 %v4399_v11, 16  ;;  %v4404_v43 = vshll.u32 %v4400_v58, 16  ;;  %v4403_v56 = vshrl.u32 %v4399_v11, 16  ;;  %v4383_v7 = vsel %vm4379_vm1, %v9903_v52, %v4382_v4 }
 0x3f1   : > { %vm4428_vm5 = vc.u32 %v4420_v37, %v4424_v44  ;;  %v4430_v15 = vadd.s32 %v4424_v44, %v4420_v37  ;;  %v4425_v50 = vshrl.u32 %v4421_v30, 16  ;;  %v4405_v47 = vshrl.u32 %v4400_v58, 16 }
 0x3f2   : > { %vm4406_vm3 = vc.u32 %v4398_v45, %v4402_v12  ;;  %v4408_v23 = vadd.s32 %v4402_v12, %v4398_v45  ;;  %v4429_v16 = vsel %vm4428_vm5, 1, %v11070_v6  ;;  %v4197_v13 = vand.u32 8388607, %v11037_v42 }
 0x3f3   : > { %v4407_v34 = vsel %vm4406_vm3, 1, %v11070_v6  ;;  %v4431_v55 = vadd.s32 %v4429_v16, %v4423_v48  ;;  %vm4432_vm14 = vc.u32 %v4430_v15, %v4426_v1  ;;  %vm4201_vm10 = vcmp.gt.s32.totalorder %v4200_v36, 0 }
 0x3f4   : > { %v4409_v18 = vadd.s32 %v4407_v34, %v4401_v22  ;;  %vm4410_vm7 = vc.u32 %v4408_v23, %v4404_v43  ;;  %v4433_v40 = vsel %vm4432_vm14, 1, %v11070_v6  ;;  %v9972_v28 = vsel %vm5755_vm15, 0, %v5754_v24 }
 0x3f5   : > { %v4411_v29 = vsel %vm4410_vm7, 1, %v11070_v6  ;;  %v4435_v61 = vadd.s32 %v4433_v40, %v4431_v55  ;;  %v4427_v32 = vshrl.u32 %v4422_v3, 16  ;;  %v4202_v11 = vsel %vm4201_vm10, %v4200_v36, 0 }
 0x3f6   : > { %v4413_v60 = vadd.s32 %v4411_v29, %v4409_v18  ;;  %v4384_v33 = vsel %vm4378_vm12, %v4381_v54, %v4383_v7  ;;  %v9978_v52 = vadd.s32 %v4430_v15, %v4426_v1  ;;  %v4204_v30 = vand.u32 31, %v4202_v11 }
 0x3f7   : > { %v4436_v5 = vadd.s32 %v4435_v61, %v4425_v50  ;;  %v3993_v45 = vor.u32 %v3992_v39, %v3991_v14  ;;  %v3998_v12 = vand.u32 2147483647, %v9952_v0  ;;  %v4149_v3 = vsub.s32 4294967266, %v9972_v28 }
 0x3f8   : > { %v4414_v8 = vadd.s32 %v4413_v60, %v4403_v56  ;;  %v9983_v37 = vsub.s32 32, %v4204_v30  ;;  %v4438_v24 = vmul.u32 %v9926_v31, %v4384_v33  ;;  %v4198_v22 = vor.u32 8388608, %v4197_v13 }
 0x3f9   : > { %v4437_v58 = vadd.s32 %v4436_v5, %v4427_v32  ;;  %v4207_v48 = vshll.u32 %v11327_v17, %v4204_v30  ;;  %v4210_v14 = vshll.u32 %v11328_v19, %v4204_v30  ;;  %v4216_v23 = vshll.u32 %v11331_v49, %v4204_v30 }
 0x3fa   : > { %v9976_v44 = vadd.s32 %v4414_v8, %v4405_v47  ;;  %v4208_v27 = vshrl.u32 %v11328_v19, %v9983_v37  ;;  %v4211_v39 = vshrl.u32 %v11330_v35, %v9983_v37  ;;  %v4214_v43 = vshrl.u32 %v11331_v49, %v9983_v37 }
 0x3fb   : > { %v4441_v41 = vadd.s32 1, %v4437_v58  ;;  %v4217_v31 = vshrl.u32 %v11332_v26, %v9983_v37  ;;  %v9998_v1 = vshrl.u32 %v4202_v11, 5  ;;  %v4213_v15 = vshll.u32 %v11330_v35, %v4204_v30 }
 0x3fc   : > { %vm4440_vm0 = vc.u32 %v9976_v44, %v9978_v52  ;;  %v10000_v16 = vor.u32 %v4208_v27, %v4207_v48  ;;  %v10003_v4 = vor.u32 %v4211_v39, %v4210_v14  ;;  %v4219_v55 = vshll.u32 %v11332_v26, %v4204_v30  ;;  %v566_v27 = vpop.permute.xlu0 %565 }
 0x3fd   : > { %v4442_v0 = vsel %vm4440_vm0, %v4441_v41, %v4437_v58  ;;  %v4218_v18 = vor.u32 %v4217_v31, %v4216_v23  ;;  %v4220_v59 = vshrl.u32 %v11333_v57, %v9983_v37  ;;  %v4129_v29 = vadd.s32 %v9859_v9, %v9857_v46  ;;  %v462_v58 = vpop.permute.xlu1 %461 }
 0x3fe   : > { %v4443_v34 = vadd.s32 %v4442_v0, %v4438_v24  ;;  %v4215_v60 = vor.u32 %v4214_v43, %v4213_v15  ;;  %v4000_v40 = vcvt.s32.f32 %v3993_v45  ;;  %v4145_v36 = vsub.s32 32, %v9972_v28  ;;  %v6019_v43 = vld [vmem:[%s6115_s30 + $0xc0] sm:$0xff] }
 0x3ff   : > { %v4150_v54 = vadd.s32 127, %v4149_v3  ;;  %v4221_v7 = vor.u32 %v4220_v59, %v4219_v55  ;;  %vm4222_vm8 = vcmp.lt.s32.totalorder %v9998_v1, 1  ;;  %vm4225_vm11 = vcmp.lt.s32.totalorder %v9998_v1, 4  ;;  %v10044_v3 = vpop.permute.xlu2 %463 }
 0x400   : > { %v4444_v56 = vadd.s32 536870912, %v4443_v34  ;;  %v10015_v61 = vshll.u32 %v4198_v22, 8  ;;  %v10017_v47 = vmul.f32 %v4000_v40, %v3998_v12  ;;  %v4230_v46 = vsel %vm4222_vm8, %v10000_v16, %v10003_v4 }
 0x401   : > { %v4231_v9 = vsel %vm4225_vm11, %v4218_v18, 920167782  ;;  %v4235_v8 = vsel %vm4225_vm11, %v4221_v7, 1326507024  ;;  %v4146_v13 = vshll.u32 %v9896_v53, %v9972_v28  ;;  %vm4224_vm4 = vcmp.lt.s32.totalorder %v9998_v1, 3 }
 0x402   : > { %v10011_v50 = vshrl.u32 %v4444_v56, 30  ;;  %v4234_v5 = vsel %vm4222_vm8, %v10003_v4, %v4215_v60  ;;  %v4147_v11 = vshrl.u32 %v4129_v29, %v4145_v36  ;;  %vm4223_vm13 = vcmp.lt.s32.totalorder %v9998_v1, 2  ;;  %v6021_v1 = vld [vmem:[%s6115_s30 + $0x30] sm:$0xff] }
 0x403   : > { %v4232_v33 = vsel %vm4224_vm4, %v4215_v60, %v4231_v9  ;;  %v4236_v30 = vsel %vm4224_vm4, %v4218_v18, %v4235_v8  ;;  %v4151_v53 = vshll.u32 %v4150_v54, 23  ;;  %v4239_v12 = vand.u32 65535, %v10015_v61 }
 0x404   : > { %v4446_v32 = vshll.u32 %v10011_v50, 30  ;;  %v4233_v45 = vsel %vm4223_vm13, %v4230_v46, %v4232_v33  ;;  %v4237_v24 = vsel %vm4223_vm13, %v4234_v5, %v4236_v30  ;;  %v4240_v41 = vshrl.u32 %v10015_v61, 16 }
 0x405   : > { %v4263_v22 = vand.u32 65535, %v4233_v45  ;;  %v4264_v48 = vshrl.u32 %v4233_v45, 16  ;;  %v4241_v39 = vand.u32 65535, %v4237_v24  ;;  %v4242_v0 = vshrl.u32 %v4237_v24, 16 }
 0x406   : > { %v10039_v28 = vsub.s32 %v4443_v34, %v4446_v32  ;;  %vm11341_vm6 = vcmask 244736   ;;  %v4002_v15 = vxor.u32 2147483648, %v10017_v47  ;;  %v4148_v18 = vor.u32 %v4147_v11, %v4146_v13 }
 0x407   : > { %v724_v23 = vsel %vm11341_vm6, %v6019_v43, %v462_v58  ;;  %v4266_v31 = vmul.u32 %v4264_v48, %v4239_v12  ;;  %v4267_v34 = vmul.u32 %v4263_v22, %v4240_v41  ;;  %v4244_v55 = vmul.u32 %v4242_v0, %v4239_v12  ;;  %vm11343_vm10 = vmmov %vm11341_vm6 }
 0x408   : > { %v4449_v14 = vsub.s32 0, %v10039_v28  ;;  %vm4448_vm1 = vcmp.lt.s32.totalorder %v10039_v28, 0  ;;  %v4245_v59 = vmul.u32 %v4241_v39, %v4240_v41  ;;  %v4152_v29 = vor.u32 4788187, %v4151_v53 }
 0x409   : > { %v4265_v56 = vmul.u32 %v4263_v22, %v4239_v12  ;;  %v4269_v40 = vshll.u32 %v4266_v31, 16  ;;  %vm11342_vm12 = vcmask 490496   ;;  %v4243_v7 = vmul.u32 %v4241_v39, %v4239_v12  ;;  %v5943_v39 = vpop.permute.xlu0 %5942 }
 0x40a   : > { %v751_v36 = vsel %vm11342_vm12, %v724_v23, %v566_v27  ;;  %v4450_v54 = vsel %vm4448_vm1, %v4449_v14, %v10039_v28  ;;  %v4247_v46 = vshll.u32 %v4244_v55, 16  ;;  %v4268_v9 = vmul.u32 %v4264_v48, %v4240_v41 }
 0x40b   : > { %vm3882_vm3 = vcmp.lt.s32.totalorder %v9635_v62, 0  ;;  %v4246_v8 = vmul.u32 %v4242_v0, %v4240_v41  ;;  %v4249_v32 = vshll.u32 %v4245_v59, 16  ;;  %v4271_v5 = vshll.u32 %v4267_v34, 16  ;;  %v670_v41 = vpop.permute.xlu2 %669 }
 0x40c   : > { %vm4273_vm5 = vc.u32 %v4265_v56, %v4269_v40  ;;  %vm4251_vm7 = vc.u32 %v4243_v7, %v4247_v46  ;;  %v4253_v13 = vadd.s32 %v4247_v46, %v4243_v7  ;;  %v4275_v33 = vadd.s32 %v4269_v40, %v4265_v56 }
 0x40d   : > { %v4274_v11 = vsel %vm4273_vm5, 1, %v11070_v6  ;;  %v4206_v30 = vshrl.u32 %v11327_v17, %v9983_v37  ;;  %v4227_v58 = vsel %vm4225_vm11, %v4215_v60, 2102212464  ;;  %v4252_v53 = vsel %vm4251_vm7, 1, %v11070_v6 }
 0x40e   : > { %v4276_v45 = vadd.s32 %v4274_v11, %v4268_v9  ;;  %v4451_v12 = vclz %v4450_v54  ;;  %v4254_v24 = vadd.s32 %v4252_v53, %v4246_v8  ;;  %vm4255_vm15 = vc.u32 %v4253_v13, %v4249_v32 }
 0x40f   : > { %vm4277_vm14 = vc.u32 %v4275_v33, %v4271_v5  ;;  %v4153_v22 = vand.u32 2147483647, %v4152_v29  ;;  %v4155_v48 = vcvt.s32.f32 %v4148_v18  ;;  %v4256_v27 = vsel %vm4255_vm15, 1, %v11070_v6 }
 0x410   : > { %v10065_v14 = vsel %vm753_vm2, %v751_v36, %v670_v41  ;;  %v4226_v37 = vsel %vm4222_vm8, %v4206_v30, %v10000_v16  ;;  %v4248_v60 = vshrl.u32 %v4244_v55, 16  ;;  %v4258_v0 = vadd.s32 %v4256_v27, %v4254_v24  ;;  %v6020_v30 = vld [vmem:[%s6115_s30 + $0x38] sm:$0xff] }
 0x411   : > { %v4278_v43 = vsel %vm4277_vm14, 1, %v11070_v6  ;;  %v4228_v23 = vsel %vm4224_vm4, %v10003_v4, %v4227_v58  ;;  %v4250_v29 = vshrl.u32 %v4245_v59, 16  ;;  %v4270_v18 = vshrl.u32 %v4266_v31, 16  ;;  %vm11346_vm4 = vmmov %vm11341_vm6 }
 0x412   : > { %v4280_v56 = vadd.s32 %v4278_v43, %v4276_v45  ;;  %v5760_v40 = vadd.s32 4294967294, %v4451_v12  ;;  %v4259_v36 = vadd.s32 %v4258_v0, %v4248_v60  ;;  %v4503_v54 = vand.u32 2139095040, %v10065_v14  ;;  %vm11349_vm12 = vmmov %vm11346_vm4 }
 0x413   : > { %v5945_v7 = vunpack.i.h.bf16 %v5943_v39  ;;  %v4156_v46 = vmul.f32 %v4155_v48, %v4153_v22  ;;  %v4272_v9 = vshrl.u32 %v4267_v34, 16  ;;  %v5944_v55 = vunpack.i.l.bf16 %v5943_v39 }
 0x414   : > { %v4281_v16 = vadd.s32 %v4280_v56, %v4270_v18  ;;  %v4003_v8 = vsel %vm3882_vm3, %v4002_v15, %v10017_v47  ;;  %v10078_v32 = vadd.s32 %v4259_v36, %v4250_v29  ;;  %v10080_v4 = vadd.s32 %v4275_v33, %v4271_v5 }
 0x415   : > { %v4504_v31 = vshrl.u32 %v4503_v54, 23  ;;  %v4229_v59 = vsel %vm4223_vm13, %v4226_v37, %v4228_v23  ;;  %v4947_v11 = vpack.c.bf16 %v5945_v7, %v5944_v55  ;;  %v4921_v34 = vsel %vm11343_vm10, %v6020_v30, %v5945_v7 }
 0x416   : > { %v4282_v13 = vadd.s32 %v4281_v16, %v4272_v9  ;;  %vm5761_vm0 = vcmp.lt.s32.totalorder %v5760_v40, 0  ;;  %vm4285_vm8 = vc.u32 %v10078_v32, %v10080_v4  ;;  %vm10090_vm11 = vcmp.le.f32.partialorder %v3880_v20, 0.7853982 }
 0x417   : > { %v5762_v58 = vadd.s32 4294967169, %v4504_v31  ;;  %v4157_v15 = vxor.u32 2147483648, %v4156_v46  ;;  %5807 = vmatmul.msk.bf16.gmra.mxu1 %vm5046_vm9, %v4947_v11  ;;  %v4920_v33 = vsel %vm11346_vm4, %v6021_v1, %v5944_v55  ;;  %v10100_v53 = vsel %vm10090_vm11, %v9635_v62, %v4003_v8 }
 0x418   : > { %v4286_v5 = vadd.s32 1, %v4282_v13  ;;  %v4283_v45 = vmul.u32 %v10015_v61, %v4229_v59  ;;  %v4946_v24 = vpack.c.bf16 %v4921_v34, %v4920_v33  ;;  %v4454_v20 = vsel %vm5761_vm0, 0, %v5760_v40  ;;  %v568_v34 = vpop.permute.xlu1 %567 }
 0x419   : > { %v4510_v12 = vadd.s32 1, %v5762_v58  ;;  %vm4037_vm13 = vcmp.lt.s32.totalorder %v9723_v10, 0  ;;  %v11036_v48 = vand.u32 2147483647, %v10065_v14  ;;  %v4004_v27 = vsub.s32 4, %v9792_v63 }
 0x41a   : > { %v4287_v41 = vsel %vm4285_vm8, %v4286_v5, %v4282_v13  ;;  %5113 = vmatmul.bf16.gmra.mxu0 %v4946_v24  ;;  %v10108_v39 = vmul.f32 %v10100_v53, %v10100_v53  ;;  %v4158_v61 = vsel %vm4037_vm13, %v4157_v15, %v4156_v46  ;;  %v4455_v60 = vsub.s32 32, %v4454_v20 }
 0x41b   : > { %v4288_v22 = vadd.s32 %v4287_v41, %v4283_v45  ;;  %vm4511_vm6 = vcmp.gt.s32.totalorder %v4510_v12, 0  ;;  %v4459_v0 = vsub.s32 4294967266, %v4454_v20  ;;  %vm10114_vm1 = vcmp.le.f32.partialorder %v4035_v51, 0.7853982 }
 0x41c   : > { %v4512_v37 = vsel %vm4511_vm6, %v4510_v12, 0  ;;  %v4439_v18 = vadd.s32 %v9978_v52, %v9976_v44  ;;  %v4507_v40 = vand.u32 8388607, %v11036_v48  ;;  %v10127_v54 = vsel %vm3882_vm3, %v4004_v27, %v9792_v63  ;;  %v6022_v44 = vld [vmem:[%s6115_s30 + $0xc8] sm:$0xff] }
 0x41d   : > { %v4289_v43 = vadd.s32 536870912, %v4288_v22  ;;  %v4514_v23 = vand.u32 31, %v4512_v37  ;;  %v10130_v7 = vmul.f32 -0.00019511016, %v10108_v39  ;;  %v10135_v51 = vsel %vm10114_vm1, %v9723_v10, %v4158_v61  ;;  %v672_v61 = vpop.permute.xlu0 %671 }
 0x41e   : > { %v725_v52 = vsel %vm11349_vm12, %v6022_v44, %v10044_v3  ;;  %v4457_v46 = vshrl.u32 %v4439_v18, %v4455_v60  ;;  %v4460_v9 = vadd.s32 127, %v4459_v0  ;;  %v4508_v11 = vor.u32 8388608, %v4507_v40 }
 0x41f   : > { %v10120_v56 = vshrl.u32 %v4289_v43, 30  ;;  %v4515_v36 = vsub.s32 32, %v4514_v23  ;;  %v4517_v63 = vshll.u32 %v11327_v17, %v4514_v23  ;;  %v4520_v30 = vshll.u32 %v11328_v19, %v4514_v23 }
 0x420   : > { %v4526_v3 = vshll.u32 %v11331_v49, %v4514_v23  ;;  %v4456_v58 = vshll.u32 %v10039_v28, %v4454_v20  ;;  %v10151_v15 = vshrl.u32 %v4512_v37, 5  ;;  %v4523_v1 = vshll.u32 %v11330_v35, %v4514_v23 }
 0x421   : > { %v4291_v16 = vshll.u32 %v10120_v56, 30  ;;  %v4518_v55 = vshrl.u32 %v11328_v19, %v4515_v36  ;;  %v4521_v8 = vshrl.u32 %v11330_v35, %v4515_v36  ;;  %v4524_v31 = vshrl.u32 %v11331_v49, %v4515_v36 }
 0x422   : > { %v4527_v59 = vshrl.u32 %v11332_v26, %v4515_v36  ;;  %v4529_v41 = vshll.u32 %v11332_v26, %v4514_v23  ;;  %vm11350_vm5 = vcmask 490496   ;;  %v10159_v28 = vor.u32 %v4457_v46, %v4456_v58 }
 0x423   : > { %v10146_v13 = vsub.s32 %v4288_v22, %v4291_v16  ;;  %v4519_v5 = vor.u32 %v4518_v55, %v4517_v63  ;;  %v4522_v45 = vor.u32 %v4521_v8, %v4520_v30  ;;  %v4525_v24 = vor.u32 %v4524_v31, %v4523_v1 }
 0x424   : > { %v4528_v12 = vor.u32 %v4527_v59, %v4526_v3  ;;  %v4530_v22 = vshrl.u32 %v11333_v57, %v4515_v36  ;;  %v752_v27 = vsel %vm11350_vm5, %v725_v52, %v568_v34  ;;  %v4461_v20 = vshll.u32 %v4460_v9, 23 }
 0x425   : > { %vm4293_vm3 = vcmp.lt.s32.totalorder %v10146_v13, 0  ;;  %v4294_v33 = vsub.s32 0, %v10146_v13  ;;  %v10162_v60 = vshll.u32 %v4508_v11, 8  ;;  %vm4532_vm7 = vcmp.lt.s32.totalorder %v10151_v15, 1 }
 0x426   : > { %v4531_v43 = vor.u32 %v4530_v22, %v4529_v41  ;;  %vm4535_vm15 = vcmp.lt.s32.totalorder %v10151_v15, 4  ;;  %vm4534_vm14 = vcmp.lt.s32.totalorder %v10151_v15, 3  ;;  %v4540_v23 = vsel %vm4532_vm7, %v4519_v5, %v4522_v45 }
 0x427   : > { %v4295_v37 = vsel %vm4293_vm3, %v4294_v33, %v10146_v13  ;;  %v4541_v18 = vsel %vm4535_vm15, %v4528_v12, 920167782  ;;  %v10172_v40 = vsel %vm753_vm2, %v752_v27, %v672_v61  ;;  %vm4533_vm10 = vcmp.lt.s32.totalorder %v10151_v15, 2 }
 0x428   : > { %v4296_v0 = vclz %v4295_v37  ;;  %v4542_v52 = vsel %vm4534_vm14, %v4525_v24, %v4541_v18  ;;  %v4544_v46 = vsel %vm4532_vm7, %v4522_v45, %v4525_v24  ;;  %v10179_v9 = vor.u32 4788187, %v4461_v20 }
 0x429   : > { %v4465_v16 = vcvt.s32.f32 %v10159_v28  ;;  %v4543_v55 = vsel %vm4533_vm10, %v4540_v23, %v4542_v52  ;;  %v4545_v63 = vsel %vm4535_vm15, %v4531_v43, 1326507024  ;;  %v11035_v59 = vand.u32 2147483647, %v10172_v40 }
 0x42a   : > { %v5757_v44 = vadd.s32 4294967294, %v4296_v0  ;;  %v4546_v8 = vsel %vm4534_vm14, %v4528_v12, %v4545_v63  ;;  %v4573_v31 = vand.u32 65535, %v4543_v55  ;;  %v4549_v3 = vand.u32 65535, %v10162_v60 }
 0x42b   : > { %v4547_v30 = vsel %vm4533_vm10, %v4544_v46, %v4546_v8  ;;  %v4574_v34 = vshrl.u32 %v4543_v55, 16  ;;  %v4516_v58 = vshrl.u32 %v11327_v17, %v4515_v36  ;;  %v4537_v1 = vsel %vm4535_vm15, %v4525_v24, 2102212464 }
 0x42c   : > { %vm5758_vm2 = vcmp.lt.s32.totalorder %v5757_v44, 0  ;;  %v4550_v33 = vshrl.u32 %v10162_v60, 16  ;;  %v4658_v41 = vand.u32 2139095040, %v10172_v40  ;;  %v4551_v22 = vand.u32 65535, %v4547_v30 }
 0x42d   : > { %v4299_v11 = vsel %vm5758_vm2, 0, %v5757_v44  ;;  %v4552_v27 = vshrl.u32 %v4547_v30, 16  ;;  %v4576_v61 = vmul.u32 %v4574_v34, %v4549_v3  ;;  %v4463_v20 = vand.u32 2147483647, %v10179_v9 }
 0x42e   : > { %v4304_v12 = vsub.s32 4294967266, %v4299_v11  ;;  %v4284_v37 = vadd.s32 %v10080_v4, %v10078_v32  ;;  %v4577_v0 = vmul.u32 %v4573_v31, %v4550_v33  ;;  %v10202_v36 = vand.u32 8388607, %v11035_v59 }
 0x42f   : > { %v4536_v24 = vsel %vm4532_vm7, %v4516_v58, %v4519_v5  ;;  %v4538_v43 = vsel %vm4534_vm14, %v4522_v45, %v4537_v1  ;;  %v4554_v23 = vmul.u32 %v4552_v27, %v4549_v3  ;;  %v4555_v18 = vmul.u32 %v4551_v22, %v4550_v33 }
 0x430   : > { %v4300_v44 = vsub.s32 32, %v4299_v11  ;;  %v4301_v52 = vshll.u32 %v10146_v13, %v4299_v11  ;;  %v4579_v46 = vshll.u32 %v4576_v61, 16  ;;  %v4659_v9 = vshrl.u32 %v4658_v41, 23 }
 0x431   : > { %v4305_v55 = vadd.s32 127, %v4304_v12  ;;  %v4553_v32 = vmul.u32 %v4551_v22, %v4549_v3  ;;  %v4557_v4 = vshll.u32 %v4554_v23, 16  ;;  %v4575_v63 = vmul.u32 %v4573_v31, %v4549_v3  ;;  %v10211_v12 = vpop.permute.xlu1 %5947 }
 0x432   : > { %v4556_v8 = vmul.u32 %v4552_v27, %v4550_v33  ;;  %v4559_v30 = vshll.u32 %v4555_v18, 16  ;;  %v4578_v59 = vmul.u32 %v4574_v34, %v4550_v33  ;;  %v4581_v48 = vshll.u32 %v4577_v0, 16 }
 0x433   : > { %vm4561_vm0 = vc.u32 %v4553_v32, %v4557_v4  ;;  %v4563_v5 = vadd.s32 %v4557_v4, %v4553_v32  ;;  %vm4583_vm8 = vc.u32 %v4575_v63, %v4579_v46  ;;  %v4585_v58 = vadd.s32 %v4579_v46, %v4575_v63 }
 0x434   : > { %v4302_v45 = vshrl.u32 %v4284_v37, %v4300_v44  ;;  %v4562_v1 = vsel %vm4561_vm0, 1, %v11070_v6  ;;  %v4584_v42 = vsel %vm4583_vm8, 1, %v11070_v6  ;;  %v5765_v13 = vadd.s32 4294967169, %v4659_v9 }
 0x435   : > { %v4564_v11 = vadd.s32 %v4562_v1, %v4556_v8  ;;  %vm4565_vm4 = vc.u32 %v4563_v5, %v4559_v30  ;;  %v4586_v41 = vadd.s32 %v4584_v42, %v4578_v59  ;;  %vm4587_vm6 = vc.u32 %v4585_v58, %v4581_v48 }
 0x436   : > { %v4306_v31 = vshll.u32 %v4305_v55, 23  ;;  %v4566_v3 = vsel %vm4565_vm4, 1, %v11070_v6  ;;  %v4580_v34 = vshrl.u32 %v4576_v61, 16  ;;  %v4588_v33 = vsel %vm4587_vm6, 1, %v11070_v6 }
 0x437   : > { %v4558_v22 = vshrl.u32 %v4554_v23, 16  ;;  %v4568_v27 = vadd.s32 %v4566_v3, %v4564_v11  ;;  %v4590_v37 = vadd.s32 %v4588_v33, %v4586_v41  ;;  %v4665_v44 = vadd.s32 1, %v5765_v13 }
 0x438   : > { %v4303_v46 = vor.u32 %v4302_v45, %v4301_v52  ;;  %v4560_v32 = vshrl.u32 %v4555_v18, 16  ;;  %v5950_v9 = vunpack.i.h.bf16 %v10211_v12  ;;  %v5949_v4 = vunpack.i.l.bf16 %v10211_v12 }
 0x439   : > { %v4569_v42 = vadd.s32 %v4568_v27, %v4558_v22  ;;  %v4582_v59 = vshrl.u32 %v4577_v0, 16  ;;  %v4591_v63 = vadd.s32 %v4590_v37, %v4580_v34  ;;  %vm4666_vm12 = vcmp.gt.s32.totalorder %v4665_v44, 0 }
 0x43a   : > { %v4307_v55 = vor.u32 4788187, %v4306_v31  ;;  %v4539_v61 = vsel %vm4533_vm10, %v4536_v24, %v4538_v43  ;;  %v4667_v8 = vsel %vm4666_vm12, %v4665_v44, 0  ;;  %v4949_v23 = vpack.c.bf16 %v5950_v9, %v5949_v4 }
 0x43b   : > { %v4007_v18 = vsel %vm10090_vm11, 0, %v10127_v54  ;;  %v10226_v52 = vadd.s32 %v4569_v42, %v4560_v32  ;;  %v10228_v30 = vadd.s32 %v4585_v58, %v4581_v48  ;;  %v4592_v0 = vadd.s32 %v4591_v63, %v4582_v59  ;;  %v6026_v54 = vld [vmem:[%s6115_s30 + $0x58] sm:$0xff] }
 0x43c   : > { %v4017_v5 = vadd.f32 0.008332121, %v10130_v7  ;;  %v10233_v15 = vmul.f32 %v10135_v51, %v10135_v51  ;;  %v4466_v24 = vmul.f32 %v4465_v16, %v4463_v20  ;;  %v4669_v43 = vand.u32 31, %v4667_v8  ;;  %5808 = vmatmul.msk.bf16.gmra.mxu1 %vm5046_vm9, %v4949_v23 }
 0x43d   : > { %v4310_v45 = vcvt.s32.f32 %v4303_v46  ;;  %v4593_v1 = vmul.u32 %v10162_v60, %v4539_v61  ;;  %vm4595_vm3 = vc.u32 %v10226_v52, %v10228_v30  ;;  %v4596_v48 = vadd.s32 1, %v4592_v0 }
 0x43e   : > { %v4308_v58 = vand.u32 2147483647, %v4307_v55  ;;  %v4663_v7 = vor.u32 8388608, %v10202_v36  ;;  %v10242_v13 = vshrl.u32 %v4667_v8, 5  ;;  %v10244_v11 = vsub.s32 32, %v4669_v43 }
 0x43f   : > { %vm4347_vm5 = vcmp.lt.s32.totalorder %v9854_v38, 0  ;;  %v4597_v28 = vsel %vm4595_vm3, %v4596_v48, %v4592_v0  ;;  %v4672_v16 = vshll.u32 %v11327_v17, %v4669_v43  ;;  %v4675_v20 = vshll.u32 %v11328_v19, %v4669_v43 }
 0x440   : > { %v4678_v60 = vshll.u32 %v11330_v35, %v4669_v43  ;;  %v4598_v41 = vadd.s32 %v4597_v28, %v4593_v1  ;;  %v4673_v31 = vshrl.u32 %v11328_v19, %v10244_v11  ;;  %v4681_v3 = vshll.u32 %v11331_v49, %v4669_v43 }
 0x441   : > { %v4684_v36 = vshll.u32 %v11332_v26, %v4669_v43  ;;  %v4676_v34 = vshrl.u32 %v11330_v35, %v10244_v11  ;;  %v4679_v33 = vshrl.u32 %v11331_v49, %v10244_v11  ;;  %v4682_v22 = vshrl.u32 %v11332_v26, %v10244_v11  ;;  %v10272_v49 = vpop.permute.xlu2 %5952 }
 0x442   : > { %v4685_v27 = vshrl.u32 %v11333_v57, %v10244_v11  ;;  %v10263_v37 = vmul.f32 %v4017_v5, %v10108_v39  ;;  %vm4192_vm7 = vcmp.lt.s32.totalorder %v9914_v21, 0  ;;  %v4311_v19 = vmul.f32 %v4310_v45, %v4308_v58 }
 0x443   : > { %v4599_v44 = vadd.s32 536870912, %v4598_v41  ;;  %v4674_v46 = vor.u32 %v4673_v31, %v4672_v16  ;;  %vm10268_vm15 = vcmp.le.f32.partialorder %v4345_v2, 0.7853982  ;;  %v10274_v26 = vor.u32 %v4676_v34, %v4675_v20 }
 0x444   : > { %v10276_v32 = vor.u32 %v4679_v33, %v4678_v60  ;;  %v4683_v57 = vor.u32 %v4682_v22, %v4681_v3  ;;  %v4686_v42 = vor.u32 %v4685_v27, %v4684_v36  ;;  %v4467_v59 = vxor.u32 2147483648, %v4466_v24 }
 0x445   : > { %v10278_v63 = vshrl.u32 %v4599_v44, 30  ;;  %vm4687_vm14 = vcmp.lt.s32.totalorder %v10242_v13, 1  ;;  %vm4690_vm10 = vcmp.lt.s32.totalorder %v10242_v13, 4  ;;  %v4171_v2 = vmul.f32 -0.00019511016, %v10233_v15 }
 0x446   : > { %v11353_v55 = vand.u32 2147483647, %v9914_v21  ;;  %v4695_v8 = vsel %vm4687_vm14, %v4674_v46, %v10274_v26  ;;  %v4696_v23 = vsel %vm4690_vm10, %v4683_v57, 920167782  ;;  %v10294_v0 = vshll.u32 %v4663_v7, 8 }
 0x447   : > { %v4601_v5 = vshll.u32 %v10278_v63, 30  ;;  %v11038_v43 = vunpack.i.h.bf16 %v10272_v49  ;;  %v5954_v45 = vunpack.i.l.bf16 %v10272_v49  ;;  %vm4689_vm0 = vcmp.lt.s32.totalorder %v10242_v13, 3 }
 0x448   : > { %vm10285_vm2 = vcmp.le.f32.partialorder %v11353_v55, 0.7853982  ;;  %v4312_v1 = vxor.u32 2147483648, %v4311_v19  ;;  %vm4688_vm8 = vcmp.lt.s32.totalorder %v10242_v13, 2  ;;  %v4697_v48 = vsel %vm4689_vm0, %v10276_v32, %v4696_v23 }
 0x449   : > { %v4700_v58 = vsel %vm4690_vm10, %v4686_v42, 1326507024  ;;  %v4468_v7 = vsel %vm4347_vm5, %v4467_v59, %v4466_v24  ;;  %v10308_v28 = vsub.s32 %v4598_v41, %v4601_v5  ;;  %v4698_v16 = vsel %vm4688_vm8, %v4695_v8, %v4697_v48 }
 0x44a   : > { %v4699_v20 = vsel %vm4687_vm14, %v10274_v26, %v10276_v32  ;;  %v4701_v60 = vsel %vm4689_vm0, %v4683_v57, %v4700_v58  ;;  %v4704_v31 = vand.u32 65535, %v10294_v0  ;;  %v4728_v3 = vand.u32 65535, %v4698_v16  ;;  %v6023_v58 = vld [vmem:[%s6115_s30 + $0x40] sm:$0xff] }
 0x44b   : > { %v4729_v36 = vshrl.u32 %v4698_v16, 16  ;;  %vm4603_vm4 = vcmp.lt.s32.totalorder %v10308_v28, 0  ;;  %v4604_v24 = vsub.s32 0, %v10308_v28  ;;  %v4951_v41 = vpack.c.bf16 %v11038_v43, %v5954_v45 }
 0x44c   : > { %v4705_v34 = vshrl.u32 %v10294_v0, 16  ;;  %v4172_v33 = vadd.f32 0.008332121, %v4171_v2  ;;  %v4313_v22 = vsel %vm4192_vm7, %v4312_v1, %v4311_v19  ;;  %v4702_v27 = vsel %vm4688_vm8, %v4699_v20, %v4701_v60 }
 0x44d   : > { %v4731_v44 = vmul.u32 %v4729_v36, %v4704_v31  ;;  %v10333_v57 = vsel %vm10268_vm15, %v9854_v38, %v4468_v7  ;;  %v4605_v42 = vsel %vm4603_vm4, %v4604_v24, %v10308_v28  ;;  %v4706_v59 = vand.u32 65535, %v4702_v27  ;;  %5809 = vmatmul.msk.bf16.gmra.mxu1 %vm5046_vm9, %v4951_v41 }
 0x44e   : > { %v10336_v55 = vmul.u32 %v4728_v3, %v4705_v34  ;;  %v4606_v2 = vclz %v4605_v42  ;;  %v4671_v19 = vshrl.u32 %v11327_v17, %v10244_v11  ;;  %v4707_v8 = vshrl.u32 %v4702_v27, 16 }
 0x44f   : > { %v4734_v23 = vshll.u32 %v4731_v44, 16  ;;  %v10344_v5 = vsel %vm10285_vm2, %v9914_v21, %v4313_v22  ;;  %v4594_v1 = vadd.s32 %v10228_v30, %v10226_v52  ;;  %v4730_v48 = vmul.u32 %v4728_v3, %v4704_v31 }
 0x450   : > { %vm11356_vm6 = vcmask 244736   ;;  %v5763_v16 = vadd.s32 4294967294, %v4606_v2  ;;  %v4691_v17 = vsel %vm4687_vm14, %v4671_v19, %v4674_v46  ;;  %v4709_v11 = vmul.u32 %v4707_v8, %v4704_v31 }
 0x451   : > { %v4922_v7 = vsel %vm11356_vm6, %v6023_v58, %v5949_v4  ;;  %v4733_v20 = vmul.u32 %v4729_v36, %v4705_v34  ;;  %v4710_v60 = vmul.u32 %v4706_v59, %v4705_v34  ;;  %v4736_v24 = vshll.u32 %v10336_v55, 16  ;;  %vm11359_vm11 = vmmov %vm11356_vm6 }
 0x452   : > { %vm4738_vm12 = vc.u32 %v4730_v48, %v4734_v23  ;;  %v4740_v41 = vadd.s32 %v4734_v23, %v4730_v48  ;;  %vm5764_vm3 = vcmp.lt.s32.totalorder %v5763_v16, 0  ;;  %v4708_v22 = vmul.u32 %v4706_v59, %v4704_v31 }
 0x453   : > { %v4712_v52 = vshll.u32 %v4709_v11, 16  ;;  %v4739_v30 = vsel %vm4738_vm12, 1, %v11070_v6  ;;  %v4609_v3 = vsel %vm5764_vm3, 0, %v5763_v16  ;;  %v4692_v4 = vsel %vm4690_vm10, %v10276_v32, 2102212464 }
 0x454   : > { %v4741_v27 = vadd.s32 %v4739_v30, %v4733_v20  ;;  %vm4742_vm4 = vc.u32 %v4740_v41, %v4736_v24  ;;  %v4610_v46 = vsub.s32 32, %v4609_v3  ;;  %v4614_v36 = vsub.s32 4294967266, %v4609_v3  ;;  %v6024_v20 = vld [vmem:[%s6115_s30 + $0x48] sm:$0xff] }
 0x455   : > { %v4711_v42 = vmul.u32 %v4707_v8, %v4705_v34  ;;  %vm4716_vm14 = vc.u32 %v4708_v22, %v4712_v52  ;;  %v4714_v2 = vshll.u32 %v4710_v60, 16  ;;  %v4718_v23 = vadd.s32 %v4712_v52, %v4708_v22 }
 0x456   : > { %v4717_v19 = vsel %vm4716_vm14, 1, %v11070_v6  ;;  %v4743_v31 = vsel %vm4742_vm4, 1, %v11070_v6  ;;  %v4615_v59 = vadd.s32 127, %v4614_v36  ;;  %v4735_v58 = vshrl.u32 %v4731_v44, 16  ;;  %vm11363_vm14 = vmmov %vm11356_vm6 }
 0x457   : > { %v4719_v48 = vadd.s32 %v4717_v19, %v4711_v42  ;;  %v4745_v16 = vadd.s32 %v4743_v31, %v4741_v27  ;;  %v4612_v43 = vshrl.u32 %v4594_v1, %v4610_v46  ;;  %v4693_v32 = vsel %vm4689_vm0, %v10274_v26, %v4692_v4 }
 0x458   : > { %vm4720_vm10 = vc.u32 %v4718_v23, %v4714_v2  ;;  %v4923_v34 = vsel %vm11356_vm6, %v6024_v20, %v5950_v9  ;;  %v4616_v8 = vshll.u32 %v4615_v59, 23  ;;  %v4737_v52 = vshrl.u32 %v10336_v55, 16 }
 0x459   : > { %v4721_v22 = vsel %vm4720_vm10, 1, %v11070_v6  ;;  %v4746_v30 = vadd.s32 %v4745_v16, %v4735_v58  ;;  %v4611_v44 = vshll.u32 %v10308_v28, %v4609_v3  ;;  %v4713_v27 = vshrl.u32 %v4709_v11, 16  ;;  %vm11364_vm10 = vmmov %vm11356_vm6 }
 0x45a   : > { %v4723_v1 = vadd.s32 %v4721_v22, %v4719_v48  ;;  %v4948_v46 = vpack.c.bf16 %v4923_v34, %v4922_v7  ;;  %v4159_v36 = vsub.s32 4, %v9874_v25  ;;  %v4173_v26 = vmul.f32 %v4172_v33, %v10233_v15 }
 0x45b   : > { %v4617_v4 = vor.u32 4788187, %v4616_v8  ;;  %v4747_v42 = vadd.s32 %v4746_v30, %v4737_v52  ;;  %v4019_v12 = vadd.f32 -0.16666654, %v10263_v37  ;;  %v4613_v9 = vor.u32 %v4612_v43, %v4611_v44  ;;  %v10388_v43 = vpop.permute.xlu0 %5957 }
 0x45c   : > { %v4715_v2 = vshrl.u32 %v4710_v60, 16  ;;  %v4724_v19 = vadd.s32 %v4723_v1, %v4713_v27  ;;  %5118 = vmatmul.bf16.gmra.mxu0 %v4948_v46  ;;  %v10376_v6 = vmul.f32 %v10333_v57, %v10333_v57  ;;  %v10380_v28 = vmul.f32 %v10344_v5, %v10344_v5 }
 0x45d   : > { %v4694_v55 = vsel %vm4688_vm8, %v4691_v17, %v4693_v32  ;;  %v4751_v33 = vadd.s32 1, %v4747_v42  ;;  %v4618_v7 = vand.u32 2147483647, %v4617_v4  ;;  %v10386_v37 = vadd.s32 %v4740_v41, %v4736_v24 }
 0x45e   : > { %v10384_v11 = vadd.s32 %v4724_v19, %v4715_v2  ;;  %v4009_v60 = vmul.f32 -0.001358992, %v10108_v39  ;;  %v4160_v3 = vsel %vm4037_vm13, %v4159_v36, %v9874_v25  ;;  %v4174_v23 = vadd.f32 -0.16666654, %v4173_v26  ;;  %vm11357_vm13 = vmmov %vm11356_vm6 }
 0x45f   : > { %v5960_v31 = vunpack.i.h.bf16 %v10388_v43  ;;  %v5959_v13 = vunpack.i.l.bf16 %v10388_v43  ;;  %v4620_v17 = vcvt.s32.f32 %v4613_v9  ;;  %v4748_v59 = vmul.u32 %v10294_v0, %v4694_v55 }
 0x460   : > { %vm4750_vm0 = vc.u32 %v10384_v11, %v10386_v37  ;;  %v4010_v24 = vadd.f32 0.041655596, %v4009_v60  ;;  %v4020_v41 = vmul.f32 %v4019_v12, %v10108_v39  ;;  %v4481_v48 = vmul.f32 -0.00019511016, %v10376_v6 }
 0x461   : > { %v4752_v58 = vsel %vm4750_vm0, %v4751_v33, %v4747_v42  ;;  %v4953_v25 = vpack.c.bf16 %v5960_v31, %v5959_v13  ;;  %v4326_v16 = vmul.f32 -0.00019511016, %v10380_v28  ;;  %v4621_v32 = vmul.f32 %v4620_v17, %v4618_v7  ;;  %v6025_v42 = vld [vmem:[%s6115_s30 + $0x50] sm:$0xff] }
 0x462   : > { %v4753_v20 = vadd.s32 %v4752_v58, %v4748_v59  ;;  %v4011_v0 = vmul.f32 %v4010_v24, %v10108_v39  ;;  %v4175_v34 = vmul.f32 %v4174_v23, %v10233_v15  ;;  %v4024_v8 = vadd.s32 3, %v4007_v18 }
 0x463   : > { %5810 = vmatmul.msk.bf16.gmra.mxu1 %vm5046_vm9, %v4953_v25  ;;  %v4162_v22 = vsel %vm10114_vm1, 0, %v4160_v3  ;;  %v4482_v30 = vadd.f32 0.008332121, %v4481_v48  ;;  %v4164_v27 = vmul.f32 -0.001358992, %v10233_v15  ;;  %v4021_v1 = vadd.f32 1.0, %v4020_v41 }
 0x464   : > { %v4754_v52 = vadd.s32 536870912, %v4753_v20  ;;  %v4012_v44 = vadd.f32 -0.4999988, %v4011_v0  ;;  %v4327_v46 = vadd.f32 0.008332121, %v4326_v16  ;;  %v4622_v36 = vxor.u32 2147483648, %v4621_v32 }
 0x465   : > { %v4176_v4 = vadd.f32 1.0, %v4175_v34  ;;  %v4924_v47 = vsel %vm11357_vm13, %v6025_v42, %v5954_v45  ;;  %v11358_v29 = vunpack.i.h.bf16 %v10272_v49  ;;  %v4165_v12 = vadd.f32 0.041655596, %v4164_v27  ;;  %v10466_v34 = vpop.permute.xlu1 %5962 }
 0x466   : > { %v10416_v26 = vshrl.u32 %v4754_v52, 30  ;;  %v4179_v9 = vadd.s32 3, %v4162_v22  ;;  %v4469_v2 = vsub.s32 4, %v10011_v50  ;;  %vm4502_vm1 = vcmp.lt.s32.totalorder %v10065_v14, 0 }
 0x467   : > { %v4925_v18 = vsel %vm11359_vm11, %v6026_v54, %v11358_v29  ;;  %v4483_v55 = vmul.f32 %v4482_v30, %v10376_v6  ;;  %v4314_v33 = vsub.s32 4, %v10120_v56  ;;  %v4013_v7 = vmul.f32 %v4012_v44, %v10108_v39 }
 0x468   : > { %v4756_v19 = vshll.u32 %v10416_v26, 30  ;;  %v4166_v45 = vmul.f32 %v4165_v12, %v10233_v15  ;;  %v4328_v49 = vmul.f32 %v4327_v46, %v10380_v28  ;;  %v4623_v60 = vsel %vm4502_vm1, %v4622_v36, %v4621_v32 }
 0x469   : > { %v4950_v23 = vpack.c.bf16 %v4925_v18, %v4924_v47  ;;  %v4022_v17 = vmul.f32 %v4021_v1, %v10100_v53  ;;  %v4025_v59 = vand.u32 3, %v4024_v8  ;;  %v10440_v24 = vmul.f32 %v4176_v4, %v10135_v51  ;;  %v5899_v47 = vld [vmem:[%s10873_s3 + $0x38] sm:$0xff] }
 0x46a   : > { %v10436_v3 = vsub.s32 %v4753_v20, %v4756_v19  ;;  %v4167_v41 = vadd.f32 -0.4999988, %v4166_v45  ;;  %v10445_v39 = vsel %vm4347_vm5, %v4469_v2, %v10011_v50  ;;  %v11360_v48 = vand.u32 2147483647, %v10065_v14  ;;  %v6027_v2 = vld [vmem:[%s6115_s30 + $0x60] sm:$0xff]  ;;  %5345 = vmatpush.bf16.msra.mxu2 %v5899_v47 }
 0x46b   : > { %v4484_v25 = vadd.f32 -0.16666654, %v4483_v55  ;;  %v10458_v51 = vsel %vm4192_vm7, %v4314_v33, %v10120_v56  ;;  %v4014_v16 = vadd.f32 1.0, %v4013_v7  ;;  %v4180_v32 = vand.u32 3, %v4179_v9  ;;  %v6028_v55 = vld [vmem:[%s6115_s30 + $0x68] sm:$0xff]  ;;  %v5898_v7 = vld [vmem:[%s10873_s3 + $0x30] sm:$0xff] }
 0x46c   : > { %vm10449_vm8 = vcmp.le.f32.partialorder %v11360_v48, 0.7853982  ;;  %vm4758_vm12 = vcmp.lt.s32.totalorder %v10436_v3, 0  ;;  %v4759_v53 = vsub.s32 0, %v10436_v3  ;;  %5123 = vmatmul.bf16.gmra.mxu0 %v4950_v23  ;;  %v4329_v20 = vadd.f32 -0.16666654, %v4328_v49  ;;  %v10507_v49 = vpop.f32.mrf.mxu1 }
 0x46d   : > { %v10463_v50 = vsel %vm10449_vm8, %v10065_v14, %v4623_v60  ;;  %v4168_v8 = vmul.f32 %v4167_v41, %v10233_v15  ;;  %v4028_v22 = vxor.u32 2147483648, %v4022_v17  ;;  %v5965_v30 = vunpack.i.h.bf16 %v10466_v34  ;;  %v10509_v60 = vpop.f32.mrf.mxu0 }
 0x46e   : > { %v4760_v0 = vsel %vm4758_vm12, %v4759_v53, %v10436_v3  ;;  %v5964_v56 = vunpack.i.l.bf16 %v10466_v34  ;;  %v4183_v44 = vxor.u32 2147483648, %v10440_v24  ;;  %v4472_v27 = vsel %vm10268_vm15, 0, %v10445_v39  ;;  %5346 = vmatpush.bf16.msra.mxu2 %v5898_v7  ;;  %v5894_v34 = vld [vmem:[%s10873_s3 + $0x10] sm:$0xff] }
 0x46f   : > { %v4761_v52 = vclz %v4760_v0  ;;  %v4317_v1 = vsel %vm10285_vm2, 0, %v10458_v51  ;;  %v10480_v46 = vmul.f32 %v10463_v50, %v10463_v50  ;;  %v4485_v15 = vmul.f32 %v4484_v25, %v10376_v6  ;;  %v5897_v51 = vld [vmem:[%s10873_s3 + $0x28] sm:$0xff]  ;;  %v10519_v0 = vpop.permute.xlu2 %5967 }
 0x470   : > { %v4955_v4 = vpack.c.bf16 %v5965_v30, %v5964_v56  ;;  %vm4023_vm5 = vweird.f32 %v9635_v62  ;;  %v4031_v42 = vxor.u32 2147483648, %v4014_v16  ;;  %v4330_v61 = vmul.f32 %v4329_v20, %v10380_v28  ;;  %v5896_v62 = vld [vmem:[%s10873_s3 + $0x20] sm:$0xff] }
 0x471   : > { %v5766_v36 = vadd.s32 4294967294, %v4761_v52  ;;  %vm4026_vm7 = vcmp.lt.s32.totalorder %v4025_v59, 2  ;;  %vm4027_vm2 = vcmp.eq.s32.totalorder %v4025_v59, 0  ;;  %v4169_v54 = vadd.f32 1.0, %v4168_v8 }
 0x472   : > { %v4749_v29 = vadd.s32 %v10386_v37, %v10384_v11  ;;  %v4029_v18 = vsel %vm4027_vm2, %v4014_v16, %v4028_v22  ;;  %vm4030_vm4 = vcmp.eq.s32.totalorder %v4025_v59, 2  ;;  %v4636_v12 = vmul.f32 -0.00019511016, %v10480_v46  ;;  %5347 = vmatpush.bf16.msra.mxu2 %v5897_v51 }
 0x473   : > { %vm5767_vm3 = vcmp.lt.s32.totalorder %v5766_v36, 0  ;;  %5811 = vmatmul.msk.bf16.gmra.mxu1 %vm5046_vm9, %v4955_v4  ;;  %v4926_v19 = vsel %vm11363_vm14, %v6027_v2, %v5959_v13  ;;  %v4927_v33 = vsel %vm11364_vm10, %v6028_v55, %v5960_v31  ;;  %v4032_v45 = vsel %vm4030_vm4, %v4031_v42, %v4022_v17  ;;  %v10550_v2 = vld [vmem:[%s10872_s2] ss:$0 sm:$0xff] }
 0x474   : > { %v4764_v9 = vsel %vm5767_vm3, 0, %v5766_v36  ;;  %vm4182_vm6 = vcmp.eq.s32.totalorder %v4180_v32, 0  ;;  %v4624_v13 = vsub.s32 4, %v10278_v63  ;;  %v4033_v23 = vsel %vm4026_vm7, %v4029_v18, %v4032_v45  ;;  %v5895_v45 = vld [vmem:[%s10873_s3 + $0x18] sm:$0xff] }
 0x475   : > { %v4765_v11 = vsub.s32 32, %v4764_v9  ;;  %v4769_v37 = vsub.s32 4294967266, %v4764_v9  ;;  %v4184_v43 = vsel %vm4182_vm6, %v4169_v54, %v4183_v44  ;;  %v4186_v41 = vxor.u32 2147483648, %v4169_v54  ;;  %v5101_v54 = vpop.f32.mrf.mxu0 }
 0x476   : > { %v4766_v31 = vshll.u32 %v10436_v3, %v4764_v9  ;;  %vm4185_vm0 = vcmp.eq.s32.totalorder %v4180_v32, 2  ;;  %v4952_v25 = vpack.c.bf16 %v4927_v33, %v4926_v19  ;;  %vm4178_vm13 = vweird.f32 %v9723_v10  ;;  %5348 = vmatpush.bf16.msra.mxu2 %v5896_v62 }
 0x477   : > { %v4767_v48 = vshrl.u32 %v4749_v29, %v4765_v11  ;;  %v4770_v53 = vadd.s32 127, %v4769_v37  ;;  %vm4181_vm11 = vcmp.lt.s32.totalorder %v4180_v32, 2  ;;  %v4187_v17 = vsel %vm4185_vm0, %v4186_v41, %v10440_v24 }
 0x478   : > { %v4637_v59 = vadd.f32 0.008332121, %v4636_v12  ;;  %v4188_v3 = vsel %vm4181_vm11, %v4184_v43, %v4187_v17  ;;  %v4331_v8 = vadd.f32 1.0, %v4330_v61  ;;  %vm4657_vm12 = vcmp.lt.s32.totalorder %v10172_v40, 0  ;;  %v6030_v17 = vld [vmem:[%s6115_s30 + $0x78] sm:$0xff] }
 0x479   : > { %v4768_v16 = vor.u32 %v4767_v48, %v4766_v31  ;;  %v4771_v20 = vshll.u32 %v4770_v53, 23  ;;  %v4034_v22 = vsel %vm4023_vm5, nan, %v4033_v23  ;;  %v4189_v10 = vsel %vm4178_vm13, nan, %v4188_v3  ;;  %v6029_v53 = vld [vmem:[%s6115_s30 + $0x70] sm:$0xff]  ;;  %vm11368_vm5 = vmmov %vm11364_vm10 }
 0x47a   : > { %v4486_v32 = vadd.f32 1.0, %v4485_v15  ;;  %v4334_v52 = vadd.s32 3, %v4317_v1  ;;  %v5976_v44 = vpack.i.bf16 %v4189_v10, %v4034_v22  ;;  %v10527_v36 = vsel %vm4502_vm1, %v4624_v13, %v10278_v63  ;;  %v5175_v63 = vpop.f32.mrf.mxu1  ;;  %vm11369_vm15 = vmmov %vm11368_vm5  ;;  %5349 = vmatpush.bf16.msra.mxu2 %v5895_v45 }
 0x47b   : > { %v4772_v24 = vor.u32 4788187, %v4771_v20  ;;  %v5970_v4 = vunpack.i.h.bf16 %v10519_v0  ;;  %v5969_v42 = vunpack.i.l.bf16 %v10519_v0  ;;  %v4319_v15 = vmul.f32 -0.001358992, %v10380_v28  ;;  %vm11371_vm13 = vmmov %vm11368_vm5 }
 0x47c   : > { %5128 = vmatmul.bf16.gmra.mxu0 %v4952_v25  ;;  %v4638_v1 = vmul.f32 %v4637_v59, %v10480_v46  ;;  %v4775_v47 = vcvt.s32.f32 %v4768_v16  ;;  %5977 = vrot.lane.b32.xlu1 %v5976_v44, %s6050_s9  ;;  %v4474_v29 = vmul.f32 -0.001358992, %v10376_v6  ;;  %v10539_v18 = vmul.f32 %v4331_v8, %v10344_v5 }
 0x47d   : > { %v4773_v61 = vand.u32 2147483647, %v4772_v24  ;;  %v11365_v12 = vand.u32 2147483647, %v10172_v40  ;;  %v4320_v19 = vadd.f32 0.041655596, %v4319_v15  ;;  %v10553_v55 = vmul.f32 %v4486_v32, %v10333_v57  ;;  %v10614_v32 = vpop.f32.mrf.mxu0 }
 0x47e   : > { %v10555_v33 = vand.u32 3, %v4334_v52  ;;  %v4475_v11 = vadd.f32 0.041655596, %v4474_v29  ;;  %v4627_v37 = vsel %vm10449_vm8, 0, %v10527_v36  ;;  %v4779_v7 = vsub.s32 4, %v10416_v26  ;;  %5350 = vmatpush.bf16.msra.mxu2 %v5894_v34  ;;  %vm11370_vm8 = vmmov %vm11368_vm5 }
 0x47f   : > { %vm10543_vm1 = vcmp.le.f32.partialorder %v11365_v12, 0.7853982  ;;  %v4776_v5 = vmul.f32 %v4775_v47, %v4773_v61  ;;  %v4321_v13 = vmul.f32 %v4320_v19, %v10380_v28  ;;  %v4489_v57 = vadd.s32 3, %v4472_v27 }
 0x480   : > { %v4639_v23 = vadd.f32 -0.16666654, %v4638_v1  ;;  %v4957_v41 = vpack.c.bf16 %v5970_v4, %v5969_v42  ;;  %v4476_v31 = vmul.f32 %v4475_v11, %v10376_v6  ;;  %v4338_v48 = vxor.u32 2147483648, %v10539_v18  ;;  %v10620_v1 = vpop.permute.xlu0 %5972 }
 0x481   : > { %v4777_v43 = vxor.u32 2147483648, %v4776_v5  ;;  %v4928_v25 = vsel %vm11368_vm5, %v6029_v53, %v5964_v56  ;;  %v5100_v35 = vadd.f32 %v10550_v2, %v10509_v60  ;;  %v4322_v39 = vadd.f32 -0.4999988, %v4321_v13 }
 0x482   : > { %v4929_v51 = vsel %vm11369_vm15, %v6030_v17, %v5965_v30  ;;  %v5102_v59 = vadd.f32 %v10550_v2, %v5101_v54  ;;  %vm4333_vm7 = vweird.f32 %v9914_v21  ;;  %v4477_v16 = vadd.f32 -0.4999988, %v4476_v31  ;;  %v10612_v10 = vpop.f32.mrf.mxu1 }
 0x483   : > { %v4778_v27 = vsel %vm4657_vm12, %v4777_v43, %v4776_v5  ;;  %5812 = vmatmul.msk.bf16.gmra.mxu1 %vm5046_vm9, %v4957_v41  ;;  %v10593_v56 = vsel %vm4657_vm12, %v4779_v7, %v10416_v26  ;;  %v4323_v30 = vmul.f32 %v4322_v39, %v10380_v28  ;;  %vm4488_vm2 = vweird.f32 %v9854_v38 }
 0x484   : > { %v10598_v60 = vsel %vm10543_vm1, %v10172_v40, %v4778_v27  ;;  %v4490_v20 = vand.u32 3, %v4489_v57  ;;  %v4640_v3 = vmul.f32 %v4639_v23, %v10480_v46  ;;  %v4478_v8 = vmul.f32 %v4477_v16, %v10376_v6 }
 0x485   : > { %v10608_v26 = vmul.f32 %v10598_v60, %v10598_v60  ;;  %v4493_v22 = vxor.u32 2147483648, %v10553_v55  ;;  %v4954_v52 = vpack.c.bf16 %v4929_v51, %v4928_v25  ;;  %v5174_v28 = vadd.f32 %v10507_v49, %v5100_v35  ;;  %v5893_v49 = vld [vmem:[%s10873_s3 + $0x8] sm:$0xff] }
 0x486   : > { %v4324_v24 = vadd.f32 1.0, %v4323_v30  ;;  %vm4336_vm3 = vcmp.lt.s32.totalorder %v10555_v33, 2  ;;  %v5176_v62 = vadd.f32 %v5175_v63, %v5102_v59  ;;  %vm4337_vm4 = vcmp.eq.s32.totalorder %v10555_v33, 0  ;;  %5351 = vmatpush.bf16.msra.mxu2 %v5893_v49 }
 0x487   : > { %v4791_v44 = vmul.f32 -0.00019511016, %v10608_v26  ;;  %v4479_v15 = vadd.f32 1.0, %v4478_v8  ;;  %vm4340_vm14 = vcmp.eq.s32.totalorder %v10555_v33, 2  ;;  %vm4492_vm10 = vcmp.eq.s32.totalorder %v4490_v20, 0 }
 0x488   : > { %v4339_v6 = vsel %vm4337_vm4, %v4324_v24, %v4338_v48  ;;  %v4341_v61 = vxor.u32 2147483648, %v4324_v24  ;;  %vm4491_vm6 = vcmp.lt.s32.totalorder %v4490_v20, 2  ;;  %vm4495_vm0 = vcmp.eq.s32.totalorder %v4490_v20, 2  ;;  %vm11372_vm4 = vmmov %vm11370_vm8 }
 0x489   : > { %v4792_v47 = vadd.f32 0.008332121, %v4791_v44  ;;  %v4494_v54 = vsel %vm4492_vm10, %v4479_v15, %v4493_v22  ;;  %v4496_v29 = vxor.u32 2147483648, %v4479_v15  ;;  %v5975_v12 = vunpack.i.h.bf16 %v10620_v1  ;;  %v6031_v22 = vld [vmem:[%s6115_s30 + $0x80] sm:$0xff]  ;;  %v6032_v44 = vld [vmem:[%s6115_s30 + $0x88] sm:$0xff]  ;;  %vm11374_vm10 = vmmov %vm11372_vm4 }
 0x48a   : > { %v4342_v63 = vsel %vm4340_vm14, %v4341_v61, %v10539_v18  ;;  %v5974_v19 = vunpack.i.l.bf16 %v10620_v1  ;;  %v5239_v45 = vmax.f32 %v5176_v62, 0.0  ;;  %v4641_v13 = vadd.f32 1.0, %v4640_v3  ;;  %v5892_v18 = vld [vmem:[%s10873_s3] sm:$0xff]  ;;  %v5180_v53 = vpop.f32.mrf.mxu1  ;;  %vm11373_vm14 = vmmov %vm11372_vm4 }
 0x48b   : > { %v4793_v5 = vmul.f32 %v4792_v47, %v10608_v26  ;;  %v4343_v11 = vsel %vm4336_vm3, %v4339_v6, %v4342_v63  ;;  %v4497_v7 = vsel %vm4495_vm0, %v4496_v29, %v10553_v55  ;;  %v4629_v43 = vmul.f32 -0.001358992, %v10480_v46  ;;  %v5106_v55 = vpop.f32.mrf.mxu0  ;;  %5352 = vmatpush.bf16.msra.mxu2 %v5892_v18  ;;  %vm11376_vm0 = vmmov %vm11372_vm4 }
 0x48c   : > { %5133 = vmatmul.bf16.gmra.mxu0 %v4954_v52  ;;  %v4344_v57 = vsel %vm4333_vm7, nan, %v4343_v11  ;;  %v4498_v23 = vsel %vm4491_vm6, %v4494_v54, %v4497_v7  ;;  %v5238_v31 = vmax.f32 %v5174_v28, 0.0  ;;  %v4782_v48 = vsel %vm10543_vm1, 0, %v10593_v56  ;;  %vm11375_vm6 = vmmov %vm11372_vm4 }
 0x48d   : > { %v4794_v41 = vadd.f32 -0.16666654, %v4793_v5  ;;  %v4499_v33 = vsel %vm4488_vm2, nan, %v4498_v23  ;;  %v4630_v25 = vadd.f32 0.041655596, %v4629_v43  ;;  %v4644_v39 = vadd.s32 3, %v4627_v37 }
 0x48e   : > { %v5981_v21 = vpack.i.bf16 %v4499_v33, %v4344_v57  ;;  %v4784_v35 = vmul.f32 -0.001358992, %v10608_v26  ;;  %v4959_v38 = vpack.c.bf16 %v5975_v12, %v5974_v19  ;;  %v5264_v17 = vpack.c.bf16 %v5239_v45, %v5238_v31 }
 0x48f   : > { %v4795_v27 = vmul.f32 %v4794_v41, %v10608_v26  ;;  %v4642_v9 = vmul.f32 %v4641_v13, %v10463_v50  ;;  %v4631_v51 = vmul.f32 %v4630_v25, %v10480_v46  ;;  %v4799_v36 = vadd.s32 3, %v4782_v48  ;;  %v6033_v41 = vld [vmem:[%s6115_s30 + $0x90] sm:$0xff] }
 0x490   : > { %5982 = vrot.lane.b32.xlu2 %v5981_v21, %s6050_s9  ;;  %v4785_v58 = vadd.f32 0.041655596, %v4784_v35  ;;  %v4645_v56 = vand.u32 3, %v4644_v39  ;;  %5353 = vmatmul.bf16.vlgmr.msra.gmra.mxu2 %v5264_v17  ;;  %v5107_v50 = vadd.f32 %v10550_v2, %v5106_v55  ;;  %v4930_v52 = vsel %vm11370_vm8, %v6031_v22, %v5969_v42  ;;  %vm11377_vm8 = vmmov %vm11376_vm0 }
 0x491   : > { %v4796_v59 = vadd.f32 1.0, %v4795_v27  ;;  %v4632_v37 = vadd.f32 -0.4999988, %v4631_v51  ;;  %v4648_v30 = vxor.u32 2147483648, %v4642_v9  ;;  %v4800_v8 = vand.u32 3, %v4799_v36 }
 0x492   : > { %v4786_v16 = vmul.f32 %v4785_v58, %v10608_v26  ;;  %v5105_v28 = vadd.f32 %v10550_v2, %v10614_v32  ;;  %v4931_v62 = vsel %vm11371_vm13, %v6032_v44, %v5970_v4  ;;  %v5181_v6 = vadd.f32 %v5180_v53, %v5107_v50  ;;  %v5183_v54 = vpop.f32.mrf.mxu1  ;;  %vm11378_vm13 = vmmov %vm11376_vm0 }
 0x493   : > { %v4797_v34 = vmul.f32 %v4796_v59, %v10598_v60  ;;  %5813 = vmatmul.msk.bf16.gmra.mxu1 %vm5046_vm9, %v4959_v38  ;;  %v4633_v20 = vmul.f32 %v4632_v37, %v10480_v46  ;;  %v5109_v24 = vpop.f32.mrf.mxu0  ;;  %vm4647_vm11 = vcmp.eq.s32.totalorder %v4645_v56, 0  ;;  %v4956_v42 = vpack.c.bf16 %v4931_v62, %v4930_v52 }
 0x494   : > { %v4787_v3 = vadd.f32 -0.4999988, %v4786_v16  ;;  %v5179_v29 = vadd.f32 %v10612_v10, %v5105_v28  ;;  %vm4650_vm12 = vcmp.eq.s32.totalorder %v4645_v56, 2  ;;  %vm4802_vm1 = vcmp.eq.s32.totalorder %v4800_v8, 0 }
 0x495   : > { %v4803_v60 = vxor.u32 2147483648, %v4797_v34  ;;  %v4634_v15 = vadd.f32 1.0, %v4633_v20  ;;  %vm4646_vm5 = vcmp.lt.s32.totalorder %v4645_v56, 2  ;;  %v5241_v5 = vmax.f32 %v5181_v6, 0.0 }
 0x496   : > { %v4788_v46 = vmul.f32 %v4787_v3, %v10608_v26  ;;  %vm4805_vm15 = vcmp.eq.s32.totalorder %v4800_v8, 2  ;;  %vm4801_vm7 = vcmp.lt.s32.totalorder %v4800_v8, 2  ;;  %v5240_v11 = vmax.f32 %v5179_v29, 0.0  ;;  %v6036_v29 = vld [vmem:[%s6115_s30 + $0xa8] sm:$0xff] }
 0x497   : > { %v4649_v61 = vsel %vm4647_vm11, %v4634_v15, %v4648_v30  ;;  %v4651_v49 = vxor.u32 2147483648, %v4634_v15  ;;  %vm4643_vm2 = vweird.f32 %v10065_v14  ;;  %vm4798_vm3 = vweird.f32 %v10172_v40  ;;  %v6034_v14 = vld [vmem:[%s6115_s30 + $0x98] sm:$0xff]  ;;  %vm11379_vm11 = vmmov %vm11376_vm0 }
 0x498   : > { %v4789_v47 = vadd.f32 1.0, %v4788_v46  ;;  %v5265_v23 = vpack.c.bf16 %v5241_v5, %v5240_v11  ;;  %v4932_v31 = vsel %vm11372_vm4, %v6033_v41, %v5974_v19  ;;  %v4933_v40 = vsel %vm11373_vm14, %v6034_v14, %v5975_v12  ;;  %v6038_v41 = vld [vmem:[%s6115_s30 + $0xb8] sm:$0xff] }
 0x499   : > { %v4652_v32 = vsel %vm4650_vm12, %v4651_v49, %v4642_v9  ;;  %v5110_v33 = vadd.f32 %v10550_v2, %v5109_v24  ;;  %v4958_v21 = vpack.c.bf16 %v4933_v40, %v4932_v31 }
 0x49a   : > { %v4804_v63 = vsel %vm4802_vm1, %v4789_v47, %v4803_v60  ;;  %v4806_v0 = vxor.u32 2147483648, %v4789_v47  ;;  %v4653_v4 = vsel %vm4646_vm5, %v4649_v61, %v4652_v32  ;;  %v5185_v18 = vpop.f32.mrf.mxu1 }
 0x49b   : > { %v5111_v7 = vpop.f32.mrf.mxu0  ;;  %v4654_v45 = vsel %vm4643_vm2, nan, %v4653_v4  ;;  %v5184_v53 = vadd.f32 %v5183_v54, %v5110_v33  ;;  %v6035_v54 = vld [vmem:[%s6115_s30 + $0xa0] sm:$0xff] }
 0x49c   : > { %5138 = vmatmul.bf16.gmra.mxu0 %v4956_v42  ;;  %v4807_v26 = vsel %vm4805_vm15, %v4806_v0, %v4797_v34  ;;  %v5112_v43 = vadd.f32 %v10550_v2, %v5111_v7 }
 0x49d   : > { %v4808_v10 = vsel %vm4801_vm7, %v4804_v63, %v4807_v26  ;;  %v5242_v39 = vmax.f32 %v5184_v53, 0.0 }
 0x49e   : > { %v4809_v13 = vsel %vm4798_vm3, nan, %v4808_v10  ;;  %v5186_v48 = vadd.f32 %v5185_v18, %v5112_v43  ;;  %v6037_v18 = vld [vmem:[%s6115_s30 + $0xb0] sm:$0xff] }
 0x49f   : > { %v5986_v57 = vpack.i.bf16 %v4809_v13, %v4654_v45 }
 0x4a0   : > { %5358 = vmatmul.bf16.gmra.mxu2 %v5265_v23  ;;  %v5243_v25 = vmax.f32 %v5186_v48, 0.0  ;;  %v5907_v23 = vld [vmem:[%s10875_s5 + $0x38] sm:$0xff] }
 0x4a1   : > { %5987 = vrot.lane.b32.xlu0 %v5986_v57, %s6050_s9  ;;  %5526 = vmatpush.bf16.msra.mxu3 %v5907_v23 }
 0x4a2   : > { %v5188_v35 = vpop.f32.mrf.mxu1  ;;  %v5266_v27 = vpack.c.bf16 %v5243_v25, %v5242_v39  ;;  %v5906_v39 = vld [vmem:[%s10875_s5 + $0x30] sm:$0xff] }
 0x4a3   : > { %v5114_v55 = vpop.f32.mrf.mxu0 }
 0x4a4   : > { %v5115_v17 = vadd.f32 %v10550_v2, %v5114_v55 }
 0x4a5   : > { %5527 = vmatpush.bf16.msra.mxu3 %v5906_v39 }
 0x4a6   : > { %v5189_v12 = vadd.f32 %v5188_v35, %v5115_v17 }
 0x4a8   : > { %v5244_v58 = vmax.f32 %v5189_v12, 0.0  ;;  %v5903_v12 = vld [vmem:[%s10875_s5 + $0x18] sm:$0xff] }
 0x4aa   : > { %v5190_v1 = vpop.f32.mrf.mxu1 }
 0x4ab   : > { %v5116_v38 = vpop.f32.mrf.mxu0 }
 0x4ac   : > { %5143 = vmatmul.bf16.gmra.mxu0 %v4958_v21  ;;  %v5117_v19 = vadd.f32 %v10550_v2, %v5116_v38  ;;  %v5905_v38 = vld [vmem:[%s10875_s5 + $0x28] sm:$0xff] }
 0x4ad   : > { %5528 = vmatpush.bf16.msra.mxu3 %v5905_v38 }
 0x4ae   : > { %v5191_v9 = vadd.f32 %v5190_v1, %v5117_v19 }
 0x4b0   : > { %5363 = vmatmul.bf16.gmra.mxu2 %v5266_v27  ;;  %v5245_v51 = vmax.f32 %v5191_v9, 0.0  ;;  %v5904_v9 = vld [vmem:[%s10875_s5 + $0x20] sm:$0xff] }
 0x4b1   : > { %5529 = vmatpush.bf16.msra.mxu3 %v5904_v9 }
 0x4b2   : > { %v5267_v59 = vpack.c.bf16 %v5245_v51, %v5244_v58 }
 0x4b5   : > { %5530 = vmatpush.bf16.msra.mxu3 %v5903_v12 }
 0x4b9   : > { %v5193_v36 = vpop.f32.mrf.mxu1 }
 0x4c0   : > { %5368 = vmatmul.bf16.gmra.mxu2 %v5267_v59 }
 0x4c1   : > { %v5195_v37 = vpop.f32.mrf.mxu1 }
 0x4ca   : > { %v5198_v56 = vpop.f32.mrf.mxu1 }
 0x4d2   : > { %v5200_v3 = vpop.f32.mrf.mxu1 }
 0x4d9   : > { %v5119_v16 = vpop.f32.mrf.mxu0 }
 0x4da   : > { %v5120_v34 = vadd.f32 %v10550_v2, %v5119_v16 }
 0x4dc   : > { %v5194_v30 = vadd.f32 %v5193_v36, %v5120_v34 }
 0x4de   : > { %v5246_v22 = vmax.f32 %v5194_v30, 0.0 }
 0x4e0   : > { %v5203_v44 = vpop.f32.mrf.mxu1 }
 0x4e1   : > { %v5121_v50 = vpop.f32.mrf.mxu0 }
 0x4e2   : > { %v5122_v20 = vadd.f32 %v10550_v2, %v5121_v50 }
 0x4e4   : > { %v5196_v8 = vadd.f32 %v5195_v37, %v5122_v20 }
 0x4e6   : > { %v5247_v52 = vmax.f32 %v5196_v8, 0.0 }
 0x4e8   : > { %v5268_v28 = vpack.c.bf16 %v5247_v52, %v5246_v22  ;;  %v5205_v26 = vpop.f32.mrf.mxu1  ;;  %v6040_v22 = vld [vmem:[%s6115_s30 + $0xc8] sm:$0xff] }
 0x4e9   : > { %v5124_v24 = vpop.f32.mrf.mxu0 }
 0x4ea   : > { %5373 = vmatmul.bf16.gmra.mxu2 %v5268_v28  ;;  %v5125_v60 = vadd.f32 %v10550_v2, %v5124_v24  ;;  %v5983_v7 = vpop.permute.xlu2 %5982  ;;  %v5902_v24 = vld [vmem:[%s10875_s5 + $0x10] sm:$0xff] }
 0x4eb   : > { %v5985_v45 = vunpack.i.h.bf16 %v5983_v7  ;;  %v5984_v13 = vunpack.i.l.bf16 %v5983_v7  ;;  %5531 = vmatpush.bf16.msra.mxu3 %v5902_v24 }
 0x4ec   : > { %v5199_v6 = vadd.f32 %v5198_v56, %v5125_v60 }
 0x4ed   : > { %v4936_v43 = vsel %vm11376_vm0, %v6037_v18, %v5984_v13  ;;  %v4937_v31 = vsel %vm11377_vm8, %v6038_v41, %v5985_v45  ;;  %v4963_v55 = vpack.c.bf16 %v5985_v45, %v5984_v13 }
 0x4ee   : > { %v5978_v62 = vpop.permute.xlu1 %5977  ;;  %v5248_v5 = vmax.f32 %v5199_v6, 0.0  ;;  %v4962_v21 = vpack.c.bf16 %v4937_v31, %v4936_v43  ;;  %v5900_v6 = vld [vmem:[%s10875_s5] sm:$0xff] }
 0x4ef   : > { %v5980_v15 = vunpack.i.h.bf16 %v5978_v62  ;;  %v5979_v46 = vunpack.i.l.bf16 %v5978_v62  ;;  %v5901_v62 = vld [vmem:[%s10875_s5 + $0x8] sm:$0xff] }
 0x4f0   : > { %v5208_v40 = vpop.f32.mrf.mxu1  ;;  %5532 = vmatpush.bf16.msra.mxu3 %v5901_v62 }
 0x4f1   : > { %v5126_v61 = vpop.f32.mrf.mxu0  ;;  %v4961_v47 = vpack.c.bf16 %v5980_v15, %v5979_v46  ;;  %v4934_v42 = vsel %vm11374_vm10, %v6035_v54, %v5979_v46  ;;  %v4935_v32 = vsel %vm11375_vm6, %v6036_v29, %v5980_v15  ;;  %v10736_v46 = vld [vmem:[%s10874_s4] ss:$0 sm:$0xff] }
 0x4f2   : > { %v5127_v49 = vadd.f32 %v10550_v2, %v5126_v61  ;;  %v4960_v63 = vpack.c.bf16 %v4935_v32, %v4934_v42 }
 0x4f3   : > { %5814 = vmatmul.msk.bf16.gmra.mxu1 %vm5046_vm9, %v4961_v47 }
 0x4f4   : > { %v5201_v0 = vadd.f32 %v5200_v3, %v5127_v49  ;;  %5148 = vmatmul.bf16.gmra.mxu0 %v4960_v63  ;;  %v6039_v3 = vld [vmem:[%s6115_s30 + $0xc0] sm:$0xff]  ;;  %5533 = vmatpush.bf16.msra.mxu3 %v5900_v6 }
 0x4f6   : > { %v5249_v4 = vmax.f32 %v5201_v0, 0.0 }
 0x4f8   : > { %v5269_v11 = vpack.c.bf16 %v5249_v4, %v5248_v5  ;;  %v5210_v17 = vpop.f32.mrf.mxu1 }
 0x4f9   : > { %v5129_v10 = vpop.f32.mrf.mxu0 }
 0x4fa   : > { %5378 = vmatmul.bf16.gmra.mxu2 %v5269_v11  ;;  %v5130_v57 = vadd.f32 %v10550_v2, %v5129_v10 }
 0x4fc   : > { %v5204_v33 = vadd.f32 %v5203_v44, %v5130_v57 }
 0x4fe   : > { %v5250_v25 = vmax.f32 %v5204_v33, 0.0 }
 0x500   : > { %v5213_v50 = vpop.f32.mrf.mxu1 }
 0x501   : > { %v5131_v14 = vpop.f32.mrf.mxu0 }
 0x502   : > { %v5132_v48 = vadd.f32 %v10550_v2, %v5131_v14 }
 0x503   : > { %5815 = vmatmul.msk.bf16.gmra.mxu1 %vm5046_vm9, %v4963_v55 }
 0x504   : > { %v5206_v53 = vadd.f32 %v5205_v26, %v5132_v48  ;;  %5153 = vmatmul.bf16.gmra.mxu0 %v4962_v21 }
 0x506   : > { %v5251_v35 = vmax.f32 %v5206_v53, 0.0 }
 0x508   : > { %v5270_v27 = vpack.c.bf16 %v5251_v35, %v5250_v25  ;;  %v5215_v54 = vpop.f32.mrf.mxu1 }
 0x509   : > { %v5134_v19 = vpop.f32.mrf.mxu0 }
 0x50a   : > { %5383 = vmatmul.bf16.gmra.mxu2 %v5270_v27  ;;  %v5135_v1 = vadd.f32 %v10550_v2, %v5134_v19 }
 0x50c   : > { %v5209_v51 = vadd.f32 %v5208_v40, %v5135_v1 }
 0x50e   : > { %v5252_v34 = vmax.f32 %v5209_v51, 0.0 }
 0x510   : > { %v5218_v13 = vpop.f32.mrf.mxu1 }
 0x511   : > { %v5136_v58 = vpop.f32.mrf.mxu0 }
 0x512   : > { %v5137_v59 = vadd.f32 %v10550_v2, %v5136_v58 }
 0x513   : > { %v5988_v36 = vpop.permute.xlu0 %5987  ;;  %v5354_v28 = vpop.f32.mrf.mxu2 }
 0x514   : > { %v5211_v37 = vadd.f32 %v5210_v17, %v5137_v59  ;;  %v5990_v16 = vunpack.i.h.bf16 %v5988_v36  ;;  %v5989_v56 = vunpack.i.l.bf16 %v5988_v36  ;;  %v5355_v61 = vadd.f32 %v10736_v46, %v5354_v28 }
 0x516   : > { %v5253_v30 = vmax.f32 %v5211_v37, 0.0  ;;  %v4965_v20 = vpack.c.bf16 %v5990_v16, %v5989_v56  ;;  %v4938_v8 = vsel %vm11378_vm13, %v6039_v3, %v5989_v56  ;;  %v4939_v52 = vsel %vm11379_vm11, %v6040_v22, %v5990_v16 }
 0x517   : > { %v4964_v60 = vpack.c.bf16 %v4939_v52, %v4938_v8  ;;  %v5419_v32 = vmax.f32 %v5355_v61, 0.0 }
 0x518   : > { %v5271_v44 = vpack.c.bf16 %v5253_v30, %v5252_v34  ;;  %5816 = vmatmul.msk.bf16.gmra.mxu1 %vm5046_vm9, %v4965_v20  ;;  %v5220_v48 = vpop.f32.mrf.mxu1  ;;  %vm5600_vm9 = vcmask 23552  }
 0x519   : > { %v5139_v15 = vpop.f32.mrf.mxu0  ;;  %5158 = vmatmul.bf16.gmra.mxu0 %v4964_v60 }
 0x51a   : > { %5388 = vmatmul.bf16.gmra.mxu2 %v5271_v44  ;;  %v5140_v49 = vadd.f32 %v10550_v2, %v5139_v15 }
 0x51b   : > { %v5356_v47 = vpop.f32.mrf.mxu2 }
 0x51c   : > { %v5357_v42 = vadd.f32 %v10736_v46, %v5356_v47  ;;  %v5214_v0 = vadd.f32 %v5213_v50, %v5140_v49 }
 0x51e   : > { %v5420_v63 = vmax.f32 %v5357_v42, 0.0  ;;  %v5254_v11 = vmax.f32 %v5214_v0, 0.0 }
 0x520   : > { %v5445_v4 = vpack.c.bf16 %v5420_v63, %v5419_v32 }
 0x521   : > { %v5141_v29 = vpop.f32.mrf.mxu0 }
 0x522   : > { %v5142_v5 = vadd.f32 %v10550_v2, %v5141_v29  ;;  %5534 = vmatmul.bf16.vlgmr.msra.gmra.mxu3 %v5445_v4 }
 0x523   : > { %v5359_v7 = vpop.f32.mrf.mxu2 }
 0x524   : > { %v5216_v26 = vadd.f32 %v5215_v54, %v5142_v5  ;;  %v5360_v23 = vadd.f32 %v10736_v46, %v5359_v7 }
 0x526   : > { %v5255_v10 = vmax.f32 %v5216_v26, 0.0  ;;  %v5421_v14 = vmax.f32 %v5360_v23, 0.0 }
 0x528   : > { %v5272_v45 = vpack.c.bf16 %v5255_v10, %v5254_v11 }
 0x529   : > { %v5144_v57 = vpop.f32.mrf.mxu0 }
 0x52a   : > { %5393 = vmatmul.bf16.gmra.mxu2 %v5272_v45  ;;  %v5145_v18 = vadd.f32 %v10550_v2, %v5144_v57 }
 0x52b   : > { %v5361_v43 = vpop.f32.mrf.mxu2 }
 0x52c   : > { %v5362_v41 = vadd.f32 %v10736_v46, %v5361_v43  ;;  %v5219_v33 = vadd.f32 %v5218_v13, %v5145_v18 }
 0x52e   : > { %v5422_v40 = vmax.f32 %v5362_v41, 0.0  ;;  %v5256_v25 = vmax.f32 %v5219_v33, 0.0 }
 0x530   : > { %v5446_v21 = vpack.c.bf16 %v5422_v40, %v5421_v14 }
 0x531   : > { %v5146_v31 = vpop.f32.mrf.mxu0 }
 0x532   : > { %v5147_v55 = vadd.f32 %v10550_v2, %v5146_v31  ;;  %5539 = vmatmul.bf16.gmra.mxu3 %v5446_v21 }
 0x533   : > { %v5364_v39 = vpop.f32.mrf.mxu2 }
 0x534   : > { %v5221_v53 = vadd.f32 %v5220_v48, %v5147_v55  ;;  %v5365_v38 = vadd.f32 %v10736_v46, %v5364_v39 }
 0x536   : > { %v5257_v35 = vmax.f32 %v5221_v53, 0.0  ;;  %v5423_v1 = vmax.f32 %v5365_v38, 0.0 }
 0x538   : > { %v5273_v27 = vpack.c.bf16 %v5257_v35, %v5256_v25 }
 0x53a   : > { %5398 = vmatmul.bf16.gmra.mxu2 %v5273_v27 }
 0x53b   : > { %v5366_v19 = vpop.f32.mrf.mxu2 }
 0x53c   : > { %v5367_v17 = vadd.f32 %v10736_v46, %v5366_v19 }
 0x53e   : > { %v5424_v9 = vmax.f32 %v5367_v17, 0.0 }
 0x540   : > { %v5447_v12 = vpack.c.bf16 %v5424_v9, %v5423_v1 }
 0x542   : > { %5544 = vmatmul.bf16.gmra.mxu3 %v5447_v12 }
 0x543   : > { %v5369_v51 = vpop.f32.mrf.mxu2 }
 0x544   : > { %v5370_v58 = vadd.f32 %v10736_v46, %v5369_v51 }
 0x546   : > { %v5425_v37 = vmax.f32 %v5370_v58, 0.0 }
 0x54b   : > { %v5371_v59 = vpop.f32.mrf.mxu2 }
 0x54c   : > { %v5372_v36 = vadd.f32 %v10736_v46, %v5371_v59  ;;  %v10769_v59 = vld [vmem:[%s10876_s6] ss:$0 sm:$0xff] }
 0x54e   : > { %v5426_v16 = vmax.f32 %v5372_v36, 0.0 }
 0x550   : > { %v5448_v56 = vpack.c.bf16 %v5426_v16, %v5425_v37 }
 0x552   : > { %5549 = vmatmul.bf16.gmra.mxu3 %v5448_v56 }
 0x56d   : > { %v5374_v34 = vpop.f32.mrf.mxu2 }
 0x56e   : > { %v5375_v20 = vadd.f32 %v10736_v46, %v5374_v34 }
 0x570   : > { %v5223_v50 = vpop.f32.mrf.mxu1  ;;  %v5427_v52 = vmax.f32 %v5375_v20, 0.0 }
 0x571   : > { %v5149_v30 = vpop.f32.mrf.mxu0 }
 0x572   : > { %v5150_v22 = vadd.f32 %v10550_v2, %v5149_v30 }
 0x574   : > { %v5224_v62 = vadd.f32 %v5223_v50, %v5150_v22 }
 0x575   : > { %v5376_v3 = vpop.f32.mrf.mxu2 }
 0x576   : > { %v5377_v8 = vadd.f32 %v10736_v46, %v5376_v3  ;;  %v5258_v49 = vmax.f32 %v5224_v62, 0.0 }
 0x578   : > { %v5428_v28 = vmax.f32 %v5377_v8, 0.0  ;;  %v5225_v24 = vpop.f32.mrf.mxu1 }
 0x579   : > { %v5151_v44 = vpop.f32.mrf.mxu0 }
 0x57a   : > { %v5449_v60 = vpack.c.bf16 %v5428_v28, %v5427_v52  ;;  %v5152_v15 = vadd.f32 %v10550_v2, %v5151_v44 }
 0x57c   : > { %5554 = vmatmul.bf16.gmra.mxu3 %v5449_v60  ;;  %v5226_v61 = vadd.f32 %v5225_v24, %v5152_v15 }
 0x57d   : > { %v5379_v6 = vpop.f32.mrf.mxu2 }
 0x57e   : > { %v5259_v47 = vmax.f32 %v5226_v61, 0.0  ;;  %v5380_v32 = vadd.f32 %v10736_v46, %v5379_v6 }
 0x580   : > { %v5274_v54 = vpack.c.bf16 %v5259_v47, %v5258_v49  ;;  %v5228_v42 = vpop.f32.mrf.mxu1  ;;  %v5429_v4 = vmax.f32 %v5380_v32, 0.0 }
 0x581   : > { %v5154_v29 = vpop.f32.mrf.mxu0 }
 0x582   : > { %5403 = vmatmul.bf16.gmra.mxu2 %v5274_v54  ;;  %v5155_v5 = vadd.f32 %v10550_v2, %v5154_v29 }
 0x584   : > { %v5229_v7 = vadd.f32 %v5228_v42, %v5155_v5 }
 0x585   : > { %v5381_v63 = vpop.f32.mrf.mxu2 }
 0x586   : > { %v5382_v0 = vadd.f32 %v10736_v46, %v5381_v63  ;;  %v5260_v18 = vmax.f32 %v5229_v7, 0.0 }
 0x588   : > { %v5430_v26 = vmax.f32 %v5382_v0, 0.0  ;;  %v5230_v13 = vpop.f32.mrf.mxu1 }
 0x589   : > { %v5156_v10 = vpop.f32.mrf.mxu0 }
 0x58a   : > { %v5450_v11 = vpack.c.bf16 %v5430_v26, %v5429_v4  ;;  %v5157_v45 = vadd.f32 %v10550_v2, %v5156_v10 }
 0x58c   : > { %5559 = vmatmul.bf16.gmra.mxu3 %v5450_v11  ;;  %v5231_v23 = vadd.f32 %v5230_v13, %v5157_v45 }
 0x58d   : > { %v5384_v57 = vpop.f32.mrf.mxu2 }
 0x58e   : > { %v5261_v43 = vmax.f32 %v5231_v23, 0.0  ;;  %v5385_v31 = vadd.f32 %v10736_v46, %v5384_v57 }
 0x590   : > { %v5275_v41 = vpack.c.bf16 %v5261_v43, %v5260_v18  ;;  %v5431_v48 = vmax.f32 %v5385_v31, 0.0 }
 0x592   : > { %5408 = vmatmul.bf16.gmra.mxu2 %v5275_v41 }
 0x595   : > { %v5386_v14 = vpop.f32.mrf.mxu2  ;;  %v5233_v33 = vpop.f32.mrf.mxu1 }
 0x596   : > { %v5387_v40 = vadd.f32 %v10736_v46, %v5386_v14  ;;  %v5159_v55 = vpop.f32.mrf.mxu0 }
 0x597   : > { %v5160_v25 = vadd.f32 %v10550_v2, %v5159_v55 }
 0x598   : > { %v5432_v21 = vmax.f32 %v5387_v40, 0.0 }
 0x599   : > { %v5234_v27 = vadd.f32 %v5233_v33, %v5160_v25 }
 0x59a   : > { %v5451_v53 = vpack.c.bf16 %v5432_v21, %v5431_v48 }
 0x59b   : > { %v5262_v1 = vmax.f32 %v5234_v27, 0.0 }
 0x59c   : > { %5564 = vmatmul.bf16.gmra.mxu3 %v5451_v53 }
 0x59d   : > { %v5389_v35 = vpop.f32.mrf.mxu2  ;;  %v5235_v19 = vpop.f32.mrf.mxu1 }
 0x59e   : > { %v5161_v39 = vpop.f32.mrf.mxu0  ;;  %v5390_v12 = vadd.f32 %v10736_v46, %v5389_v35 }
 0x59f   : > { %v5162_v38 = vadd.f32 %v10550_v2, %v5161_v39 }
 0x5a0   : > { %v5433_v37 = vmax.f32 %v5390_v12, 0.0 }
 0x5a1   : > { %v5236_v17 = vadd.f32 %v5235_v19, %v5162_v38 }
 0x5a3   : > { %v5263_v9 = vmax.f32 %v5236_v17, 0.0 }
 0x5a5   : > { %v5391_v51 = vpop.f32.mrf.mxu2  ;;  %v5276_v58 = vpack.c.bf16 %v5263_v9, %v5262_v1  ;;  %v5535_v2 = vpop.f32.mrf.mxu3 }
 0x5a6   : > { %v5392_v36 = vadd.f32 %v10736_v46, %v5391_v51  ;;  %v5536_v56 = vadd.f32 %v10769_v59, %v5535_v2 }
 0x5a7   : > { %5413 = vmatmul.bf16.gmra.mxu2 %v5276_v58 }
 0x5a8   : > { %v5434_v16 = vmax.f32 %v5392_v36, 0.0  ;;  %5601 = vst.msk [vmem:[%s10777_s14] sm:$0xff] %vm5600_vm9, %v5536_v56 }
 0x5aa   : > { %v5452_v34 = vpack.c.bf16 %v5434_v16, %v5433_v37 }
 0x5ac   : > { %5569 = vmatmul.bf16.gmra.mxu3 %v5452_v34 }
 0x5ad   : > { %v5394_v50 = vpop.f32.mrf.mxu2  ;;  %v5537_v30 = vpop.f32.mrf.mxu3 }
 0x5ae   : > { %v5538_v20 = vadd.f32 %v10769_v59, %v5537_v30  ;;  %v5395_v3 = vadd.f32 %v10736_v46, %v5394_v50 }
 0x5b0   : > { %5602 = vst.msk [vmem:[%s10777_s14 + $0x8] sm:$0xff] %vm5600_vm9, %v5538_v20  ;;  %v5435_v52 = vmax.f32 %v5395_v3, 0.0 }
 0x5b5   : > { %v5396_v8 = vpop.f32.mrf.mxu2  ;;  %v5540_v24 = vpop.f32.mrf.mxu3 }
 0x5b6   : > { %v5397_v22 = vadd.f32 %v10736_v46, %v5396_v8  ;;  %v5541_v60 = vadd.f32 %v10769_v59, %v5540_v24 }
 0x5b8   : > { %v5436_v28 = vmax.f32 %v5397_v22, 0.0  ;;  %5603 = vst.msk [vmem:[%s10777_s14 + $0x10] sm:$0xff] %vm5600_vm9, %v5541_v60 }
 0x5ba   : > { %v5453_v44 = vpack.c.bf16 %v5436_v28, %v5435_v52 }
 0x5bc   : > { %5574 = vmatmul.bf16.gmra.mxu3 %v5453_v44 }
 0x5bd   : > { %v5399_v62 = vpop.f32.mrf.mxu2  ;;  %v5542_v15 = vpop.f32.mrf.mxu3 }
 0x5be   : > { %v5543_v6 = vadd.f32 %v10769_v59, %v5542_v15  ;;  %v5400_v61 = vadd.f32 %v10736_v46, %v5399_v62 }
 0x5c0   : > { %5604 = vst.msk [vmem:[%s10777_s14 + $0x18] sm:$0xff] %vm5600_vm9, %v5543_v6  ;;  %v5437_v54 = vmax.f32 %v5400_v61, 0.0 }
 0x5c5   : > { %v5401_v49 = vpop.f32.mrf.mxu2  ;;  %v5545_v29 = vpop.f32.mrf.mxu3 }
 0x5c6   : > { %v5402_v47 = vadd.f32 %v10736_v46, %v5401_v49  ;;  %v5546_v32 = vadd.f32 %v10769_v59, %v5545_v29 }
 0x5c8   : > { %v5438_v42 = vmax.f32 %v5402_v47, 0.0  ;;  %5605 = vst.msk [vmem:[%s10777_s14 + $0x20] sm:$0xff] %vm5600_vm9, %v5546_v32 }
 0x5ca   : > { %v5454_v63 = vpack.c.bf16 %v5438_v42, %v5437_v54 }
 0x5cc   : > { %5579 = vmatmul.bf16.gmra.mxu3 %v5454_v63 }
 0x5cd   : > { %v5547_v0 = vpop.f32.mrf.mxu3 }
 0x5ce   : > { %v5548_v5 = vadd.f32 %v10769_v59, %v5547_v0 }
 0x5d0   : > { %5606 = vst.msk [vmem:[%s10777_s14 + $0x28] sm:$0xff] %vm5600_vm9, %v5548_v5 }
 0x5d5   : > { %v5550_v4 = vpop.f32.mrf.mxu3 }
 0x5d6   : > { %v5551_v26 = vadd.f32 %v10769_v59, %v5550_v4 }
 0x5d8   : > { %5607 = vst.msk [vmem:[%s10777_s14 + $0x30] sm:$0xff] %vm5600_vm9, %v5551_v26 }
 0x5dd   : > { %v5552_v11 = vpop.f32.mrf.mxu3 }
 0x5de   : > { %v5553_v10 = vadd.f32 %v10769_v59, %v5552_v11 }
 0x5e0   : > { %5608 = vst.msk [vmem:[%s10777_s14 + $0x38] sm:$0xff] %vm5600_vm9, %v5553_v10 }
 0x5ff   : > { %v5555_v7 = vpop.f32.mrf.mxu3 }
 0x600   : > { %v5556_v45 = vadd.f32 %v10769_v59, %v5555_v7 }
 0x602   : > { %5609 = vst.msk [vmem:[%s10777_s14 + $0x40] sm:$0xff] %vm5600_vm9, %v5556_v45 }
 0x605   : > { %v5404_v13 = vpop.f32.mrf.mxu2 }
 0x606   : > { %v5405_v18 = vadd.f32 %v10736_v46, %v5404_v13 }
 0x607   : > { %v5557_v57 = vpop.f32.mrf.mxu3 }
 0x608   : > { %v5558_v23 = vadd.f32 %v10769_v59, %v5557_v57  ;;  %v5439_v40 = vmax.f32 %v5405_v18, 0.0 }
 0x60a   : > { %5610 = vst.msk [vmem:[%s10777_s14 + $0x48] sm:$0xff] %vm5600_vm9, %v5558_v23 }
 0x60d   : > { %v5406_v43 = vpop.f32.mrf.mxu2 }
 0x60e   : > { %v5407_v31 = vadd.f32 %v10736_v46, %v5406_v43 }
 0x60f   : > { %v5560_v41 = vpop.f32.mrf.mxu3 }
 0x610   : > { %v5561_v14 = vadd.f32 %v10769_v59, %v5560_v41  ;;  %v5440_v33 = vmax.f32 %v5407_v31, 0.0 }
 0x612   : > { %5611 = vst.msk [vmem:[%s10777_s14 + $0x50] sm:$0xff] %vm5600_vm9, %v5561_v14  ;;  %v5455_v55 = vpack.c.bf16 %v5440_v33, %v5439_v40 }
 0x614   : > { %5584 = vmatmul.bf16.gmra.mxu3 %v5455_v55 }
 0x615   : > { %v5409_v48 = vpop.f32.mrf.mxu2 }
 0x616   : > { %v5410_v25 = vadd.f32 %v10736_v46, %v5409_v48 }
 0x617   : > { %v5562_v21 = vpop.f32.mrf.mxu3 }
 0x618   : > { %v5563_v53 = vadd.f32 %v10769_v59, %v5562_v21  ;;  %v5441_v19 = vmax.f32 %v5410_v25, 0.0 }
 0x61a   : > { %5612 = vst.msk [vmem:[%s10777_s14 + $0x58] sm:$0xff] %vm5600_vm9, %v5563_v53 }
 0x61d   : > { %v5411_v35 = vpop.f32.mrf.mxu2 }
 0x61e   : > { %v5412_v27 = vadd.f32 %v10736_v46, %v5411_v35 }
 0x61f   : > { %v5565_v39 = vpop.f32.mrf.mxu3 }
 0x620   : > { %v5566_v38 = vadd.f32 %v10769_v59, %v5565_v39  ;;  %v5442_v17 = vmax.f32 %v5412_v27, 0.0 }
 0x622   : > { %5613 = vst.msk [vmem:[%s10777_s14 + $0x60] sm:$0xff] %vm5600_vm9, %v5566_v38  ;;  %v5456_v1 = vpack.c.bf16 %v5442_v17, %v5441_v19 }
 0x624   : > { %5589 = vmatmul.bf16.gmra.mxu3 %v5456_v1 }
 0x627   : > { %v5567_v9 = vpop.f32.mrf.mxu3 }
 0x628   : > { %v5568_v12 = vadd.f32 %v10769_v59, %v5567_v9 }
 0x62a   : > { %5614 = vst.msk [vmem:[%s10777_s14 + $0x68] sm:$0xff] %vm5600_vm9, %v5568_v12  ;;  %v5414_v51 = vpop.f32.mrf.mxu2 }
 0x62b   : > { %v5415_v37 = vadd.f32 %v10736_v46, %v5414_v51 }
 0x62d   : > { %v5443_v56 = vmax.f32 %v5415_v37, 0.0 }
 0x62f   : > { %v5570_v58 = vpop.f32.mrf.mxu3 }
 0x630   : > { %v5571_v36 = vadd.f32 %v10769_v59, %v5570_v58 }
 0x632   : > { %5615 = vst.msk [vmem:[%s10777_s14 + $0x70] sm:$0xff] %vm5600_vm9, %v5571_v36  ;;  %v5416_v16 = vpop.f32.mrf.mxu2 }
 0x633   : > { %v5417_v2 = vadd.f32 %v10736_v46, %v5416_v16 }
 0x635   : > { %v5444_v34 = vmax.f32 %v5417_v2, 0.0 }
 0x637   : > { %v5572_v50 = vpop.f32.mrf.mxu3  ;;  %v5457_v30 = vpack.c.bf16 %v5444_v34, %v5443_v56 }
 0x638   : > { %v5573_v20 = vadd.f32 %v10769_v59, %v5572_v50 }
 0x639   : > { %5594 = vmatmul.bf16.gmra.mxu3 %v5457_v30 }
 0x63a   : > { %5616 = vst.msk [vmem:[%s10777_s14 + $0x78] sm:$0xff] %vm5600_vm9, %v5573_v20 }
 0x63f   : > { %v5575_v3 = vpop.f32.mrf.mxu3 }
 0x640   : > { %v5576_v8 = vadd.f32 %v10769_v59, %v5575_v3 }
 0x642   : > { %5617 = vst.msk [vmem:[%s10777_s14 + $0x80] sm:$0xff] %vm5600_vm9, %v5576_v8 }
 0x647   : > { %v5577_v22 = vpop.f32.mrf.mxu3 }
 0x648   : > { %v5578_v46 = vadd.f32 %v10769_v59, %v5577_v22 }
 0x64a   : > { %5618 = vst.msk [vmem:[%s10777_s14 + $0x88] sm:$0xff] %vm5600_vm9, %v5578_v46 }
 0x64f   : > { %v5580_v52 = vpop.f32.mrf.mxu3 }
 0x650   : > { %v5581_v28 = vadd.f32 %v10769_v59, %v5580_v52 }
 0x652   : > { %5619 = vst.msk [vmem:[%s10777_s14 + $0x90] sm:$0xff] %vm5600_vm9, %v5581_v28 }
 0x657   : > { %v5582_v24 = vpop.f32.mrf.mxu3 }
 0x658   : > { %v5583_v60 = vadd.f32 %v10769_v59, %v5582_v24 }
 0x65a   : > { %5620 = vst.msk [vmem:[%s10777_s14 + $0x98] sm:$0xff] %vm5600_vm9, %v5583_v60 }
 0x697   : > { %v5585_v44 = vpop.f32.mrf.mxu3 }
 0x698   : > { %v5586_v62 = vadd.f32 %v10769_v59, %v5585_v44 }
 0x69a   : > { %5621 = vst.msk [vmem:[%s10777_s14 + $0xa0] sm:$0xff] %vm5600_vm9, %v5586_v62 }
 0x69f   : > { %v5587_v15 = vpop.f32.mrf.mxu3 }
 0x6a0   : > { %v5588_v6 = vadd.f32 %v10769_v59, %v5587_v15 }
 0x6a2   : > { %5622 = vst.msk [vmem:[%s10777_s14 + $0xa8] sm:$0xff] %vm5600_vm9, %v5588_v6 }
 0x6a7   : > { %v5590_v61 = vpop.f32.mrf.mxu3 }
 0x6a8   : > { %v5591_v49 = vadd.f32 %v10769_v59, %v5590_v61 }
 0x6aa   : > { %5623 = vst.msk [vmem:[%s10777_s14 + $0xb0] sm:$0xff] %vm5600_vm9, %v5591_v49 }
 0x6af   : > { %v5592_v47 = vpop.f32.mrf.mxu3 }
 0x6b0   : > { %v5593_v54 = vadd.f32 %v10769_v59, %v5592_v47 }
 0x6b2   : > { %5624 = vst.msk [vmem:[%s10777_s14 + $0xb8] sm:$0xff] %vm5600_vm9, %v5593_v54 }
 0x6bc   : > { %v5595_v42 = vpop.f32.mrf.mxu3 }
 0x6bd   : > { %v5596_v29 = vadd.f32 %v10769_v59, %v5595_v42 }
 0x6bf   : > { %5625 = vst.msk [vmem:[%s10777_s14 + $0xc0] sm:$0xff] %vm5600_vm9, %v5596_v29 }
 0x6c4   : > { %v5597_v32 = vpop.f32.mrf.mxu3 }
 0x6c5   : > { %v5598_v63 = vadd.f32 %v10769_v59, %v5597_v32 }
 0x6c7   : > { %5626 = vst.msk [vmem:[%s10777_s14 + $0xc8] sm:$0xff] %vm5600_vm9, %v5598_v63 }
 0x6c8 PF: > { %s17_s24 = sadd.s32 1, %s6047_s24  }
 0x6c9   : > { %p14_p4 = scmp.ge.s32.totalorder %s17_s24, 7  }
 0x6cb   :  { %16 = sbr.rel (!%p14_p4) target bundleno = 1 (0x1), region = 78 }

</bundles_post_ra>
